<compile_context>
chip_gen: v5e
topology: v5e:2x2
jax: 0.10.0
libtpu: 0.0.40
codegen_flags: <defaults>
</compile_context>

<pallas_src>
import functools

import jax
import jax.numpy as jnp
from jax import lax
from jax.experimental import pallas as pl
from jax.experimental.pallas import tpu as pltpu


# ----------------------------------------------------------------------------
# Fused kernel: conv3x3_ocr -> aux_head -> SpatialGather -> ObjectAttention ->
#               SpatialOCR conv_bn -> cls_head     (one batch element per step)
# ----------------------------------------------------------------------------

def _ocr_fused_kernel(xp_ref, w3_ref, wa1_ref, wa2_ref, wu_ref, wcls_ref,
                      w_mk_ref, w_kk_ref, w_mm_ref,
                      ss_key_ref, ss_mid_ref, ss_high_ref,
                      col_mid_ref, col_cls_ref,
                      aux_ref, cls_ref, ocr_ref,
                      im2col_ref, *, H, W, pad, inv_sqrt_key):
    HW = H * W
    Cin = xp_ref.shape[2]

    # ---------------- conv3x3_ocr: im2col-in-VMEM + one MXU dot ----------------
    col = lax.broadcasted_iota(jnp.int32, (HW, 1), 0) % W
    valid_m1 = col >= 1            # taps with dx = -1 (masks hoisted, reused)
    valid_p1 = col <= W - 2        # taps with dx = +1
    for ky in range(3):
        for kx in range(3):
            dx = kx - 1
            off = (ky - 1) * W + dx
            t = ky * 3 + kx
            tap = xp_ref[0, pad + off:pad + off + HW, :].astype(jnp.bfloat16)
            if dx == -1:
                tap = jnp.where(valid_m1, tap, jnp.zeros_like(tap))
            elif dx == 1:
                tap = jnp.where(valid_p1, tap, jnp.zeros_like(tap))
            im2col_ref[:, t * Cin:(t + 1) * Cin] = tap
    s3 = ss_mid_ref[0:1, :]
    t3 = ss_mid_ref[1:2, :]
    feats_f32 = jnp.dot(im2col_ref[...], w3_ref[...],
                        preferred_element_type=jnp.float32)
    feats_f32 = jnp.maximum(feats_f32 * s3 + t3, 0.0)           # (HW, mid) f32
    feats = feats_f32.astype(jnp.bfloat16)

    # ---------------- aux_head: class-major logits (K, HW) --------------------
    x0 = xp_ref[0, pad:pad + HW, :].astype(jnp.bfloat16)        # (HW, Cin)
    h = jnp.dot(x0, wa1_ref[...], preferred_element_type=jnp.float32)
    h = jnp.maximum(h * ss_high_ref[0:1, :] + ss_high_ref[1:2, :], 0.0
                    ).astype(jnp.bfloat16)
    aux = lax.dot_general(wa2_ref[...], h,                       # (K, HW) f32
                          dimension_numbers=(((1,), (1,)), ((), ())),
                          preferred_element_type=jnp.float32)
    aux = aux + col_cls_ref[:, 0:1]
    aux_ref[0] = aux                                             # lane-dense store

    # ------------- SpatialGather: lane softmax + one MXU contraction ----------
    m = jnp.max(aux, axis=-1, keepdims=True)
    e = jnp.exp(aux - m)
    probs = e / jnp.sum(e, axis=-1, keepdims=True)               # exact division
    ctx = jnp.dot(probs.astype(jnp.bfloat16), feats,
                  preferred_element_type=jnp.float32).astype(jnp.bfloat16)  # (K, mid)

    # ---------------- ObjectAttentionBlock ------------------------------------
    def cbr(a, w, s, t):  # 1x1 conv + folded BN + ReLU, bf16 out
        y = jnp.dot(a, w, preferred_element_type=jnp.float32)
        return jnp.maximum(y * s + t, 0.0).astype(jnp.bfloat16)

    q = cbr(cbr(feats, w_mk_ref[0], ss_key_ref[0:1, :], ss_key_ref[1:2, :]),
            w_kk_ref[0], ss_key_ref[2:3, :], ss_key_ref[3:4, :])    # (HW, key)
    k = cbr(cbr(ctx, w_mk_ref[1], ss_key_ref[4:5, :], ss_key_ref[5:6, :]),
            w_kk_ref[1], ss_key_ref[6:7, :], ss_key_ref[7:8, :])    # (K,  key)
    v = cbr(ctx, w_mk_ref[2], ss_key_ref[8:9, :], ss_key_ref[9:10, :])  # (K, key)

    sim = lax.dot_general(q, k, dimension_numbers=(((1,), (1,)), ((), ())),
                          preferred_element_type=jnp.float32) * inv_sqrt_key
    sim = sim - jnp.max(sim, axis=-1, keepdims=True)
    e2 = jnp.exp(sim)
    p = (e2 / jnp.sum(e2, axis=-1, keepdims=True)).astype(jnp.bfloat16)  # (HW, K)
    attn = jnp.dot(p, v, preferred_element_type=jnp.float32)             # (HW, key)
    up = cbr(attn.astype(jnp.bfloat16), wu_ref[...],
             ss_mid_ref[2:3, :], ss_mid_ref[3:4, :])                     # (HW, mid)

    # --------- SpatialOCR conv_bn (concat-free), channel-major output ---------
    # cat([context, feats], C) @ W^T  ==  W[:, :mid] acting on 'up' + W[:, mid:]
    # acting on 'feats'; computed directly in (mid_out, HW) orientation.
    ocr_cm = (lax.dot_general(w_mm_ref[0], up,
                              dimension_numbers=(((1,), (1,)), ((), ())),
                              preferred_element_type=jnp.float32)
              + lax.dot_general(w_mm_ref[1], feats,
                                dimension_numbers=(((1,), (1,)), ((), ())),
                                preferred_element_type=jnp.float32))
    ocr_cm = jnp.maximum(ocr_cm * col_mid_ref[:, 0:1] + col_mid_ref[:, 1:2], 0.0)
    ocr_ref[0] = ocr_cm                                          # (mid, HW) f32

    # ---------------- cls_head: class-major (K, HW), bias only ----------------
    cls_ref[0] = (jnp.dot(wcls_ref[...], ocr_cm.astype(jnp.bfloat16),
                          preferred_element_type=jnp.float32)
                  + col_cls_ref[:, 1:2])


_WEIGHT_NAMES = ["w3", "wa1", "wa2", "wu", "wcls",
                 "w_mk", "w_kk", "w_mm",
                 "ss_key", "ss_mid", "ss_high", "col_mid", "col_cls"]


def ocr_block_forward(x_nchw, params, mid_ch, key_ch, num_classes):
    N, Cin, H, W = x_nchw.shape
    HW = H * W
    pad = W + 8                                   # >= W+1, keeps rows 8-aligned
    # single layout change at the module boundary: NCHW -> flattened row-major NHWC
    x_flat = (jnp.transpose(x_nchw, (0, 2, 3, 1))
              .astype(jnp.float32).reshape(N, HW, Cin))
    xp = jnp.pad(x_flat, ((0, 0), (pad, pad), (0, 0)))
    HWP = HW + 2 * pad

    w_args = [params[n] for n in _WEIGHT_NAMES]

    def full_block(arr):
        return pl.BlockSpec(arr.shape, lambda b, _n=arr.ndim: (0,) * _n)

    def batch_block(shape):
        return pl.BlockSpec(shape, lambda b: (b, 0, 0))

    aux, cls, ocr = pl.pallas_call(
        functools.partial(_ocr_fused_kernel, H=H, W=W, pad=pad,
                          inv_sqrt_key=float(key_ch) ** -0.5),
        out_shape=(jax.ShapeDtypeStruct((N, num_classes, HW), jnp.float32),
                   jax.ShapeDtypeStruct((N, num_classes, HW), jnp.float32),
                   jax.ShapeDtypeStruct((N, mid_ch, HW), jnp.float32)),
        grid_spec=pltpu.PrefetchScalarGridSpec(
            num_scalar_prefetch=0,
            grid=(N,),
            in_specs=[batch_block((1, HWP, Cin))]
                     + [full_block(a) for a in w_args],
            out_specs=(batch_block((1, num_classes, HW)),
                       batch_block((1, num_classes, HW)),
                       batch_block((1, mid_ch, HW))),
            scratch_shapes=[pltpu.VMEM((HW, 9 * Cin), jnp.bfloat16)],
        ),
        compiler_params=pltpu.CompilerParams(
            dimension_semantics=("parallel",)),
    )(xp, *w_args)

    # class-/channel-major kernel outputs -> NCHW via pure reshapes (no transposes)
    cls_out = cls.reshape(N, num_classes, H, W)
    aux_out = aux.reshape(N, num_classes, H, W)
    ocr_out = ocr.reshape(N, mid_ch, H, W)
    return cls_out, aux_out, ocr_out


# ----------------------------------------------------------------------------
# Deterministic parameter construction (eval-mode BN folded into scale/shift)
# ----------------------------------------------------------------------------

def _bn_fold(key, ch, conv_bias=None, eps=1e-5):
    k1, k2, k3, k4 = jax.random.split(key, 4)
    gamma = 1.0 + 0.1 * jax.random.normal(k1, (ch,), jnp.float32)
    beta = 0.1 * jax.random.normal(k2, (ch,), jnp.float32)
    rmean = 0.1 * jax.random.normal(k3, (ch,), jnp.float32)
    rvar = 1.0 + 0.1 * jax.random.uniform(k4, (ch,), jnp.float32)
    s = gamma / jnp.sqrt(rvar + eps)
    b = conv_bias if conv_bias is not None else jnp.zeros((ch,), jnp.float32)
    t = (b - rmean) * s + beta
    return s, t                                            # 1-D (ch,)


def _w(key, shape, fan_in):
    return (jax.random.normal(key, shape, jnp.float32)
            * (2.0 / fan_in) ** 0.5).astype(jnp.bfloat16)


def make_params(high_ch, mid_ch, key_ch, num_classes, seed=0):
    keys = iter(jax.random.split(jax.random.PRNGKey(seed), 64))
    p = {}
    # conv3x3_ocr: Conv3x3(high->mid, bias=True) + BN + ReLU.
    # Tap-major layout: row t*Cin+c of w3 <-> torch weight[:, c, ky, kx], t=ky*3+kx.
    w3 = _w(next(keys), (3, 3, high_ch, mid_ch), 9 * high_ch)
    b3 = 0.1 * jax.random.normal(next(keys), (mid_ch,), jnp.float32)
    p["w3"] = w3.reshape(9 * high_ch, mid_ch)
    s3, t3 = _bn_fold(next(keys), mid_ch, b3)
    # aux_head: Conv1x1(high->high, bias)+BN+ReLU ; Conv1x1(high->K, bias)
    ba1 = 0.1 * jax.random.normal(next(keys), (high_ch,), jnp.float32)
    p["wa1"] = _w(next(keys), (high_ch, high_ch), high_ch)        # (in, out)
    sa1, ta1 = _bn_fold(next(keys), high_ch, ba1)
    p["wa2"] = _w(next(keys), (num_classes, high_ch), high_ch)    # class-major (out, in)
    ba2 = 0.1 * jax.random.normal(next(keys), (num_classes,), jnp.float32)
    # ObjectAttentionBlock 1x1 convs (no bias) + BN + ReLU, stored (in, out)
    wp1 = _w(next(keys), (mid_ch, key_ch), mid_ch); sp1, tp1 = _bn_fold(next(keys), key_ch)
    wp2 = _w(next(keys), (key_ch, key_ch), key_ch); sp2, tp2 = _bn_fold(next(keys), key_ch)
    wo1 = _w(next(keys), (mid_ch, key_ch), mid_ch); so1, to1 = _bn_fold(next(keys), key_ch)
    wo2 = _w(next(keys), (key_ch, key_ch), key_ch); so2, to2 = _bn_fold(next(keys), key_ch)
    wd = _w(next(keys), (mid_ch, key_ch), mid_ch); sd, td = _bn_fold(next(keys), key_ch)
    p["wu"] = _w(next(keys), (key_ch, mid_ch), key_ch)
    su, tu = _bn_fold(next(keys), mid_ch)
    # SpatialOCR conv_bn_dropout: Conv1x1(2*mid->mid, no bias)+BN+ReLU (+Dropout=id).
    # Torch weight (mid_out, 2*mid_in) split on input channels:
    #   half 'a' acts on the attention context (f_up output), half 'b' on feats.
    # Stored output-major (mid_out, mid_in) for the channel-major in-kernel dots.
    wcba = _w(next(keys), (mid_ch, mid_ch), 2 * mid_ch)
    wcbb = _w(next(keys), (mid_ch, mid_ch), 2 * mid_ch)
    scb, tcb = _bn_fold(next(keys), mid_ch)
    # cls_head: Conv1x1(mid->K, bias=True), class-major (out, in)
    p["wcls"] = _w(next(keys), (num_classes, mid_ch), mid_ch)
    bcls = 0.1 * jax.random.normal(next(keys), (num_classes,), jnp.float32)

    # ---- packed operand slabs (fewer DMA descriptors / VMEM slots) ----
    p["w_mk"] = jnp.stack([wp1, wo1, wd])                   # (3, mid, key) bf16
    p["w_kk"] = jnp.stack([wp2, wo2])                       # (2, key, key) bf16
    p["w_mm"] = jnp.stack([wcba, wcbb])                     # (2, mid, mid) bf16
    p["ss_key"] = jnp.stack([sp1, tp1, sp2, tp2, so1, to1,
                             so2, to2, sd, td])             # (10, key) f32
    p["ss_mid"] = jnp.stack([s3, t3, su, tu])               # (4, mid) f32
    p["ss_high"] = jnp.stack([sa1, ta1])                    # (2, high) f32
    p["col_mid"] = jnp.stack([scb, tcb], axis=-1)           # (mid, 2) f32 columns
    p["col_cls"] = jnp.stack([ba2, bcls], axis=-1)          # (K, 2)  f32 columns
    return p


# ----------------------------------------------------------------------------
# Main
# ----------------------------------------------------------------------------

if __name__ == "__main__":
    N, HIGH_CH, H, W = 2, 32, 16, 16
    MID_CH, KEY_CH, NUM_CLASSES = 64, 32, 8

    x = jax.random.normal(jax.random.PRNGKey(0), (N, HIGH_CH, H, W), jnp.float32)
    params = make_params(HIGH_CH, MID_CH, KEY_CH, NUM_CLASSES, seed=0)

    fwd = jax.jit(functools.partial(ocr_block_forward, mid_ch=MID_CH,
                                    key_ch=KEY_CH, num_classes=NUM_CLASSES))
    cls_out, aux_out, ocr_feats = fwd(x, params)
    jax.block_until_ready((cls_out, aux_out, ocr_feats))

    assert cls_out.shape == (N, NUM_CLASSES, H, W)
    assert aux_out.shape == (N, NUM_CLASSES, H, W)
    assert ocr_feats.shape == (N, MID_CH, H, W)
    print("KERNEL_OK")
</pallas_src>

<mosaic_0001>
module attributes {stable_mosaic.version = 11 : i64} {
  func.func @_ocr_fused_kernel(%arg0: i32, %arg1: memref<1x304x32xf32, #tpu.memory_space<vmem>>, %arg2: memref<288x64xbf16, #tpu.memory_space<vmem>>, %arg3: memref<32x32xbf16, #tpu.memory_space<vmem>>, %arg4: memref<8x32xbf16, #tpu.memory_space<vmem>>, %arg5: memref<32x64xbf16, #tpu.memory_space<vmem>>, %arg6: memref<8x64xbf16, #tpu.memory_space<vmem>>, %arg7: memref<3x64x32xbf16, #tpu.memory_space<vmem>>, %arg8: memref<2x32x32xbf16, #tpu.memory_space<vmem>>, %arg9: memref<2x64x64xbf16, #tpu.memory_space<vmem>>, %arg10: memref<10x32xf32, #tpu.memory_space<vmem>>, %arg11: memref<4x64xf32, #tpu.memory_space<vmem>>, %arg12: memref<2x32xf32, #tpu.memory_space<vmem>>, %arg13: memref<64x2xf32, #tpu.memory_space<vmem>>, %arg14: memref<8x2xf32, #tpu.memory_space<vmem>>, %arg15: memref<1x8x256xf32, #tpu.memory_space<vmem>>, %arg16: memref<1x8x256xf32, #tpu.memory_space<vmem>>, %arg17: memref<1x64x256xf32, #tpu.memory_space<vmem>>, %arg18: memref<256x288xbf16, #tpu.memory_space<vmem>>) attributes {dimension_semantics = [#tpu.dimension_semantics<parallel>], iteration_bounds = array<i64: 2>, scalar_prefetch = 0 : i64, scratch_operands = 1 : i64, tpu.core_type = #tpu.core_type<tc>, window_params = [{transform_indices = @transform_0, window_bounds = array<i64: 1, 304, 32>}, {pipeline_mode = #tpu.pipeline_mode<synchronous>, transform_indices = @transform_1, window_bounds = array<i64: 288, 64>}, {pipeline_mode = #tpu.pipeline_mode<synchronous>, transform_indices = @transform_2, window_bounds = array<i64: 32, 32>}, {pipeline_mode = #tpu.pipeline_mode<synchronous>, transform_indices = @transform_3, window_bounds = array<i64: 8, 32>}, {pipeline_mode = #tpu.pipeline_mode<synchronous>, transform_indices = @transform_4, window_bounds = array<i64: 32, 64>}, {pipeline_mode = #tpu.pipeline_mode<synchronous>, transform_indices = @transform_5, window_bounds = array<i64: 8, 64>}, {pipeline_mode = #tpu.pipeline_mode<synchronous>, transform_indices = @transform_6, window_bounds = array<i64: 3, 64, 32>}, {pipeline_mode = #tpu.pipeline_mode<synchronous>, transform_indices = @transform_7, window_bounds = array<i64: 2, 32, 32>}, {pipeline_mode = #tpu.pipeline_mode<synchronous>, transform_indices = @transform_8, window_bounds = array<i64: 2, 64, 64>}, {pipeline_mode = #tpu.pipeline_mode<synchronous>, transform_indices = @transform_9, window_bounds = array<i64: 10, 32>}, {pipeline_mode = #tpu.pipeline_mode<synchronous>, transform_indices = @transform_10, window_bounds = array<i64: 4, 64>}, {pipeline_mode = #tpu.pipeline_mode<synchronous>, transform_indices = @transform_11, window_bounds = array<i64: 2, 32>}, {pipeline_mode = #tpu.pipeline_mode<synchronous>, transform_indices = @transform_12, window_bounds = array<i64: 64, 2>}, {pipeline_mode = #tpu.pipeline_mode<synchronous>, transform_indices = @transform_13, window_bounds = array<i64: 8, 2>}, {transform_indices = @transform_14, window_bounds = array<i64: 1, 8, 256>}, {transform_indices = @transform_15, window_bounds = array<i64: 1, 8, 256>}, {transform_indices = @transform_16, window_bounds = array<i64: 1, 64, 256>}]} {
    %0 = tpu.iota {dimensions = array<i32: 0>} : vector<256x1xi32>
    %c16_i32 = arith.constant 16 : i32
    %c0_i32 = arith.constant 0 : i32
    %1 = arith.cmpi eq, %c16_i32, %c0_i32 : i32
    %c1_i32 = arith.constant 1 : i32
    %2 = arith.select %1, %c1_i32, %c16_i32 : i32
    %3 = vector.broadcast %2 : i32 to vector<256x1xi32>
    %4 = arith.remsi %0, %3 : vector<256x1xi32>
    %c0_i32_0 = arith.constant 0 : i32
    %5 = vector.broadcast %c0_i32_0 : i32 to vector<256x1xi32>
    %6 = arith.cmpi ne, %4, %5 : vector<256x1xi32>
    %c0_i32_1 = arith.constant 0 : i32
    %7 = vector.broadcast %c0_i32_1 : i32 to vector<256x1xi32>
    %8 = arith.cmpi slt, %4, %7 : vector<256x1xi32>
    %c0_i32_2 = arith.constant 0 : i32
    %9 = arith.cmpi slt, %2, %c0_i32_2 : i32
    %10 = vector.broadcast %9 : i1 to vector<256x1xi1>
    %11 = vector.broadcast %10 : vector<256x1xi1> to vector<256x1xi1>
    %12 = arith.xori %8, %11 : vector<256x1xi1>
    %13 = arith.andi %12, %6 : vector<256x1xi1>
    %14 = vector.broadcast %2 : i32 to vector<256x1xi32>
    %15 = arith.addi %4, %14 : vector<256x1xi32>
    %16 = arith.select %13, %15, %4 : vector<256x1xi1>, vector<256x1xi32>
    %c1_i32_3 = arith.constant 1 : i32
    %17 = vector.broadcast %c1_i32_3 : i32 to vector<256x1xi32>
    %18 = arith.cmpi sge, %16, %17 : vector<256x1xi32>
    %c14_i32 = arith.constant 14 : i32
    %19 = vector.broadcast %c14_i32 : i32 to vector<256x1xi32>
    %20 = arith.cmpi sle, %16, %19 : vector<256x1xi32>
    %c0 = arith.constant 0 : index
    %c7 = arith.constant 7 : index
    %c0_4 = arith.constant 0 : index
    %21 = vector.load %arg1[%c0, %c7, %c0_4] : memref<1x304x32xf32, #tpu.memory_space<vmem>>, vector<1x256x32xf32>
    %22 = vector.shape_cast %21 : vector<1x256x32xf32> to vector<256x32xf32>
    %23 = arith.truncf %22 : vector<256x32xf32> to vector<256x32xbf16>
    %cst = arith.constant 0.000000e+00 : bf16
    %24 = vector.broadcast %cst : bf16 to vector<256x32xbf16>
    %25 = vector.shape_cast %18 : vector<256x1xi1> to vector<256x1xi1>
    %26 = vector.broadcast %25 : vector<256x1xi1> to vector<256x32xi1>
    %27 = arith.select %26, %23, %24 : vector<256x32xi1>, vector<256x32xbf16>
    %c0_5 = arith.constant 0 : index
    %c0_6 = arith.constant 0 : index
    %28 = vector.load %arg18[%c0_5, %c0_6] : memref<256x288xbf16, #tpu.memory_space<vmem>>, vector<256x32xbf16>
    tpu.vector_store %arg18[%c0_5, %c0_6], %27 {strides = array<i32>} : memref<256x288xbf16, #tpu.memory_space<vmem>>, vector<256x32xbf16>,
    %c0_7 = arith.constant 0 : index
    %c8 = arith.constant 8 : index
    %c0_8 = arith.constant 0 : index
    %29 = vector.load %arg1[%c0_7, %c8, %c0_8] : memref<1x304x32xf32, #tpu.memory_space<vmem>>, vector<1x256x32xf32>
    %30 = vector.shape_cast %29 : vector<1x256x32xf32> to vector<256x32xf32>
    %31 = arith.truncf %30 : vector<256x32xf32> to vector<256x32xbf16>
    %c0_9 = arith.constant 0 : index
    %c32 = arith.constant 32 : index
    %32 = vector.load %arg18[%c0_9, %c32] : memref<256x288xbf16, #tpu.memory_space<vmem>>, vector<256x32xbf16>
    tpu.vector_store %arg18[%c0_9, %c32], %31 {strides = array<i32>} : memref<256x288xbf16, #tpu.memory_space<vmem>>, vector<256x32xbf16>,
    %c0_10 = arith.constant 0 : index
    %c9 = arith.constant 9 : index
    %c0_11 = arith.constant 0 : index
    %33 = vector.load %arg1[%c0_10, %c9, %c0_11] : memref<1x304x32xf32, #tpu.memory_space<vmem>>, vector<1x256x32xf32>
    %34 = vector.shape_cast %33 : vector<1x256x32xf32> to vector<256x32xf32>
    %35 = arith.truncf %34 : vector<256x32xf32> to vector<256x32xbf16>
    %cst_12 = arith.constant 0.000000e+00 : bf16
    %36 = vector.broadcast %cst_12 : bf16 to vector<256x32xbf16>
    %37 = vector.shape_cast %20 : vector<256x1xi1> to vector<256x1xi1>
    %38 = vector.broadcast %37 : vector<256x1xi1> to vector<256x32xi1>
    %39 = arith.select %38, %35, %36 : vector<256x32xi1>, vector<256x32xbf16>
    %c0_13 = arith.constant 0 : index
    %c64 = arith.constant 64 : index
    %40 = vector.load %arg18[%c0_13, %c64] : memref<256x288xbf16, #tpu.memory_space<vmem>>, vector<256x32xbf16>
    tpu.vector_store %arg18[%c0_13, %c64], %39 {strides = array<i32>} : memref<256x288xbf16, #tpu.memory_space<vmem>>, vector<256x32xbf16>,
    %c0_14 = arith.constant 0 : index
    %c23 = arith.constant 23 : index
    %c0_15 = arith.constant 0 : index
    %41 = vector.load %arg1[%c0_14, %c23, %c0_15] : memref<1x304x32xf32, #tpu.memory_space<vmem>>, vector<1x256x32xf32>
    %42 = vector.shape_cast %41 : vector<1x256x32xf32> to vector<256x32xf32>
    %43 = arith.truncf %42 : vector<256x32xf32> to vector<256x32xbf16>
    %cst_16 = arith.constant 0.000000e+00 : bf16
    %44 = vector.broadcast %cst_16 : bf16 to vector<256x32xbf16>
    %45 = vector.shape_cast %18 : vector<256x1xi1> to vector<256x1xi1>
    %46 = vector.broadcast %45 : vector<256x1xi1> to vector<256x32xi1>
    %47 = arith.select %46, %43, %44 : vector<256x32xi1>, vector<256x32xbf16>
    %c0_17 = arith.constant 0 : index
    %c96 = arith.constant 96 : index
    %48 = vector.load %arg18[%c0_17, %c96] : memref<256x288xbf16, #tpu.memory_space<vmem>>, vector<256x32xbf16>
    tpu.vector_store %arg18[%c0_17, %c96], %47 {strides = array<i32>} : memref<256x288xbf16, #tpu.memory_space<vmem>>, vector<256x32xbf16>,
    %c0_18 = arith.constant 0 : index
    %c24 = arith.constant 24 : index
    %c0_19 = arith.constant 0 : index
    %49 = vector.load %arg1[%c0_18, %c24, %c0_19] : memref<1x304x32xf32, #tpu.memory_space<vmem>>, vector<1x256x32xf32>
    %50 = vector.shape_cast %49 : vector<1x256x32xf32> to vector<256x32xf32>
    %51 = arith.truncf %50 : vector<256x32xf32> to vector<256x32xbf16>
    %c0_20 = arith.constant 0 : index
    %c128 = arith.constant 128 : index
    %52 = vector.load %arg18[%c0_20, %c128] : memref<256x288xbf16, #tpu.memory_space<vmem>>, vector<256x32xbf16>
    tpu.vector_store %arg18[%c0_20, %c128], %51 {strides = array<i32>} : memref<256x288xbf16, #tpu.memory_space<vmem>>, vector<256x32xbf16>,
    %c0_21 = arith.constant 0 : index
    %c25 = arith.constant 25 : index
    %c0_22 = arith.constant 0 : index
    %53 = vector.load %arg1[%c0_21, %c25, %c0_22] : memref<1x304x32xf32, #tpu.memory_space<vmem>>, vector<1x256x32xf32>
    %54 = vector.shape_cast %53 : vector<1x256x32xf32> to vector<256x32xf32>
    %55 = arith.truncf %54 : vector<256x32xf32> to vector<256x32xbf16>
    %cst_23 = arith.constant 0.000000e+00 : bf16
    %56 = vector.broadcast %cst_23 : bf16 to vector<256x32xbf16>
    %57 = vector.shape_cast %20 : vector<256x1xi1> to vector<256x1xi1>
    %58 = vector.broadcast %57 : vector<256x1xi1> to vector<256x32xi1>
    %59 = arith.select %58, %55, %56 : vector<256x32xi1>, vector<256x32xbf16>
    %c0_24 = arith.constant 0 : index
    %c160 = arith.constant 160 : index
    %60 = vector.load %arg18[%c0_24, %c160] : memref<256x288xbf16, #tpu.memory_space<vmem>>, vector<256x32xbf16>
    tpu.vector_store %arg18[%c0_24, %c160], %59 {strides = array<i32>} : memref<256x288xbf16, #tpu.memory_space<vmem>>, vector<256x32xbf16>,
    %c0_25 = arith.constant 0 : index
    %c39 = arith.constant 39 : index
    %c0_26 = arith.constant 0 : index
    %61 = vector.load %arg1[%c0_25, %c39, %c0_26] : memref<1x304x32xf32, #tpu.memory_space<vmem>>, vector<1x256x32xf32>
    %62 = vector.shape_cast %61 : vector<1x256x32xf32> to vector<256x32xf32>
    %63 = arith.truncf %62 : vector<256x32xf32> to vector<256x32xbf16>
    %cst_27 = arith.constant 0.000000e+00 : bf16
    %64 = vector.broadcast %cst_27 : bf16 to vector<256x32xbf16>
    %65 = vector.shape_cast %18 : vector<256x1xi1> to vector<256x1xi1>
    %66 = vector.broadcast %65 : vector<256x1xi1> to vector<256x32xi1>
    %67 = arith.select %66, %63, %64 : vector<256x32xi1>, vector<256x32xbf16>
    %c0_28 = arith.constant 0 : index
    %c192 = arith.constant 192 : index
    %68 = vector.load %arg18[%c0_28, %c192] : memref<256x288xbf16, #tpu.memory_space<vmem>>, vector<256x32xbf16>
    tpu.vector_store %arg18[%c0_28, %c192], %67 {strides = array<i32>} : memref<256x288xbf16, #tpu.memory_space<vmem>>, vector<256x32xbf16>,
    %c0_29 = arith.constant 0 : index
    %c40 = arith.constant 40 : index
    %c0_30 = arith.constant 0 : index
    %69 = vector.load %arg1[%c0_29, %c40, %c0_30] : memref<1x304x32xf32, #tpu.memory_space<vmem>>, vector<1x256x32xf32>
    %70 = vector.shape_cast %69 : vector<1x256x32xf32> to vector<256x32xf32>
    %71 = arith.truncf %70 : vector<256x32xf32> to vector<256x32xbf16>
    %c0_31 = arith.constant 0 : index
    %c224 = arith.constant 224 : index
    %72 = vector.load %arg18[%c0_31, %c224] : memref<256x288xbf16, #tpu.memory_space<vmem>>, vector<256x32xbf16>
    tpu.vector_store %arg18[%c0_31, %c224], %71 {strides = array<i32>} : memref<256x288xbf16, #tpu.memory_space<vmem>>, vector<256x32xbf16>,
    %c0_32 = arith.constant 0 : index
    %c41 = arith.constant 41 : index
    %c0_33 = arith.constant 0 : index
    %73 = vector.load %arg1[%c0_32, %c41, %c0_33] : memref<1x304x32xf32, #tpu.memory_space<vmem>>, vector<1x256x32xf32>
    %74 = vector.shape_cast %73 : vector<1x256x32xf32> to vector<256x32xf32>
    %75 = arith.truncf %74 : vector<256x32xf32> to vector<256x32xbf16>
    %cst_34 = arith.constant 0.000000e+00 : bf16
    %76 = vector.broadcast %cst_34 : bf16 to vector<256x32xbf16>
    %77 = vector.shape_cast %20 : vector<256x1xi1> to vector<256x1xi1>
    %78 = vector.broadcast %77 : vector<256x1xi1> to vector<256x32xi1>
    %79 = arith.select %78, %75, %76 : vector<256x32xi1>, vector<256x32xbf16>
    %c0_35 = arith.constant 0 : index
    %c256 = arith.constant 256 : index
    %80 = vector.load %arg18[%c0_35, %c256] : memref<256x288xbf16, #tpu.memory_space<vmem>>, vector<256x32xbf16>
    tpu.vector_store %arg18[%c0_35, %c256], %79 {strides = array<i32>} : memref<256x288xbf16, #tpu.memory_space<vmem>>, vector<256x32xbf16>,
    %c0_36 = arith.constant 0 : index
    %c0_37 = arith.constant 0 : index
    %81 = vector.load %arg11[%c0_36, %c0_37] : memref<4x64xf32, #tpu.memory_space<vmem>>, vector<1x64xf32>
    %c1 = arith.constant 1 : index
    %c0_38 = arith.constant 0 : index
    %82 = vector.load %arg11[%c1, %c0_38] : memref<4x64xf32, #tpu.memory_space<vmem>>, vector<1x64xf32>
    %c0_39 = arith.constant 0 : index
    %c0_40 = arith.constant 0 : index
    %83 = vector.load %arg18[%c0_39, %c0_40] : memref<256x288xbf16, #tpu.memory_space<vmem>>, vector<256x288xbf16>
    %c0_41 = arith.constant 0 : index
    %c0_42 = arith.constant 0 : index
    %84 = vector.load %arg2[%c0_41, %c0_42] : memref<288x64xbf16, #tpu.memory_space<vmem>>, vector<288x64xbf16>
    %cst_43 = arith.constant dense<0.000000e+00> : vector<256x64xf32>
    %85 = tpu.matmul %83, %84, %cst_43 {dimension_numbers = #tpu.dot_dimension_numbers<[1], [0], [0], [1], [0, 0, 1, 1], [], []>} : vector<256x288xbf16>, vector<288x64xbf16>, vector<256x64xf32> -> vector<256x64xf32>
    %86 = vector.broadcast %81 : vector<1x64xf32> to vector<256x64xf32>
    %87 = arith.mulf %85, %86 : vector<256x64xf32>
    %88 = vector.broadcast %82 : vector<1x64xf32> to vector<256x64xf32>
    %89 = arith.addf %87, %88 : vector<256x64xf32>
    %cst_44 = arith.constant 0.000000e+00 : f32
    %90 = vector.broadcast %cst_44 : f32 to vector<256x64xf32>
    %91 = arith.maximumf %89, %90 : vector<256x64xf32>
    %92 = arith.truncf %91 : vector<256x64xf32> to vector<256x64xbf16>
    %c0_45 = arith.constant 0 : index
    %c24_46 = arith.constant 24 : index
    %c0_47 = arith.constant 0 : index
    %93 = vector.load %arg1[%c0_45, %c24_46, %c0_47] : memref<1x304x32xf32, #tpu.memory_space<vmem>>, vector<1x256x32xf32>
    %94 = vector.shape_cast %93 : vector<1x256x32xf32> to vector<256x32xf32>
    %95 = arith.truncf %94 : vector<256x32xf32> to vector<256x32xbf16>
    %c0_48 = arith.constant 0 : index
    %c0_49 = arith.constant 0 : index
    %96 = vector.load %arg3[%c0_48, %c0_49] : memref<32x32xbf16, #tpu.memory_space<vmem>>, vector<32x32xbf16>
    %cst_50 = arith.constant dense<0.000000e+00> : vector<256x32xf32>
    %97 = tpu.matmul %95, %96, %cst_50 {dimension_numbers = #tpu.dot_dimension_numbers<[1], [0], [0], [1], [0, 0, 1, 1], [], []>} : vector<256x32xbf16>, vector<32x32xbf16>, vector<256x32xf32> -> vector<256x32xf32>
    %c0_51 = arith.constant 0 : index
    %c0_52 = arith.constant 0 : index
    %98 = vector.load %arg12[%c0_51, %c0_52] : memref<2x32xf32, #tpu.memory_space<vmem>>, vector<1x32xf32>
    %99 = vector.broadcast %98 : vector<1x32xf32> to vector<256x32xf32>
    %100 = arith.mulf %97, %99 : vector<256x32xf32>
    %c1_53 = arith.constant 1 : index
    %c0_54 = arith.constant 0 : index
    %101 = vector.load %arg12[%c1_53, %c0_54] : memref<2x32xf32, #tpu.memory_space<vmem>>, vector<1x32xf32>
    %102 = vector.broadcast %101 : vector<1x32xf32> to vector<256x32xf32>
    %103 = arith.addf %100, %102 : vector<256x32xf32>
    %cst_55 = arith.constant 0.000000e+00 : f32
    %104 = vector.broadcast %cst_55 : f32 to vector<256x32xf32>
    %105 = arith.maximumf %103, %104 : vector<256x32xf32>
    %106 = arith.truncf %105 : vector<256x32xf32> to vector<256x32xbf16>
    %c0_56 = arith.constant 0 : index
    %c0_57 = arith.constant 0 : index
    %107 = vector.load %arg4[%c0_56, %c0_57] : memref<8x32xbf16, #tpu.memory_space<vmem>>, vector<8x32xbf16>
    %cst_58 = arith.constant dense<0.000000e+00> : vector<8x256xf32>
    %108 = tpu.matmul %107, %106, %cst_58 {dimension_numbers = #tpu.dot_dimension_numbers<[1], [1], [0], [0], [0, 0, 1, 0], [], []>} : vector<8x32xbf16>, vector<256x32xbf16>, vector<8x256xf32> -> vector<8x256xf32>
    %c0_59 = arith.constant 0 : index
    %c0_60 = arith.constant 0 : index
    %109 = vector.load %arg14[%c0_59, %c0_60] : memref<8x2xf32, #tpu.memory_space<vmem>>, vector<8x1xf32>
    %110 = vector.broadcast %109 : vector<8x1xf32> to vector<8x256xf32>
    %111 = arith.addf %108, %110 : vector<8x256xf32>
    %c0_61 = arith.constant 0 : index
    %c0_62 = arith.constant 0 : index
    %c0_63 = arith.constant 0 : index
    %112 = vector.load %arg15[%c0_61, %c0_62, %c0_63] : memref<1x8x256xf32, #tpu.memory_space<vmem>>, vector<1x8x256xf32>
    %113 = vector.shape_cast %112 : vector<1x8x256xf32> to vector<8x256xf32>
    %114 = vector.shape_cast %111 : vector<8x256xf32> to vector<1x8x256xf32>
    tpu.vector_store %arg15[%c0_61, %c0_62, %c0_63], %114 {strides = array<i32>} : memref<1x8x256xf32, #tpu.memory_space<vmem>>, vector<1x8x256xf32>,
    %cst_64 = arith.constant dense<0xFF800000> : vector<8xf32>
    %115 = vector.multi_reduction <maximumf>, %111, %cst_64 [1] : vector<8x256xf32> to vector<8xf32>
    %116 = vector.shape_cast %115 : vector<8xf32> to vector<8x1xf32>
    %117 = vector.broadcast %116 : vector<8x1xf32> to vector<8x256xf32>
    %118 = arith.subf %111, %117 : vector<8x256xf32>
    %119 = math.exp %118 : vector<8x256xf32>
    %cst_65 = arith.constant dense<0.000000e+00> : vector<8xf32>
    %120 = vector.multi_reduction <add>, %119, %cst_65 [1] : vector<8x256xf32> to vector<8xf32>
    %121 = vector.shape_cast %120 : vector<8xf32> to vector<8x1xf32>
    %122 = vector.broadcast %121 : vector<8x1xf32> to vector<8x256xf32>
    %123 = arith.divf %119, %122 : vector<8x256xf32>
    %124 = arith.truncf %123 : vector<8x256xf32> to vector<8x256xbf16>
    %cst_66 = arith.constant dense<0.000000e+00> : vector<8x64xf32>
    %125 = tpu.matmul %124, %92, %cst_66 {dimension_numbers = #tpu.dot_dimension_numbers<[1], [0], [0], [1], [0, 0, 1, 1], [], []>} : vector<8x256xbf16>, vector<256x64xbf16>, vector<8x64xf32> -> vector<8x64xf32>
    %126 = arith.truncf %125 : vector<8x64xf32> to vector<8x64xbf16>
    %c0_67 = arith.constant 0 : index
    %c0_68 = arith.constant 0 : index
    %c0_69 = arith.constant 0 : index
    %127 = vector.load %arg7[%c0_67, %c0_68, %c0_69] : memref<3x64x32xbf16, #tpu.memory_space<vmem>>, vector<1x64x32xbf16>
    %128 = vector.shape_cast %127 : vector<1x64x32xbf16> to vector<64x32xbf16>
    %c0_70 = arith.constant 0 : index
    %c0_71 = arith.constant 0 : index
    %129 = vector.load %arg10[%c0_70, %c0_71] : memref<10x32xf32, #tpu.memory_space<vmem>>, vector<1x32xf32>
    %c1_72 = arith.constant 1 : index
    %c0_73 = arith.constant 0 : index
    %130 = vector.load %arg10[%c1_72, %c0_73] : memref<10x32xf32, #tpu.memory_space<vmem>>, vector<1x32xf32>
    %cst_74 = arith.constant dense<0.000000e+00> : vector<256x32xf32>
    %131 = tpu.matmul %92, %128, %cst_74 {dimension_numbers = #tpu.dot_dimension_numbers<[1], [0], [0], [1], [0, 0, 1, 1], [], []>} : vector<256x64xbf16>, vector<64x32xbf16>, vector<256x32xf32> -> vector<256x32xf32>
    %132 = vector.broadcast %129 : vector<1x32xf32> to vector<256x32xf32>
    %133 = arith.mulf %131, %132 : vector<256x32xf32>
    %134 = vector.broadcast %130 : vector<1x32xf32> to vector<256x32xf32>
    %135 = arith.addf %133, %134 : vector<256x32xf32>
    %cst_75 = arith.constant 0.000000e+00 : f32
    %136 = vector.broadcast %cst_75 : f32 to vector<256x32xf32>
    %137 = arith.maximumf %135, %136 : vector<256x32xf32>
    %138 = arith.truncf %137 : vector<256x32xf32> to vector<256x32xbf16>
    %c0_76 = arith.constant 0 : index
    %c0_77 = arith.constant 0 : index
    %c0_78 = arith.constant 0 : index
    %139 = vector.load %arg8[%c0_76, %c0_77, %c0_78] : memref<2x32x32xbf16, #tpu.memory_space<vmem>>, vector<1x32x32xbf16>
    %140 = vector.shape_cast %139 : vector<1x32x32xbf16> to vector<32x32xbf16>
    %c2 = arith.constant 2 : index
    %c0_79 = arith.constant 0 : index
    %141 = vector.load %arg10[%c2, %c0_79] : memref<10x32xf32, #tpu.memory_space<vmem>>, vector<1x32xf32>
    %c3 = arith.constant 3 : index
    %c0_80 = arith.constant 0 : index
    %142 = vector.load %arg10[%c3, %c0_80] : memref<10x32xf32, #tpu.memory_space<vmem>>, vector<1x32xf32>
    %cst_81 = arith.constant dense<0.000000e+00> : vector<256x32xf32>
    %143 = tpu.matmul %138, %140, %cst_81 {dimension_numbers = #tpu.dot_dimension_numbers<[1], [0], [0], [1], [0, 0, 1, 1], [], []>} : vector<256x32xbf16>, vector<32x32xbf16>, vector<256x32xf32> -> vector<256x32xf32>
    %144 = vector.broadcast %141 : vector<1x32xf32> to vector<256x32xf32>
    %145 = arith.mulf %143, %144 : vector<256x32xf32>
    %146 = vector.broadcast %142 : vector<1x32xf32> to vector<256x32xf32>
    %147 = arith.addf %145, %146 : vector<256x32xf32>
    %cst_82 = arith.constant 0.000000e+00 : f32
    %148 = vector.broadcast %cst_82 : f32 to vector<256x32xf32>
    %149 = arith.maximumf %147, %148 : vector<256x32xf32>
    %150 = arith.truncf %149 : vector<256x32xf32> to vector<256x32xbf16>
    %c1_83 = arith.constant 1 : index
    %c0_84 = arith.constant 0 : index
    %c0_85 = arith.constant 0 : index
    %151 = vector.load %arg7[%c1_83, %c0_84, %c0_85] : memref<3x64x32xbf16, #tpu.memory_space<vmem>>, vector<1x64x32xbf16>
    %152 = vector.shape_cast %151 : vector<1x64x32xbf16> to vector<64x32xbf16>
    %c4 = arith.constant 4 : index
    %c0_86 = arith.constant 0 : index
    %153 = vector.load %arg10[%c4, %c0_86] : memref<10x32xf32, #tpu.memory_space<vmem>>, vector<1x32xf32>
    %c5 = arith.constant 5 : index
    %c0_87 = arith.constant 0 : index
    %154 = vector.load %arg10[%c5, %c0_87] : memref<10x32xf32, #tpu.memory_space<vmem>>, vector<1x32xf32>
    %cst_88 = arith.constant dense<0.000000e+00> : vector<8x32xf32>
    %155 = tpu.matmul %126, %152, %cst_88 {dimension_numbers = #tpu.dot_dimension_numbers<[1], [0], [0], [1], [0, 0, 1, 1], [], []>} : vector<8x64xbf16>, vector<64x32xbf16>, vector<8x32xf32> -> vector<8x32xf32>
    %156 = vector.broadcast %153 : vector<1x32xf32> to vector<8x32xf32>
    %157 = arith.mulf %155, %156 : vector<8x32xf32>
    %158 = vector.broadcast %154 : vector<1x32xf32> to vector<8x32xf32>
    %159 = arith.addf %157, %158 : vector<8x32xf32>
    %cst_89 = arith.constant 0.000000e+00 : f32
    %160 = vector.broadcast %cst_89 : f32 to vector<8x32xf32>
    %161 = arith.maximumf %159, %160 : vector<8x32xf32>
    %162 = arith.truncf %161 : vector<8x32xf32> to vector<8x32xbf16>
    %c1_90 = arith.constant 1 : index
    %c0_91 = arith.constant 0 : index
    %c0_92 = arith.constant 0 : index
    %163 = vector.load %arg8[%c1_90, %c0_91, %c0_92] : memref<2x32x32xbf16, #tpu.memory_space<vmem>>, vector<1x32x32xbf16>
    %164 = vector.shape_cast %163 : vector<1x32x32xbf16> to vector<32x32xbf16>
    %c6 = arith.constant 6 : index
    %c0_93 = arith.constant 0 : index
    %165 = vector.load %arg10[%c6, %c0_93] : memref<10x32xf32, #tpu.memory_space<vmem>>, vector<1x32xf32>
    %c7_94 = arith.constant 7 : index
    %c0_95 = arith.constant 0 : index
    %166 = vector.load %arg10[%c7_94, %c0_95] : memref<10x32xf32, #tpu.memory_space<vmem>>, vector<1x32xf32>
    %cst_96 = arith.constant dense<0.000000e+00> : vector<8x32xf32>
    %167 = tpu.matmul %162, %164, %cst_96 {dimension_numbers = #tpu.dot_dimension_numbers<[1], [0], [0], [1], [0, 0, 1, 1], [], []>} : vector<8x32xbf16>, vector<32x32xbf16>, vector<8x32xf32> -> vector<8x32xf32>
    %168 = vector.broadcast %165 : vector<1x32xf32> to vector<8x32xf32>
    %169 = arith.mulf %167, %168 : vector<8x32xf32>
    %170 = vector.broadcast %166 : vector<1x32xf32> to vector<8x32xf32>
    %171 = arith.addf %169, %170 : vector<8x32xf32>
    %cst_97 = arith.constant 0.000000e+00 : f32
    %172 = vector.broadcast %cst_97 : f32 to vector<8x32xf32>
    %173 = arith.maximumf %171, %172 : vector<8x32xf32>
    %174 = arith.truncf %173 : vector<8x32xf32> to vector<8x32xbf16>
    %c2_98 = arith.constant 2 : index
    %c0_99 = arith.constant 0 : index
    %c0_100 = arith.constant 0 : index
    %175 = vector.load %arg7[%c2_98, %c0_99, %c0_100] : memref<3x64x32xbf16, #tpu.memory_space<vmem>>, vector<1x64x32xbf16>
    %176 = vector.shape_cast %175 : vector<1x64x32xbf16> to vector<64x32xbf16>
    %c8_101 = arith.constant 8 : index
    %c0_102 = arith.constant 0 : index
    %177 = vector.load %arg10[%c8_101, %c0_102] : memref<10x32xf32, #tpu.memory_space<vmem>>, vector<1x32xf32>
    %c9_103 = arith.constant 9 : index
    %c0_104 = arith.constant 0 : index
    %178 = vector.load %arg10[%c9_103, %c0_104] : memref<10x32xf32, #tpu.memory_space<vmem>>, vector<1x32xf32>
    %cst_105 = arith.constant dense<0.000000e+00> : vector<8x32xf32>
    %179 = tpu.matmul %126, %176, %cst_105 {dimension_numbers = #tpu.dot_dimension_numbers<[1], [0], [0], [1], [0, 0, 1, 1], [], []>} : vector<8x64xbf16>, vector<64x32xbf16>, vector<8x32xf32> -> vector<8x32xf32>
    %180 = vector.broadcast %177 : vector<1x32xf32> to vector<8x32xf32>
    %181 = arith.mulf %179, %180 : vector<8x32xf32>
    %182 = vector.broadcast %178 : vector<1x32xf32> to vector<8x32xf32>
    %183 = arith.addf %181, %182 : vector<8x32xf32>
    %cst_106 = arith.constant 0.000000e+00 : f32
    %184 = vector.broadcast %cst_106 : f32 to vector<8x32xf32>
    %185 = arith.maximumf %183, %184 : vector<8x32xf32>
    %186 = arith.truncf %185 : vector<8x32xf32> to vector<8x32xbf16>
    %cst_107 = arith.constant dense<0.000000e+00> : vector<256x8xf32>
    %187 = tpu.matmul %150, %174, %cst_107 {dimension_numbers = #tpu.dot_dimension_numbers<[1], [1], [0], [0], [0, 0, 1, 0], [], []>} : vector<256x32xbf16>, vector<8x32xbf16>, vector<256x8xf32> -> vector<256x8xf32>
    %cst_108 = arith.constant 0.176776692 : f32
    %188 = vector.broadcast %cst_108 : f32 to vector<256x8xf32>
    %189 = arith.mulf %187, %188 : vector<256x8xf32>
    %cst_109 = arith.constant dense<0xFF800000> : vector<256xf32>
    %190 = vector.multi_reduction <maximumf>, %189, %cst_109 [1] : vector<256x8xf32> to vector<256xf32>
    %191 = vector.shape_cast %190 : vector<256xf32> to vector<256x1xf32>
    %192 = vector.broadcast %191 : vector<256x1xf32> to vector<256x8xf32>
    %193 = arith.subf %189, %192 : vector<256x8xf32>
    %194 = math.exp %193 : vector<256x8xf32>
    %cst_110 = arith.constant dense<0.000000e+00> : vector<256xf32>
    %195 = vector.multi_reduction <add>, %194, %cst_110 [1] : vector<256x8xf32> to vector<256xf32>
    %196 = vector.shape_cast %195 : vector<256xf32> to vector<256x1xf32>
    %197 = vector.broadcast %196 : vector<256x1xf32> to vector<256x8xf32>
    %198 = arith.divf %194, %197 : vector<256x8xf32>
    %199 = arith.truncf %198 : vector<256x8xf32> to vector<256x8xbf16>
    %cst_111 = arith.constant dense<0.000000e+00> : vector<256x32xf32>
    %200 = tpu.matmul %199, %186, %cst_111 {dimension_numbers = #tpu.dot_dimension_numbers<[1], [0], [0], [1], [0, 0, 1, 1], [], []>} : vector<256x8xbf16>, vector<8x32xbf16>, vector<256x32xf32> -> vector<256x32xf32>
    %201 = arith.truncf %200 : vector<256x32xf32> to vector<256x32xbf16>
    %c0_112 = arith.constant 0 : index
    %c0_113 = arith.constant 0 : index
    %202 = vector.load %arg5[%c0_112, %c0_113] : memref<32x64xbf16, #tpu.memory_space<vmem>>, vector<32x64xbf16>
    %c2_114 = arith.constant 2 : index
    %c0_115 = arith.constant 0 : index
    %203 = vector.load %arg11[%c2_114, %c0_115] : memref<4x64xf32, #tpu.memory_space<vmem>>, vector<1x64xf32>
    %c3_116 = arith.constant 3 : index
    %c0_117 = arith.constant 0 : index
    %204 = vector.load %arg11[%c3_116, %c0_117] : memref<4x64xf32, #tpu.memory_space<vmem>>, vector<1x64xf32>
    %cst_118 = arith.constant dense<0.000000e+00> : vector<256x64xf32>
    %205 = tpu.matmul %201, %202, %cst_118 {dimension_numbers = #tpu.dot_dimension_numbers<[1], [0], [0], [1], [0, 0, 1, 1], [], []>} : vector<256x32xbf16>, vector<32x64xbf16>, vector<256x64xf32> -> vector<256x64xf32>
    %206 = vector.broadcast %203 : vector<1x64xf32> to vector<256x64xf32>
    %207 = arith.mulf %205, %206 : vector<256x64xf32>
    %208 = vector.broadcast %204 : vector<1x64xf32> to vector<256x64xf32>
    %209 = arith.addf %207, %208 : vector<256x64xf32>
    %cst_119 = arith.constant 0.000000e+00 : f32
    %210 = vector.broadcast %cst_119 : f32 to vector<256x64xf32>
    %211 = arith.maximumf %209, %210 : vector<256x64xf32>
    %212 = arith.truncf %211 : vector<256x64xf32> to vector<256x64xbf16>
    %c0_120 = arith.constant 0 : index
    %c0_121 = arith.constant 0 : index
    %c0_122 = arith.constant 0 : index
    %213 = vector.load %arg9[%c0_120, %c0_121, %c0_122] : memref<2x64x64xbf16, #tpu.memory_space<vmem>>, vector<1x64x64xbf16>
    %214 = vector.shape_cast %213 : vector<1x64x64xbf16> to vector<64x64xbf16>
    %cst_123 = arith.constant dense<0.000000e+00> : vector<64x256xf32>
    %215 = tpu.matmul %214, %212, %cst_123 {dimension_numbers = #tpu.dot_dimension_numbers<[1], [1], [0], [0], [0, 0, 1, 0], [], []>} : vector<64x64xbf16>, vector<256x64xbf16>, vector<64x256xf32> -> vector<64x256xf32>
    %c1_124 = arith.constant 1 : index
    %c0_125 = arith.constant 0 : index
    %c0_126 = arith.constant 0 : index
    %216 = vector.load %arg9[%c1_124, %c0_125, %c0_126] : memref<2x64x64xbf16, #tpu.memory_space<vmem>>, vector<1x64x64xbf16>
    %217 = vector.shape_cast %216 : vector<1x64x64xbf16> to vector<64x64xbf16>
    %cst_127 = arith.constant dense<0.000000e+00> : vector<64x256xf32>
    %218 = tpu.matmul %217, %92, %cst_127 {dimension_numbers = #tpu.dot_dimension_numbers<[1], [1], [0], [0], [0, 0, 1, 0], [], []>} : vector<64x64xbf16>, vector<256x64xbf16>, vector<64x256xf32> -> vector<64x256xf32>
    %219 = arith.addf %215, %218 : vector<64x256xf32>
    %c0_128 = arith.constant 0 : index
    %c0_129 = arith.constant 0 : index
    %220 = vector.load %arg13[%c0_128, %c0_129] : memref<64x2xf32, #tpu.memory_space<vmem>>, vector<64x1xf32>
    %221 = vector.broadcast %220 : vector<64x1xf32> to vector<64x256xf32>
    %222 = arith.mulf %219, %221 : vector<64x256xf32>
    %c0_130 = arith.constant 0 : index
    %c1_131 = arith.constant 1 : index
    %223 = vector.load %arg13[%c0_130, %c1_131] : memref<64x2xf32, #tpu.memory_space<vmem>>, vector<64x1xf32>
    %224 = vector.broadcast %223 : vector<64x1xf32> to vector<64x256xf32>
    %225 = arith.addf %222, %224 : vector<64x256xf32>
    %cst_132 = arith.constant 0.000000e+00 : f32
    %226 = vector.broadcast %cst_132 : f32 to vector<64x256xf32>
    %227 = arith.maximumf %225, %226 : vector<64x256xf32>
    %c0_133 = arith.constant 0 : index
    %c0_134 = arith.constant 0 : index
    %c0_135 = arith.constant 0 : index
    %228 = vector.load %arg17[%c0_133, %c0_134, %c0_135] : memref<1x64x256xf32, #tpu.memory_space<vmem>>, vector<1x64x256xf32>
    %229 = vector.shape_cast %228 : vector<1x64x256xf32> to vector<64x256xf32>
    %230 = vector.shape_cast %227 : vector<64x256xf32> to vector<1x64x256xf32>
    tpu.vector_store %arg17[%c0_133, %c0_134, %c0_135], %230 {strides = array<i32>} : memref<1x64x256xf32, #tpu.memory_space<vmem>>, vector<1x64x256xf32>,
    %c0_136 = arith.constant 0 : index
    %c0_137 = arith.constant 0 : index
    %231 = vector.load %arg6[%c0_136, %c0_137] : memref<8x64xbf16, #tpu.memory_space<vmem>>, vector<8x64xbf16>
    %232 = arith.truncf %227 : vector<64x256xf32> to vector<64x256xbf16>
    %cst_138 = arith.constant dense<0.000000e+00> : vector<8x256xf32>
    %233 = tpu.matmul %231, %232, %cst_138 {dimension_numbers = #tpu.dot_dimension_numbers<[1], [0], [0], [1], [0, 0, 1, 1], [], []>} : vector<8x64xbf16>, vector<64x256xbf16>, vector<8x256xf32> -> vector<8x256xf32>
    %c0_139 = arith.constant 0 : index
    %c1_140 = arith.constant 1 : index
    %234 = vector.load %arg14[%c0_139, %c1_140] : memref<8x2xf32, #tpu.memory_space<vmem>>, vector<8x1xf32>
    %235 = vector.broadcast %234 : vector<8x1xf32> to vector<8x256xf32>
    %236 = arith.addf %233, %235 : vector<8x256xf32>
    %c0_141 = arith.constant 0 : index
    %c0_142 = arith.constant 0 : index
    %c0_143 = arith.constant 0 : index
    %237 = vector.load %arg16[%c0_141, %c0_142, %c0_143] : memref<1x8x256xf32, #tpu.memory_space<vmem>>, vector<1x8x256xf32>
    %238 = vector.shape_cast %237 : vector<1x8x256xf32> to vector<8x256xf32>
    %239 = vector.shape_cast %236 : vector<8x256xf32> to vector<1x8x256xf32>
    tpu.vector_store %arg16[%c0_141, %c0_142, %c0_143], %239 {strides = array<i32>} : memref<1x8x256xf32, #tpu.memory_space<vmem>>, vector<1x8x256xf32>,
    return
  }
  func.func @transform_0(%arg0: i32) -> (i32, i32, i32) {
    %c0_i32 = arith.constant 0 : i32
    %c0_i32_0 = arith.constant 0 : i32
    %c0_i32_1 = arith.constant 0 : i32
    return %arg0, %c0_i32, %c0_i32_0 : i32, i32, i32
  }
  func.func @transform_1(%arg0: i32) -> (i32, i32) {
    %c0_i32 = arith.constant 0 : i32
    %c0_i32_0 = arith.constant 0 : i32
    %c0_i32_1 = arith.constant 0 : i32
    return %c0_i32, %c0_i32_0 : i32, i32
  }
  func.func @transform_2(%arg0: i32) -> (i32, i32) {
    %c0_i32 = arith.constant 0 : i32
    %c0_i32_0 = arith.constant 0 : i32
    %c0_i32_1 = arith.constant 0 : i32
    return %c0_i32, %c0_i32_0 : i32, i32
  }
  func.func @transform_3(%arg0: i32) -> (i32, i32) {
    %c0_i32 = arith.constant 0 : i32
    %c0_i32_0 = arith.constant 0 : i32
    %c0_i32_1 = arith.constant 0 : i32
    return %c0_i32, %c0_i32_0 : i32, i32
  }
  func.func @transform_4(%arg0: i32) -> (i32, i32) {
    %c0_i32 = arith.constant 0 : i32
    %c0_i32_0 = arith.constant 0 : i32
    %c0_i32_1 = arith.constant 0 : i32
    return %c0_i32, %c0_i32_0 : i32, i32
  }
  func.func @transform_5(%arg0: i32) -> (i32, i32) {
    %c0_i32 = arith.constant 0 : i32
    %c0_i32_0 = arith.constant 0 : i32
    %c0_i32_1 = arith.constant 0 : i32
    return %c0_i32, %c0_i32_0 : i32, i32
  }
  func.func @transform_6(%arg0: i32) -> (i32, i32, i32) {
    %c0_i32 = arith.constant 0 : i32
    %c0_i32_0 = arith.constant 0 : i32
    %c0_i32_1 = arith.constant 0 : i32
    %c0_i32_2 = arith.constant 0 : i32
    return %c0_i32, %c0_i32_0, %c0_i32_1 : i32, i32, i32
  }
  func.func @transform_7(%arg0: i32) -> (i32, i32, i32) {
    %c0_i32 = arith.constant 0 : i32
    %c0_i32_0 = arith.constant 0 : i32
    %c0_i32_1 = arith.constant 0 : i32
    %c0_i32_2 = arith.constant 0 : i32
    return %c0_i32, %c0_i32_0, %c0_i32_1 : i32, i32, i32
  }
  func.func @transform_8(%arg0: i32) -> (i32, i32, i32) {
    %c0_i32 = arith.constant 0 : i32
    %c0_i32_0 = arith.constant 0 : i32
    %c0_i32_1 = arith.constant 0 : i32
    %c0_i32_2 = arith.constant 0 : i32
    return %c0_i32, %c0_i32_0, %c0_i32_1 : i32, i32, i32
  }
  func.func @transform_9(%arg0: i32) -> (i32, i32) {
    %c0_i32 = arith.constant 0 : i32
    %c0_i32_0 = arith.constant 0 : i32
    %c0_i32_1 = arith.constant 0 : i32
    return %c0_i32, %c0_i32_0 : i32, i32
  }
  func.func @transform_10(%arg0: i32) -> (i32, i32) {
    %c0_i32 = arith.constant 0 : i32
    %c0_i32_0 = arith.constant 0 : i32
    %c0_i32_1 = arith.constant 0 : i32
    return %c0_i32, %c0_i32_0 : i32, i32
  }
  func.func @transform_11(%arg0: i32) -> (i32, i32) {
    %c0_i32 = arith.constant 0 : i32
    %c0_i32_0 = arith.constant 0 : i32
    %c0_i32_1 = arith.constant 0 : i32
    return %c0_i32, %c0_i32_0 : i32, i32
  }
  func.func @transform_12(%arg0: i32) -> (i32, i32) {
    %c0_i32 = arith.constant 0 : i32
    %c0_i32_0 = arith.constant 0 : i32
    %c0_i32_1 = arith.constant 0 : i32
    return %c0_i32, %c0_i32_0 : i32, i32
  }
  func.func @transform_13(%arg0: i32) -> (i32, i32) {
    %c0_i32 = arith.constant 0 : i32
    %c0_i32_0 = arith.constant 0 : i32
    %c0_i32_1 = arith.constant 0 : i32
    return %c0_i32, %c0_i32_0 : i32, i32
  }
  func.func @transform_14(%arg0: i32) -> (i32, i32, i32) {
    %c0_i32 = arith.constant 0 : i32
    %c0_i32_0 = arith.constant 0 : i32
    %c0_i32_1 = arith.constant 0 : i32
    return %arg0, %c0_i32, %c0_i32_0 : i32, i32, i32
  }
  func.func @transform_15(%arg0: i32) -> (i32, i32, i32) {
    %c0_i32 = arith.constant 0 : i32
    %c0_i32_0 = arith.constant 0 : i32
    %c0_i32_1 = arith.constant 0 : i32
    return %arg0, %c0_i32, %c0_i32_0 : i32, i32, i32
  }
  func.func @transform_16(%arg0: i32) -> (i32, i32, i32) {
    %c0_i32 = arith.constant 0 : i32
    %c0_i32_0 = arith.constant 0 : i32
    %c0_i32_1 = arith.constant 0 : i32
    return %arg0, %c0_i32, %c0_i32_0 : i32, i32, i32
  }
}

</mosaic_0001>

<bundles_post_ra>
// kernel: ocr_block_forward.1
= control target key start
LH: loop header
LB: loop body
LE: loop exit
PB: predicated region body
PF: predicated region fallthrough
CT: control target
= control target key end

     0   :  { %s7976_s21 = smov 0   ;;  %s11583_s0 = inlined_call_operand.vmem [shape: f32[2,304,32], index: 0, kind: input, shape index: {}]   ;;  %s11584_s1 = inlined_call_operand.vmem [shape: bf16[288,64], index: 1, kind: input, shape index: {}]   ;;  %s11585_s2 = inlined_call_operand.vmem [shape: bf16[32,32], index: 2, kind: input, shape index: {}]   ;;  %s11586_s3 = inlined_call_operand.vmem [shape: bf16[8,32], index: 3, kind: input, shape index: {}]   ;;  %s11587_s4 = inlined_call_operand.vmem [shape: bf16[32,64], index: 4, kind: input, shape index: {}]   ;;  %s11588_s5 = inlined_call_operand.vmem [shape: bf16[8,64], index: 5, kind: input, shape index: {}]   ;;  %s11589_s6 = inlined_call_operand.vmem [shape: bf16[3,64,32], index: 6, kind: input, shape index: {}]   ;;  %s11590_s7 = inlined_call_operand.vmem [shape: bf16[2,32,32], index: 7, kind: input, shape index: {}]   ;;  %s11591_s8 = inlined_call_operand.vmem [shape: bf16[2,64,64], index: 8, kind: input, shape index: {}]   ;;  %s11592_s9 = inlined_call_operand.vmem [shape: f32[10,32], index: 9, kind: input, shape index: {}]   ;;  %s11593_s10 = inlined_call_operand.vmem [shape: f32[4,64], index: 10, kind: input, shape index: {}]   ;;  %s11594_s11 = inlined_call_operand.vmem [shape: f32[2,32], index: 11, kind: input, shape index: {}]   ;;  %s11595_s12 = inlined_call_operand.vmem [shape: f32[64,2], index: 12, kind: input, shape index: {}]   ;;  %s11596_s13 = inlined_call_operand.vmem [shape: f32[8,2], index: 13, kind: input, shape index: {}]   ;;  %s11597_s14 = inlined_call_operand.vmem [shape: f32[2,8,256], index: 14, kind: output, shape index: {0}]   ;;  %s11598_s15 = inlined_call_operand.vmem [shape: f32[2,8,256], index: 15, kind: output, shape index: {1}]   ;;  %s11599_s16 = inlined_call_operand.vmem [shape: f32[2,64,256], index: 16, kind: output, shape index: {2}]  }
   0x1   :  { %11604 = sst [smem:[#allocation22_spill]] %s11583_s0 }
   0x2 LB: > { %s7035_s22 = sadd.s32 4294967295, %s7883_s21   ;;  %p7039_p0 = scmp.ge.s32.totalorder %s7883_s21, 1  ;;  %s7883_s21 = sphi %s7976_s21, %s27_s21  }
   0x3   : > { %p467_p1 = scmp.lt.s32.totalorder %s7883_s21, 3 }
   0x5   : > { %p468_p2 = pnand %p7039_p0, %p467_p1 }
   0x7   : > { %471 = sbr.rel (%p468_p2) target bundleno = 2874 (0xb3a), region = 76 }
   0xc   : > { %p527_p3 = scmp.lt.s32.totalorder %s7035_s22, 1  ;;  %v548_v0 = vlaneseq  ;;  %v7656_v1 = vld [vmem:[%s11584_s1 + $0x88] sm:$0xff]  ;;  %v7655_v2 = vld [vmem:[%s11584_s1 + $0x80] sm:$0xff]  ;;  %s11605_s30 = sld [smem:[#allocation22_spill]]  ;;  %vm7885_vm0 = vmmov 1   ;;  %vm1221_vm6 = vcmask 257024  }
   0xd   : > { %7686 = vmatpush.bf16.msra.mxu3 %v7656_v1  ;;  %7685 = vmatpush.bf16.msra.mxu2 %v7656_v1  ;;  %vm8005_vm1 = vmpackc.low %vm7885_vm0, %vm7885_vm0  ;;  %s7886_s17 = smov 32   ;;  %s7887_s18 = smov 64   ;;  %vm11600_vm14 = vcmask 261120  }
   0xe   : > { %s11861_s22 = smov (!%p527_p3, %s7035_s22), 1  ;;  %v7992_v3 = vshrl.u32 %v548_v0, 7  ;;  %s7888_s19 = smov 96  }
   0xf   : > { %s7691_s27 = smul.u32 304, %s11861_s22  ;;  %s7590_s23 = sshll.u32 %s11861_s22, 7 }
  0x10   : > { %v585_v4 = vand.u32 15, %v7992_v3  ;;  %v550_v5 = vadd.s32 8, %v7992_v3  ;;  %v576_v6 = vadd.s32 216, %v7992_v3  ;;  %v552_v7 = vadd.s32 24, %v7992_v3  ;;  %s11530_s25 = scalar_lea.vmem %s11599_s16, %s7590_s23 }
  0x11   : > { %v578_v8 = vadd.s32 232, %v7992_v3  ;;  %7688 = vmatpush.bf16.msra.mxu3 %v7655_v2  ;;  %7687 = vmatpush.bf16.msra.mxu2 %v7655_v2  ;;  %v580_v44 = vadd.s32 248, %v7992_v3  ;;  %v551_v56 = vadd.s32 16, %v7992_v3 }
  0x12   : > { %s8003_s0 = scalar_lea.vmem %s11605_s30, %s7691_s27  ;;  %vm965_vm2 = vcmp.ge.s32.totalorder %v585_v4, 1  ;;  %v592_v10 = vand.u32 15, %v550_v5  ;;  %v774_v11 = vand.u32 15, %v576_v6  ;;  %v606_v12 = vand.u32 15, %v552_v7 }
  0x13   : > { %v2185_v13 = vld [vmem:[%s8003_s0 + $0x19] sm:$0xff]  ;;  %vm8010_vm3 = vmpackc.low %vm965_vm2, %vm965_vm2  ;;  %v2441_v15 = vld [vmem:[%s8003_s0 + $0x27] sm:$0xff]  ;;  %v788_v26 = vand.u32 15, %v578_v8  ;;  %v802_v60 = vand.u32 15, %v580_v44  ;;  %v599_v63 = vand.u32 15, %v551_v56  ;;  %v11620_v5 = vmov 0 }
  0x14   : > { %v2217_v16 = vpack.c.bf16 %v2185_v13, %v2185_v13  ;;  %v8015_v17 = vpack.c.bf16 %v2441_v15, %v2441_v15  ;;  %vm998_vm4 = vcmp.le.s32.totalorder %v592_v10, 14  ;;  %v2186_v18 = vld [vmem:[%s8003_s0 + $0x21] sm:$0xff]  ;;  %v2922_v19 = vld [vmem:[%s8003_s0 + $0x31] sm:$0xff]  ;;  %vm1024_vm5 = vcmp.le.s32.totalorder %v774_v11, 14  ;;  %v2947_v23 = vld [vmem:[%s8003_s0 + $0xf9] sm:$0xff] }
  0x15   : > { %v2442_v20 = vld [vmem:[%s8003_s0 + $0x2f] sm:$0xff]  ;;  %vm8020_vm7 = vmpackc.low %vm998_vm4, %vm998_vm4  ;;  %v8024_v22 = vpack.c.bf16 %v2922_v19, %v2922_v19  ;;  %v2948_v24 = vld [vmem:[%s8003_s0 + $0x101] sm:$0xff]  ;;  %vm8028_vm8 = vcmp.le.s32.totalorder %v606_v12, 14  ;;  %v2979_v30 = vpack.c.bf16 %v2947_v23, %v2947_v23  ;;  %v8047_v33 = vpack.c.bf16 %v2186_v18, %v2186_v18 }
  0x16   : > { %v8034_v27 = vsel %vm8005_vm1, %v2217_v16, 0  ;;  %v2505_v28 = vsel %vm8010_vm3, %v8015_v17, 0  ;;  %vm8039_vm9 = vmpackc.low %vm1024_vm5, %vm1024_vm5  ;;  %v2980_v31 = vpack.c.bf16 %v2948_v24, %v2948_v24  ;;  %v2924_v32 = vld [vmem:[%s8003_s0 + $0x41] sm:$0xff]  ;;  %v2474_v35 = vpack.c.bf16 %v2442_v20, %v2442_v20  ;;  %v2949_v42 = vld [vmem:[%s8003_s0 + $0x109] sm:$0xff] }
  0x17   : > { %2313 = vrot.lane.b32.xlu0 %v8034_v27, %s7886_s17  ;;  %2569 = vrot.lane.b32.xlu1 %v2505_v28, %s7887_s18  ;;  %v2986_v34 = vsel %vm8020_vm7, %v8024_v22, 0  ;;  %v8053_v36 = vld [vmem:[%s8003_s0 + $0x28] sm:$0xff]  ;;  %v3011_v37 = vsel %vm8005_vm1, %v2979_v30, 0  ;;  %v8060_v39 = vpack.c.bf16 %v2924_v32, %v2924_v32  ;;  %vm8066_vm10 = vmpackc.low %vm8028_vm8, %vm8028_vm8  ;;  %v2950_v43 = vld [vmem:[%s8003_s0 + $0x111] sm:$0xff]  ;;  %vm1026_vm11 = vcmp.le.s32.totalorder %v788_v26, 14 }
  0x18   : > { %3018 = vst.msk [vmem:[#allocation2 + $0x14] sm:$0xf] %vm1221_vm6, %v2986_v34  ;;  %v3012_v38 = vsel %vm8039_vm9, %v2980_v31, 0  ;;  %v8072_v41 = vpack.c.bf16 %v8053_v36, %v8053_v36  ;;  %v2981_v46 = vpack.c.bf16 %v2949_v42, %v2949_v42  ;;  %v2982_v47 = vpack.c.bf16 %v2950_v43, %v2950_v43  ;;  %v8082_v48 = vld [vmem:[%s8003_s0 + $0x30] sm:$0xff]  ;;  %v8095_v51 = vld [vmem:[%s8003_s0 + $0x38] sm:$0xff]  ;;  %vm8097_vm12 = vmpackc.low %vm1026_vm11, %vm1026_vm11 }
  0x19   : > { %3043 = vst.msk [vmem:[#allocation2 + $0x140] sm:$0xf] %vm1221_vm6, %v3011_v37  ;;  %v2988_v45 = vsel %vm8066_vm10, %v8060_v39, 0  ;;  %v2250_v49 = vsel %vm8020_vm7, %v8047_v33, 0  ;;  %v8089_v50 = vsel %vm8005_vm1, %v2474_v35, 0  ;;  %v2951_v53 = vld [vmem:[%s8003_s0 + $0x119] sm:$0xff]  ;;  %v8114_v59 = vpack.c.bf16 %v8082_v48, %v8082_v48 }
  0x1a   : > { %3044 = vst.msk [vmem:[#allocation2 + $0x14c] sm:$0xf] %vm1221_vm6, %v3012_v38  ;;  %2793 = vrot.lane.b32.xlu2 %v8072_v41, %s7888_s19  ;;  %v3013_v54 = vsel %vm8005_vm1, %v2981_v46, 0  ;;  %v3014_v55 = vsel %vm8097_vm12, %v2982_v47, 0  ;;  %v2952_v57 = vld [vmem:[%s8003_s0 + $0x121] sm:$0xff]  ;;  %v2187_v58 = vld [vmem:[%s8003_s0 + $0x29] sm:$0xff]  ;;  %v2983_v61 = vpack.c.bf16 %v2951_v53, %v2951_v53  ;;  %v8122_v0 = vpack.c.bf16 %v8095_v51, %v8095_v51 }
  0x1b   : > { %3020 = vst.msk [vmem:[#allocation2 + $0x2c] sm:$0xf] %vm1221_vm6, %v2988_v45  ;;  %v2984_v62 = vpack.c.bf16 %v2952_v57, %v2952_v57  ;;  %vm1028_vm13 = vcmp.le.s32.totalorder %v802_v60, 14  ;;  %v2219_v4 = vpack.c.bf16 %v2187_v58, %v2187_v58  ;;  %v2443_v7 = vld [vmem:[%s8003_s0 + $0x37] sm:$0xff]  ;;  %vm967_vm0 = vcmp.ge.s32.totalorder %v599_v63, 1  ;;  %v2444_v13 = vld [vmem:[%s8003_s0 + $0x3f] sm:$0xff] }
  0x1c   : > { %2155 = vst.msk [vmem:[#allocation2 + $0x1c] sm:$0xf] %vm1221_vm6, %v8072_v41  ;;  %v3015_v1 = vsel %vm8005_vm1, %v2983_v61, 0  ;;  %vm8128_vm15 = vmpackc.low %vm1028_vm13, %vm1028_vm13  ;;  %v2252_v12 = vsel %vm8066_vm10, %v8024_v22, 0  ;;  %v8150_v15 = vpack.c.bf16 %v2443_v7, %v2443_v7  ;;  %v554_v16 = vadd.s32 40, %v7992_v3  ;;  %v8161_v23 = vld [vmem:[%s8003_s0 + $0x40] sm:$0xff] }
  0x1d   : > { %3045 = vst.msk [vmem:[#allocation2 + $0x158] sm:$0xf] %vm1221_vm6, %v3013_v54  ;;  %v11621_v5 = vsel %vm8128_vm15, 4294967295, %v11620_v5  ;;  %v3016_v8 = vsel %vm8128_vm15, %v2984_v62, 0  ;;  %v8144_v11 = vsel %vm8005_vm1, %v2219_v4, 0  ;;  %vm8153_vm2 = vmpackc.low %vm967_vm0, %vm967_vm0  ;;  %v2476_v20 = vpack.c.bf16 %v2444_v13, %v2444_v13  ;;  %v2926_v24 = vld [vmem:[%s8003_s0 + $0x51] sm:$0xff] }
  0x1e   : > { %3046 = vst.msk [vmem:[#allocation2 + $0x164] sm:$0xf] %vm1221_vm6, %v3014_v55  ;;  %v620_v19 = vand.u32 15, %v554_v16  ;;  %v2507_v25 = vsel %vm8153_vm2, %v8150_v15, 0  ;;  %v8169_v26 = vpack.c.bf16 %v8161_v23, %v8161_v23  ;;  %v8171_v28 = vpack.c.bf16 %v2926_v24, %v2926_v24  ;;  %v7658_v30 = vld [vmem:[%s11585_s2 + $0x8] sm:$0xff]  ;;  %v7657_v34 = vld [vmem:[%s11585_s2] sm:$0xff] }
  0x1f   : > { %2315 = vrot.lane.b32.xlu0 %v2250_v49, %s7886_s17  ;;  %2571 = vrot.lane.b32.xlu1 %v8089_v50, %s7887_s18  ;;  %2156 = vst.msk [vmem:[#allocation2 + $0x28] sm:$0xf] %vm1221_vm6, %v8114_v59  ;;  %v8192_v35 = vsel %vm8005_vm1, %v2476_v20, 0  ;;  %v8199_v42 = vld [vmem:[%s8003_s0 + $0x48] sm:$0xff]  ;;  %v1255_v45 = vld [vmem:[%s8003_s0 + $0x10] sm:$0xff]  ;;  %v1642_v63 = vsel %vm8066_vm10, %v8047_v33, 0  ;;  %v3962_v24 = vpack.c.bf16 %v8082_v48, %v8053_v36 }
  0x20   : > { %v7213_v2 = vld [vmem:[#allocation2 + $0x140] sm:$0xf]  ;;  %3047 = vst.msk [vmem:[#allocation2 + $0x170] sm:$0xf] %vm1221_vm6, %v3015_v1  ;;  %vm1002_vm4 = vcmp.le.s32.totalorder %v620_v19, 14  ;;  %4047 = vmatpush.bf16.msrb.mxu3 %v7658_v30  ;;  %v1254_v44 = vld [vmem:[%s8003_s0 + $0x8] sm:$0xff]  ;;  %v8205_v46 = vpack.c.bf16 %v8199_v42, %v8199_v42  ;;  %v1287_v53 = vpack.c.bf16 %v1255_v45, %v1255_v45 }
  0x21   : > { %v7632_v6 = vld [vmem:[#allocation2 + $0x148] sm:$0xf0]  ;;  %2157 = vst.msk [vmem:[#allocation2 + $0x34] sm:$0xf] %vm1221_vm6, %v8122_v0  ;;  %vm8176_vm5 = vmpackc.low %vm1002_vm4, %vm1002_vm4  ;;  %v1286_v49 = vpack.c.bf16 %v1254_v44, %v1254_v44  ;;  %v8213_v54 = vld [vmem:[%s8003_s0 + $0x18] sm:$0xff]  ;;  %v556_v48 = vadd.s32 56, %v7992_v3 }
  0x22   : > { %v7214_v10 = vor.u32 %v7632_v6, %v7213_v2  ;;  %3048 = vst.msk [vmem:[#allocation2 + $0x17c] sm:$0xf] %vm1221_vm6, %v3016_v8  ;;  %2795 = vrot.lane.b32.xlu2 %v8114_v59, %s7888_s19  ;;  %v2990_v32 = vsel %vm8176_vm5, %v8171_v28, 0  ;;  %v1479_v47 = vld [vmem:[%s8003_s0 + $0x9] sm:$0xff]  ;;  %v8218_v56 = vpack.c.bf16 %v8213_v54, %v8213_v54  ;;  %v1480_v57 = vld [vmem:[%s8003_s0 + $0x11] sm:$0xff]  ;;  %v3930_v60 = vld [vmem:[%s8003_s0 + $0x20] sm:$0xff] }
  0x23   : > { %2158 = vst.msk [vmem:[#allocation2 + $0x40] sm:$0xf] %vm1221_vm6, %v8169_v26  ;;  %v1511_v55 = vpack.c.bf16 %v1479_v47, %v1479_v47  ;;  %v1832_v58 = vld [vmem:[%s8003_s0 + $0x17] sm:$0xff]  ;;  %v1833_v61 = vld [vmem:[%s8003_s0 + $0x1f] sm:$0xff]  ;;  %v1289_v62 = vpack.c.bf16 %v3930_v60, %v3930_v60  ;;  %v1512_v1 = vpack.c.bf16 %v1480_v57, %v1480_v57  ;;  %v2445_v30 = vld [vmem:[%s8003_s0 + $0x47] sm:$0xff]  ;;  %vm1799_vm15 = vcmask 781824  }
  0x24   : > { %7324 = vmatmul.msk.bf16.vlgmr.msra.gmra.mxu3 %vm11600_vm14, %v7214_v10  ;;  %3022 = vst.msk [vmem:[#allocation2 + $0x44] sm:$0xf] %vm1221_vm6, %v2990_v32  ;;  %v7225_v37 = vld [vmem:[#allocation2 + $0x158] sm:$0xf]  ;;  %v8231_v2 = vpack.c.bf16 %v1832_v58, %v1832_v58  ;;  %v1865_v6 = vpack.c.bf16 %v1833_v61, %v1833_v61  ;;  %v8262_v36 = vpack.c.bf16 %v2445_v30, %v2445_v30  ;;  %v8273_v45 = vld [vmem:[%s8003_s0 + $0x50] sm:$0xff]  ;;  %v2928_v47 = vld [vmem:[%s8003_s0 + $0x61] sm:$0xff] }
  0x25   : > { %v7635_v38 = vld [vmem:[#allocation2 + $0x160] sm:$0xf0]  ;;  %4048 = vmatpush.bf16.msrb.mxu3 %v7657_v34  ;;  %2159 = vst.msk [vmem:[#allocation2 + $0x4c] sm:$0xf] %vm1221_vm6, %v8205_v46  ;;  %v1639_v4 = vsel %vm8005_vm1, %v1511_v55, 0  ;;  %v1640_v8 = vsel %vm8020_vm7, %v1512_v1, 0  ;;  %v8283_v55 = vpack.c.bf16 %v2928_v47, %v2928_v47 }
  0x26   : > { %v7226_v43 = vor.u32 %v7635_v38, %v7225_v37  ;;  %2153 = vst.msk [vmem:[#allocation2 + $0x4] sm:$0xf] %vm1221_vm6, %v8218_v56  ;;  %v1897_v7 = vsel %vm8005_vm1, %v1865_v6, 0  ;;  %v1896_v10 = vsel %vm8010_vm3, %v8231_v2, 0  ;;  %v2189_v19 = vld [vmem:[%s8003_s0 + $0x39] sm:$0xff]  ;;  %v2254_v34 = vsel %vm8176_vm5, %v8060_v39, 0 }
  0x27   : > { %2317 = vrot.lane.b32.xlu0 %v8144_v11, %s7886_s17  ;;  %2319 = vrot.lane.b32.xlu1 %v2252_v12, %s7886_s17  ;;  %2154 = vst.msk [vmem:[#allocation2 + $0x10] sm:$0xf] %vm1221_vm6, %v1289_v62  ;;  %v553_v12 = vadd.s32 32, %v7992_v3  ;;  %v7237_v13 = vld [vmem:[#allocation2 + $0x170] sm:$0xf]  ;;  %v8305_v1 = vld [vmem:[%s8003_s0 + $0x58] sm:$0xff]  ;;  %v3961_v6 = vpack.c.bf16 %v3930_v60, %v8213_v54 }
  0x28   : > { %1225 = vst.msk [vmem:[#allocation2 + $0x24] sm:$0xf] %vm1221_vm6, %v1897_v7  ;;  %v2446_v37 = vld [vmem:[%s8003_s0 + $0x4f] sm:$0xff]  ;;  %v555_v54 = vadd.s32 48, %v7992_v3  ;;  %v2448_v40 = vld [vmem:[%s8003_s0 + $0x5f] sm:$0xff] }
  0x29   : > { %v7638_v16 = vld [vmem:[#allocation2 + $0x178] sm:$0xf0]  ;;  %v613_v20 = vand.u32 15, %v553_v12  ;;  %v2478_v44 = vpack.c.bf16 %v2446_v37, %v2446_v37  ;;  %v2191_v60 = vld [vmem:[%s8003_s0 + $0x49] sm:$0xff]  ;;  %v2930_v12 = vld [vmem:[%s8003_s0 + $0x71] sm:$0xff] }
  0x2a   : > { %2573 = vrot.lane.b32.xlu2 %v2507_v25, %s7887_s18  ;;  %v7238_v21 = vor.u32 %v7638_v16, %v7237_v13  ;;  %v2221_v25 = vpack.c.bf16 %v2189_v19, %v2189_v19  ;;  %v8371_v19 = vpack.c.bf16 %v2930_v12, %v2930_v12  ;;  %v1030_v12 = vld [vmem:[%s8003_s0 + $0xf] sm:$0xff] }
  0x2b   : > { %vm969_vm7 = vcmp.ge.s32.totalorder %v613_v20, 1  ;;  %v8298_v61 = vsel %vm8005_vm1, %v2478_v44, 0  ;;  %v3943_v20 = vld [vmem:[%s8003_s0 + $0x88] sm:$0xff] }
  0x2c   : > { %v8256_v32 = vsel %vm8005_vm1, %v2221_v25, 0  ;;  %vm8265_vm8 = vmpackc.low %vm969_vm7, %vm969_vm7  ;;  %v8393_v25 = vld [vmem:[%s8003_s0 + $0x68] sm:$0xff] }
  0x2d   : > { %v8397_v30 = vpack.c.bf16 %v8393_v25, %v8393_v25  ;;  %v1900_v37 = vsel %vm8265_vm8, %v8150_v15, 0  ;;  %v7648_v38 = vld [vmem:[%s11584_s1 + $0x48] sm:$0xff] }
  0x2f   : > { %2575 = vrot.lane.b32.xlu0 %v8192_v35, %s7887_s18  ;;  %2797 = vrot.lane.b32.xlu1 %v8122_v0, %s7888_s19  ;;  %2163 = vst.msk [vmem:[#allocation2 + $0x7c] sm:$0xf] %vm1221_vm6, %v8397_v30 }
  0x32   : > { %2799 = vrot.lane.b32.xlu2 %v8169_v26, %s7888_s19 }
  0x34   : > { %7325 = vmatmul.msk.bf16.gmra.mxu3 %vm11600_vm14, %v7226_v43  ;;  %v634_v43 = vand.u32 15, %v556_v48  ;;  %v557_v48 = vadd.s32 64, %v7992_v3 }
  0x36   : > { %vm1004_vm11 = vcmp.le.s32.totalorder %v634_v43, 14  ;;  %v2193_v43 = vld [vmem:[%s8003_s0 + $0x59] sm:$0xff]  ;;  %v641_v47 = vand.u32 15, %v557_v48 }
  0x37   : > { %1350 = vrot.lane.b32.xlu0 %v1286_v49, %s7886_s17  ;;  %1352 = vrot.lane.b32.xlu1 %v1287_v53, %s7886_s17  ;;  %v2509_v49 = vsel %vm8265_vm8, %v8262_v36, 0  ;;  %v8281_v53 = vpack.c.bf16 %v8273_v45, %v8273_v45  ;;  %vm8285_vm13 = vmpackc.low %vm1004_vm11, %vm1004_vm11 }
  0x38   : > { %v2992_v58 = vsel %vm8285_vm13, %v8283_v55, 0  ;;  %v2256_v33 = vsel %vm8285_vm13, %v8171_v28, 0  ;;  %vm973_vm7 = vcmp.ge.s32.totalorder %v641_v47, 1 }
  0x39   : > { %2160 = vst.msk [vmem:[#allocation2 + $0x58] sm:$0xf] %vm1221_vm6, %v8281_v53  ;;  %vm8434_vm11 = vmpackc.low %vm973_vm7, %vm973_vm7  ;;  %vm2056_vm7 = vcmask 1044224  }
  0x3a   : > { %1703 = vrot.lane.b32.xlu2 %v1639_v4, %s7887_s18  ;;  %3024 = vst.msk [vmem:[#allocation2 + $0x5c] sm:$0xf] %vm1221_vm6, %v2992_v58  ;;  %v3963_v4 = vpack.c.bf16 %v8161_v23, %v8095_v51  ;;  %v1644_v51 = vsel %vm8176_vm5, %v8024_v22, 0  ;;  %v1898_v23 = vsel %vm8153_vm2, %v8015_v17, 0  ;;  %v2223_v22 = vpack.c.bf16 %v2191_v60, %v2191_v60 }
  0x3c   : > { %v8344_v17 = vsel %vm8005_vm1, %v2223_v22, 0 }
  0x3f   : > { %1705 = vrot.lane.b32.xlu0 %v1640_v8, %s7887_s18  ;;  %1960 = vrot.lane.b32.xlu1 %v1896_v10, %s7888_s19  ;;  %v627_v8 = vand.u32 15, %v555_v54  ;;  %v8361_v10 = vld [vmem:[%s8003_s0 + $0x60] sm:$0xff] }
  0x40   : > { %v8369_v16 = vpack.c.bf16 %v8361_v10, %v8361_v10  ;;  %v2932_v54 = vld [vmem:[%s8003_s0 + $0x81] sm:$0xff]  ;;  %v3965_v14 = vpack.c.bf16 %v8361_v10, %v8305_v1 }
  0x41   : > { %vm971_vm0 = vcmp.ge.s32.totalorder %v627_v8, 1  ;;  %v8452_v22 = vpack.c.bf16 %v2932_v54, %v2932_v54 }
  0x42   : > { %1962 = vrot.lane.b32.xlu2 %v1897_v7, %s7888_s19  ;;  %v8312_v7 = vpack.c.bf16 %v8305_v1, %v8305_v1  ;;  %vm8353_vm10 = vmpackc.low %vm971_vm0, %vm971_vm0  ;;  %2162 = vst.msk [vmem:[#allocation2 + $0x70] sm:$0xf] %vm1221_vm6, %v8369_v16  ;;  %vm11603_vm0 = vcmask 519424  }
  0x44   : > { %7326 = vmatmul.msk.bf16.gmra.mxu3 %vm11600_vm14, %v7238_v21  ;;  %2161 = vst.msk [vmem:[#allocation2 + $0x64] sm:$0xf] %vm1221_vm6, %v8312_v7 }
  0x47   : > { %2321 = vrot.lane.b32.xlu0 %v8256_v32, %s7886_s17  ;;  %2323 = vrot.lane.b32.xlu1 %v2254_v34, %s7886_s17 }
  0x4a   : > { %2577 = vrot.lane.b32.xlu2 %v2509_v49, %s7887_s18 }
  0x4f   : > { %2579 = vrot.lane.b32.xlu0 %v8298_v61, %s7887_s18  ;;  %2801 = vrot.lane.b32.xlu1 %v8205_v46, %s7888_s19 }
  0x52   : > { %2803 = vrot.lane.b32.xlu2 %v8281_v53, %s7888_s19 }
  0x54   : > { %7335 = vmatmul.msk.bf16.vlgmr.msrb.gmra.mxu3 %vm11600_vm14, %v3961_v6 }
  0x57   : > { %1354 = vrot.lane.b32.xlu0 %v8218_v56, %s7886_s17  ;;  %1356 = vrot.lane.b32.xlu1 %v1289_v62, %s7886_s17  ;;  %v558_v56 = vadd.s32 72, %v7992_v3 }
  0x5a   : > { %1707 = vrot.lane.b32.xlu2 %v8034_v27, %s7887_s18  ;;  %v2447_v27 = vld [vmem:[%s8003_s0 + $0x57] sm:$0xff] }
  0x5b   : > { %v8350_v31 = vpack.c.bf16 %v2447_v27, %v2447_v27 }
  0x5d   : > { %v2511_v13 = vsel %vm8353_vm10, %v8350_v31, 0 }
  0x5f   : > { %1709 = vrot.lane.b32.xlu0 %v1642_v63, %s7887_s18  ;;  %1964 = vrot.lane.b32.xlu1 %v1898_v23, %s7888_s19  ;;  %v2480_v63 = vpack.c.bf16 %v2448_v40, %v2448_v40 }
  0x61   : > { %v8386_v21 = vsel %vm8005_vm1, %v2480_v63, 0 }
  0x62   : > { %1966 = vrot.lane.b32.xlu2 %v8089_v50, %s7888_s19  ;;  %v648_v50 = vand.u32 15, %v558_v56  ;;  %v1029_v56 = vld [vmem:[%s8003_s0 + $0x7] sm:$0xff] }
  0x63   : > { %v1061_v63 = vpack.c.bf16 %v1029_v56, %v1029_v56  ;;  %v2707_v56 = vld [vmem:[%s8003_s0 + $0x78] sm:$0xff] }
  0x64   : > { %7336 = vmatmul.msk.bf16.gmra.mxu3 %vm11600_vm14, %v3962_v24  ;;  %vm1006_vm4 = vcmp.le.s32.totalorder %v648_v50, 14 }
  0x65   : > { %vm8373_vm5 = vmpackc.low %vm1006_vm4, %vm1006_vm4 }
  0x66   : > { %v2994_v24 = vsel %vm8373_vm5, %v8371_v19, 0  ;;  %v2258_v49 = vsel %vm8373_vm5, %v8283_v55, 0 }
  0x67   : > { %2325 = vrot.lane.b32.xlu0 %v8344_v17, %s7886_s17  ;;  %2327 = vrot.lane.b32.xlu1 %v2256_v33, %s7886_s17  ;;  %3026 = vst.msk [vmem:[#allocation2 + $0x74] sm:$0xf] %vm1221_vm6, %v2994_v24  ;;  %v1189_v24 = vsel %vm8010_vm3, %v1061_v63, 0  ;;  %vm11638_vm3 = vcmask 261120  }
  0x68   : > { %1222 = vst.msk [vmem:[#allocation2] sm:$0xf] %vm1221_vm6, %v1189_v24 }
  0x6a   : > { %2581 = vrot.lane.b32.xlu2 %v2511_v13, %s7887_s18 }
  0x6f   : > { %2583 = vrot.lane.b32.xlu0 %v8386_v21, %s7887_s18  ;;  %2805 = vrot.lane.b32.xlu1 %v8312_v7, %s7888_s19 }
  0x72   : > { %2807 = vrot.lane.b32.xlu2 %v8369_v16, %s7888_s19 }
  0x74   : > { %7337 = vmatmul.msk.bf16.gmra.mxu3 %vm11600_vm14, %v3963_v4  ;;  %v2794_v34 = vpop.permute.xlu2 %2793 }
  0x77   : > { %1358 = vrot.lane.b32.xlu0 %v8072_v41, %s7886_s17  ;;  %1360 = vrot.lane.b32.xlu1 %v8114_v59, %s7886_s17  ;;  %v3964_v41 = vpack.c.bf16 %v8273_v45, %v8199_v42  ;;  %v2225_v59 = vpack.c.bf16 %v2193_v43, %v2193_v43  ;;  %v560_v42 = vadd.s32 88, %v7992_v3  ;;  %v2450_v45 = vld [vmem:[%s8003_s0 + $0x6f] sm:$0xff] }
  0x78   : > { %v2482_v60 = vpack.c.bf16 %v2450_v45, %v2450_v45  ;;  %v2451_v45 = vld [vmem:[%s8003_s0 + $0x77] sm:$0xff] }
  0x79   : > { %v8425_v15 = vsel %vm8005_vm1, %v2225_v59, 0  ;;  %v2195_v59 = vld [vmem:[%s8003_s0 + $0x69] sm:$0xff] }
  0x7a   : > { %1711 = vrot.lane.b32.xlu2 %v8144_v11, %s7887_s18  ;;  %v2449_v11 = vld [vmem:[%s8003_s0 + $0x67] sm:$0xff]  ;;  %v8471_v13 = vsel %vm8005_vm1, %v2482_v60, 0 }
  0x7b   : > { %v8430_v58 = vpack.c.bf16 %v2449_v11, %v2449_v11 }
  0x7c   : > { %v2796_v44 = vpop.permute.xlu2 %2795 }
  0x7d   : > { %v2513_v8 = vsel %vm8434_vm11, %v8430_v58, 0 }
  0x7f   : > { %1713 = vrot.lane.b32.xlu0 %v1644_v51, %s7887_s18  ;;  %1968 = vrot.lane.b32.xlu1 %v1900_v37, %s7888_s19  ;;  %v662_v51 = vand.u32 15, %v560_v42  ;;  %v1062_v37 = vpack.c.bf16 %v1030_v12, %v1030_v12  ;;  %v2227_v42 = vpack.c.bf16 %v2195_v59, %v2195_v59  ;;  %v7646_v59 = vld [vmem:[%s11584_s1 + $0x38] sm:$0xff] }
  0x80   : > { %3548 = vmatpush.bf16.msra.mxu0 %v7646_v59 }
  0x81   : > { %vm1008_vm4 = vcmp.le.s32.totalorder %v662_v51, 14  ;;  %v1190_v43 = vsel %vm8005_vm1, %v1062_v37, 0  ;;  %v2452_v51 = vld [vmem:[%s8003_s0 + $0x7f] sm:$0xff] }
  0x82   : > { %1970 = vrot.lane.b32.xlu2 %v8192_v35, %s7888_s19  ;;  %v8439_v35 = vld [vmem:[%s8003_s0 + $0x70] sm:$0xff]  ;;  %1223 = vst.msk [vmem:[#allocation2 + $0xc] sm:$0xf] %vm1221_vm6, %v1190_v43  ;;  %v8556_v43 = vpack.c.bf16 %v2707_v56, %v2707_v56 }
  0x83   : > { %v8446_v23 = vpack.c.bf16 %v8439_v35, %v8439_v35 }
  0x84   : > { %7338 = vmatmul.msk.bf16.gmra.mxu3 %vm11600_vm14, %v3964_v41  ;;  %v2574_v4 = vpop.permute.xlu2 %2573  ;;  %vm8454_vm14 = vmpackc.low %vm1008_vm4, %vm1008_vm4 }
  0x85   : > { %2164 = vst.msk [vmem:[#allocation2 + $0x88] sm:$0xf] %vm1221_vm6, %v8446_v23  ;;  %v2996_v50 = vsel %vm8454_vm14, %v8452_v22, 0  ;;  %vm11639_vm4 = vmmov %vm11638_vm3 }
  0x86   : > { %3028 = vst.msk [vmem:[#allocation2 + $0x8c] sm:$0xf] %vm1221_vm6, %v2996_v50 }
  0x87   : > { %2329 = vrot.lane.b32.xlu0 %v8425_v15, %s7886_s17  ;;  %2331 = vrot.lane.b32.xlu1 %v2258_v49, %s7886_s17 }
  0x89   : > { %v2314_v27 = vpop.permute.xlu0 %2313  ;;  %v2570_v33 = vpop.permute.xlu1 %2569 }
  0x8a   : > { %2409 = vst.msk [vmem:[#allocation2 + $0x4] sm:$0xf] %vm11603_vm0, %v2314_v27  ;;  %2585 = vrot.lane.b32.xlu2 %v2513_v8, %s7887_s18  ;;  %v2934_v27 = vld [vmem:[%s8003_s0 + $0x91] sm:$0xff] }
  0x8b   : > { %2665 = vst.msk [vmem:[#allocation2 + $0x4] sm:$0xf] %vm1799_vm15, %v2570_v33  ;;  %v2484_v33 = vpack.c.bf16 %v2452_v51, %v2452_v51  ;;  %v8545_v63 = vpack.c.bf16 %v2934_v27, %v2934_v27 }
  0x8c   : > { %2889 = vst.msk [vmem:[#allocation2 + $0x4] sm:$0xf] %vm2056_vm7, %v2794_v34  ;;  %v2800_v48 = vpop.permute.xlu2 %2799 }
  0x8f   : > { %2587 = vrot.lane.b32.xlu0 %v8471_v13, %s7887_s18  ;;  %2809 = vrot.lane.b32.xlu1 %v8397_v30, %s7888_s19 }
  0x91   : > { %v2316_v34 = vpop.permute.xlu0 %2315  ;;  %v2572_v47 = vpop.permute.xlu1 %2571 }
  0x92   : > { %2410 = vst.msk [vmem:[#allocation2 + $0x10] sm:$0xf] %vm11603_vm0, %v2316_v34  ;;  %2811 = vrot.lane.b32.xlu2 %v8446_v23, %s7888_s19  ;;  %v8565_v34 = vsel %vm8005_vm1, %v2484_v33, 0 }
  0x93   : > { %2666 = vst.msk [vmem:[#allocation2 + $0x10] sm:$0xf] %vm1799_vm15, %v2572_v47  ;;  %v3942_v47 = vld [vmem:[%s8003_s0 + $0x80] sm:$0xff] }
  0x94   : > { %7339 = vmatmul.msk.bf16.gmra.mxu3 %vm11638_vm3, %v3965_v14  ;;  %2890 = vst.msk [vmem:[#allocation2 + $0x10] sm:$0xf] %vm2056_vm7, %v2796_v44  ;;  %v1704_v41 = vpop.permute.xlu2 %1703  ;;  %v1646_v44 = vsel %vm8285_vm13, %v8060_v39, 0  ;;  %v1191_v14 = vsel %vm8153_vm2, %v8231_v2, 0  ;;  %v8576_v18 = vpack.c.bf16 %v3942_v47, %v3942_v47  ;;  %v3967_v2 = vpack.c.bf16 %v3942_v47, %v2707_v56  ;;  %v2453_v56 = vld [vmem:[%s8003_s0 + $0x87] sm:$0xff]  ;;  %v2454_v47 = vld [vmem:[%s8003_s0 + $0x8f] sm:$0xff] }
  0x95   : > { %1224 = vst.msk [vmem:[#allocation2 + $0x18] sm:$0xf] %vm1221_vm6, %v1191_v14  ;;  %vm11646_vm2 = vcmask 261120   ;;  %v7643_v14 = vld [vmem:[%s11584_s1 + $0x20] sm:$0xff]  ;;  %v2486_v59 = vpack.c.bf16 %v2454_v47, %v2454_v47 }
  0x97   : > { %1362 = vrot.lane.b32.xlu0 %v8122_v0, %s7886_s17  ;;  %1364 = vrot.lane.b32.xlu1 %v8169_v26, %s7886_s17  ;;  %v1902_v0 = vsel %vm8353_vm10, %v8262_v36, 0  ;;  %v559_v26 = vadd.s32 80, %v7992_v3  ;;  %v8522_v36 = vsel %vm8005_vm1, %v2227_v42, 0  ;;  %v2197_v42 = vld [vmem:[%s8003_s0 + $0x79] sm:$0xff] }
  0x99   : > { %v2318_v1 = vpop.permute.xlu0 %2317  ;;  %v2320_v10 = vpop.permute.xlu1 %2319  ;;  %v655_v49 = vand.u32 15, %v559_v26 }
  0x9a   : > { %2411 = vst.msk [vmem:[#allocation2 + $0x1c] sm:$0xf] %vm11603_vm0, %v2318_v1  ;;  %1715 = vrot.lane.b32.xlu2 %v8256_v32, %s7887_s18  ;;  %v3966_v32 = vpack.c.bf16 %v8439_v35, %v8393_v25  ;;  %v2260_v25 = vsel %vm8454_vm14, %v8371_v19, 0  ;;  %v562_v35 = vadd.s32 104, %v7992_v3 }
  0x9b   : > { %2667 = vst.msk [vmem:[#allocation2 + $0x1c] sm:$0xf] %vm1799_vm15, %v2574_v4  ;;  %vm975_vm13 = vcmp.ge.s32.totalorder %v655_v49, 1  ;;  %v8527_v4 = vpack.c.bf16 %v2451_v45, %v2451_v45  ;;  %v8619_v45 = vld [vmem:[%s8003_s0 + $0x90] sm:$0xff] }
  0x9c   : > { %2412 = vst.msk [vmem:[#allocation2 + $0x28] sm:$0xf] %vm11603_vm0, %v2320_v10  ;;  %v1963_v11 = vpop.permute.xlu2 %1962  ;;  %vm8531_vm3 = vmpackc.low %vm975_vm13, %vm975_vm13  ;;  %v676_v60 = vand.u32 15, %v562_v35  ;;  %v2229_v35 = vpack.c.bf16 %v2197_v42, %v2197_v42  ;;  %v3968_v51 = vpack.c.bf16 %v8619_v45, %v3943_v20  ;;  %v8681_v42 = vpack.c.bf16 %v3943_v20, %v3943_v20 }
  0x9d   : > { %v2515_v50 = vsel %vm8531_vm3, %v8527_v4, 0 }
  0x9e   : > { %vm1010_vm13 = vcmp.le.s32.totalorder %v676_v60, 14  ;;  %v7652_v60 = vld [vmem:[%s11584_s1 + $0x68] sm:$0xff] }
  0x9f   : > { %1717 = vrot.lane.b32.xlu0 %v1646_v44, %s7887_s18  ;;  %1972 = vrot.lane.b32.xlu1 %v1902_v0, %s7888_s19 }
  0xa1   : > { %v2576_v57 = vpop.permute.xlu0 %2575  ;;  %v2798_v39 = vpop.permute.xlu1 %2797 }
  0xa2   : > { %2668 = vst.msk [vmem:[#allocation2 + $0x28] sm:$0xf] %vm1799_vm15, %v2576_v57  ;;  %1974 = vrot.lane.b32.xlu2 %v8298_v61, %s7888_s19  ;;  %v561_v57 = vadd.s32 96, %v7992_v3 }
  0xa3   : > { %2892 = vst.msk [vmem:[#allocation2 + $0x28] sm:$0xf] %vm2056_vm7, %v2800_v48 }
  0xa4   : > { %7340 = vmatmul.msk.bf16.gmra.mxu3 %vm11639_vm4, %v3966_v32  ;;  %2891 = vst.msk [vmem:[#allocation2 + $0x1c] sm:$0xf] %vm2056_vm7, %v2798_v39  ;;  %v2578_v54 = vpop.permute.xlu2 %2577  ;;  %vm8547_vm4 = vmpackc.low %vm1010_vm13, %vm1010_vm13  ;;  %v7645_v39 = vld [vmem:[%s11584_s1 + $0x30] sm:$0xff] }
  0xa5   : > { %v2998_v48 = vsel %vm8547_vm4, %v8545_v63, 0  ;;  %3549 = vmatpush.bf16.msra.mxu0 %v7645_v39  ;;  %vm11649_vm13 = vmmov %vm11646_vm2  ;;  %v8690_v39 = vsel %vm8005_vm1, %v2486_v59, 0 }
  0xa6   : > { %3030 = vst.msk [vmem:[#allocation2 + $0xa4] sm:$0xf] %vm1221_vm6, %v2998_v48  ;;  %v564_v48 = vadd.s32 120, %v7992_v3 }
  0xa7   : > { %v8535_v8 = vpop.f32.mrf.mxu3  ;;  %2333 = vrot.lane.b32.xlu0 %v8522_v36, %s7886_s17  ;;  %2335 = vrot.lane.b32.xlu1 %v2260_v25, %s7886_s17 }
  0xa8   : > { %11642 = vst [vmem:[#allocation3_spill] sm:$0xff] %v8535_v8 }
  0xa9   : > { %v1351_v12 = vpop.permute.xlu0 %1350  ;;  %v1353_v24 = vpop.permute.xlu1 %1352 }
  0xaa   : > { %1447 = vst.msk [vmem:[#allocation2] sm:$0xf] %vm11603_vm0, %v1351_v12  ;;  %2589 = vrot.lane.b32.xlu2 %v2515_v50, %s7887_s18  ;;  %v8639_v50 = vsel %vm8005_vm1, %v2229_v35, 0  ;;  %v2262_v12 = vsel %vm8547_vm4, %v8452_v22, 0  ;;  %v1034_v35 = vld [vmem:[%s8003_s0 + $0x2f] sm:$0xff] }
  0xab   : > { %1800 = vst.msk [vmem:[#allocation2] sm:$0xf] %vm1799_vm15, %v1704_v41 }
  0xac   : > { %1448 = vst.msk [vmem:[#allocation2 + $0xc] sm:$0xf] %vm11603_vm0, %v1353_v24  ;;  %v2804_v1 = vpop.permute.xlu2 %2803  ;;  %v8648_v24 = vpack.c.bf16 %v2453_v56, %v2453_v56  ;;  %v1066_v56 = vpack.c.bf16 %v1034_v35, %v1034_v35 }
  0xaf   : > { %v8570_v41 = vpop.f32.mrf.mxu3  ;;  %2591 = vrot.lane.b32.xlu0 %v8565_v34, %s7887_s18  ;;  %2813 = vrot.lane.b32.xlu1 %v8556_v43, %s7888_s19 }
  0xb0   : > { %11645 = vst [vmem:[#allocation4_spill] sm:$0xff] %v8570_v41 }
  0xb1   : > { %v1706_v10 = vpop.permute.xlu0 %1705  ;;  %v1961_v44 = vpop.permute.xlu1 %1960 }
  0xb2   : > { %1801 = vst.msk [vmem:[#allocation2 + $0xc] sm:$0xf] %vm1799_vm15, %v1706_v10  ;;  %2815 = vrot.lane.b32.xlu2 %v8576_v18, %s7888_s19 }
  0xb3   : > { %2058 = vst.msk [vmem:[#allocation2 + $0xc] sm:$0xf] %vm2056_vm7, %v1963_v11  ;;  %v7654_v11 = vld [vmem:[%s11584_s1 + $0x78] sm:$0xff] }
  0xb4   : > { %7341 = vmatmul.msk.bf16.gmra.mxu3 %vm11646_vm2, %v3967_v2  ;;  %2057 = vst.msk [vmem:[#allocation2] sm:$0xf] %vm2056_vm7, %v1961_v44  ;;  %v8584_v0 = vpop.permute.xlu2 %1707  ;;  %3637 = vmatpush.bf16.msra.mxu1 %v7654_v11  ;;  %v690_v44 = vand.u32 15, %v564_v48  ;;  %v8720_v48 = vpack.c.bf16 %v8619_v45, %v8619_v45 }
  0xb7   : > { %v8586_v26 = vpop.f32.mrf.mxu3  ;;  %1366 = vrot.lane.b32.xlu0 %v8205_v46, %s7886_s17  ;;  %1368 = vrot.lane.b32.xlu1 %v8281_v53, %s7886_s17  ;;  %v1648_v46 = vsel %vm8373_vm5, %v8171_v28, 0  ;;  %v1904_v53 = vsel %vm8434_vm11, %v8350_v31, 0  ;;  %v7653_v28 = vld [vmem:[%s11584_s1 + $0x70] sm:$0xff] }
  0xb8   : > { %11647 = vst [vmem:[#allocation5_spill] sm:$0xff] %v8586_v26  ;;  %3638 = vmatpush.bf16.msra.mxu1 %v7653_v28  ;;  %v2936_v28 = vld [vmem:[%s8003_s0 + $0xa1] sm:$0xff] }
  0xb9   : > { %v2322_v49 = vpop.permute.xlu0 %2321  ;;  %v2324_v32 = vpop.permute.xlu1 %2323 }
  0xba   : > { %2413 = vst.msk [vmem:[#allocation2 + $0x34] sm:$0xf] %vm11603_vm0, %v2322_v49  ;;  %1719 = vrot.lane.b32.xlu2 %v8344_v17, %s7887_s18  ;;  %v669_v17 = vand.u32 15, %v561_v57  ;;  %v7642_v49 = vld [vmem:[%s11584_s1 + $0x18] sm:$0xff]  ;;  %v7592_v35 = vld [vmem:[#allocation2 + $0x8] sm:$0xf0] }
  0xbb   : > { %2669 = vst.msk [vmem:[#allocation2 + $0x34] sm:$0xf] %vm1799_vm15, %v2578_v54  ;;  %v7644_v54 = vld [vmem:[%s11584_s1 + $0x28] sm:$0xff]  ;;  %v8684_v57 = vld [vmem:[%s8003_s0 + $0x98] sm:$0xff] }
  0xbc   : > { %2414 = vst.msk [vmem:[#allocation2 + $0x40] sm:$0xf] %vm11603_vm0, %v2324_v32  ;;  %v8621_v31 = vpop.permute.xlu2 %1966  ;;  %vm977_vm5 = vcmp.ge.s32.totalorder %v669_v17, 1  ;;  %3550 = vmatpush.bf16.msra.mxu0 %v7644_v54  ;;  %3639 = vmatpush.bf16.msra.mxu1 %v7652_v60  ;;  %v7650_v32 = vld [vmem:[%s11584_s1 + $0x58] sm:$0xff]  ;;  %v1033_v17 = vld [vmem:[%s8003_s0 + $0x27] sm:$0xff]  ;;  %v7641_v60 = vld [vmem:[%s11584_s1 + $0x10] sm:$0xff] }
  0xbd   : > { %vm8660_vm2 = vmpackc.low %vm977_vm5, %vm977_vm5  ;;  %vm1012_vm5 = vcmp.le.s32.totalorder %v690_v44, 14  ;;  %v1065_v20 = vpack.c.bf16 %v1033_v17, %v1033_v17  ;;  %v7640_v44 = vld [vmem:[%s11584_s1 + $0x8] sm:$0xff] }
  0xbe   : > { %v2517_v11 = vsel %vm8660_vm2, %v8648_v24, 0 }
  0xbf   : > { %v8623_v25 = vpop.f32.mrf.mxu3  ;;  %1721 = vrot.lane.b32.xlu0 %v1648_v46, %s7887_s18  ;;  %1976 = vrot.lane.b32.xlu1 %v1904_v53, %s7888_s19 }
  0xc0   : > { %11648 = vst [vmem:[#allocation6_spill] sm:$0xff] %v8623_v25  ;;  %3551 = vmatpush.bf16.msra.mxu0 %v7643_v14 }
  0xc1   : > { %v2580_v27 = vpop.permute.xlu0 %2579  ;;  %v2802_v33 = vpop.permute.xlu1 %2801 }
  0xc2   : > { %2670 = vst.msk [vmem:[#allocation2 + $0x40] sm:$0xf] %vm1799_vm15, %v2580_v27  ;;  %1978 = vrot.lane.b32.xlu2 %v8386_v21, %s7888_s19  ;;  %v7651_v21 = vld [vmem:[%s11584_s1 + $0x60] sm:$0xff]  ;;  %v7649_v27 = vld [vmem:[%s11584_s1 + $0x50] sm:$0xff] }
  0xc3   : > { %2894 = vst.msk [vmem:[#allocation2 + $0x40] sm:$0xf] %vm2056_vm7, %v2804_v1  ;;  %3640 = vmatpush.bf16.msra.mxu1 %v7651_v21  ;;  %v1193_v21 = vsel %vm8265_vm8, %v1065_v20, 0  ;;  %vm11656_vm8 = vcmask 261120   ;;  %v8762_v20 = vld [vmem:[%s11594_s11] ss:$0 sm:$0xff] }
  0xc4   : > { %7342 = vmatmul.msk.bf16.gmra.mxu3 %vm11649_vm13, %v3968_v51  ;;  %2893 = vst.msk [vmem:[#allocation2 + $0x34] sm:$0xf] %vm2056_vm7, %v2802_v33  ;;  %v8658_v1 = vpop.permute.xlu2 %2581  ;;  %3552 = vmatpush.bf16.msra.mxu0 %v7642_v49  ;;  %v8696_v51 = vld [vmem:[%s8003_s0 + $0xa0] sm:$0xff]  ;;  %vm8708_vm13 = vmpackc.low %vm1012_vm5, %vm1012_vm5 }
  0xc5   : > { %v3969_v47 = vpack.c.bf16 %v8696_v51, %v8684_v57  ;;  %1226 = vst.msk [vmem:[#allocation2 + $0x30] sm:$0xf] %vm1221_vm6, %v1193_v21  ;;  %v7639_v49 = vld [vmem:[%s11584_s1] sm:$0xff]  ;;  %vm11657_vm5 = vmmov %vm11656_vm8 }
  0xc7   : > { %v8664_v10 = vpop.f32.mrf.mxu3  ;;  %2337 = vrot.lane.b32.xlu0 %v8639_v50, %s7886_s17  ;;  %2339 = vrot.lane.b32.xlu1 %v2262_v12, %s7886_s17 }
  0xc8   : > { %11652 = vst [vmem:[#allocation7_spill] sm:$0xff] %v8664_v10  ;;  %3641 = vmatpush.bf16.msra.mxu1 %v7650_v32  ;;  %3553 = vmatpush.bf16.msra.mxu0 %v7641_v60 }
  0xc9   : > { %v1355_v46 = vpop.permute.xlu0 %1354  ;;  %v1357_v53 = vpop.permute.xlu1 %1356 }
  0xca   : > { %1449 = vst.msk [vmem:[#allocation2 + $0x18] sm:$0xf] %vm11603_vm0, %v1355_v46  ;;  %2593 = vrot.lane.b32.xlu2 %v2517_v11, %s7887_s18  ;;  %v1194_v11 = vsel %vm8005_vm1, %v1066_v56, 0  ;;  %v7591_v46 = vld [vmem:[#allocation2 + $0x4] sm:$0xf] }
  0xcb   : > { %1802 = vst.msk [vmem:[#allocation2 + $0x18] sm:$0xf] %vm1799_vm15, %v8584_v0  ;;  %v8700_v0 = vpack.c.bf16 %v2936_v28, %v2936_v28  ;;  %v7049_v28 = vld [vmem:[#allocation2] sm:$0xf] }
  0xcc   : > { %1450 = vst.msk [vmem:[#allocation2 + $0x24] sm:$0xf] %vm11603_vm0, %v1357_v53  ;;  %v8698_v54 = vpop.permute.xlu2 %2807  ;;  %3642 = vmatpush.bf16.msra.mxu1 %v7649_v27  ;;  %3554 = vmatpush.bf16.msra.mxu0 %v7640_v44  ;;  %v7051_v53 = vld [vmem:[#allocation2 + $0xc] sm:$0xf0]  ;;  %v7050_v27 = vor.u32 %v7592_v35, %v7049_v28  ;;  %v1906_v44 = vsel %vm8531_vm3, %v8430_v58, 0 }
  0xcd   : > { %v3000_v14 = vsel %vm8708_vm13, %v8700_v0, 0  ;;  %1227 = vst.msk [vmem:[#allocation2 + $0x3c] sm:$0xf] %vm1221_vm6, %v1194_v11  ;;  %v7054_v60 = vor.u32 %v7591_v46, %v7051_v53 }
  0xce   : > { %3032 = vst.msk [vmem:[#allocation2 + $0xbc] sm:$0xf] %vm1221_vm6, %v3000_v14 }
  0xcf   : > { %v8712_v12 = vpop.f32.mrf.mxu3  ;;  %2595 = vrot.lane.b32.xlu0 %v8690_v39, %s7887_s18  ;;  %2817 = vrot.lane.b32.xlu1 %v8681_v42, %s7888_s19 }
  0xd0   : > { %11655 = vst [vmem:[#allocation8_spill] sm:$0xff] %v8712_v12  ;;  %3643 = vmatpush.bf16.msra.mxu1 %v7648_v38  ;;  %3555 = vmatpush.bf16.msra.mxu0 %v7639_v49 }
  0xd1   : > { %v1710_v45 = vpop.permute.xlu0 %1709  ;;  %v1965_v59 = vpop.permute.xlu1 %1964 }
  0xd2   : > { %1803 = vst.msk [vmem:[#allocation2 + $0x24] sm:$0xf] %vm1799_vm15, %v1710_v45  ;;  %2819 = vrot.lane.b32.xlu2 %v8720_v48, %s7888_s19  ;;  %v2199_v45 = vld [vmem:[%s8003_s0 + $0x89] sm:$0xff] }
  0xd3   : > { %2060 = vst.msk [vmem:[#allocation2 + $0x24] sm:$0xf] %vm2056_vm7, %v8621_v31  ;;  %v7647_v31 = vld [vmem:[%s11584_s1 + $0x40] sm:$0xff]  ;;  %3556 = vmatmul.bf16.vlgmr.msra.gmra.mxu0 %v7050_v27  ;;  %v2231_v58 = vpack.c.bf16 %v2199_v45, %v2199_v45  ;;  %v2264_v27 = vsel %vm8708_vm13, %v8545_v63, 0 }
  0xd4   : > { %7343 = vmatmul.msk.bf16.gmra.mxu3 %vm11656_vm8, %v3969_v47  ;;  %2059 = vst.msk [vmem:[#allocation2 + $0x18] sm:$0xf] %vm2056_vm7, %v1965_v59  ;;  %v8749_v32 = vpop.permute.xlu2 %1711  ;;  %3644 = vmatpush.bf16.msra.mxu1 %v7647_v31  ;;  %v1650_v47 = vsel %vm8454_vm14, %v8283_v55, 0  ;;  %v563_v59 = vadd.s32 112, %v7992_v3  ;;  %v7873_v55 = vld [vmem:[%s11584_s1 + $0x80] sm:$0xff] }
  0xd6   : > { %v683_v11 = vand.u32 15, %v563_v59 }
  0xd7   : > { %v4050_v17 = vpop.f32.mrf.mxu3  ;;  %1370 = vrot.lane.b32.xlu0 %v8312_v7, %s7886_s17  ;;  %1372 = vrot.lane.b32.xlu1 %v8369_v16, %s7886_s17  ;;  %v7872_v7 = vld [vmem:[%s11584_s1 + $0x88] sm:$0xff]  ;;  %v8771_v16 = vld [vmem:[%s11594_s11 + $0x1] ss:$0 sm:$0xff] }
  0xd8   : > { %3732 = vmatpush.bf16.msrb.mxu1 %v7872_v7  ;;  %v4132_v21 = vmul.f32 %v8762_v20, %v4050_v17  ;;  %v2455_v17 = vld [vmem:[%s8003_s0 + $0x97] sm:$0xff]  ;;  %vm979_vm14 = vcmp.ge.s32.totalorder %v683_v11, 1 }
  0xd9   : > { %v2326_v56 = vpop.permute.xlu0 %2325  ;;  %v2328_v14 = vpop.permute.xlu1 %2327  ;;  %3645 = vmatmul.bf16.vlgmr.msra.gmra.mxu1 %v7054_v60  ;;  %v8811_v60 = vsel %vm8005_vm1, %v2231_v58, 0  ;;  %v8820_v7 = vpack.c.bf16 %v2455_v17, %v2455_v17  ;;  %vm8826_vm8 = vmpackc.low %vm979_vm14, %vm979_vm14  ;;  %v7063_v58 = vld [vmem:[#allocation2 + $0x24] sm:$0xf0] }
  0xda   : > { %2415 = vst.msk [vmem:[#allocation2 + $0x4c] sm:$0xf] %vm11603_vm0, %v2326_v56  ;;  %1723 = vrot.lane.b32.xlu2 %v8425_v15, %s7887_s18  ;;  %v8791_v15 = vld [vmem:[%s8003_s0 + $0xb0] sm:$0xff]  ;;  %v4166_v49 = vadd.f32 %v8771_v16, %v4132_v21  ;;  %v2456_v21 = vld [vmem:[%s8003_s0 + $0x9f] sm:$0xff] }
  0xdb   : > { %2671 = vst.msk [vmem:[#allocation2 + $0x4c] sm:$0xf] %vm1799_vm15, %v8658_v1  ;;  %v8788_v1 = vld [vmem:[%s8003_s0 + $0xa8] sm:$0xff]  ;;  %v2488_v11 = vpack.c.bf16 %v2456_v21, %v2456_v21  ;;  %v1036_v21 = vld [vmem:[%s8003_s0 + $0x3f] sm:$0xff] }
  0xdc   : > { %2416 = vst.msk [vmem:[#allocation2 + $0x58] sm:$0xf] %vm11603_vm0, %v2328_v14  ;;  %v8793_v38 = vpop.permute.xlu2 %1970  ;;  %3733 = vmatpush.bf16.msrb.mxu1 %v7873_v55  ;;  %v3970_v46 = vpack.c.bf16 %v8791_v15, %v8788_v1  ;;  %v4198_v56 = vmax.f32 %v4166_v49, 0.0  ;;  %v2519_v55 = vsel %vm8826_vm8, %v8820_v7, 0 }
  0xdf   : > { %v4052_v40 = vpop.f32.mrf.mxu3  ;;  %1725 = vrot.lane.b32.xlu0 %v1650_v47, %s7887_s18  ;;  %1980 = vrot.lane.b32.xlu1 %v1906_v44, %s7888_s19 }
  0xe0   : > { %v4133_v31 = vmul.f32 %v8762_v20, %v4052_v40  ;;  %v7594_v40 = vld [vmem:[#allocation2 + $0x1c] sm:$0xf] }
  0xe1   : > { %v2584_v53 = vpop.permute.xlu0 %2583  ;;  %v2806_v28 = vpop.permute.xlu1 %2805 }
  0xe2   : > { %v4167_v35 = vadd.f32 %v8771_v16, %v4133_v31  ;;  %2672 = vst.msk [vmem:[#allocation2 + $0x58] sm:$0xf] %vm1799_vm15, %v2584_v53  ;;  %1982 = vrot.lane.b32.xlu2 %v8471_v13, %s7888_s19  ;;  %v7061_v53 = vld [vmem:[#allocation2 + $0x18] sm:$0xf] }
  0xe3   : > { %2896 = vst.msk [vmem:[#allocation2 + $0x58] sm:$0xf] %vm2056_vm7, %v8698_v54  ;;  %v566_v54 = vadd.s32 136, %v7992_v3 }
  0xe4   : > { %v4199_v14 = vmax.f32 %v4167_v35, 0.0  ;;  %7344 = vmatmul.msk.bf16.gmra.mxu3 %vm11657_vm5, %v3970_v46  ;;  %2895 = vst.msk [vmem:[#allocation2 + $0x4c] sm:$0xf] %vm2056_vm7, %v2806_v28  ;;  %v8824_v47 = vpop.permute.xlu2 %2585  ;;  %v7066_v46 = vor.u32 %v7594_v40, %v7063_v58  ;;  %v7595_v28 = vld [vmem:[#allocation2 + $0x20] sm:$0xf0]  ;;  %v2743_v35 = vpack.c.bf16 %v8684_v57, %v8684_v57  ;;  %v1068_v58 = vpack.c.bf16 %v1036_v21, %v1036_v21 }
  0xe5   : > { %v704_v59 = vand.u32 15, %v566_v54  ;;  %v7062_v17 = vor.u32 %v7595_v28, %v7061_v53  ;;  %v1035_v54 = vld [vmem:[%s8003_s0 + $0x37] sm:$0xff]  ;;  %v8857_v40 = vld [vmem:[%s8003_s0 + $0xc0] sm:$0xff] }
  0xe6   : > { %v8830_v45 = vpack.c.bf16 %v4199_v14, %v4198_v56  ;;  %v8848_v56 = vsel %vm8005_vm1, %v2488_v11, 0  ;;  %v2938_v14 = vld [vmem:[%s8003_s0 + $0xb1] sm:$0xff]  ;;  %v1196_v62 = vsel %vm8005_vm1, %v1068_v58, 0 }
  0xe7   : > { %v4055_v13 = vpop.f32.mrf.mxu3  ;;  %2341 = vrot.lane.b32.xlu0 %v8811_v60, %s7886_s17  ;;  %2343 = vrot.lane.b32.xlu1 %v2264_v27, %s7886_s17  ;;  %vm1014_vm14 = vcmp.le.s32.totalorder %v704_v59, 14  ;;  %v1067_v59 = vpack.c.bf16 %v1035_v54, %v1035_v54  ;;  %1229 = vst.msk [vmem:[#allocation2 + $0x54] sm:$0xf] %vm1221_vm6, %v1196_v62  ;;  %v2457_v62 = vld [vmem:[%s8003_s0 + $0xa7] sm:$0xff] }
  0xe8   : > { %v4134_v27 = vmul.f32 %v8762_v20, %v4055_v13  ;;  %3561 = vmatmul.bf16.gmra.mxu0 %v7062_v17  ;;  %vm8861_vm5 = vmpackc.low %vm1014_vm14, %vm1014_vm14  ;;  %v3960_v13 = vld [vmem:[%s8003_s0 + $0x110] sm:$0xff] }
  0xe9   : > { %v1359_v49 = vpop.permute.xlu0 %1358  ;;  %v1361_v31 = vpop.permute.xlu1 %1360  ;;  %3650 = vmatmul.bf16.gmra.mxu1 %v7066_v46  ;;  %v1195_v46 = vsel %vm8353_vm10, %v1067_v59, 0  ;;  %vm11662_vm10 = vcmask 261120  }
  0xea   : > { %1451 = vst.msk [vmem:[#allocation2 + $0x30] sm:$0xf] %vm11603_vm0, %v1359_v49  ;;  %2597 = vrot.lane.b32.xlu2 %v2519_v55, %s7887_s18  ;;  %v8859_v55 = vpack.c.bf16 %v2938_v14, %v2938_v14  ;;  %v2744_v49 = vpack.c.bf16 %v8696_v51, %v8696_v51  ;;  %v4168_v53 = vadd.f32 %v8771_v16, %v4134_v27  ;;  %vm11663_vm14 = vmmov %vm11662_vm10 }
  0xeb   : > { %1804 = vst.msk [vmem:[#allocation2 + $0x30] sm:$0xf] %vm1799_vm15, %v8749_v32  ;;  %v8854_v32 = vld [vmem:[%s8003_s0 + $0xb8] sm:$0xff] }
  0xec   : > { %1452 = vst.msk [vmem:[#allocation2 + $0x3c] sm:$0xf] %vm11603_vm0, %v1361_v31  ;;  %v2812_v57 = vpop.permute.xlu2 %2811  ;;  %v3002_v31 = vsel %vm8861_vm5, %v8859_v55, 0  ;;  %v3971_v17 = vpack.c.bf16 %v8857_v40, %v8854_v32  ;;  %v4200_v27 = vmax.f32 %v4168_v53, 0.0  ;;  %v8918_v53 = vld [vmem:[%s8003_s0 + $0xd0] sm:$0xff] }
  0xed   : > { %3034 = vst.msk [vmem:[#allocation2 + $0xd4] sm:$0xf] %vm1221_vm6, %v3002_v31  ;;  %v2201_v31 = vld [vmem:[%s8003_s0 + $0x99] sm:$0xff] }
  0xee   : > { %1228 = vst.msk [vmem:[#allocation2 + $0x48] sm:$0xf] %vm1221_vm6, %v1195_v46  ;;  %v565_v46 = vadd.s32 128, %v7992_v3 }
  0xef   : > { %v4057_v11 = vpop.f32.mrf.mxu3  ;;  %2599 = vrot.lane.b32.xlu0 %v8848_v56, %s7887_s18  ;;  %2821 = vrot.lane.b32.xlu1 %v2743_v35, %s7888_s19 }
  0xf0   : > { %v4135_v28 = vmul.f32 %v8762_v20, %v4057_v11 }
  0xf1   : > { %v1714_v35 = vpop.permute.xlu0 %1713  ;;  %v1969_v14 = vpop.permute.xlu1 %1968 }
  0xf2   : > { %v4169_v51 = vadd.f32 %v8771_v16, %v4135_v28  ;;  %1805 = vst.msk [vmem:[#allocation2 + $0x3c] sm:$0xf] %vm1799_vm15, %v1714_v35  ;;  %2823 = vrot.lane.b32.xlu2 %v2744_v49, %s7888_s19  ;;  %v697_v28 = vand.u32 15, %v565_v46 }
  0xf3   : > { %2062 = vst.msk [vmem:[#allocation2 + $0x3c] sm:$0xf] %vm2056_vm7, %v8793_v38 }
  0xf4   : > { %v4201_v54 = vmax.f32 %v4169_v51, 0.0  ;;  %7345 = vmatmul.msk.bf16.gmra.mxu3 %vm11662_vm10, %v3971_v17  ;;  %2061 = vst.msk [vmem:[#allocation2 + $0x30] sm:$0xf] %vm2056_vm7, %v1969_v14  ;;  %v8890_v21 = vpop.permute.xlu2 %1715 }
  0xf6   : > { %v8893_v59 = vpack.c.bf16 %v4201_v54, %v4200_v27 }
  0xf7   : > { %v4060_v58 = vpop.f32.mrf.mxu3  ;;  %1374 = vrot.lane.b32.xlu0 %v8397_v30, %s7886_s17  ;;  %1376 = vrot.lane.b32.xlu1 %v8446_v23, %s7886_s17  ;;  %v1652_v30 = vsel %vm8547_vm4, %v8371_v19, 0  ;;  %v1908_v23 = vsel %vm8660_vm2, %v8527_v4, 0  ;;  %v2233_v19 = vpack.c.bf16 %v2201_v31, %v2201_v31  ;;  %vm981_vm4 = vcmp.ge.s32.totalorder %v697_v28, 1  ;;  %v2937_v31 = vld [vmem:[%s8003_s0 + $0xa9] sm:$0xff] }
  0xf8   : > { %v4136_v49 = vmul.f32 %v8762_v20, %v4060_v58  ;;  %v2266_v58 = vsel %vm8861_vm5, %v8700_v0, 0  ;;  %vm8947_vm10 = vmpackc.low %vm981_vm4, %vm981_vm4 }
  0xf9   : > { %v2330_v38 = vpop.permute.xlu0 %2329  ;;  %v2332_v11 = vpop.permute.xlu1 %2331  ;;  %v2265_v54 = vsel %vm8005_vm1, %v2233_v19, 0 }
  0xfa   : > { %2417 = vst.msk [vmem:[#allocation2 + $0x64] sm:$0xf] %vm11603_vm0, %v2330_v38  ;;  %1727 = vrot.lane.b32.xlu2 %v8522_v36, %s7887_s18  ;;  %v4170_v37 = vadd.f32 %v8771_v16, %v4136_v49  ;;  %v8941_v49 = vpack.c.bf16 %v2457_v62, %v2457_v62  ;;  %v7075_v62 = vld [vmem:[#allocation2 + $0x3c] sm:$0xf0] }
  0xfb   : > { %2673 = vst.msk [vmem:[#allocation2 + $0x64] sm:$0xf] %vm1799_vm15, %v8824_v47  ;;  %v8915_v47 = vld [vmem:[%s8003_s0 + $0xc8] sm:$0xff]  ;;  %v7073_v19 = vld [vmem:[#allocation2 + $0x30] sm:$0xf] }
  0xfc   : > { %2418 = vst.msk [vmem:[#allocation2 + $0x70] sm:$0xf] %vm11603_vm0, %v2332_v11  ;;  %v8920_v36 = vpop.permute.xlu2 %1974  ;;  %v3972_v35 = vpack.c.bf16 %v8918_v53, %v8915_v47  ;;  %v4202_v38 = vmax.f32 %v4170_v37, 0.0  ;;  %v7598_v37 = vld [vmem:[#allocation2 + $0x38] sm:$0xf0] }
  0xff   : > { %v4062_v17 = vpop.f32.mrf.mxu3  ;;  %1729 = vrot.lane.b32.xlu0 %v1652_v30, %s7887_s18  ;;  %1984 = vrot.lane.b32.xlu1 %v1908_v23, %s7888_s19  ;;  %v2458_v30 = vld [vmem:[%s8003_s0 + $0xaf] sm:$0xff] }
 0x100   : > { %v4137_v4 = vmul.f32 %v8762_v20, %v4062_v17  ;;  %v2490_v28 = vpack.c.bf16 %v2458_v30, %v2458_v30  ;;  %v2521_v17 = vsel %vm8947_vm10, %v8941_v49, 0  ;;  %v1038_v30 = vld [vmem:[%s8003_s0 + $0x4f] sm:$0xff] }
 0x101   : > { %v2588_v14 = vpop.permute.xlu0 %2587  ;;  %v2810_v51 = vpop.permute.xlu1 %2809 }
 0x102   : > { %v4171_v27 = vadd.f32 %v8771_v16, %v4137_v4  ;;  %2674 = vst.msk [vmem:[#allocation2 + $0x70] sm:$0xf] %vm1799_vm15, %v2588_v14  ;;  %1986 = vrot.lane.b32.xlu2 %v8565_v34, %s7888_s19  ;;  %v7074_v14 = vor.u32 %v7598_v37, %v7073_v19  ;;  %v3954_v19 = vld [vmem:[%s8003_s0 + $0xe0] sm:$0xff]  ;;  %v1070_v37 = vpack.c.bf16 %v1038_v30, %v1038_v30 }
 0x103   : > { %2898 = vst.msk [vmem:[#allocation2 + $0x70] sm:$0xf] %vm2056_vm7, %v2812_v57  ;;  %v568_v57 = vadd.s32 152, %v7992_v3 }
 0x104   : > { %v4203_v11 = vmax.f32 %v4171_v27, 0.0  ;;  %7346 = vmatmul.msk.bf16.gmra.mxu3 %vm11663_vm14, %v3972_v35  ;;  %2897 = vst.msk [vmem:[#allocation2 + $0x64] sm:$0xf] %vm2056_vm7, %v2810_v51  ;;  %v8945_v23 = vpop.permute.xlu2 %2589  ;;  %v7597_v51 = vld [vmem:[#allocation2 + $0x34] sm:$0xf]  ;;  %3566 = vmatmul.bf16.gmra.mxu0 %v7074_v14  ;;  %v1198_v6 = vsel %vm8005_vm1, %v1070_v37, 0 }
 0x105   : > { %v718_v46 = vand.u32 15, %v568_v57  ;;  %v7078_v27 = vor.u32 %v7597_v51, %v7075_v62  ;;  %v1037_v57 = vld [vmem:[%s8003_s0 + $0x47] sm:$0xff]  ;;  %1231 = vst.msk [vmem:[#allocation2 + $0x6c] sm:$0xf] %vm1221_vm6, %v1198_v6 }
 0x106   : > { %v8951_v0 = vpack.c.bf16 %v4203_v11, %v4202_v38  ;;  %v8968_v38 = vsel %vm8005_vm1, %v2490_v28, 0  ;;  %v2940_v11 = vld [vmem:[%s8003_s0 + $0xc1] sm:$0xff]  ;;  %v2746_v28 = vpack.c.bf16 %v8791_v15, %v8791_v15 }
 0x107   : > { %v4065_v34 = vpop.f32.mrf.mxu3  ;;  %2345 = vrot.lane.b32.xlu0 %v2265_v54, %s7886_s17  ;;  %2347 = vrot.lane.b32.xlu1 %v2266_v58, %s7886_s17  ;;  %v2745_v54 = vpack.c.bf16 %v8788_v1, %v8788_v1  ;;  %vm1016_vm4 = vcmp.le.s32.totalorder %v718_v46, 14  ;;  %v1069_v46 = vpack.c.bf16 %v1037_v57, %v1037_v57 }
 0x108   : > { %v4138_v58 = vmul.f32 %v8762_v20, %v4065_v34  ;;  %3655 = vmatmul.bf16.gmra.mxu1 %v7078_v27  ;;  %vm8981_vm14 = vmpackc.low %vm1016_vm4, %vm1016_vm4 }
 0x109   : > { %v1363_v4 = vpop.permute.xlu0 %1362  ;;  %v1365_v35 = vpop.permute.xlu1 %1364  ;;  %v1197_v14 = vsel %vm8434_vm11, %v1069_v46, 0  ;;  %vm11668_vm11 = vcmask 261120  }
 0x10a   : > { %1453 = vst.msk [vmem:[#allocation2 + $0x48] sm:$0xf] %vm11603_vm0, %v1363_v4  ;;  %2601 = vrot.lane.b32.xlu2 %v2521_v17, %s7887_s18  ;;  %v8979_v17 = vpack.c.bf16 %v2940_v11, %v2940_v11  ;;  %v4172_v51 = vadd.f32 %v8771_v16, %v4138_v58  ;;  %vm11669_vm4 = vmmov %vm11668_vm11 }
 0x10b   : > { %1806 = vst.msk [vmem:[#allocation2 + $0x48] sm:$0xf] %vm1799_vm15, %v8890_v21  ;;  %v8974_v21 = vld [vmem:[%s8003_s0 + $0xd8] sm:$0xff] }
 0x10c   : > { %1454 = vst.msk [vmem:[#allocation2 + $0x54] sm:$0xf] %vm11603_vm0, %v1365_v35  ;;  %v8977_v1 = vpop.permute.xlu2 %2815  ;;  %v3004_v35 = vsel %vm8981_vm14, %v8979_v17, 0  ;;  %v3973_v27 = vpack.c.bf16 %v3954_v19, %v8974_v21  ;;  %v4204_v58 = vmax.f32 %v4172_v51, 0.0  ;;  %v2102_v51 = vld [vmem:[%s8003_s0 + $0x80] sm:$0xff] }
 0x10d   : > { %3036 = vst.msk [vmem:[#allocation2 + $0xec] sm:$0xf] %vm1221_vm6, %v3004_v35  ;;  %v1654_v35 = vsel %vm8708_vm13, %v8452_v22, 0  ;;  %v2134_v33 = vpack.c.bf16 %v2102_v51, %v2102_v51 }
 0x10e   : > { %1230 = vst.msk [vmem:[#allocation2 + $0x60] sm:$0xf] %vm1221_vm6, %v1197_v14  ;;  %v2101_v14 = vld [vmem:[%s8003_s0 + $0x78] sm:$0xff] }
 0x10f   : > { %v4067_v4 = vpop.f32.mrf.mxu3  ;;  %2603 = vrot.lane.b32.xlu0 %v8968_v38, %s7887_s18  ;;  %2825 = vrot.lane.b32.xlu1 %v2745_v54, %s7888_s19  ;;  %v2133_v22 = vpack.c.bf16 %v2101_v14, %v2101_v14  ;;  %2166 = vst.msk [vmem:[#allocation2 + $0xa0] sm:$0xf] %vm1221_vm6, %v2134_v33 }
 0x110   : > { %v4139_v62 = vmul.f32 %v8762_v20, %v4067_v4  ;;  %v2927_v4 = vld [vmem:[%s8003_s0 + $0x59] sm:$0xff] }
 0x111   : > { %v1718_v11 = vpop.permute.xlu0 %1717  ;;  %v1973_v54 = vpop.permute.xlu1 %1972  ;;  %2165 = vst.msk [vmem:[#allocation2 + $0x94] sm:$0xf] %vm1221_vm6, %v2133_v22 }
 0x112   : > { %v4173_v15 = vadd.f32 %v8771_v16, %v4139_v62  ;;  %1807 = vst.msk [vmem:[#allocation2 + $0x54] sm:$0xf] %vm1799_vm15, %v1718_v11  ;;  %2827 = vrot.lane.b32.xlu2 %v2746_v28, %s7888_s19  ;;  %v2959_v28 = vpack.c.bf16 %v2927_v4, %v2927_v4  ;;  %v567_v62 = vadd.s32 144, %v7992_v3  ;;  %v2268_v4 = vsel %vm8981_vm14, %v8859_v55, 0 }
 0x113   : > { %2064 = vst.msk [vmem:[#allocation2 + $0x54] sm:$0xf] %vm2056_vm7, %v8920_v36 }
 0x114   : > { %v4205_v57 = vmax.f32 %v4173_v15, 0.0  ;;  %7347 = vmatmul.msk.bf16.gmra.mxu3 %vm11668_vm11, %v3973_v27  ;;  %2063 = vst.msk [vmem:[#allocation2 + $0x48] sm:$0xf] %vm2056_vm7, %v1973_v54  ;;  %v9009_v30 = vpop.permute.xlu2 %1719  ;;  %v3955_v27 = vld [vmem:[%s8003_s0 + $0xe8] sm:$0xff]  ;;  %v711_v54 = vand.u32 15, %v567_v62 }
 0x116   : > { %v9012_v19 = vpack.c.bf16 %v4205_v57, %v4204_v58  ;;  %vm983_vm13 = vcmp.ge.s32.totalorder %v711_v54, 1 }
 0x117   : > { %v9014_v46 = vpop.f32.mrf.mxu3  ;;  %1378 = vrot.lane.b32.xlu0 %v8556_v43, %s7886_s17  ;;  %1380 = vrot.lane.b32.xlu1 %v8576_v18, %s7886_s17  ;;  %v1910_v43 = vsel %vm8826_vm8, %v8648_v24, 0  ;;  %v2203_v18 = vld [vmem:[%s8003_s0 + $0xa9] sm:$0xff]  ;;  %v2991_v24 = vsel %vm8005_vm1, %v2959_v28, 0  ;;  %vm9071_vm11 = vmpackc.low %vm983_vm13, %vm983_vm13 }
 0x118   : > { %3023 = vst.msk [vmem:[#allocation2 + $0x50] sm:$0xf] %vm1221_vm6, %v2991_v24  ;;  %v2235_v15 = vpack.c.bf16 %v2203_v18, %v2203_v18 }
 0x119   : > { %v2334_v36 = vpop.permute.xlu0 %2333  ;;  %v2336_v37 = vpop.permute.xlu1 %2335 }
 0x11a   : > { %2419 = vst.msk [vmem:[#allocation2 + $0x7c] sm:$0xf] %vm11603_vm0, %v2334_v36  ;;  %1731 = vrot.lane.b32.xlu2 %v8639_v50, %s7887_s18  ;;  %v2459_v36 = vld [vmem:[%s8003_s0 + $0xb7] sm:$0xff] }
 0x11b   : > { %2675 = vst.msk [vmem:[#allocation2 + $0x7c] sm:$0xf] %vm1799_vm15, %v8945_v23  ;;  %v3956_v23 = vld [vmem:[%s8003_s0 + $0xf0] sm:$0xff]  ;;  %v9065_v28 = vpack.c.bf16 %v2459_v36, %v2459_v36  ;;  %v7085_v22 = vld [vmem:[#allocation2 + $0x48] sm:$0xf]  ;;  %v2747_v36 = vpack.c.bf16 %v8854_v32, %v8854_v32 }
 0x11c   : > { %2420 = vst.msk [vmem:[#allocation2 + $0x88] sm:$0xf] %vm11603_vm0, %v2336_v37  ;;  %v9039_v11 = vpop.permute.xlu2 %1978  ;;  %v3974_v6 = vpack.c.bf16 %v3956_v23, %v3955_v27  ;;  %v9056_v37 = vsel %vm8005_vm1, %v2235_v15, 0  ;;  %v7601_v33 = vld [vmem:[#allocation2 + $0x50] sm:$0xf0] }
 0x11d   : > { %v2523_v23 = vsel %vm9071_vm11, %v9065_v28, 0  ;;  %v7086_v15 = vor.u32 %v7601_v33, %v7085_v22 }
 0x11f   : > { %v9044_v50 = vpop.f32.mrf.mxu3  ;;  %1733 = vrot.lane.b32.xlu0 %v1654_v35, %s7887_s18  ;;  %1988 = vrot.lane.b32.xlu1 %v1910_v43, %s7888_s19  ;;  %v570_v35 = vadd.s32 168, %v7992_v3  ;;  %v2460_v43 = vld [vmem:[%s8003_s0 + $0xbf] sm:$0xff] }
 0x120   : > { %v2492_v27 = vpack.c.bf16 %v2460_v43, %v2460_v43  ;;  %3571 = vmatmul.bf16.gmra.mxu0 %v7086_v15  ;;  %v1040_v43 = vld [vmem:[%s8003_s0 + $0x5f] sm:$0xff] }
 0x121   : > { %v2592_v58 = vpop.permute.xlu0 %2591  ;;  %v2814_v57 = vpop.permute.xlu1 %2813  ;;  %v732_v55 = vand.u32 15, %v570_v35  ;;  %v2942_v35 = vld [vmem:[%s8003_s0 + $0xd1] sm:$0xff] }
 0x122   : > { %2676 = vst.msk [vmem:[#allocation2 + $0x88] sm:$0xf] %vm1799_vm15, %v2592_v58  ;;  %1990 = vrot.lane.b32.xlu2 %v8690_v39, %s7888_s19  ;;  %v7093_v39 = vld [vmem:[#allocation2 + $0x50] sm:$0xf]  ;;  %v7087_v58 = vld [vmem:[#allocation2 + $0x54] sm:$0xf0]  ;;  %v9102_v22 = vpack.c.bf16 %v2942_v35, %v2942_v35 }
 0x123   : > { %2900 = vst.msk [vmem:[#allocation2 + $0x88] sm:$0xf] %vm2056_vm7, %v8977_v1  ;;  %v7602_v1 = vld [vmem:[#allocation2 + $0x58] sm:$0xf0]  ;;  %vm1018_vm13 = vcmp.le.s32.totalorder %v732_v55, 14 }
 0x124   : > { %7348 = vmatmul.msk.bf16.gmra.mxu3 %vm11669_vm4, %v3974_v6  ;;  %2899 = vst.msk [vmem:[#allocation2 + $0x7c] sm:$0xf] %vm2056_vm7, %v2814_v57  ;;  %v9069_v18 = vpop.permute.xlu2 %2593  ;;  %v7094_v51 = vor.u32 %v7602_v1, %v7093_v39  ;;  %v7600_v6 = vld [vmem:[#allocation2 + $0x4c] sm:$0xf]  ;;  %v1039_v1 = vld [vmem:[%s8003_s0 + $0x57] sm:$0xff] }
 0x125   : > { %v7090_v57 = vor.u32 %v7600_v6, %v7087_v58  ;;  %v3957_v39 = vld [vmem:[%s8003_s0 + $0xf8] sm:$0xff]  ;;  %v1071_v32 = vpack.c.bf16 %v1039_v1, %v1039_v1  ;;  %v2929_v1 = vld [vmem:[%s8003_s0 + $0x69] sm:$0xff] }
 0x126   : > { %7314 = vmatmul.msk.bf16.vlgmr.msra.gmra.mxu2 %vm11669_vm4, %v7094_v51  ;;  %v3958_v51 = vld [vmem:[%s8003_s0 + $0x100] sm:$0xff]  ;;  %vm9104_vm4 = vmpackc.low %vm1018_vm13, %vm1018_vm13 }
 0x127   : > { %v9075_v62 = vpop.f32.mrf.mxu3  ;;  %2349 = vrot.lane.b32.xlu0 %v9056_v37, %s7886_s17  ;;  %2351 = vrot.lane.b32.xlu1 %v2268_v4, %s7886_s17  ;;  %v9093_v4 = vsel %vm8005_vm1, %v2492_v27, 0  ;;  %v2748_v27 = vpack.c.bf16 %v8857_v40, %v8857_v40  ;;  %v3975_v15 = vpack.c.bf16 %v3958_v51, %v3957_v39  ;;  %v2205_v39 = vld [vmem:[%s8003_s0 + $0xb9] sm:$0xff] }
 0x128   : > { %3660 = vmatmul.bf16.gmra.mxu1 %v7090_v57 }
 0x129   : > { %v1367_v24 = vpop.permute.xlu0 %1366  ;;  %v1369_v54 = vpop.permute.xlu1 %1368 }
 0x12a   : > { %1455 = vst.msk [vmem:[#allocation2 + $0x60] sm:$0xf] %vm11603_vm0, %v1367_v24  ;;  %2605 = vrot.lane.b32.xlu2 %v2523_v23, %s7887_s18  ;;  %v1072_v23 = vpack.c.bf16 %v1040_v43, %v1040_v43  ;;  %v3006_v24 = vsel %vm9104_vm4, %v9102_v22, 0  ;;  %v2961_v43 = vpack.c.bf16 %v2929_v1, %v2929_v1  ;;  %v2461_v1 = vld [vmem:[%s8003_s0 + $0xc7] sm:$0xff] }
 0x12b   : > { %1808 = vst.msk [vmem:[#allocation2 + $0x60] sm:$0xf] %vm1799_vm15, %v9009_v30 }
 0x12c   : > { %1456 = vst.msk [vmem:[#allocation2 + $0x6c] sm:$0xf] %vm11603_vm0, %v1369_v54  ;;  %v9100_v30 = vpop.permute.xlu2 %2819  ;;  %v1199_v54 = vsel %vm8531_vm3, %v1071_v32, 0  ;;  %v1200_v40 = vsel %vm8005_vm1, %v1072_v23, 0  ;;  %vm11674_vm3 = vcmask 261120   ;;  %v1273_v32 = vld [vmem:[%s8003_s0 + $0xa0] sm:$0xff] }
 0x12d   : > { %3038 = vst.msk [vmem:[#allocation2 + $0x104] sm:$0xf] %vm1221_vm6, %v3006_v24  ;;  %v2103_v23 = vld [vmem:[%s8003_s0 + $0x88] sm:$0xff]  ;;  %vm11675_vm13 = vmmov %vm11674_vm3 }
 0x12e   : > { %1232 = vst.msk [vmem:[#allocation2 + $0x78] sm:$0xf] %vm1221_vm6, %v1199_v54  ;;  %v3959_v24 = vld [vmem:[%s8003_s0 + $0x108] sm:$0xff]  ;;  %v2135_v54 = vpack.c.bf16 %v2103_v23, %v2103_v23 }
 0x12f   : > { %v9108_v33 = vpop.f32.mrf.mxu3  ;;  %2607 = vrot.lane.b32.xlu0 %v9093_v4, %s7887_s18  ;;  %2829 = vrot.lane.b32.xlu1 %v2747_v36, %s7888_s19  ;;  %1233 = vst.msk [vmem:[#allocation2 + $0x84] sm:$0xf] %vm1221_vm6, %v1200_v40  ;;  %v9173_v40 = vpack.c.bf16 %v1273_v32, %v1273_v32  ;;  %v2462_v32 = vld [vmem:[%s8003_s0 + $0xcf] sm:$0xff] }
 0x130   : > { %2167 = vst.msk [vmem:[#allocation2 + $0xac] sm:$0xf] %vm1221_vm6, %v2135_v54 }
 0x131   : > { %v1722_v6 = vpop.permute.xlu0 %1721  ;;  %v1977_v58 = vpop.permute.xlu1 %1976  ;;  %2170 = vst.msk [vmem:[#allocation2 + $0xd0] sm:$0xf] %vm1221_vm6, %v9173_v40 }
 0x132   : > { %1809 = vst.msk [vmem:[#allocation2 + $0x6c] sm:$0xf] %vm1799_vm15, %v1722_v6  ;;  %2831 = vrot.lane.b32.xlu2 %v2748_v27, %s7888_s19  ;;  %v2104_v27 = vld [vmem:[%s8003_s0 + $0x90] sm:$0xff] }
 0x133   : > { %2066 = vst.msk [vmem:[#allocation2 + $0x6c] sm:$0xf] %vm2056_vm7, %v9039_v11  ;;  %v1272_v11 = vld [vmem:[%s8003_s0 + $0x98] sm:$0xff] }
 0x134   : > { %7349 = vmatmul.msk.bf16.gmra.mxu3 %vm11674_vm3, %v3975_v15  ;;  %2065 = vst.msk [vmem:[#allocation2 + $0x60] sm:$0xf] %vm2056_vm7, %v1977_v58  ;;  %v9130_v61 = vpop.permute.xlu2 %1723  ;;  %v9153_v51 = vpack.c.bf16 %v1272_v11, %v1272_v11  ;;  %v2993_v15 = vsel %vm8005_vm1, %v2961_v43, 0  ;;  %v2237_v58 = vpack.c.bf16 %v2205_v39, %v2205_v39  ;;  %v3976_v11 = vpack.c.bf16 %v3960_v13, %v3959_v24 }
 0x135   : > { %3025 = vst.msk [vmem:[#allocation2 + $0x68] sm:$0xf] %vm1221_vm6, %v2993_v15  ;;  %v572_v39 = vadd.s32 184, %v7992_v3  ;;  %v2494_v13 = vpack.c.bf16 %v2462_v32, %v2462_v32  ;;  %v2944_v32 = vld [vmem:[%s8003_s0 + $0xe1] sm:$0xff] }
 0x136   : > { %2169 = vst.msk [vmem:[#allocation2 + $0xc4] sm:$0xf] %vm1221_vm6, %v9153_v51  ;;  %v9185_v43 = vsel %vm8005_vm1, %v2237_v58, 0 }
 0x137   : > { %v9133_v57 = vpop.f32.mrf.mxu3  ;;  %1382 = vrot.lane.b32.xlu0 %v8681_v42, %s7886_s17  ;;  %1384 = vrot.lane.b32.xlu1 %v8720_v48, %s7886_s17  ;;  %v1656_v42 = vsel %vm8861_vm5, %v8545_v63, 0  ;;  %v1912_v48 = vsel %vm8947_vm10, %v8820_v7, 0  ;;  %v2136_v7 = vpack.c.bf16 %v2104_v27, %v2104_v27 }
 0x138   : > { %v4144_v2 = vmul.f32 %v8762_v20, %v9133_v57 }
 0x139   : > { %v2338_v36 = vpop.permute.xlu0 %2337  ;;  %v2340_v35 = vpop.permute.xlu1 %2339  ;;  %2168 = vst.msk [vmem:[#allocation2 + $0xb8] sm:$0xf] %vm1221_vm6, %v2136_v7 }
 0x13a   : > { %2421 = vst.msk [vmem:[#allocation2 + $0x94] sm:$0xf] %vm11603_vm0, %v2338_v36  ;;  %1735 = vrot.lane.b32.xlu2 %v8811_v60, %s7887_s18  ;;  %v7604_v15 = vld [vmem:[#allocation2 + $0x68] sm:$0xf0] }
 0x13b   : > { %2677 = vst.msk [vmem:[#allocation2 + $0x94] sm:$0xf] %vm1799_vm15, %v9069_v18  ;;  %v569_v18 = vadd.s32 160, %v7992_v3  ;;  %v7097_v7 = vld [vmem:[#allocation2 + $0x60] sm:$0xf] }
 0x13c   : > { %2422 = vst.msk [vmem:[#allocation2 + $0xa0] sm:$0xf] %vm11603_vm0, %v2340_v35  ;;  %v9162_v63 = vpop.permute.xlu2 %1982 }
 0x13d   : > { %v725_v60 = vand.u32 15, %v569_v18 }
 0x13f   : > { %v9169_v6 = vpop.f32.mrf.mxu3  ;;  %1737 = vrot.lane.b32.xlu0 %v1656_v42, %s7887_s18  ;;  %1992 = vrot.lane.b32.xlu1 %v1912_v48, %s7888_s19  ;;  %vm985_vm5 = vcmp.ge.s32.totalorder %v725_v60, 1  ;;  %v2270_v42 = vsel %vm9104_vm4, %v8979_v17, 0  ;;  %v9194_v48 = vpack.c.bf16 %v2461_v1, %v2461_v1  ;;  %v746_v17 = vand.u32 15, %v572_v39 }
 0x140   : > { %vm9200_vm3 = vmpackc.low %vm985_vm5, %vm985_vm5 }
 0x141   : > { %v2596_v36 = vpop.permute.xlu0 %2595  ;;  %v2818_v35 = vpop.permute.xlu1 %2817  ;;  %v2525_v54 = vsel %vm9200_vm3, %v9194_v48, 0  ;;  %vm1020_vm5 = vcmp.le.s32.totalorder %v746_v17, 14 }
 0x142   : > { %2678 = vst.msk [vmem:[#allocation2 + $0xa0] sm:$0xf] %vm1799_vm15, %v2596_v36  ;;  %1994 = vrot.lane.b32.xlu2 %v8848_v56, %s7888_s19  ;;  %v7105_v56 = vld [vmem:[#allocation2 + $0x68] sm:$0xf]  ;;  %v7603_v36 = vld [vmem:[#allocation2 + $0x64] sm:$0xf] }
 0x143   : > { %2902 = vst.msk [vmem:[#allocation2 + $0xa0] sm:$0xf] %vm2056_vm7, %v9100_v30  ;;  %v7605_v30 = vld [vmem:[#allocation2 + $0x70] sm:$0xf0] }
 0x144   : > { %7350 = vmatmul.msk.bf16.gmra.mxu3 %vm11675_vm13, %v3976_v11  ;;  %2901 = vst.msk [vmem:[#allocation2 + $0x94] sm:$0xf] %vm2056_vm7, %v2818_v35  ;;  %v9198_v23 = vpop.permute.xlu2 %2597  ;;  %v7106_v18 = vor.u32 %v7605_v30, %v7105_v56  ;;  %v7098_v11 = vor.u32 %v7604_v15, %v7097_v7  ;;  %v7099_v35 = vld [vmem:[#allocation2 + $0x6c] sm:$0xf0]  ;;  %v9221_v30 = vsel %vm8005_vm1, %v2494_v13, 0  ;;  %v1041_v56 = vld [vmem:[%s8003_s0 + $0x67] sm:$0xff]  ;;  %v2750_v13 = vpack.c.bf16 %v8918_v53, %v8918_v53 }
 0x145   : > { %v7102_v1 = vor.u32 %v7603_v36, %v7099_v35  ;;  %v2931_v7 = vld [vmem:[%s8003_s0 + $0x79] sm:$0xff]  ;;  %v4145_v36 = vmul.f32 %v8762_v20, %v9169_v6 }
 0x146   : > { %7315 = vmatmul.msk.bf16.gmra.mxu2 %vm11675_vm13, %v7106_v18  ;;  %3576 = vmatmul.bf16.gmra.mxu0 %v7098_v11  ;;  %vm9230_vm13 = vmpackc.low %vm1020_vm5, %vm1020_vm5  ;;  %v1497_v11 = vld [vmem:[%s8003_s0 + $0x99] sm:$0xff] }
 0x147   : > { %v4085_v24 = vpop.f32.mrf.mxu3  ;;  %2353 = vrot.lane.b32.xlu0 %v9185_v43, %s7886_s17  ;;  %2355 = vrot.lane.b32.xlu1 %v2270_v42, %s7886_s17  ;;  %v2749_v42 = vpack.c.bf16 %v8915_v47, %v8915_v47  ;;  %v9228_v47 = vpack.c.bf16 %v2944_v32, %v2944_v32 }
 0x148   : > { %v4146_v39 = vmul.f32 %v8762_v20, %v4085_v24  ;;  %3665 = vmatmul.bf16.gmra.mxu1 %v7102_v1 }
 0x149   : > { %v1371_v60 = vpop.permute.xlu0 %1370  ;;  %v1373_v58 = vpop.permute.xlu1 %1372 }
 0x14a   : > { %1457 = vst.msk [vmem:[#allocation2 + $0x78] sm:$0xf] %vm11603_vm0, %v1371_v60  ;;  %2609 = vrot.lane.b32.xlu2 %v2525_v54, %s7887_s18  ;;  %v1073_v54 = vpack.c.bf16 %v1041_v56, %v1041_v56  ;;  %v3008_v60 = vsel %vm9230_vm13, %v9228_v47, 0  ;;  %v4180_v35 = vadd.f32 %v8771_v16, %v4146_v39  ;;  %v1529_v39 = vpack.c.bf16 %v1497_v11, %v1497_v11 }
 0x14b   : > { %1810 = vst.msk [vmem:[#allocation2 + $0x78] sm:$0xf] %vm1799_vm15, %v9130_v61  ;;  %v1042_v61 = vld [vmem:[%s8003_s0 + $0x6f] sm:$0xff] }
 0x14c   : > { %1458 = vst.msk [vmem:[#allocation2 + $0x84] sm:$0xf] %vm11603_vm0, %v1373_v58  ;;  %v9226_v18 = vpop.permute.xlu2 %2823  ;;  %v1074_v24 = vpack.c.bf16 %v1042_v61, %v1042_v61  ;;  %v1201_v58 = vsel %vm8660_vm2, %v1073_v54, 0  ;;  %v4179_v54 = vadd.f32 %v8771_v16, %v4145_v36  ;;  %vm11680_vm2 = vcmask 261120  }
 0x14d   : > { %3040 = vst.msk [vmem:[#allocation2 + $0x11c] sm:$0xf] %vm1221_vm6, %v3008_v60  ;;  %vm11683_vm5 = vmmov %vm11680_vm2 }
 0x14e   : > { %1234 = vst.msk [vmem:[#allocation2 + $0x90] sm:$0xf] %vm1221_vm6, %v1201_v58  ;;  %v1202_v6 = vsel %vm8005_vm1, %v1074_v24, 0  ;;  %v4143_v24 = vmul.f32 %v8762_v20, %v9108_v33  ;;  %v1657_v58 = vsel %vm8005_vm1, %v1529_v39, 0  ;;  %v4211_v33 = vmax.f32 %v4179_v54, 0.0  ;;  %v2207_v39 = vld [vmem:[%s8003_s0 + $0xc9] sm:$0xff] }
 0x14f   : > { %v4087_v15 = vpop.f32.mrf.mxu3  ;;  %2611 = vrot.lane.b32.xlu0 %v9221_v30, %s7887_s18  ;;  %2833 = vrot.lane.b32.xlu1 %v2749_v42, %s7888_s19  ;;  %v2963_v42 = vpack.c.bf16 %v2931_v7, %v2931_v7  ;;  %v4212_v7 = vmax.f32 %v4180_v35, 0.0  ;;  %1235 = vst.msk [vmem:[#allocation2 + $0x9c] sm:$0xf] %vm1221_vm6, %v1202_v6  ;;  %v1914_v6 = vsel %vm9071_vm11, %v8941_v49, 0  ;;  %v571_v54 = vadd.s32 176, %v7992_v3 }
 0x150   : > { %v4147_v1 = vmul.f32 %v8762_v20, %v4087_v15  ;;  %v1498_v15 = vld [vmem:[%s8003_s0 + $0xa1] sm:$0xff]  ;;  %3031 = vst.msk [vmem:[#allocation2 + $0xb0] sm:$0xf] %vm1221_vm6, %v1657_v58 }
 0x151   : > { %v1726_v53 = vpop.permute.xlu0 %1725  ;;  %v1981_v32 = vpop.permute.xlu1 %1980  ;;  %v2995_v61 = vsel %vm8005_vm1, %v2963_v42, 0  ;;  %v1530_v36 = vpack.c.bf16 %v1498_v15, %v1498_v15  ;;  %v739_v49 = vand.u32 15, %v571_v54  ;;  %v2239_v54 = vpack.c.bf16 %v2207_v39, %v2207_v39 }
 0x152   : > { %v4181_v56 = vadd.f32 %v8771_v16, %v4147_v1  ;;  %1811 = vst.msk [vmem:[#allocation2 + $0x84] sm:$0xf] %vm1799_vm15, %v1726_v53  ;;  %2835 = vrot.lane.b32.xlu2 %v2750_v13, %s7888_s19  ;;  %v4142_v1 = vmul.f32 %v8762_v20, %v9075_v62 }
 0x153   : > { %2068 = vst.msk [vmem:[#allocation2 + $0x84] sm:$0xf] %vm2056_vm7, %v9162_v63  ;;  %v4178_v63 = vadd.f32 %v8771_v16, %v4144_v2  ;;  %v1658_v2 = vsel %vm8981_vm14, %v1530_v36, 0  ;;  %vm11682_vm14 = vmmov %vm11680_vm2 }
 0x154   : > { %v4213_v57 = vmax.f32 %v4181_v56, 0.0  ;;  %2067 = vst.msk [vmem:[#allocation2 + $0x78] sm:$0xf] %vm2056_vm7, %v1981_v32  ;;  %v9266_v60 = vpop.permute.xlu2 %1727  ;;  %v4177_v32 = vadd.f32 %v8771_v16, %v4143_v24  ;;  %v7608_v56 = vld [vmem:[#allocation2 + $0x88] sm:$0xf0]  ;;  %v4176_v34 = vadd.f32 %v8771_v16, %v4142_v1 }
 0x155   : > { %3027 = vst.msk [vmem:[#allocation2 + $0x80] sm:$0xf] %vm1221_vm6, %v2995_v61  ;;  %v1275_v61 = vld [vmem:[%s8003_s0 + $0xb0] sm:$0xff] }
 0x156   : > { %v4237_v13 = vpack.c.bf16 %v4213_v57, %v4212_v7 }
 0x157   : > { %v9275_v11 = vpop.f32.mrf.mxu3  ;;  %1386 = vrot.lane.b32.xlu0 %v9153_v51, %s7886_s17  ;;  %1388 = vrot.lane.b32.xlu1 %v9173_v40, %s7886_s17  ;;  %v4210_v51 = vmax.f32 %v4178_v63, 0.0  ;;  %v1274_v40 = vld [vmem:[%s8003_s0 + $0xa8] sm:$0xff] }
 0x158   : > { %v4278_v35 = vsel %vm11680_vm2, %v4237_v13, 0  ;;  %v9305_v57 = vpack.c.bf16 %v1274_v40, %v1274_v40  ;;  %v4209_v13 = vmax.f32 %v4177_v32, 0.0  ;;  %v2933_v40 = vld [vmem:[%s8003_s0 + $0x89] sm:$0xff]  ;;  %vm987_vm2 = vcmp.ge.s32.totalorder %v739_v49, 1 }
 0x159   : > { %4304 = vmatpush.bf16.xpose.msrb.mxu2 %v4278_v35  ;;  %v2342_v42 = vpop.permute.xlu0 %2341  ;;  %v2344_v53 = vpop.permute.xlu1 %2343  ;;  %v4236_v62 = vpack.c.bf16 %v4211_v33, %v4210_v51  ;;  %v7606_v33 = vld [vmem:[#allocation2 + $0x7c] sm:$0xf]  ;;  %v7111_v35 = vld [vmem:[#allocation2 + $0x84] sm:$0xf0] }
 0x15a   : > { %2423 = vst.msk [vmem:[#allocation2 + $0xac] sm:$0xf] %vm11603_vm0, %v2342_v42  ;;  %1739 = vrot.lane.b32.xlu2 %v1657_v58, %s7887_s18  ;;  %v7607_v63 = vld [vmem:[#allocation2 + $0x80] sm:$0xf0]  ;;  %v3557_v42 = vpop.f32.mrf.mxu0  ;;  %v7114_v1 = vor.u32 %v7606_v33, %v7111_v35 }
 0x15b   : > { %2679 = vst.msk [vmem:[#allocation2 + $0xac] sm:$0xf] %vm1799_vm15, %v9198_v23  ;;  %v4141_v23 = vmul.f32 %v8762_v20, %v9044_v50  ;;  %v7109_v24 = vld [vmem:[#allocation2 + $0x78] sm:$0xf]  ;;  %v9311_v50 = vpack.c.bf16 %v1275_v61, %v1275_v61 }
 0x15c   : > { %2424 = vst.msk [vmem:[#allocation2 + $0xb8] sm:$0xf] %vm11603_vm0, %v2344_v53  ;;  %v9303_v7 = vpop.permute.xlu2 %1986  ;;  %v7117_v15 = vld [vmem:[#allocation2 + $0x80] sm:$0xf]  ;;  %v7110_v36 = vor.u32 %v7607_v63, %v7109_v24  ;;  %v3646_v53 = vpop.f32.mrf.mxu1  ;;  %v2463_v61 = vld [vmem:[%s8003_s0 + $0xd7] sm:$0xff]  ;;  %3670 = vmatmul.bf16.gmra.mxu1 %v7114_v1  ;;  %v4140_v63 = vmul.f32 %v8762_v20, %v9014_v46  ;;  %v9336_v20 = vsel %vm8005_vm1, %v2239_v54, 0 }
 0x15d   : > { %v7118_v58 = vor.u32 %v7608_v56, %v7117_v15  ;;  %2171 = vst.msk [vmem:[#allocation2 + $0xdc] sm:$0xf] %vm1221_vm6, %v9305_v57  ;;  %v9316_v32 = vadd.f32 %v3646_v53, %v3557_v42  ;;  %v4275_v56 = vsel %vm11682_vm14, %v4236_v62, 0  ;;  %v2965_v15 = vpack.c.bf16 %v2933_v40, %v2933_v40  ;;  %vm9347_vm14 = vmpackc.low %vm987_vm2, %vm987_vm2 }
 0x15e   : > { %3581 = vmatmul.bf16.gmra.mxu0 %v7110_v36  ;;  %2172 = vst.msk [vmem:[#allocation2 + $0xe8] sm:$0xf] %vm1221_vm6, %v9311_v50  ;;  %v4175_v39 = vadd.f32 %v8771_v16, %v4141_v23  ;;  %v2272_v46 = vsel %vm9230_vm13, %v9102_v22, 0  ;;  %v9342_v49 = vpack.c.bf16 %v2463_v61, %v2463_v61  ;;  %v574_v16 = vadd.s32 200, %v7992_v3  ;;  %v9903_v23 = vld [vmem:[%s11586_s3] sm:$0xf] }
 0x15f   : > { %v9307_v51 = vpop.f32.mrf.mxu3  ;;  %1741 = vrot.lane.b32.xlu0 %v1658_v2, %s7887_s18  ;;  %1996 = vrot.lane.b32.xlu1 %v1914_v6, %s7888_s19  ;;  %11681 = vst [vmem:[#allocation9_spill] sm:$0xff] %v9316_v32  ;;  %v4208_v2 = vmax.f32 %v4176_v34, 0.0  ;;  %v2997_v62 = vsel %vm8005_vm1, %v2965_v15, 0 }
 0x160   : > { %7316 = vmatmul.msk.bf16.gmra.mxu2 %vm11683_vm5, %v7118_v58  ;;  %v2464_v58 = vld [vmem:[%s8003_s0 + $0xdf] sm:$0xff]  ;;  %3029 = vst.msk [vmem:[#allocation2 + $0x98] sm:$0xf] %vm1221_vm6, %v2997_v62  ;;  %v760_v35 = vand.u32 15, %v574_v16  ;;  %v4207_v42 = vmax.f32 %v4175_v39, 0.0  ;;  %v2527_v1 = vsel %vm9347_vm14, %v9342_v49, 0 }
 0x161   : > { %4305 = vmatpush.bf16.xpose.msrb.mxu2 %v4275_v56  ;;  %v2600_v24 = vpop.permute.xlu0 %2599  ;;  %v2822_v6 = vpop.permute.xlu1 %2821  ;;  %v4235_v34 = vpack.c.bf16 %v4209_v13, %v4208_v2  ;;  %v2209_v13 = vld [vmem:[%s8003_s0 + $0xd9] sm:$0xff]  ;;  %v2496_v33 = vpack.c.bf16 %v2464_v58, %v2464_v58  ;;  %v7611_v62 = vld [vmem:[#allocation2 + $0xa0] sm:$0xf0] }
 0x162   : > { %2680 = vst.msk [vmem:[#allocation2 + $0xb8] sm:$0xf] %vm1799_vm15, %v2600_v24  ;;  %1998 = vrot.lane.b32.xlu2 %v8968_v38, %s7888_s19  ;;  %v9355_v38 = vld [vmem:[%s11594_s11 + $0x1] ss:$0 sm:$0xff]  ;;  %v2241_v40 = vpack.c.bf16 %v2209_v13, %v2209_v13  ;;  %v9368_v56 = vpop.f32.mrf.mxu0  ;;  %vm1022_vm2 = vcmp.le.s32.totalorder %v760_v35, 14 }
 0x163   : > { %2904 = vst.msk [vmem:[#allocation2 + $0xb8] sm:$0xf] %vm2056_vm7, %v9226_v18  ;;  %v4174_v22 = vadd.f32 %v9355_v38, %v4140_v63  ;;  %v4272_v53 = vsel %vm11683_vm5, %v4235_v34, 0  ;;  %v9378_v61 = vsel %vm8005_vm1, %v2496_v33, 0  ;;  %v2751_v63 = vpack.c.bf16 %v8974_v21, %v8974_v21  ;;  %v1044_v58 = vld [vmem:[%s8003_s0 + $0x7f] sm:$0xff]  ;;  %vm9397_vm5 = vmpackc.low %vm1022_vm2, %vm1022_vm2 }
 0x164   : > { %2903 = vst.msk [vmem:[#allocation2 + $0xac] sm:$0xf] %vm2056_vm7, %v2822_v6  ;;  %v9345_v18 = vpop.permute.xlu2 %2601  ;;  %v9370_v54 = vpop.f32.mrf.mxu1  ;;  %v2720_v6 = vld [vmem:[%s8003_s0 + $0xe0] sm:$0xff]  ;;  %v9386_v34 = vsel %vm8005_vm1, %v2241_v40, 0  ;;  %v7609_v35 = vld [vmem:[#allocation2 + $0x94] sm:$0xf] }
 0x165   : > { %11686 = vst [vmem:[#allocation10_spill] sm:$0xff] %v9368_v56  ;;  %v4206_v24 = vmax.f32 %v4174_v22, 0.0  ;;  %v9393_v22 = vpack.c.bf16 %v2720_v6, %v2720_v6  ;;  %vm11690_vm2 = vcmask 261120  }
 0x166   : > { %11687 = vst [vmem:[#allocation11_spill] sm:$0xff] %v9370_v54  ;;  %v2469_v54 = vld [vmem:[%s8003_s0 + $0x107] sm:$0xff] }
 0x167   : > { %v9359_v36 = vpop.f32.mrf.mxu3  ;;  %2357 = vrot.lane.b32.xlu0 %v9336_v20, %s7886_s17  ;;  %2359 = vrot.lane.b32.xlu1 %v2272_v46, %s7886_s17  ;;  %v4234_v39 = vpack.c.bf16 %v4207_v42, %v4206_v24  ;;  %v2946_v46 = vld [vmem:[%s8003_s0 + $0xf1] sm:$0xff]  ;;  %v1076_v42 = vpack.c.bf16 %v1044_v58, %v1044_v58  ;;  %3039 = vst.msk [vmem:[#allocation2 + $0x110] sm:$0xf] %vm1221_vm6, %v9386_v34 }
 0x168   : > { %v9395_v13 = vpack.c.bf16 %v2946_v46, %v2946_v46  ;;  %v7129_v33 = vld [vmem:[#allocation2 + $0x98] sm:$0xf]  ;;  %2178 = vst.msk [vmem:[#allocation2 + $0x130] sm:$0xf] %vm1221_vm6, %v9393_v22 }
 0x169   : > { %4306 = vmatpush.bf16.xpose.msrb.mxu2 %v4272_v53  ;;  %v1375_v15 = vpop.permute.xlu0 %1374  ;;  %v1377_v2 = vpop.permute.xlu1 %1376  ;;  %v7123_v53 = vld [vmem:[#allocation2 + $0x9c] sm:$0xf0]  ;;  %v7130_v40 = vor.u32 %v7611_v62, %v7129_v33  ;;  %v4269_v62 = vsel %vm11690_vm2, %v4234_v39, 0  ;;  %v1204_v39 = vsel %vm8005_vm1, %v1076_v42, 0  ;;  %v1276_v42 = vld [vmem:[%s8003_s0 + $0xb8] sm:$0xff] }
 0x16a   : > { %1459 = vst.msk [vmem:[#allocation2 + $0x90] sm:$0xf] %vm11603_vm0, %v1375_v15  ;;  %2613 = vrot.lane.b32.xlu2 %v2527_v1, %s7887_s18  ;;  %v7126_v15 = vor.u32 %v7609_v35, %v7123_v53  ;;  %v3010_v24 = vsel %vm9397_vm5, %v9395_v13, 0  ;;  %v3562_v46 = vpop.f32.mrf.mxu0 }
 0x16b   : > { %1812 = vst.msk [vmem:[#allocation2 + $0x90] sm:$0xf] %vm1799_vm15, %v9266_v60  ;;  %v1043_v60 = vld [vmem:[%s8003_s0 + $0x77] sm:$0xff] }
 0x16c   : > { %1460 = vst.msk [vmem:[#allocation2 + $0x9c] sm:$0xf] %vm11603_vm0, %v1377_v2  ;;  %v9391_v16 = vpop.permute.xlu2 %2827  ;;  %v1075_v21 = vpack.c.bf16 %v1043_v60, %v1043_v60  ;;  %vm11691_vm0 = vmmov %vm11690_vm2  ;;  %v3651_v60 = vpop.f32.mrf.mxu1  ;;  %3675 = vmatmul.bf16.gmra.mxu1 %v7126_v15 }
 0x16d   : > { %3042 = vst.msk [vmem:[#allocation2 + $0x134] sm:$0xf] %vm1221_vm6, %v3010_v24  ;;  %v9419_v44 = vadd.f32 %v3651_v60, %v3562_v46  ;;  %v1277_v24 = vld [vmem:[%s8003_s0 + $0xc0] sm:$0xff]  ;;  %v9453_v60 = vpack.c.bf16 %v1276_v42, %v1276_v42 }
 0x16e   : > { %v1203_v6 = vsel %vm8826_vm8, %v1075_v21, 0  ;;  %v1500_v21 = vld [vmem:[%s8003_s0 + $0xb1] sm:$0xff]  ;;  %1237 = vst.msk [vmem:[#allocation2 + $0xb4] sm:$0xf] %vm1221_vm6, %v1204_v39  ;;  %vm11693_vm8 = vcmask 519424  }
 0x16f   : > { %v9403_v2 = vpop.f32.mrf.mxu3  ;;  %2615 = vrot.lane.b32.xlu0 %v9378_v61, %s7887_s18  ;;  %2837 = vrot.lane.b32.xlu1 %v2751_v63, %s7888_s19  ;;  %1236 = vst.msk [vmem:[#allocation2 + $0xa8] sm:$0xf] %vm1221_vm6, %v1203_v6  ;;  %v1532_v53 = vpack.c.bf16 %v1500_v21, %v1500_v21  ;;  %v7141_v6 = vld [vmem:[#allocation2 + $0xb0] sm:$0xf]  ;;  %vm11694_vm2 = vmmov %vm11693_vm8  ;;  %v7612_v21 = vld [vmem:[#allocation2 + $0xac] sm:$0xf] }
 0x170   : > { %7317 = vmatmul.msk.bf16.gmra.mxu2 %vm11691_vm0, %v7130_v40  ;;  %11692 = vst [vmem:[#allocation12_spill] sm:$0xff] %v9419_v44 }
 0x171   : > { %4307 = vmatpush.bf16.xpose.msrb.mxu2 %v4269_v62  ;;  %v1730_v63 = vpop.permute.xlu0 %1729  ;;  %v1985_v58 = vpop.permute.xlu1 %1984  ;;  %v7614_v62 = vld [vmem:[#allocation2 + $0xb8] sm:$0xf0]  ;;  %2173 = vst.msk [vmem:[#allocation2 + $0xf4] sm:$0xf] %vm1221_vm6, %v9453_v60 }
 0x172   : > { %1813 = vst.msk [vmem:[#allocation2 + $0x9c] sm:$0xf] %vm1799_vm15, %v1730_v63  ;;  %2839 = vrot.lane.b32.xlu2 %v9393_v22, %s7888_s19  ;;  %v7142_v39 = vor.u32 %v7614_v62, %v7141_v6  ;;  %v2466_v62 = vld [vmem:[%s8003_s0 + $0xef] sm:$0xff] }
 0x173   : > { %2070 = vst.msk [vmem:[#allocation2 + $0x9c] sm:$0xf] %vm2056_vm7, %v9303_v7  ;;  %v4266_v7 = vsel %vm11691_vm0, %v9012_v19, 0  ;;  %v1916_v19 = vsel %vm9200_vm3, %v9065_v28, 0 }
 0x174   : > { %2069 = vst.msk [vmem:[#allocation2 + $0x90] sm:$0xf] %vm2056_vm7, %v1985_v58  ;;  %v9430_v33 = vpop.permute.xlu2 %1731  ;;  %v9456_v58 = vpack.c.bf16 %v1277_v24, %v1277_v24  ;;  %v2465_v24 = vld [vmem:[%s8003_s0 + $0xe7] sm:$0xff] }
 0x175   : > { %v9482_v6 = vpack.c.bf16 %v2465_v24, %v2465_v24 }
 0x176   : > { %2174 = vst.msk [vmem:[#allocation2 + $0x100] sm:$0xf] %vm1221_vm6, %v9456_v58 }
 0x177   : > { %v9433_v35 = vpop.f32.mrf.mxu3  ;;  %1390 = vrot.lane.b32.xlu0 %v9305_v57, %s7886_s17  ;;  %1392 = vrot.lane.b32.xlu1 %v9311_v50, %s7886_s17  ;;  %v1660_v57 = vsel %vm9104_vm4, %v1532_v53, 0  ;;  %v7135_v53 = vld [vmem:[#allocation2 + $0xb4] sm:$0xf0]  ;;  %vm11695_vm4 = vmmov %vm11691_vm0 }
 0x178   : > { %v7138_v28 = vor.u32 %v7612_v21, %v7135_v53  ;;  %v4263_v42 = vsel %vm11695_vm4, %v8951_v0, 0  ;;  %v2274_v0 = vsel %vm9397_vm5, %v9228_v47, 0  ;;  %vm11698_vm4 = vmmov %vm11691_vm0  ;;  %v9503_v21 = vpop.f32.mrf.mxu0  ;;  %v9505_v53 = vpop.f32.mrf.mxu1 }
 0x179   : > { %4308 = vmatpush.bf16.xpose.msrb.mxu2 %v4266_v7  ;;  %v2346_v40 = vpop.permute.xlu0 %2345  ;;  %v2348_v15 = vpop.permute.xlu1 %2347  ;;  %11699 = vst [vmem:[#allocation13_spill] sm:$0xff] %v9503_v21 }
 0x17a   : > { %2425 = vst.msk [vmem:[#allocation2 + $0xc4] sm:$0xf] %vm11693_vm8, %v2346_v40  ;;  %v7610_v46 = vld [vmem:[#allocation2 + $0x98] sm:$0xf0]  ;;  %1743 = vrot.lane.b32.xlu2 %v9056_v37, %s7887_s18 }
 0x17b   : > { %2681 = vst.msk [vmem:[#allocation2 + $0xc4] sm:$0xf] %vm1799_vm15, %v9345_v18  ;;  %v7121_v50 = vld [vmem:[#allocation2 + $0x90] sm:$0xf]  ;;  %v573_v18 = vadd.s32 192, %v7992_v3 }
 0x17c   : > { %2426 = vst.msk [vmem:[#allocation2 + $0xd0] sm:$0xf] %vm11694_vm2, %v2348_v15  ;;  %v7122_v63 = vor.u32 %v7610_v46, %v7121_v50  ;;  %v9459_v55 = vpop.permute.xlu2 %1990  ;;  %3680 = vmatmul.bf16.gmra.mxu1 %v7138_v28  ;;  %v2498_v50 = vpack.c.bf16 %v2466_v62, %v2466_v62  ;;  %v1046_v62 = vld [vmem:[%s8003_s0 + $0x8f] sm:$0xff] }
 0x17d   : > { %v753_v37 = vand.u32 15, %v573_v18  ;;  %11700 = vst [vmem:[#allocation14_spill] sm:$0xff] %v9505_v53 }
 0x17e   : > { %3586 = vmatmul.bf16.gmra.mxu0 %v7122_v63  ;;  %v2721_v63 = vld [vmem:[%s8003_s0 + $0xe8] sm:$0xff] }
 0x17f   : > { %v9465_v7 = vpop.f32.mrf.mxu3  ;;  %1745 = vrot.lane.b32.xlu0 %v1660_v57, %s7887_s18  ;;  %2000 = vrot.lane.b32.xlu1 %v1916_v19, %s7888_s19  ;;  %vm989_vm8 = vcmp.ge.s32.totalorder %v753_v37, 1  ;;  %v10020_v57 = vld [vmem:[%s11590_s7] sm:$0xff] }
 0x180   : > { %7318 = vmatmul.msk.bf16.gmra.mxu2 %vm11691_vm0, %v7142_v39  ;;  %vm9487_vm2 = vmpackc.low %vm989_vm8, %vm989_vm8  ;;  %vm11701_vm0 = vcmask 519424  }
 0x181   : > { %4309 = vmatpush.bf16.xpose.msrb.mxu2 %v4263_v42  ;;  %v2604_v40 = vpop.permute.xlu0 %2603  ;;  %v2826_v15 = vpop.permute.xlu1 %2825  ;;  %v2529_v39 = vsel %vm9487_vm2, %v9482_v6, 0  ;;  %v2722_v42 = vld [vmem:[%s8003_s0 + $0xf0] sm:$0xff]  ;;  %vm11702_vm8 = vmmov %vm11701_vm0 }
 0x182   : > { %2682 = vst.msk [vmem:[#allocation2 + $0xd0] sm:$0xf] %vm1799_vm15, %v2604_v40  ;;  %2002 = vrot.lane.b32.xlu2 %v9093_v4, %s7888_s19  ;;  %v4260_v4 = vsel %vm11698_vm4, %v8893_v59, 0  ;;  %v9511_v59 = vpack.c.bf16 %v2721_v63, %v2721_v63  ;;  %v9517_v40 = vsel %vm8005_vm1, %v2498_v50, 0  ;;  %v9523_v24 = vpack.c.bf16 %v2722_v42, %v2722_v42 }
 0x183   : > { %2906 = vst.msk [vmem:[#allocation2 + $0xd0] sm:$0xf] %vm2056_vm7, %v9391_v16  ;;  %v2211_v16 = vld [vmem:[%s8003_s0 + $0xe9] sm:$0xff] }
 0x184   : > { %2905 = vst.msk [vmem:[#allocation2 + $0xc4] sm:$0xf] %vm2056_vm7, %v2826_v15  ;;  %v9485_v46 = vpop.permute.xlu2 %2605  ;;  %v2243_v18 = vpack.c.bf16 %v2211_v16, %v2211_v16 }
 0x185   : > { %2180 = vst.msk [vmem:[#allocation2 + $0x148] sm:$0xf] %vm1221_vm6, %v9523_v24 }
 0x186   : > { %v9521_v15 = vsel %vm8005_vm1, %v2243_v18, 0  ;;  %v4257_v18 = vsel %vm11698_vm4, %v8830_v45, 0  ;;  %v2969_v45 = vpack.c.bf16 %v2937_v31, %v2937_v31 }
 0x187   : > { %v9492_v19 = vpop.f32.mrf.mxu3  ;;  %2361 = vrot.lane.b32.xlu0 %v9386_v34, %s7886_s17  ;;  %2363 = vrot.lane.b32.xlu1 %v2274_v0, %s7886_s17  ;;  %v1045_v0 = vld [vmem:[%s8003_s0 + $0x87] sm:$0xff]  ;;  %3041 = vst.msk [vmem:[#allocation2 + $0x128] sm:$0xf] %vm1221_vm6, %v9521_v15 }
 0x189   : > { %4310 = vmatpush.bf16.xpose.msrb.mxu2 %v4260_v4  ;;  %v1379_v37 = vpop.permute.xlu0 %1378  ;;  %v1381_v28 = vpop.permute.xlu1 %1380  ;;  %v1078_v4 = vpack.c.bf16 %v1046_v62, %v1046_v62 }
 0x18a   : > { %1461 = vst.msk [vmem:[#allocation2 + $0xa8] sm:$0xf] %vm11701_vm0, %v1379_v37  ;;  %2617 = vrot.lane.b32.xlu2 %v2529_v39, %s7887_s18  ;;  %v3567_v37 = vpop.f32.mrf.mxu0 }
 0x18b   : > { %1814 = vst.msk [vmem:[#allocation2 + $0xa8] sm:$0xf] %vm1799_vm15, %v9430_v33  ;;  %v1077_v33 = vpack.c.bf16 %v1045_v0, %v1045_v0  ;;  %v1206_v39 = vsel %vm8005_vm1, %v1078_v4, 0 }
 0x18c   : > { %1462 = vst.msk [vmem:[#allocation2 + $0xb4] sm:$0xf] %vm11702_vm8, %v1381_v28  ;;  %v9527_v16 = vpop.permute.xlu2 %2831  ;;  %v3656_v28 = vpop.f32.mrf.mxu1 }
 0x18d   : > { %v1205_v63 = vsel %vm8947_vm10, %v1077_v33, 0  ;;  %1239 = vst.msk [vmem:[#allocation2 + $0xcc] sm:$0xf] %vm1221_vm6, %v1206_v39  ;;  %v9547_v62 = vadd.f32 %v3656_v28, %v3567_v37  ;;  %v1502_v33 = vld [vmem:[%s8003_s0 + $0xc1] sm:$0xff]  ;;  %vm11704_vm10 = vmmov %vm11701_vm0 }
 0x18e   : > { %1238 = vst.msk [vmem:[#allocation2 + $0xc0] sm:$0xf] %vm1221_vm6, %v1205_v63  ;;  %v3001_v63 = vsel %vm8005_vm1, %v2969_v45, 0  ;;  %v7201_v29 = vld [vmem:[#allocation2 + $0x128] sm:$0xf] }
 0x18f   : > { %v9533_v50 = vpop.f32.mrf.mxu3  ;;  %2619 = vrot.lane.b32.xlu0 %v9517_v40, %s7887_s18  ;;  %2841 = vrot.lane.b32.xlu1 %v9511_v59, %s7888_s19  ;;  %11703 = vst [vmem:[#allocation15_spill] sm:$0xff] %v9547_v62  ;;  %v7147_v62 = vld [vmem:[#allocation2 + $0xcc] sm:$0xf0] }
 0x190   : > { %3033 = vst.msk [vmem:[#allocation2 + $0xc8] sm:$0xf] %vm1221_vm6, %v3001_v63 }
 0x191   : > { %4311 = vmatpush.bf16.xpose.msrb.mxu2 %v4257_v18  ;;  %v1734_v42 = vpop.permute.xlu0 %1733  ;;  %v1989_v0 = vpop.permute.xlu1 %1988  ;;  %v1278_v18 = vld [vmem:[%s8003_s0 + $0xc8] sm:$0xff] }
 0x192   : > { %1815 = vst.msk [vmem:[#allocation2 + $0xb4] sm:$0xf] %vm1799_vm15, %v1734_v42  ;;  %2843 = vrot.lane.b32.xlu2 %v9523_v24, %s7888_s19  ;;  %v1279_v42 = vld [vmem:[%s8003_s0 + $0xd0] sm:$0xff] }
 0x193   : > { %2072 = vst.msk [vmem:[#allocation2 + $0xb4] sm:$0xf] %vm2056_vm7, %v9459_v55  ;;  %v1534_v55 = vpack.c.bf16 %v1502_v33, %v1502_v33  ;;  %v9583_v63 = vpack.c.bf16 %v1279_v42, %v1279_v42 }
 0x194   : > { %2071 = vst.msk [vmem:[#allocation2 + $0xa8] sm:$0xf] %vm2056_vm7, %v1989_v0  ;;  %v9557_v4 = vpop.permute.xlu2 %1735 }
 0x195   : > { %v1662_v31 = vsel %vm9230_vm13, %v1534_v55, 0  ;;  %2176 = vst.msk [vmem:[#allocation2 + $0x118] sm:$0xf] %vm1221_vm6, %v9583_v63  ;;  %vm11705_vm13 = vmmov %vm11698_vm4 }
 0x197   : > { %v9562_v39 = vpop.f32.mrf.mxu3  ;;  %1394 = vrot.lane.b32.xlu0 %v9453_v60, %s7886_s17  ;;  %1396 = vrot.lane.b32.xlu1 %v9456_v58, %s7886_s17  ;;  %v9577_v60 = vpack.c.bf16 %v1278_v18, %v1278_v18  ;;  %v1918_v58 = vsel %vm9347_vm14, %v9194_v48, 0  ;;  %v7153_v55 = vld [vmem:[#allocation2 + $0xc8] sm:$0xf] }
 0x199   : > { %v2350_v37 = vpop.permute.xlu0 %2349  ;;  %v2352_v28 = vpop.permute.xlu1 %2351  ;;  %2175 = vst.msk [vmem:[#allocation2 + $0x10c] sm:$0xf] %vm1221_vm6, %v9577_v60 }
 0x19a   : > { %2427 = vst.msk [vmem:[#allocation2 + $0xdc] sm:$0xf] %vm11704_vm10, %v2350_v37  ;;  %v7613_v0 = vld [vmem:[#allocation2 + $0xb0] sm:$0xf0]  ;;  %1747 = vrot.lane.b32.xlu2 %v9185_v43, %s7887_s18  ;;  %vm11710_vm10 = vmmov %vm11701_vm0 }
 0x19b   : > { %2683 = vst.msk [vmem:[#allocation2 + $0xdc] sm:$0xf] %vm1799_vm15, %v9485_v46  ;;  %v7133_v45 = vld [vmem:[#allocation2 + $0xa8] sm:$0xf]  ;;  %v575_v46 = vadd.s32 208, %v7992_v3 }
 0x19c   : > { %2428 = vst.msk [vmem:[#allocation2 + $0xe8] sm:$0xf] %vm11701_vm0, %v2352_v28  ;;  %v7134_v33 = vor.u32 %v7613_v0, %v7133_v45  ;;  %v9586_v17 = vpop.permute.xlu2 %1994  ;;  %v7617_v37 = vld [vmem:[#allocation2 + $0xd0] sm:$0xf0]  ;;  %v7615_v45 = vld [vmem:[#allocation2 + $0xc4] sm:$0xf] }
 0x19d   : > { %v767_v43 = vand.u32 15, %v575_v46  ;;  %v7154_v18 = vor.u32 %v7617_v37, %v7153_v55  ;;  %v2467_v0 = vld [vmem:[%s8003_s0 + $0xf7] sm:$0xff]  ;;  %v7150_v46 = vor.u32 %v7615_v45, %v7147_v62  ;;  %v2468_v37 = vld [vmem:[%s8003_s0 + $0xff] sm:$0xff]  ;;  %v9630_v45 = vpop.f32.mrf.mxu0 }
 0x19e   : > { %3591 = vmatmul.bf16.gmra.mxu0 %v7134_v33  ;;  %v2939_v33 = vld [vmem:[%s8003_s0 + $0xb9] sm:$0xff]  ;;  %v9608_v55 = vpack.c.bf16 %v2467_v0, %v2467_v0  ;;  %11708 = vst [vmem:[#allocation16_spill] sm:$0xff] %v9630_v45 }
 0x19f   : > { %v9592_v48 = vpop.f32.mrf.mxu3  ;;  %1749 = vrot.lane.b32.xlu0 %v1662_v31, %s7887_s18  ;;  %2004 = vrot.lane.b32.xlu1 %v1918_v58, %s7888_s19  ;;  %vm991_vm8 = vcmp.ge.s32.totalorder %v767_v43, 1  ;;  %v2971_v31 = vpack.c.bf16 %v2939_v33, %v2939_v33  ;;  %v2276_v58 = vsel %vm8039_vm9, %v9395_v13, 0  ;;  %v2724_v0 = vld [vmem:[%s8003_s0 + $0x100] sm:$0xff]  ;;  %v9632_v33 = vpop.f32.mrf.mxu1 }
 0x1a0   : > { %7319 = vmatmul.msk.bf16.gmra.mxu2 %vm11705_vm13, %v7154_v18  ;;  %3685 = vmatmul.bf16.gmra.mxu1 %v7150_v46  ;;  %vm9613_vm4 = vmpackc.low %vm991_vm8, %vm991_vm8  ;;  %v2500_v18 = vpack.c.bf16 %v2468_v37, %v2468_v37  ;;  %11709 = vst [vmem:[#allocation17_spill] sm:$0xff] %v9632_v33  ;;  %v9640_v37 = vpack.c.bf16 %v2724_v0, %v2724_v0  ;;  %v1047_v33 = vld [vmem:[%s8003_s0 + $0x97] sm:$0xff]  ;;  %v1048_v45 = vld [vmem:[%s8003_s0 + $0x9f] sm:$0xff] }
 0x1a1   : > { %v2608_v28 = vpop.permute.xlu0 %2607  ;;  %v2830_v42 = vpop.permute.xlu1 %2829  ;;  %v1080_v12 = vpack.c.bf16 %v1048_v45, %v1048_v45  ;;  %vm11713_vm8 = vmmov %vm11701_vm0 }
 0x1a2   : > { %2684 = vst.msk [vmem:[#allocation2 + $0xe8] sm:$0xf] %vm1799_vm15, %v2608_v28  ;;  %2006 = vrot.lane.b32.xlu2 %v9221_v30, %s7888_s19  ;;  %v3003_v30 = vsel %vm8005_vm1, %v2971_v31, 0  ;;  %v2723_v28 = vld [vmem:[%s8003_s0 + $0xf8] sm:$0xff] }
 0x1a3   : > { %2908 = vst.msk [vmem:[#allocation2 + $0xe8] sm:$0xf] %vm2056_vm7, %v9527_v16  ;;  %v1208_v45 = vsel %vm8005_vm1, %v1080_v12, 0 }
 0x1a4   : > { %2907 = vst.msk [vmem:[#allocation2 + $0xdc] sm:$0xf] %vm2056_vm7, %v2830_v42  ;;  %v9611_v62 = vpop.permute.xlu2 %2609  ;;  %v2531_v42 = vsel %vm9613_vm4, %v9608_v55, 0 }
 0x1a5   : > { %3035 = vst.msk [vmem:[#allocation2 + $0xe0] sm:$0xf] %vm1221_vm6, %v3003_v30  ;;  %v9645_v30 = vsel %vm8005_vm1, %v2500_v18, 0 }
 0x1a6   : > { %2182 = vst.msk [vmem:[#allocation2 + $0x160] sm:$0xf] %vm1221_vm6, %v9640_v37 }
 0x1a7   : > { %v9620_v43 = vpop.f32.mrf.mxu3  ;;  %2365 = vrot.lane.b32.xlu0 %v9521_v15, %s7886_s17  ;;  %2367 = vrot.lane.b32.xlu1 %v2276_v58, %s7886_s17  ;;  %v9637_v58 = vpack.c.bf16 %v2723_v28, %v2723_v28  ;;  %v7620_v28 = vld [vmem:[#allocation2 + $0xe8] sm:$0xf0]  ;;  %1241 = vst.msk [vmem:[#allocation2 + $0xe4] sm:$0xf] %vm1221_vm6, %v1208_v45  ;;  %v1504_v45 = vld [vmem:[%s8003_s0 + $0xd1] sm:$0xff] }
 0x1a9   : > { %v1383_v46 = vpop.permute.xlu0 %1382  ;;  %v1385_v31 = vpop.permute.xlu1 %1384 }
 0x1aa   : > { %1463 = vst.msk [vmem:[#allocation2 + $0xc0] sm:$0xf] %vm11710_vm10, %v1383_v46  ;;  %2621 = vrot.lane.b32.xlu2 %v2531_v42, %s7887_s18  ;;  %v1079_v46 = vpack.c.bf16 %v1047_v33, %v1047_v33  ;;  %v2725_v33 = vld [vmem:[%s8003_s0 + $0x108] sm:$0xff]  ;;  %v3750_v14 = vpop.f32.mrf.mxu2 }
 0x1ab   : > { %1816 = vst.msk [vmem:[#allocation2 + $0xc0] sm:$0xf] %vm1799_vm15, %v9557_v4  ;;  %v9673_v12 = vpack.c.bf16 %v2725_v33, %v2725_v33  ;;  %v7159_v21 = vld [vmem:[#allocation2 + $0xe4] sm:$0xf0] }
 0x1ac   : > { %1464 = vst.msk [vmem:[#allocation2 + $0xcc] sm:$0xf] %vm11701_vm0, %v1385_v31  ;;  %v9649_v8 = vpop.permute.xlu2 %2835  ;;  %v7165_v4 = vld [vmem:[#allocation2 + $0xe0] sm:$0xf]  ;;  %v1207_v18 = vsel %vm9071_vm11, %v1079_v46, 0  ;;  %v3572_v31 = vpop.f32.mrf.mxu0  ;;  %v2941_v46 = vld [vmem:[%s8003_s0 + $0xc9] sm:$0xff]  ;;  %vm11712_vm11 = vmmov %vm11701_vm0 }
 0x1ad   : > { %v7166_v42 = vor.u32 %v7620_v28, %v7165_v4  ;;  %1240 = vst.msk [vmem:[#allocation2 + $0xd8] sm:$0xf] %vm1221_vm6, %v1207_v18  ;;  %v3661_v4 = vpop.f32.mrf.mxu1  ;;  %v2973_v18 = vpack.c.bf16 %v2941_v46, %v2941_v46 }
 0x1ae   : > { %v3662_v26 = vadd.f32 %v3661_v4, %v3572_v31  ;;  %2183 = vst.msk [vmem:[#allocation2 + $0x16c] sm:$0xf] %vm1221_vm6, %v9673_v12 }
 0x1af   : > { %v9653_v0 = vpop.f32.mrf.mxu3  ;;  %2623 = vrot.lane.b32.xlu0 %v9645_v30, %s7887_s18  ;;  %2845 = vrot.lane.b32.xlu1 %v9637_v58, %s7888_s19  ;;  %v3005_v4 = vsel %vm8005_vm1, %v2973_v18, 0 }
 0x1b0   : > { %7320 = vmatmul.msk.bf16.gmra.mxu2 %vm11705_vm13, %v7166_v42  ;;  %v9675_v42 = vadd.f32 %v3750_v14, %v3662_v26  ;;  %3037 = vst.msk [vmem:[#allocation2 + $0xf8] sm:$0xf] %vm1221_vm6, %v3005_v4  ;;  %v1280_v26 = vld [vmem:[%s8003_s0 + $0xd8] sm:$0xff]  ;;  %v2214_v4 = vld [vmem:[%s8003_s0 + $0x101] sm:$0xff] }
 0x1b1   : > { %v1738_v28 = vpop.permute.xlu0 %1737  ;;  %v1993_v41 = vpop.permute.xlu1 %1992 }
 0x1b2   : > { %1817 = vst.msk [vmem:[#allocation2 + $0xcc] sm:$0xf] %vm1799_vm15, %v1738_v28  ;;  %2847 = vrot.lane.b32.xlu2 %v9640_v37, %s7888_s19 }
 0x1b3   : > { %2074 = vst.msk [vmem:[#allocation2 + $0xcc] sm:$0xf] %vm2056_vm7, %v9586_v17 }
 0x1b4   : > { %11711 = vst [vmem:[#allocation18_spill] sm:$0xff] %v9675_v42  ;;  %v9679_v31 = vpop.permute.xlu2 %1739 }
 0x1b5   : > { %2073 = vst.msk [vmem:[#allocation2 + $0xc0] sm:$0xf] %vm2056_vm7, %v1993_v41  ;;  %v1536_v41 = vpack.c.bf16 %v1504_v45, %v1504_v45  ;;  %v2213_v45 = vld [vmem:[%s8003_s0 + $0xf9] sm:$0xff] }
 0x1b7   : > { %v9686_v17 = vpop.f32.mrf.mxu3  ;;  %1398 = vrot.lane.b32.xlu0 %v9577_v60, %s7886_s17  ;;  %1400 = vrot.lane.b32.xlu1 %v9583_v63, %s7886_s17  ;;  %v1664_v46 = vsel %vm9397_vm5, %v1536_v41, 0  ;;  %v9700_v60 = vpack.c.bf16 %v1280_v26, %v1280_v26  ;;  %v1920_v63 = vsel %vm9487_vm2, %v9342_v49, 0  ;;  %v7177_v1 = vld [vmem:[#allocation2 + $0xf8] sm:$0xf]  ;;  %v7623_v41 = vld [vmem:[#allocation2 + $0x100] sm:$0xf0]  ;;  %vm11714_vm5 = vmmov %vm11705_vm13 }
 0x1b8   : > { %v7178_v26 = vor.u32 %v7623_v41, %v7177_v1  ;;  %vm11720_vm13 = vmmov %vm11713_vm8 }
 0x1b9   : > { %v2354_v33 = vpop.permute.xlu0 %2353  ;;  %v2356_v28 = vpop.permute.xlu1 %2355  ;;  %2177 = vst.msk [vmem:[#allocation2 + $0x124] sm:$0xf] %vm1221_vm6, %v9700_v60 }
 0x1ba   : > { %2429 = vst.msk [vmem:[#allocation2 + $0xf4] sm:$0xf] %vm11712_vm11, %v2354_v33  ;;  %v7616_v14 = vld [vmem:[#allocation2 + $0xc8] sm:$0xf0]  ;;  %1751 = vrot.lane.b32.xlu2 %v9336_v20, %s7887_s18  ;;  %v577_v33 = vadd.s32 224, %v7992_v3  ;;  %vm11721_vm11 = vmmov %vm11713_vm8 }
 0x1bb   : > { %2685 = vst.msk [vmem:[#allocation2 + $0xf4] sm:$0xf] %vm1799_vm15, %v9611_v62 }
 0x1bc   : > { %v7145_v18 = vld [vmem:[#allocation2 + $0xc0] sm:$0xf]  ;;  %2430 = vst.msk [vmem:[#allocation2 + $0x100] sm:$0xf] %vm11713_vm8, %v2356_v28  ;;  %v9709_v53 = vpop.permute.xlu2 %1998  ;;  %v781_v20 = vand.u32 15, %v577_v33 }
 0x1bd   : > { %v7146_v62 = vor.u32 %v7616_v14, %v7145_v18  ;;  %v7618_v28 = vld [vmem:[#allocation2 + $0xdc] sm:$0xf]  ;;  %v2245_v14 = vpack.c.bf16 %v2213_v45, %v2213_v45  ;;  %v9715_v18 = vpack.c.bf16 %v2214_v4, %v2214_v4  ;;  %v9737_v45 = vpack.c.bf16 %v2469_v54, %v2469_v54  ;;  %v9751_v54 = vpop.f32.mrf.mxu2  ;;  %v2921_v4 = vld [vmem:[%s8003_s0 + $0x29] sm:$0xff] }
 0x1be   : > { %v7162_v49 = vor.u32 %v7618_v28, %v7159_v21  ;;  %vm993_vm10 = vcmp.ge.s32.totalorder %v781_v20, 1  ;;  %v9724_v21 = vpop.f32.mrf.mxu0  ;;  %11719 = vst [vmem:[#allocation21_spill] sm:$0xff] %v9751_v54  ;;  %v2726_v20 = vld [vmem:[%s8003_s0 + $0x110] sm:$0xff] }
 0x1bf   : > { %3596 = vmatmul.bf16.gmra.mxu0 %v7146_v62  ;;  %v4122_v25 = vpop.f32.mrf.mxu3  ;;  %1753 = vrot.lane.b32.xlu0 %v1664_v46, %s7887_s18  ;;  %11715 = vst [vmem:[#allocation19_spill] sm:$0xff] %v9724_v21  ;;  %v9726_v46 = vpop.f32.mrf.mxu1  ;;  %vm9741_vm0 = vmpackc.low %vm993_vm10, %vm993_vm10 }
 0x1c0   : > { %2008 = vrot.lane.b32.xlu1 %v1920_v63, %s7888_s19  ;;  %7321 = vmatmul.msk.bf16.gmra.mxu2 %vm11714_vm5, %v7178_v26  ;;  %11716 = vst [vmem:[#allocation20_spill] sm:$0xff] %v9726_v46  ;;  %v9731_v63 = vsel %vm8005_vm1, %v2245_v14, 0  ;;  %v2533_v62 = vsel %vm9741_vm0, %v9737_v45, 0  ;;  %v1049_v26 = vld [vmem:[%s8003_s0 + $0xa7] sm:$0xff] }
 0x1c1   : > { %v2612_v10 = vpop.permute.xlu0 %2611  ;;  %v2834_v44 = vpop.permute.xlu1 %2833  ;;  %3690 = vmatmul.bf16.gmra.mxu1 %v7162_v49  ;;  %v1081_v28 = vpack.c.bf16 %v1049_v26, %v1049_v26  ;;  %v9759_v49 = vld [vmem:[%s11594_s11] ss:$0 sm:$0xff]  ;;  %v2758_v26 = vpack.c.bf16 %v2726_v20, %v2726_v20 }
 0x1c2   : > { %2686 = vst.msk [vmem:[#allocation2 + $0x100] sm:$0xf] %vm1799_vm15, %v2612_v10  ;;  %2010 = vrot.lane.b32.xlu2 %v9378_v61, %s7888_s19  ;;  %v2278_v10 = vsel %vm8097_vm12, %v9715_v18, 0  ;;  %v4161_v27 = vmul.f32 %v9759_v49, %v4122_v25  ;;  %v4149_v52 = vmul.f32 %v9759_v49, %v9307_v51 }
 0x1c3   : > { %2910 = vst.msk [vmem:[#allocation2 + $0x100] sm:$0xf] %vm2056_vm7, %v9649_v8  ;;  %v2470_v8 = vld [vmem:[%s8003_s0 + $0x10f] sm:$0xff]  ;;  %v1209_v32 = vsel %vm9200_vm3, %v1081_v28, 0  ;;  %vm11722_vm3 = vmmov %vm11714_vm5 }
 0x1c4   : > { %2909 = vst.msk [vmem:[#allocation2 + $0xf4] sm:$0xf] %vm2056_vm7, %v2834_v44  ;;  %v9739_v61 = vpop.permute.xlu2 %2613  ;;  %v2502_v44 = vpack.c.bf16 %v2470_v8, %v2470_v8  ;;  %v1050_v8 = vld [vmem:[%s8003_s0 + $0xaf] sm:$0xff]  ;;  %v4195_v25 = vadd.f32 %v9355_v38, %v4161_v27  ;;  %vm11723_vm8 = vmmov %vm11722_vm3 }
 0x1c5   : > { %v1082_v42 = vpack.c.bf16 %v1050_v8, %v1050_v8  ;;  %1242 = vst.msk [vmem:[#allocation2 + $0xf0] sm:$0xf] %vm1221_vm6, %v1209_v32  ;;  %v4160_v8 = vmul.f32 %v9759_v49, %v9686_v17  ;;  %vm11724_vm5 = vmmov %vm11721_vm11 }
 0x1c6   : > { %v3577_v56 = vpop.f32.mrf.mxu0  ;;  %2184 = vst.msk [vmem:[#allocation2 + $0x178] sm:$0xf] %vm1221_vm6, %v2758_v26  ;;  %vm11725_vm10 = vmmov %vm11724_vm5 }
 0x1c7   : > { %v4125_v33 = vpop.f32.mrf.mxu3  ;;  %2369 = vrot.lane.b32.xlu0 %v9731_v63, %s7886_s17 }
 0x1c8   : > { %2371 = vrot.lane.b32.xlu1 %v2278_v10, %s7886_s17  ;;  %v4162_v14 = vmul.f32 %v9759_v49, %v4125_v33  ;;  %v9766_v10 = vsel %vm8005_vm1, %v2502_v44, 0  ;;  %v7626_v44 = vld [vmem:[#allocation2 + $0x118] sm:$0xf0] }
 0x1c9   : > { %v1387_v1 = vpop.permute.xlu0 %1386  ;;  %v1389_v41 = vpop.permute.xlu1 %1388 }
 0x1ca   : > { %1465 = vst.msk [vmem:[#allocation2 + $0xd8] sm:$0xf] %vm11720_vm13, %v1387_v1  ;;  %2625 = vrot.lane.b32.xlu2 %v2533_v62, %s7887_s18  ;;  %v3666_v1 = vpop.f32.mrf.mxu1  ;;  %v1210_v62 = vsel %vm8005_vm1, %v1082_v42, 0  ;;  %v4196_v32 = vadd.f32 %v9355_v38, %v4162_v14  ;;  %vm11727_vm13 = vmmov %vm11722_vm3 }
 0x1cb   : > { %1818 = vst.msk [vmem:[#allocation2 + $0xd8] sm:$0xf] %vm1799_vm15, %v9679_v31  ;;  %v3667_v33 = vadd.f32 %v3666_v1, %v3577_v56  ;;  %v7189_v31 = vld [vmem:[#allocation2 + $0x110] sm:$0xf]  ;;  %v4194_v1 = vadd.f32 %v9355_v38, %v4160_v8 }
 0x1cc   : > { %1466 = vst.msk [vmem:[#allocation2 + $0xe4] sm:$0xf] %vm11721_vm11, %v1389_v41  ;;  %v9773_v54 = vpop.permute.xlu2 %2839  ;;  %v7190_v46 = vor.u32 %v7626_v44, %v7189_v31  ;;  %v3755_v41 = vpop.f32.mrf.mxu2 }
 0x1cd   : > { %1243 = vst.msk [vmem:[#allocation2 + $0xfc] sm:$0xf] %vm1221_vm6, %v1210_v62  ;;  %v9788_v28 = vadd.f32 %v3755_v41, %v3667_v33  ;;  %v4159_v33 = vmul.f32 %v9759_v49, %v9653_v0  ;;  %v4158_v62 = vmul.f32 %v9759_v49, %v9620_v43  ;;  %v4226_v27 = vmax.f32 %v4194_v1, 0.0  ;;  %v2215_v41 = vld [vmem:[%s8003_s0 + $0x109] sm:$0xff] }
 0x1cf   : > { %v4127_v21 = vpop.f32.mrf.mxu3  ;;  %2627 = vrot.lane.b32.xlu0 %v9766_v10, %s7887_s18 }
 0x1d0   : > { %2849 = vrot.lane.b32.xlu1 %v9673_v12, %s7888_s19  ;;  %v4163_v56 = vmul.f32 %v9759_v49, %v4127_v21  ;;  %7322 = vmatmul.msk.bf16.gmra.mxu2 %vm11722_vm3, %v7190_v46  ;;  %v4228_v21 = vmax.f32 %v4196_v32, 0.0 }
 0x1d1   : > { %v1742_v42 = vpop.permute.xlu0 %1741  ;;  %v1997_v20 = vpop.permute.xlu1 %1996 }
 0x1d2   : > { %v4197_v12 = vadd.f32 %v9355_v38, %v4163_v56  ;;  %1819 = vst.msk [vmem:[#allocation2 + $0xe4] sm:$0xf] %vm1799_vm15, %v1742_v42  ;;  %2851 = vrot.lane.b32.xlu2 %v2758_v26, %s7888_s19  ;;  %v1922_v56 = vsel %vm9613_vm4, %v9482_v6, 0  ;;  %v2216_v42 = vld [vmem:[%s8003_s0 + $0x111] sm:$0xff]  ;;  %v4157_v6 = vmul.f32 %v9759_v49, %v9592_v48  ;;  %v4156_v48 = vmul.f32 %v9759_v49, %v9562_v39 }
 0x1d3   : > { %2076 = vst.msk [vmem:[#allocation2 + $0xe4] sm:$0xf] %vm2056_vm7, %v9709_v53  ;;  %v4227_v53 = vmax.f32 %v4195_v25, 0.0 }
 0x1d4   : > { %v4229_v46 = vmax.f32 %v4197_v12, 0.0  ;;  %2075 = vst.msk [vmem:[#allocation2 + $0xd8] sm:$0xf] %vm2056_vm7, %v1997_v20  ;;  %v9799_v14 = vpop.permute.xlu2 %1743  ;;  %v579_v20 = vadd.s32 240, %v7992_v3  ;;  %v7621_v12 = vld [vmem:[#allocation2 + $0xf4] sm:$0xf] }
 0x1d5   : > { %v4244_v43 = vpack.c.bf16 %v4227_v53, %v4226_v27  ;;  %v2248_v53 = vpack.c.bf16 %v2216_v42, %v2216_v42  ;;  %v4155_v42 = vmul.f32 %v9759_v49, %v9533_v50  ;;  %v1051_v50 = vld [vmem:[%s8003_s0 + $0xb7] sm:$0xff] }
 0x1d6   : > { %v4245_v17 = vpack.c.bf16 %v4229_v46, %v4228_v21  ;;  %v795_v25 = vand.u32 15, %v579_v20  ;;  %v7171_v46 = vld [vmem:[#allocation2 + $0xfc] sm:$0xf0] }
 0x1d7   : > { %1402 = vrot.lane.b32.xlu0 %v9700_v60, %s7886_s17  ;;  %v4193_v60 = vadd.f32 %v9355_v38, %v4159_v33  ;;  %v7174_v3 = vor.u32 %v7621_v12, %v7171_v46  ;;  %v2247_v33 = vpack.c.bf16 %v2215_v41, %v2215_v41  ;;  %v9860_v41 = vpop.f32.mrf.mxu1  ;;  %v4154_v46 = vmul.f32 %v9759_v49, %v9492_v19 }
 0x1d8   : > { %1404 = vrot.lane.b32.xlu1 %v9393_v22, %s7886_s17  ;;  %v4302_v26 = vsel %vm11723_vm8, %v4245_v17, 0  ;;  %v1666_v22 = vsel %vm8039_vm9, %v9228_v47, 0  ;;  %v7629_v47 = vld [vmem:[#allocation2 + $0x130] sm:$0xf0]  ;;  %vm11726_vm9 = vmmov %vm11722_vm3  ;;  %vm995_vm11 = vcmp.ge.s32.totalorder %v795_v25, 1  ;;  %vm11728_vm3 = vnez %v11621_v5 }
 0x1d9   : > { %4317 = vmatpush.bf16.xpose.msra.mxu3 %v4302_v26  ;;  %v2358_v31 = vpop.permute.xlu0 %2357  ;;  %v2360_v44 = vpop.permute.xlu1 %2359  ;;  %v7202_v21 = vor.u32 %v7629_v47, %v7201_v29  ;;  %v4225_v1 = vmax.f32 %v4193_v60, 0.0  ;;  %v4299_v17 = vsel %vm11726_vm9, %v4244_v43, 0  ;;  %3695 = vmatmul.bf16.gmra.mxu1 %v7174_v3  ;;  %v2280_v39 = vsel %vm11728_vm3, %v2248_v53, 0  ;;  %v2472_v43 = vld [vmem:[%s8003_s0 + $0x11f] sm:$0xff]  ;;  %vm9855_vm8 = vmpackc.low %vm995_vm11, %vm995_vm11 }
 0x1da   : > { %2431 = vst.msk [vmem:[#allocation2 + $0x10c] sm:$0xf] %vm11724_vm5, %v2358_v31  ;;  %v7619_v0 = vld [vmem:[#allocation2 + $0xe0] sm:$0xf0]  ;;  %1755 = vrot.lane.b32.xlu2 %v9386_v34, %s7887_s18  ;;  %v4192_v34 = vadd.f32 %v9355_v38, %v4158_v62  ;;  %v9835_v26 = vpop.f32.mrf.mxu2  ;;  %v2471_v62 = vld [vmem:[%s8003_s0 + $0x117] sm:$0xff]  ;;  %vm11731_vm5 = vmmov %vm11726_vm9  ;;  %v2504_v29 = vpack.c.bf16 %v2472_v43, %v2472_v43  ;;  %v9876_v3 = vpop.f32.mrf.mxu0 }
 0x1db   : > { %2687 = vst.msk [vmem:[#allocation2 + $0x10c] sm:$0xf] %vm1799_vm15, %v9739_v61  ;;  %v7157_v32 = vld [vmem:[#allocation2 + $0xd8] sm:$0xf]  ;;  %v1052_v53 = vld [vmem:[%s8003_s0 + $0xbf] sm:$0xff]  ;;  %vm11732_vm9 = vmmov %vm11725_vm10 }
 0x1dc   : > { %2432 = vst.msk [vmem:[#allocation2 + $0x118] sm:$0xf] %vm11725_vm10, %v2360_v44  ;;  %v7158_v61 = vor.u32 %v7619_v0, %v7157_v32  ;;  %v9827_v8 = vpop.permute.xlu2 %2002  ;;  %v4224_v27 = vmax.f32 %v4192_v34, 0.0  ;;  %v4191_v0 = vadd.f32 %v9355_v38, %v4157_v6  ;;  %v2503_v32 = vpack.c.bf16 %v2471_v62, %v2471_v62  ;;  %v2727_v47 = vld [vmem:[%s8003_s0 + $0x118] sm:$0xff]  ;;  %vm11735_vm11 = vmmov %vm11731_vm5 }
 0x1dd   : > { %v2536_v19 = vsel %vm8005_vm1, %v2504_v29, 0 }
 0x1de   : > { %3601 = vmatmul.bf16.gmra.mxu0 %v7158_v61  ;;  %v4243_v60 = vpack.c.bf16 %v4225_v1, %v4224_v27  ;;  %v4223_v20 = vmax.f32 %v4191_v0, 0.0  ;;  %v2535_v34 = vsel %vm9855_vm8, %v2503_v32, 0  ;;  %v1083_v1 = vpack.c.bf16 %v1051_v50, %v1051_v50 }
 0x1df   : > { %1757 = vrot.lane.b32.xlu0 %v1666_v22, %s7887_s18  ;;  %v2279_v22 = vsel %vm8005_vm1, %v2247_v33, 0  ;;  %v2759_v33 = vpack.c.bf16 %v2727_v47, %v2727_v47  ;;  %v9893_v0 = vpop.f32.mrf.mxu1  ;;  %v4151_v50 = vmul.f32 %v9759_v49, %v9403_v2 }
 0x1e0   : > { %2012 = vrot.lane.b32.xlu1 %v1922_v56, %s7888_s19  ;;  %7323 = vmatmul.msk.bf16.gmra.mxu2 %vm11727_vm13, %v7202_v21  ;;  %v4296_v61 = vsel %vm11731_vm5, %v4243_v60, 0  ;;  %v1211_v62 = vsel %vm9347_vm14, %v1083_v1, 0  ;;  %vm11733_vm14 = vmmov %vm11731_vm5 }
 0x1e1   : > { %4318 = vmatpush.bf16.xpose.msra.mxu3 %v4299_v17  ;;  %v2616_v31 = vpop.permute.xlu0 %2615  ;;  %v2838_v44 = vpop.permute.xlu1 %2837  ;;  %v4189_v17 = vadd.f32 %v9355_v38, %v4155_v42  ;;  %1244 = vst.msk [vmem:[#allocation2 + $0x108] sm:$0xf] %vm1221_vm6, %v1211_v62  ;;  %vm11734_vm13 = vmmov %vm11731_vm5 }
 0x1e2   : > { %2688 = vst.msk [vmem:[#allocation2 + $0x118] sm:$0xf] %vm1799_vm15, %v2616_v31  ;;  %2014 = vrot.lane.b32.xlu2 %v9517_v40, %s7888_s19  ;;  %v4190_v40 = vadd.f32 %v9355_v38, %v4156_v48  ;;  %v1084_v48 = vpack.c.bf16 %v1052_v53, %v1052_v53  ;;  %v9913_v29 = vpop.f32.mrf.mxu0  ;;  %v4150_v53 = vmul.f32 %v9759_v49, %v9359_v36  ;;  %vm11736_vm5 = vmmov %vm11732_vm9  ;;  %v1924_v36 = vsel %vm9741_vm0, %v9608_v55, 0 }
 0x1e3   : > { %2912 = vst.msk [vmem:[#allocation2 + $0x118] sm:$0xf] %vm2056_vm7, %v9773_v54  ;;  %v9868_v12 = vpop.f32.mrf.mxu2  ;;  %v4221_v32 = vmax.f32 %v4189_v17, 0.0  ;;  %v2923_v54 = vld [vmem:[%s8003_s0 + $0x39] sm:$0xff] }
 0x1e4   : > { %2911 = vst.msk [vmem:[#allocation2 + $0x10c] sm:$0xf] %vm2056_vm7, %v2838_v44  ;;  %v9853_v56 = vpop.permute.xlu2 %2617  ;;  %v4222_v6 = vmax.f32 %v4190_v40, 0.0  ;;  %v2728_v44 = vld [vmem:[%s8003_s0 + $0x120] sm:$0xff]  ;;  %v1212_v60 = vsel %vm8005_vm1, %v1084_v48, 0 }
 0x1e5   : > { %1245 = vst.msk [vmem:[#allocation2 + $0x114] sm:$0xf] %vm1221_vm6, %v1212_v60 }
 0x1e6   : > { %v4242_v31 = vpack.c.bf16 %v4223_v20, %v4222_v6  ;;  %v4152_v20 = vmul.f32 %v9759_v49, %v9433_v35  ;;  %v7876_v35 = vld [vmem:[%s11594_s11 + $0x1] ss:$0 sm:$0xff]  ;;  %v2115_v6 = vld [vmem:[%s8003_s0 + $0xe8] sm:$0xff] }
 0x1e7   : > { %2373 = vrot.lane.b32.xlu0 %v2279_v22, %s7886_s17  ;;  %v2760_v22 = vpack.c.bf16 %v2728_v44, %v2728_v44  ;;  %v1668_v44 = vsel %vm8097_vm12, %v9395_v13, 0  ;;  %vm11738_vm12 = vmmov %vm11735_vm11  ;;  %v4183_v51 = vadd.f32 %v7876_v35, %v4149_v52 }
 0x1e8   : > { %2375 = vrot.lane.b32.xlu1 %v2280_v39, %s7886_s17  ;;  %v4153_v39 = vmul.f32 %v9759_v49, %v9465_v7  ;;  %v4293_v43 = vsel %vm11733_vm14, %v4242_v31, 0  ;;  %v4185_v31 = vadd.f32 %v7876_v35, %v4151_v50  ;;  %vm11740_vm14 = vmmov %vm11736_vm5 }
 0x1e9   : > { %4319 = vmatpush.bf16.xpose.msra.mxu3 %v4296_v61  ;;  %v1391_v25 = vpop.permute.xlu0 %1390  ;;  %v1393_v21 = vpop.permute.xlu1 %1392 }
 0x1ea   : > { %1467 = vst.msk [vmem:[#allocation2 + $0xf0] sm:$0xf] %vm11725_vm10, %v1391_v25  ;;  %2629 = vrot.lane.b32.xlu2 %v2535_v34, %s7887_s18  ;;  %v4187_v7 = vadd.f32 %v9355_v38, %v4153_v39  ;;  %vm11737_vm10 = vmmov %vm11736_vm5  ;;  %v9951_v62 = vpop.f32.mrf.mxu0  ;;  %v7183_v60 = vld [vmem:[#allocation2 + $0x114] sm:$0xf0]  ;;  %v4217_v13 = vmax.f32 %v4185_v31, 0.0 }
 0x1eb   : > { %1820 = vst.msk [vmem:[#allocation2 + $0xf0] sm:$0xf] %vm1799_vm15, %v9799_v14  ;;  %v4188_v14 = vadd.f32 %v9355_v38, %v4154_v46  ;;  %v9915_v47 = vpop.f32.mrf.mxu2  ;;  %v9934_v46 = vpop.f32.mrf.mxu1 }
 0x1ec   : > { %1468 = vst.msk [vmem:[#allocation2 + $0xfc] sm:$0xf] %vm11732_vm9, %v1393_v21  ;;  %v9889_v27 = vpop.permute.xlu2 %2843  ;;  %v4186_v21 = vadd.f32 %v7876_v35, %v4152_v20  ;;  %v4219_v38 = vmax.f32 %v4187_v7, 0.0  ;;  %vm11739_vm9 = vmmov %vm11735_vm11 }
 0x1ed   : > { %v4220_v61 = vmax.f32 %v4188_v14, 0.0 }
 0x1ee   : > { %v4218_v2 = vmax.f32 %v4186_v21, 0.0 }
 0x1ef   : > { %2631 = vrot.lane.b32.xlu0 %v2536_v19, %s7887_s18  ;;  %v4241_v34 = vpack.c.bf16 %v4221_v32, %v4220_v61 }
 0x1f0   : > { %2853 = vrot.lane.b32.xlu1 %v2759_v33, %s7888_s19  ;;  %7351 = vmatmul.msk.bf16.vlgmr.msrb.gmra.mxu2 %vm11734_vm13, %v9903_v23  ;;  %v2147_v33 = vpack.c.bf16 %v2115_v6, %v2115_v6  ;;  %v4240_v19 = vpack.c.bf16 %v4219_v38, %v4218_v2  ;;  %vm11741_vm13 = vmmov %vm11736_vm5 }
 0x1f1   : > { %4320 = vmatpush.bf16.xpose.msra.mxu3 %v4293_v43  ;;  %v1746_v40 = vpop.permute.xlu0 %1745  ;;  %v2001_v42 = vpop.permute.xlu1 %2000 }
 0x1f2   : > { %1821 = vst.msk [vmem:[#allocation2 + $0xfc] sm:$0xf] %vm1799_vm15, %v1746_v40  ;;  %2855 = vrot.lane.b32.xlu2 %v2760_v22, %s7888_s19  ;;  %v4184_v22 = vadd.f32 %v7876_v35, %v4150_v53  ;;  %v4287_v55 = vsel %vm11738_vm12, %v4240_v19, 0  ;;  %v4148_v40 = vmul.f32 %v9759_v49, %v9275_v11  ;;  %v4247_v19 = vld [vmem:[%s11596_s13] sm:$0xff]  ;;  %vm11748_vm12 = vmmov %vm11736_vm5 }
 0x1f3   : > { %2078 = vst.msk [vmem:[#allocation2 + $0xfc] sm:$0xf] %vm2056_vm7, %v9827_v8  ;;  %v4290_v8 = vsel %vm11735_vm11, %v4241_v34, 0  ;;  %v9953_v48 = vpop.f32.mrf.mxu2  ;;  %v9966_v20 = vpop.f32.mrf.mxu1  ;;  %v7889_v34 = vmov 0   ;;  %vm11744_vm11 = vmmov %vm11736_vm5 }
 0x1f4   : > { %2077 = vst.msk [vmem:[#allocation2 + $0xf0] sm:$0xf] %vm2056_vm7, %v2001_v42  ;;  %v9922_v25 = vpop.permute.xlu2 %1747  ;;  %v4216_v42 = vmax.f32 %v4184_v22, 0.0  ;;  %7706 = vset.pattern.permute.xlu0 %v7889_v34  ;;  %7707 = vset.pattern.permute.xlu1 %v7889_v34  ;;  %v4182_v11 = vadd.f32 %v7876_v35, %v4148_v40 }
 0x1f5   : > { %2179 = vst.msk [vmem:[#allocation2 + $0x13c] sm:$0xf] %vm1221_vm6, %v2147_v33  ;;  %7708 = vset.pattern.permute.xlu2 %v7889_v34 }
 0x1f6   : > { %v4239_v61 = vpack.c.bf16 %v4217_v13, %v4216_v42  ;;  %v4214_v35 = vmax.f32 %v4182_v11, 0.0 }
 0x1f7   : > { %1406 = vrot.lane.b32.xlu0 %v9511_v59, %s7886_s17 }
 0x1f8   : > { %1408 = vrot.lane.b32.xlu1 %v9523_v24, %s7886_s17 }
 0x1f9   : > { %4321 = vmatpush.bf16.xpose.msra.mxu3 %v4290_v8  ;;  %v2362_v1 = vpop.permute.xlu0 %2361  ;;  %v2364_v17 = vpop.permute.xlu1 %2363  ;;  %v1926_v8 = vsel %vm9855_vm8, %v9737_v45, 0 }
 0x1fa   : > { %2433 = vst.msk [vmem:[#allocation2 + $0x124] sm:$0xf] %vm11736_vm5, %v2362_v1  ;;  %v7622_v59 = vld [vmem:[#allocation2 + $0xf8] sm:$0xf0]  ;;  %1759 = vrot.lane.b32.xlu2 %v9521_v15, %s7887_s18  ;;  %v7624_v15 = vld [vmem:[#allocation2 + $0x10c] sm:$0xf] }
 0x1fb   : > { %2689 = vst.msk [vmem:[#allocation2 + $0x124] sm:$0xf] %vm1799_vm15, %v9853_v56  ;;  %v7169_v24 = vld [vmem:[#allocation2 + $0xf0] sm:$0xf]  ;;  %v7186_v39 = vor.u32 %v7624_v15, %v7183_v60  ;;  %v3587_v49 = vpop.f32.mrf.mxu0  ;;  %v9977_v21 = vpop.f32.mrf.mxu2  ;;  %v1053_v1 = vld [vmem:[%s8003_s0 + $0xc7] sm:$0xff] }
 0x1fc   : > { %2434 = vst.msk [vmem:[#allocation2 + $0x130] sm:$0xf] %vm11737_vm10, %v2364_v17  ;;  %v7170_v56 = vor.u32 %v7622_v59, %v7169_v24  ;;  %v9955_v14 = vpop.permute.xlu2 %2006  ;;  %v3678_v6 = vpop.f32.mrf.mxu1  ;;  %v1054_v17 = vld [vmem:[%s8003_s0 + $0xcf] sm:$0xff]  ;;  %v3677_v22 = vadd.f32 %v9966_v20, %v3587_v49  ;;  %vm11747_vm10 = vmmov %vm11736_vm5 }
 0x1fd   : > { %3700 = vmatmul.bf16.gmra.mxu1 %v7186_v39  ;;  %v1086_v53 = vpack.c.bf16 %v1054_v17, %v1054_v17 }
 0x1fe   : > { %3606 = vmatmul.bf16.gmra.mxu0 %v7170_v56  ;;  %v3766_v20 = vadd.f32 %v9953_v48, %v3677_v22 }
 0x1ff   : > { %1761 = vrot.lane.b32.xlu0 %v1668_v44, %s7887_s18  ;;  %v2117_v44 = vld [vmem:[%s8003_s0 + $0xf8] sm:$0xff] }
 0x200   : > { %2016 = vrot.lane.b32.xlu1 %v1924_v36, %s7888_s19  ;;  %v2149_v56 = vpack.c.bf16 %v2117_v44, %v2117_v44 }
 0x201   : > { %4322 = vmatpush.bf16.xpose.msra.mxu3 %v4287_v55  ;;  %v2620_v32 = vpop.permute.xlu0 %2619  ;;  %v2842_v43 = vpop.permute.xlu1 %2841 }
 0x202   : > { %2690 = vst.msk [vmem:[#allocation2 + $0x130] sm:$0xf] %vm1799_vm15, %v2620_v32  ;;  %2018 = vrot.lane.b32.xlu2 %v9645_v30, %s7888_s19  ;;  %v4215_v30 = vmax.f32 %v4183_v51, 0.0 }
 0x203   : > { %2914 = vst.msk [vmem:[#allocation2 + $0x130] sm:$0xf] %vm2056_vm7, %v9889_v27  ;;  %v4284_v27 = vsel %vm11739_vm9, %v4239_v61, 0  ;;  %v3589_v2 = vpop.f32.mrf.mxu0  ;;  %v3770_v59 = vpop.f32.mrf.mxu2 }
 0x204   : > { %2913 = vst.msk [vmem:[#allocation2 + $0x124] sm:$0xf] %vm2056_vm7, %v2842_v43  ;;  %v9973_v7 = vpop.permute.xlu2 %2621  ;;  %v3681_v15 = vpop.f32.mrf.mxu1  ;;  %v3679_v39 = vadd.f32 %v3678_v6, %v3589_v2  ;;  %v1055_v2 = vld [vmem:[%s8003_s0 + $0xd7] sm:$0xff] }
 0x205   : > { %2181 = vst.msk [vmem:[#allocation2 + $0x154] sm:$0xf] %vm1221_vm6, %v2149_v56 }
 0x206   : > { %v3768_v11 = vadd.f32 %v9977_v21, %v3679_v39  ;;  %v11749_v39 = vld [vmem:[#allocation21_spill] sm:$0xff] }
 0x207   : > { %1410 = vrot.lane.b32.xlu0 %v9637_v58, %s7886_s17  ;;  %v4238_v58 = vpack.c.bf16 %v4215_v30, %v4214_v35  ;;  %v3672_v30 = vadd.f32 %v9893_v0, %v9913_v29  ;;  %v10066_v0 = vld [vmem:[%s11593_s10 + $0x1] ss:$0 sm:$0xff] }
 0x208   : > { %1412 = vrot.lane.b32.xlu1 %v9640_v37, %s7886_s17  ;;  %v1670_v37 = vsel %vm11728_vm3, %v9715_v18, 0  ;;  %v1214_v18 = vsel %vm8005_vm1, %v1086_v53, 0  ;;  %vm11742_vm3 = vmmov %vm11739_vm9 }
 0x209   : > { %4323 = vmatpush.bf16.xpose.msra.mxu3 %v4284_v27  ;;  %v1395_v50 = vpop.permute.xlu0 %1394  ;;  %v1397_v38 = vpop.permute.xlu1 %1396  ;;  %v4281_v45 = vsel %vm11742_vm3, %v4238_v58, 0  ;;  %1247 = vst.msk [vmem:[#allocation2 + $0x12c] sm:$0xf] %vm1221_vm6, %v1214_v18  ;;  %v11746_v18 = vld [vmem:[#allocation20_spill] sm:$0xff]  ;;  %vm11751_vm9 = vmmov %vm11736_vm5 }
 0x20a   : > { %1469 = vst.msk [vmem:[#allocation2 + $0x108] sm:$0xf] %vm11740_vm14, %v1395_v50  ;;  %1763 = vrot.lane.b32.xlu2 %v9731_v63, %s7887_s18  ;;  %v10004_v63 = vld [vmem:[%s11590_s7 + $0x8] sm:$0xff]  ;;  %vm11752_vm14 = vmmov %vm11736_vm5 }
 0x20b   : > { %1822 = vst.msk [vmem:[#allocation2 + $0x108] sm:$0xf] %vm1799_vm15, %v9922_v25  ;;  %v1085_v25 = vpack.c.bf16 %v1053_v1, %v1053_v1  ;;  %v3772_v13 = vpop.f32.mrf.mxu2  ;;  %v7627_v40 = vld [vmem:[#allocation2 + $0x124] sm:$0xf] }
 0x20c   : > { %1470 = vst.msk [vmem:[#allocation2 + $0x114] sm:$0xf] %vm11741_vm13, %v1397_v38  ;;  %v9999_v33 = vpop.permute.xlu2 %2847  ;;  %v3683_v49 = vpop.f32.mrf.mxu1  ;;  %v3674_v38 = vadd.f32 %v9934_v46, %v9951_v62  ;;  %v3669_v46 = vadd.f32 %v9860_v41, %v9876_v3  ;;  %v3761_v62 = vadd.f32 %v9868_v12, %v3672_v30  ;;  %vm11753_vm13 = vmmov %vm11736_vm5 }
 0x20d   : > { %v1213_v5 = vsel %vm9487_vm2, %v1085_v25, 0  ;;  %vm11743_vm2 = vmmov %vm11742_vm3 }
 0x20e   : > { %1246 = vst.msk [vmem:[#allocation2 + $0x120] sm:$0xf] %vm1221_vm6, %v1213_v5  ;;  %v11745_v5 = vld [vmem:[#allocation19_spill] sm:$0xff]  ;;  %v3758_v41 = vadd.f32 %v9835_v26, %v3669_v46  ;;  %vm11754_vm3 = vmmov %vm11736_vm5 }
 0x20f   : > { %1765 = vrot.lane.b32.xlu0 %v1670_v37, %s7887_s18 }
 0x210   : > { %2020 = vrot.lane.b32.xlu1 %v1926_v8, %s7888_s19  ;;  %v3763_v8 = vadd.f32 %v9915_v47, %v3674_v38 }
 0x211   : > { %4324 = vmatpush.bf16.xpose.msra.mxu3 %v4281_v45  ;;  %v1750_v31 = vpop.permute.xlu0 %1749  ;;  %v2005_v24 = vpop.permute.xlu1 %2004  ;;  %v3664_v45 = vadd.f32 %v11746_v18, %v11745_v5 }
 0x212   : > { %1823 = vst.msk [vmem:[#allocation2 + $0x114] sm:$0xf] %vm1799_vm15, %v1750_v31  ;;  %2022 = vrot.lane.b32.xlu2 %v9766_v10, %s7888_s19 }
 0x213   : > { %2080 = vst.msk [vmem:[#allocation2 + $0x114] sm:$0xf] %vm2056_vm7, %v9955_v14 }
 0x214   : > { %2079 = vst.msk [vmem:[#allocation2 + $0x108] sm:$0xf] %vm2056_vm7, %v2005_v24  ;;  %v10031_v36 = vpop.permute.xlu2 %1751 }
 0x217   : > { %4250 = vperm.xlu0 %7706, %v4247_v19   ;;  %v1087_v19 = vpack.c.bf16 %v1055_v2, %v1055_v2 }
 0x218   : > { %7352 = vmatmul.msk.bf16.vlgmr.msra.gmra.mxu3 %vm11743_vm2, %v9903_v23  ;;  %v7195_v23 = vld [vmem:[#allocation2 + $0x12c] sm:$0xf0] }
 0x219   : > { %7689 = vmatpush.bf16.msrb.mxu3 %v10004_v63  ;;  %v2366_v10 = vpop.permute.xlu0 %2365  ;;  %v2368_v14 = vpop.permute.xlu1 %2367  ;;  %v7198_v51 = vor.u32 %v7627_v40, %v7195_v23 }
 0x21a   : > { %2435 = vst.msk [vmem:[#allocation2 + $0x13c] sm:$0xf] %vm11744_vm11, %v2366_v10  ;;  %v7625_v60 = vld [vmem:[#allocation2 + $0x110] sm:$0xf0] }
 0x21b   : > { %2691 = vst.msk [vmem:[#allocation2 + $0x13c] sm:$0xf] %vm1799_vm15, %v9973_v7  ;;  %v3592_v52 = vpop.f32.mrf.mxu0  ;;  %v7181_v55 = vld [vmem:[#allocation2 + $0x108] sm:$0xf]  ;;  %3705 = vmatmul.bf16.gmra.mxu1 %v7198_v51  ;;  %v10049_v7 = vld [vmem:[%s11593_s10] ss:$0 sm:$0xff] }
 0x21c   : > { %2436 = vst.msk [vmem:[#allocation2 + $0x148] sm:$0xf] %vm11736_vm5, %v2368_v14  ;;  %v3682_v32 = vadd.f32 %v3681_v15, %v3592_v52  ;;  %v7182_v43 = vor.u32 %v7625_v60, %v7181_v55  ;;  %v10042_v42 = vpop.permute.xlu2 %2010  ;;  %v3828_v48 = vmul.f32 %v10049_v7, %v3766_v20  ;;  %v3829_v21 = vmul.f32 %v10049_v7, %v3768_v11  ;;  %v1056_v15 = vld [vmem:[%s8003_s0 + $0xdf] sm:$0xff] }
 0x21d   : > { %7690 = vmatpush.bf16.msrb.mxu3 %v10020_v57  ;;  %v3826_v12 = vmul.f32 %v10049_v7, %v3761_v62  ;;  %v1215_v14 = vsel %vm9613_vm4, %v1087_v19, 0  ;;  %v1088_v60 = vpack.c.bf16 %v1056_v15, %v1056_v15  ;;  %v3753_v52 = vadd.f32 %v11749_v39, %v3664_v45  ;;  %v11750_v20 = vld [vmem:[#allocation18_spill] sm:$0xff]  ;;  %v3686_v45 = vpop.f32.mrf.mxu1 }
 0x21e   : > { %v3771_v61 = vadd.f32 %v3770_v59, %v3682_v32  ;;  %3611 = vmatmul.bf16.gmra.mxu0 %v7182_v43  ;;  %v3862_v25 = vadd.f32 %v10066_v0, %v3829_v21  ;;  %v3827_v59 = vmul.f32 %v10049_v7, %v3763_v8  ;;  %v3825_v55 = vmul.f32 %v10049_v7, %v3758_v41 }
 0x21f   : > { %1248 = vst.msk [vmem:[#allocation2 + $0x138] sm:$0xf] %vm1221_vm6, %v1215_v14  ;;  %v1216_v16 = vsel %vm8005_vm1, %v1088_v60, 0  ;;  %vm4423_vm4 = vcmask 523264   ;;  %v3822_v11 = vmul.f32 %v10049_v7, %v11750_v20  ;;  %v1057_v14 = vld [vmem:[%s8003_s0 + $0xe7] sm:$0xff] }
 0x220   : > { %v3830_v35 = vmul.f32 %v10049_v7, %v3771_v61  ;;  %v3894_v56 = vmax.f32 %v3862_v25, 0.0  ;;  %v3860_v43 = vadd.f32 %v10066_v0, %v3827_v59  ;;  %1249 = vst.msk [vmem:[#allocation2 + $0x144] sm:$0xf] %vm1221_vm6, %v1216_v16  ;;  %v3858_v38 = vadd.f32 %v10066_v0, %v3825_v55 }
 0x221   : > { %v2624_v27 = vpop.permute.xlu0 %2623  ;;  %v2846_v50 = vpop.permute.xlu1 %2845 }
 0x222   : > { %2692 = vst.msk [vmem:[#allocation2 + $0x148] sm:$0xf] %vm1799_vm15, %v2624_v27  ;;  %v3863_v6 = vadd.f32 %v10066_v0, %v3830_v35  ;;  %v3890_v62 = vmax.f32 %v3858_v38, 0.0 }
 0x223   : > { %2916 = vst.msk [vmem:[#allocation2 + $0x148] sm:$0xf] %vm2056_vm7, %v9999_v33  ;;  %v3594_v58 = vpop.f32.mrf.mxu0  ;;  %v10061_v37 = vpop.f32.mrf.mxu2  ;;  %v3861_v33 = vadd.f32 %v10066_v0, %v3828_v48  ;;  %v3892_v48 = vmax.f32 %v3860_v43, 0.0 }
 0x224   : > { %2915 = vst.msk [vmem:[#allocation2 + $0x13c] sm:$0xf] %vm2056_vm7, %v2846_v50  ;;  %v3684_v29 = vadd.f32 %v3683_v49, %v3594_v58  ;;  %v10074_v17 = vpop.permute.xlu2 %2625  ;;  %v3895_v31 = vmax.f32 %v3863_v6, 0.0  ;;  %v3823_v49 = vmul.f32 %v10049_v7, %v3753_v52  ;;  %v3855_v58 = vadd.f32 %v10066_v0, %v3822_v11  ;;  %v1058_v52 = vld [vmem:[%s8003_s0 + $0xef] sm:$0xff] }
 0x225   : > { %v3893_v44 = vmax.f32 %v3861_v33, 0.0 }
 0x226   : > { %v3773_v1 = vadd.f32 %v3772_v13, %v3684_v29  ;;  %v3824_v13 = vmul.f32 %v10049_v7, %v9788_v28  ;;  %v3856_v29 = vadd.f32 %v10066_v0, %v3823_v49  ;;  %v3887_v33 = vmax.f32 %v3855_v58, 0.0  ;;  %v1059_v58 = vld [vmem:[%s8003_s0 + $0xf7] sm:$0xff] }
 0x227   : > { %v10109_v51 = vpack.c.bf16 %v3894_v56, %v3893_v44  ;;  %v2953_v49 = vpack.c.bf16 %v2921_v4, %v2921_v4 }
 0x228   : > { %v3831_v53 = vmul.f32 %v10049_v7, %v3773_v1  ;;  %v3857_v50 = vadd.f32 %v10066_v0, %v3824_v13  ;;  %v3888_v18 = vmax.f32 %v3856_v29, 0.0 }
 0x229   : > { %v1399_v3 = vpop.permute.xlu0 %1398  ;;  %v1401_v47 = vpop.permute.xlu1 %1400  ;;  %v4443_v6 = vsel %vm4423_vm4, %v10109_v51, 0 }
 0x22a   : > { %v3864_v24 = vadd.f32 %v10066_v0, %v3831_v53  ;;  %1471 = vst.msk [vmem:[#allocation2 + $0x120] sm:$0xf] %vm11747_vm10, %v1399_v3  ;;  %v7207_v32 = vld [vmem:[#allocation2 + $0x144] sm:$0xf0]  ;;  %v3889_v46 = vmax.f32 %v3857_v50, 0.0  ;;  %v10140_v59 = vpack.c.bf16 %v3888_v18, %v3887_v33 }
 0x22b   : > { %1824 = vst.msk [vmem:[#allocation2 + $0x120] sm:$0xf] %vm1799_vm15, %v10031_v36  ;;  %v10090_v26 = vpop.f32.mrf.mxu2  ;;  %v7630_v22 = vld [vmem:[#allocation2 + $0x13c] sm:$0xf]  ;;  %v3859_v36 = vadd.f32 %v10066_v0, %v3826_v12 }
 0x22c   : > { %v3896_v10 = vmax.f32 %v3864_v24, 0.0  ;;  %1472 = vst.msk [vmem:[#allocation2 + $0x12c] sm:$0xf] %vm11748_vm12, %v1401_v47  ;;  %v7210_v23 = vor.u32 %v7630_v22, %v7207_v32  ;;  %v2852_v61 = vpop.permute.xlu2 %2851  ;;  %v10132_v53 = vpack.c.bf16 %v3890_v62, %v3889_v46  ;;  %v1089_v22 = vpack.c.bf16 %v1057_v14, %v1057_v14 }
 0x22d   : > { %v3891_v35 = vmax.f32 %v3859_v36, 0.0  ;;  %v1090_v32 = vpack.c.bf16 %v1058_v52, %v1058_v52  ;;  %v1091_v46 = vpack.c.bf16 %v1059_v58, %v1059_v58 }
 0x22e   : > { %v10102_v40 = vpack.c.bf16 %v3896_v10, %v3895_v31  ;;  %3710 = vmatmul.bf16.gmra.mxu1 %v7210_v23  ;;  %v1217_v36 = vsel %vm9741_vm0, %v1089_v22, 0  ;;  %v4434_v23 = vsel %vm4423_vm4, %v10140_v59, 0  ;;  %vm11755_vm0 = vmmov %vm11754_vm3 }
 0x22f   : > { %v10126_v8 = vpack.c.bf16 %v3892_v48, %v3891_v35  ;;  %1250 = vst.msk [vmem:[#allocation2 + $0x150] sm:$0xf] %vm1221_vm6, %v1217_v36  ;;  %v1218_v16 = vsel %vm8005_vm1, %v1090_v32, 0  ;;  %vm11756_vm2 = vmmov %vm11755_vm0 }
 0x230   : > { %v4446_v28 = vsel %vm4423_vm4, %v10102_v40, 0  ;;  %4362 = vmatpush.bf16.msrb.mxu0 %v10102_v40  ;;  %1251 = vst.msk [vmem:[#allocation2 + $0x15c] sm:$0xf] %vm1221_vm6, %v1218_v16  ;;  %vm11758_vm11 = vmmov %vm11755_vm0 }
 0x231   : > { %v1754_v30 = vpop.permute.xlu0 %1753  ;;  %6528 = vmatpush.bf16.xpose.msra.mxu3 %v4446_v28  ;;  %v10170_v28 = vpop.f32.mrf.mxu1  ;;  %vm11759_vm5 = vmmov %vm11755_vm0 }
 0x232   : > { %v2009_v27 = vpop.permute.xlu1 %2008  ;;  %1825 = vst.msk [vmem:[#allocation2 + $0x12c] sm:$0xf] %vm1799_vm15, %v1754_v30  ;;  %vm11760_vm10 = vmmov %vm11755_vm0 }
 0x233   : > { %2082 = vst.msk [vmem:[#allocation2 + $0x12c] sm:$0xf] %vm2056_vm7, %v10042_v42  ;;  %v10120_v21 = vpop.f32.mrf.mxu2 }
 0x234   : > { %2081 = vst.msk [vmem:[#allocation2 + $0x120] sm:$0xf] %vm2056_vm7, %v2009_v27  ;;  %4363 = vmatpush.bf16.msrb.mxu0 %v10109_v51  ;;  %v1756_v25 = vpop.permute.xlu2 %1755  ;;  %v2985_v27 = vsel %vm8005_vm1, %v2953_v49, 0 }
 0x235   : > { %3017 = vst.msk [vmem:[#allocation2 + $0x8] sm:$0xf] %vm1221_vm6, %v2985_v27 }
 0x238   : > { %4364 = vmatpush.bf16.msrb.mxu0 %v10126_v8 }
 0x239   : > { %v2370_v42 = vpop.permute.xlu0 %2369  ;;  %6529 = vmatpush.bf16.xpose.msra.mxu3 %v4443_v6  ;;  %v1060_v6 = vld [vmem:[%s8003_s0 + $0xff] sm:$0xff] }
 0x23a   : > { %v2372_v1 = vpop.permute.xlu1 %2371  ;;  %2437 = vst.msk [vmem:[#allocation2 + $0x154] sm:$0xf] %vm11751_vm9, %v2370_v42  ;;  %v7628_v5 = vld [vmem:[#allocation2 + $0x128] sm:$0xf0] }
 0x23b   : > { %2693 = vst.msk [vmem:[#allocation2 + $0x154] sm:$0xf] %vm1799_vm15, %v10074_v17  ;;  %v7193_v41 = vld [vmem:[#allocation2 + $0x120] sm:$0xf]  ;;  %v10136_v12 = vpop.f32.mrf.mxu2  ;;  %v4440_v17 = vsel %vm4423_vm4, %v10126_v8, 0 }
 0x23c   : > { %v3597_v3 = vpop.f32.mrf.mxu0  ;;  %2438 = vst.msk [vmem:[#allocation2 + $0x160] sm:$0xf] %vm11752_vm14, %v2372_v1  ;;  %v7194_v47 = vor.u32 %v7628_v5, %v7193_v41  ;;  %4365 = vmatpush.bf16.msrb.mxu0 %v10132_v53  ;;  %v2015_v56 = vpop.permute.xlu2 %2014  ;;  %v1092_v5 = vpack.c.bf16 %v1060_v6, %v1060_v6 }
 0x23d   : > { %v3687_v2 = vadd.f32 %v3686_v45, %v3597_v3 }
 0x23e   : > { %3616 = vmatmul.bf16.gmra.mxu0 %v7194_v47  ;;  %v3691_v38 = vpop.f32.mrf.mxu1  ;;  %v1220_v45 = vsel %vm8005_vm1, %v1092_v5, 0 }
 0x23f   : > { %v10143_v31 = vadd.f32 %v10061_v37, %v3687_v2  ;;  %v4437_v37 = vsel %vm4423_vm4, %v10132_v53, 0  ;;  %1253 = vst.msk [vmem:[#allocation2 + $0x174] sm:$0xf] %vm1221_vm6, %v1220_v45 }
 0x240   : > { %4366 = vmatpush.bf16.msrb.mxu0 %v10140_v59 }
 0x241   : > { %v2628_v24 = vpop.permute.xlu0 %2627  ;;  %6530 = vmatpush.bf16.xpose.msra.mxu3 %v4440_v17 }
 0x242   : > { %v2850_v19 = vpop.permute.xlu1 %2849  ;;  %2694 = vst.msk [vmem:[#allocation2 + $0x160] sm:$0xf] %vm1799_vm15, %v2628_v24  ;;  %v2955_v24 = vpack.c.bf16 %v2923_v54, %v2923_v54 }
 0x243   : > { %2918 = vst.msk [vmem:[#allocation2 + $0x160] sm:$0xf] %vm2056_vm7, %v2852_v61  ;;  %v10150_v44 = vpop.f32.mrf.mxu2 }
 0x244   : > { %2917 = vst.msk [vmem:[#allocation2 + $0x154] sm:$0xf] %vm2056_vm7, %v2850_v19  ;;  %v2630_v43 = vpop.permute.xlu2 %2629  ;;  %v10177_v30 = vpop.f32.mrf.mxu0  ;;  %v2987_v19 = vsel %vm8005_vm1, %v2955_v24, 0 }
 0x245   : > { %3019 = vst.msk [vmem:[#allocation2 + $0x20] sm:$0xf] %vm1221_vm6, %v2987_v19  ;;  %v7599_v19 = vld [vmem:[#allocation2 + $0x40] sm:$0xf0] }
 0x246   : > { %v10213_v22 = vpop.f32.mrf.mxu1 }
 0x249   : > { %v1403_v15 = vpop.permute.xlu0 %1402  ;;  %6531 = vmatpush.bf16.xpose.msra.mxu3 %v4437_v37 }
 0x24a   : > { %v1405_v10 = vpop.permute.xlu1 %1404  ;;  %1473 = vst.msk [vmem:[#allocation2 + $0x138] sm:$0xf] %vm11753_vm13, %v1403_v15  ;;  %v7219_v60 = vld [vmem:[#allocation2 + $0x15c] sm:$0xf0] }
 0x24b   : > { %1826 = vst.msk [vmem:[#allocation2 + $0x138] sm:$0xf] %vm1799_vm15, %v1756_v25  ;;  %v7633_v39 = vld [vmem:[#allocation2 + $0x154] sm:$0xf]  ;;  %v10159_v13 = vpop.f32.mrf.mxu2  ;;  %v1219_v25 = vsel %vm9855_vm8, %v1091_v46, 0  ;;  %vm11757_vm8 = vmmov %vm11755_vm0 }
 0x24c   : > { %1474 = vst.msk [vmem:[#allocation2 + $0x144] sm:$0xf] %vm11754_vm3, %v1405_v10  ;;  %v7222_v55 = vor.u32 %v7633_v39, %v7219_v60  ;;  %v2856_v50 = vpop.permute.xlu2 %2855 }
 0x24d   : > { %1252 = vst.msk [vmem:[#allocation2 + $0x168] sm:$0xf] %vm1221_vm6, %v1219_v25  ;;  %v7596_v25 = vld [vmem:[#allocation2 + $0x28] sm:$0xf0] }
 0x24e   : > { %3715 = vmatmul.bf16.gmra.mxu1 %v7222_v55  ;;  %v2925_v55 = vld [vmem:[%s8003_s0 + $0x49] sm:$0xff]  ;;  %s7588_s0 = sshll.u32 %s11861_s22, 4 }
 0x24f   : > { %v2957_v32 = vpack.c.bf16 %v2925_v55, %v2925_v55  ;;  %s536_s17 = scalar_lea.vmem %s11597_s14, %s7588_s0  ;;  %s541_s30 = scalar_lea.vmem %s11598_s15, %s7588_s0 }
 0x251   : > { %v1758_v61 = vpop.permute.xlu0 %1757  ;;  %6532 = vmatpush.bf16.xpose.msra.mxu3 %v4434_v23  ;;  %v2989_v16 = vsel %vm8005_vm1, %v2957_v32, 0  ;;  %vm11761_vm1 = vcmask 261120  }
 0x252   : > { %v2013_v20 = vpop.permute.xlu1 %2012  ;;  %1827 = vst.msk [vmem:[#allocation2 + $0x144] sm:$0xf] %vm1799_vm15, %v1758_v61  ;;  %v7057_v61 = vld [vmem:[#allocation2 + $0x8] sm:$0xf]  ;;  %vm11779_vm13 = vmmov %vm11761_vm1 }
 0x253   : > { %2084 = vst.msk [vmem:[#allocation2 + $0x144] sm:$0xf] %vm2056_vm7, %v2015_v56  ;;  %v10175_v11 = vpop.f32.mrf.mxu2  ;;  %vm11780_vm3 = vmmov %vm11761_vm1 }
 0x254   : > { %2083 = vst.msk [vmem:[#allocation2 + $0x138] sm:$0xf] %vm2056_vm7, %v2013_v20  ;;  %v1760_v2 = vpop.permute.xlu2 %1759  ;;  %v7593_v20 = vld [vmem:[#allocation2 + $0x10] sm:$0xf0] }
 0x255   : > { %3021 = vst.msk [vmem:[#allocation2 + $0x38] sm:$0xf] %vm1221_vm6, %v2989_v16  ;;  %vm11762_vm6 = vmmov %vm11761_vm1 }
 0x256   : > { %v3696_v4 = vpop.f32.mrf.mxu1 }
 0x259   : > { %v2374_v35 = vpop.permute.xlu0 %2373 }
 0x25a   : > { %v2376_v48 = vpop.permute.xlu1 %2375  ;;  %2439 = vst.msk [vmem:[#allocation2 + $0x16c] sm:$0xf] %vm11755_vm0, %v2374_v35  ;;  %v7631_v29 = vld [vmem:[#allocation2 + $0x140] sm:$0xf0]  ;;  %vm11781_vm0 = vmmov %vm11761_vm1 }
 0x25b   : > { %2695 = vst.msk [vmem:[#allocation2 + $0x16c] sm:$0xf] %vm1799_vm15, %v2630_v43  ;;  %v7205_v62 = vld [vmem:[#allocation2 + $0x138] sm:$0xf]  ;;  %v10187_v42 = vpop.f32.mrf.mxu2  ;;  %v3602_v1 = vpop.f32.mrf.mxu0 }
 0x25c   : > { %2440 = vst.msk [vmem:[#allocation2 + $0x178] sm:$0xf] %vm11756_vm2, %v2376_v48  ;;  %v7206_v33 = vor.u32 %v7631_v29, %v7205_v62  ;;  %v3692_v18 = vadd.f32 %v3691_v38, %v3602_v1  ;;  %v2019_v60 = vpop.permute.xlu2 %2018  ;;  %v7058_v38 = vor.u32 %v7593_v20, %v7057_v61  ;;  %v7081_v24 = vld [vmem:[#allocation2 + $0x38] sm:$0xf]  ;;  %vm11782_vm2 = vmmov %vm11781_vm0 }
 0x25e   : > { %3621 = vmatmul.bf16.gmra.mxu0 %v7206_v33  ;;  %v10196_v41 = vadd.f32 %v10120_v21, %v3692_v18  ;;  %v7069_v33 = vld [vmem:[#allocation2 + $0x20] sm:$0xf] }
 0x25f   : > { %v7070_v18 = vor.u32 %v7596_v25, %v7069_v33  ;;  %v11764_v25 = vld [vmem:[#allocation9_spill] sm:$0xff] }
 0x261   : > { %v2632_v3 = vpop.permute.xlu0 %2631 }
 0x262   : > { %v2854_v47 = vpop.permute.xlu1 %2853  ;;  %2696 = vst.msk [vmem:[#allocation2 + $0x178] sm:$0xf] %vm1799_vm15, %v2632_v3 }
 0x263   : > { %2920 = vst.msk [vmem:[#allocation2 + $0x178] sm:$0xf] %vm2056_vm7, %v2856_v50  ;;  %v10202_v17 = vpop.f32.mrf.mxu2  ;;  %v10218_v43 = vpop.f32.mrf.mxu0 }
 0x264   : > { %2919 = vst.msk [vmem:[#allocation2 + $0x16c] sm:$0xf] %vm2056_vm7, %v2854_v47  ;;  %v1764_v23 = vpop.permute.xlu2 %1763 }
 0x269   : > { %v1407_v21 = vpop.permute.xlu0 %1406 }
 0x26a   : > { %v1409_v56 = vpop.permute.xlu1 %1408  ;;  %1475 = vst.msk [vmem:[#allocation2 + $0x150] sm:$0xf] %vm11757_vm8, %v1407_v21  ;;  %v7231_v37 = vld [vmem:[#allocation2 + $0x174] sm:$0xf0]  ;;  %vm11783_vm8 = vmmov %vm11781_vm0 }
 0x26b   : > { %1828 = vst.msk [vmem:[#allocation2 + $0x150] sm:$0xf] %vm1799_vm15, %v1760_v2  ;;  %v7636_v15 = vld [vmem:[#allocation2 + $0x16c] sm:$0xf]  ;;  %v10210_v10 = vpop.f32.mrf.mxu2  ;;  %v10244_v2 = vpop.f32.mrf.mxu1 }
 0x26c   : > { %1476 = vst.msk [vmem:[#allocation2 + $0x15c] sm:$0xf] %vm11758_vm11, %v1409_v56  ;;  %v7234_v14 = vor.u32 %v7636_v15, %v7231_v37  ;;  %v2023_v62 = vpop.permute.xlu2 %2022  ;;  %v7082_v56 = vor.u32 %v7599_v19, %v7081_v24  ;;  %vm11784_vm11 = vmmov %vm11781_vm0 }
 0x26e   : > { %3720 = vmatmul.bf16.gmra.mxu1 %v7234_v14 }
 0x271   : > { %v1762_v39 = vpop.permute.xlu0 %1761 }
 0x272   : > { %v2017_v52 = vpop.permute.xlu1 %2016  ;;  %1829 = vst.msk [vmem:[#allocation2 + $0x15c] sm:$0xf] %vm1799_vm15, %v1762_v39 }
 0x273   : > { %2086 = vst.msk [vmem:[#allocation2 + $0x15c] sm:$0xf] %vm2056_vm7, %v2019_v60  ;;  %v4313_v36 = vpop.f32.mrf.mxu2 }
 0x274   : > { %2085 = vst.msk [vmem:[#allocation2 + $0x150] sm:$0xf] %vm2056_vm7, %v2017_v52 }
 0x279   : > { %v1411_v49 = vpop.permute.xlu0 %1410 }
 0x27a   : > { %v1413_v27 = vpop.permute.xlu1 %1412  ;;  %1477 = vst.msk [vmem:[#allocation2 + $0x168] sm:$0xf] %vm11759_vm5, %v1411_v49  ;;  %v7634_v50 = vld [vmem:[#allocation2 + $0x158] sm:$0xf0]  ;;  %v3701_v21 = vpop.f32.mrf.mxu1  ;;  %vm11785_vm5 = vmmov %vm11781_vm0 }
 0x27b   : > { %1830 = vst.msk [vmem:[#allocation2 + $0x168] sm:$0xf] %vm1799_vm15, %v1764_v23  ;;  %v7217_v35 = vld [vmem:[#allocation2 + $0x150] sm:$0xf]  ;;  %v3607_v48 = vpop.f32.mrf.mxu0  ;;  %v4315_v58 = vpop.f32.mrf.mxu2 }
 0x27c   : > { %1478 = vst.msk [vmem:[#allocation2 + $0x174] sm:$0xf] %vm11760_vm10, %v1413_v27  ;;  %v7218_v9 = vor.u32 %v7634_v50, %v7217_v35  ;;  %v3697_v29 = vadd.f32 %v3696_v4, %v3607_v48  ;;  %v7662_v27 = vld [vmem:[%s11589_s6 + $0x18] sm:$0xff]  ;;  %v7661_v35 = vld [vmem:[%s11589_s6 + $0x10] sm:$0xff]  ;;  %v7660_v48 = vld [vmem:[%s11589_s6 + $0x8] sm:$0xff] }
 0x27d   : > { %4476 = vmatpush.bf16.msra.mxu2 %v7662_v27  ;;  %vm11786_vm10 = vmmov %vm11781_vm0 }
 0x27e   : > { %3626 = vmatmul.bf16.gmra.mxu0 %v7218_v9  ;;  %7311 = vmatmul.msk.bf16.vlgmr.msrb.gmra.mxu1 %vm11761_vm1, %v7058_v38  ;;  %v10229_v46 = vadd.f32 %v10150_v44, %v3697_v29  ;;  %v7659_v29 = vld [vmem:[%s11589_s6] sm:$0xff] }
 0x281   : > { %v1766_v6 = vpop.permute.xlu0 %1765  ;;  %4477 = vmatpush.bf16.msra.mxu2 %v7661_v35 }
 0x282   : > { %v2021_v1 = vpop.permute.xlu1 %2020  ;;  %1831 = vst.msk [vmem:[#allocation2 + $0x174] sm:$0xf] %vm1799_vm15, %v1766_v6  ;;  %vm11763_vm15 = vmmov %vm11761_vm1  ;;  %v10256_v55 = vpop.f32.mrf.mxu1 }
 0x283   : > { %2088 = vst.msk [vmem:[#allocation2 + $0x174] sm:$0xf] %vm2056_vm7, %v2023_v62  ;;  %v10246_v54 = vpop.f32.mrf.mxu0  ;;  %vm11787_vm1 = vmmov %vm11781_vm0 }
 0x284   : > { %2087 = vst.msk [vmem:[#allocation2 + $0x168] sm:$0xf] %vm2056_vm7, %v2021_v1 }
 0x285   : > { %4478 = vmatpush.bf16.msra.mxu2 %v7660_v48 }
 0x289   : > { %v4251_v5 = vpop.permute.xlu0 %4250  ;;  %4479 = vmatpush.bf16.msra.mxu2 %v7659_v29 }
 0x28a   : > { %v7637_v44 = vld [vmem:[#allocation2 + $0x170] sm:$0xf0]  ;;  %v10240_v45 = vadd.f32 %v4313_v36, %v4251_v5 }
 0x28b   : > { %v7229_v3 = vld [vmem:[#allocation2 + $0x168] sm:$0xf] }
 0x28c   : > { %v7230_v47 = vor.u32 %v7637_v44, %v7229_v3  ;;  %4330 = vst [vmem:[%s536_s17] sm:$0xff] %v10240_v45  ;;  %v11765_v44 = vld [vmem:[#allocation10_spill] sm:$0xff] }
 0x28e   : > { %3631 = vmatmul.bf16.gmra.mxu0 %v7230_v47  ;;  %7312 = vmatmul.msk.bf16.gmra.mxu1 %vm11762_vm6, %v7070_v18  ;;  %v11766_v18 = vld [vmem:[#allocation11_spill] sm:$0xff]  ;;  %vm11788_vm6 = vmmov %vm11781_vm0 }
 0x28f   : > { %v3649_v3 = vadd.f32 %v11766_v18, %v11765_v44 }
 0x298   : > { %v3706_v36 = vpop.f32.mrf.mxu1 }
 0x29b   : > { %v4326_v37 = vpop.f32.mrf.mxu3  ;;  %v3612_v15 = vpop.f32.mrf.mxu0 }
 0x29c   : > { %v10248_v14 = vadd.f32 %v4326_v37, %v4251_v5  ;;  %v10250_v60 = vadd.f32 %v3701_v21, %v3612_v15 }
 0x29e   : > { %7313 = vmatmul.msk.bf16.gmra.mxu1 %vm11763_vm15, %v7082_v56  ;;  %v4332_v39 = vmax.f32 %v10240_v45, %v10248_v14  ;;  %4331 = vst [vmem:[%s536_s17 + $0x8] sm:$0xff] %v10248_v14  ;;  %vm11789_vm15 = vmmov %vm11781_vm0 }
 0x2a0   : > { %4333 = vmax.xlane.f32.xlu1 %v4332_v39  ;;  %v3708_v16 = vpop.f32.mrf.mxu1 }
 0x2a3   : > { %v4328_v52 = vpop.f32.mrf.mxu3  ;;  %v10258_v32 = vpop.f32.mrf.mxu0 }
 0x2ab   : > { %v3711_v20 = vpop.f32.mrf.mxu1 }
 0x2b3   : > { %v3713_v4 = vpop.f32.mrf.mxu1 }
 0x2bb   : > { %v3617_v23 = vpop.f32.mrf.mxu0 }
 0x2bc   : > { %v10260_v61 = vadd.f32 %v3706_v36, %v3617_v23 }
 0x2c3   : > { %v3619_v50 = vpop.f32.mrf.mxu0 }
 0x2cb   : > { %v3716_v49 = vpop.f32.mrf.mxu1 }
 0x2d3   : > { %v3718_v38 = vpop.f32.mrf.mxu1 }
 0x2db   : > { %v3622_v58 = vpop.f32.mrf.mxu0 }
 0x2e3   : > { %v3624_v62 = vpop.f32.mrf.mxu0 }
 0x2e4   : > { %v3714_v18 = vadd.f32 %v3713_v4, %v3624_v62  ;;  %v3709_v62 = vadd.f32 %v3708_v16, %v3619_v50  ;;  %v3704_v50 = vadd.f32 %v10256_v55, %v10258_v32 }
 0x2eb   : > { %v3721_v9 = vpop.f32.mrf.mxu1 }
 0x2f3   : > { %v3723_v6 = vpop.f32.mrf.mxu1 }
 0x2fb   : > { %v3627_v1 = vpop.f32.mrf.mxu0  ;;  %v3735_v33 = vpop.f32.mrf.mxu1 }
 0x2fc   : > { %v3736_v5 = vadd.f32 %v3735_v33, %v11764_v25  ;;  %v3717_v29 = vadd.f32 %v3716_v49, %v3627_v1  ;;  %v11767_v33 = vld [vmem:[#allocation12_spill] sm:$0xff] }
 0x2fe   : > { %v3816_v47 = vmul.f32 %v10049_v7, %v3736_v5  ;;  %v11768_v5 = vld [vmem:[#allocation7_spill] sm:$0xff] }
 0x300   : > { %v3849_v56 = vadd.f32 %v10066_v0, %v3816_v47 }
 0x302   : > { %v3881_v39 = vmax.f32 %v3849_v56, 0.0 }
 0x303   : > { %v3629_v24 = vpop.f32.mrf.mxu0  ;;  %v3737_v19 = vpop.f32.mrf.mxu1 }
 0x304   : > { %v3738_v21 = vadd.f32 %v3737_v19, %v3649_v3  ;;  %v3719_v48 = vadd.f32 %v3718_v38, %v3629_v24  ;;  %v11769_v3 = vld [vmem:[#allocation6_spill] sm:$0xff]  ;;  %v11770_v19 = vld [vmem:[#allocation13_spill] sm:$0xff] }
 0x306   : > { %v3817_v37 = vmul.f32 %v10049_v7, %v3738_v21  ;;  %v3808_v47 = vadd.f32 %v11769_v3, %v3719_v48  ;;  %v11771_v21 = vld [vmem:[#allocation14_spill] sm:$0xff] }
 0x307   : > { %v3654_v56 = vadd.f32 %v11771_v21, %v11770_v19 }
 0x308   : > { %v3850_v15 = vadd.f32 %v10066_v0, %v3817_v37  ;;  %v3712_v37 = vadd.f32 %v3711_v20, %v3622_v58  ;;  %v3845_v20 = vmul.f32 %v10049_v7, %v3808_v47  ;;  %v3798_v47 = vadd.f32 %v10210_v10, %v3709_v62 }
 0x309   : > { %v3699_v10 = vadd.f32 %v10244_v2, %v10246_v54 }
 0x30a   : > { %v3882_v52 = vmax.f32 %v3850_v15, 0.0  ;;  %v11772_v15 = vld [vmem:[#allocation5_spill] sm:$0xff] }
 0x30b   : > { %v3632_v36 = vpop.f32.mrf.mxu0  ;;  %v3740_v23 = vpop.f32.mrf.mxu1 }
 0x30c   : > { %v10281_v27 = vpack.c.bf16 %v3882_v52, %v3881_v39  ;;  %v3722_v35 = vadd.f32 %v3721_v9, %v3632_v36  ;;  %v3741_v25 = vadd.f32 %v3740_v23, %v11767_v33  ;;  %v3806_v39 = vadd.f32 %v11772_v15, %v3717_v29  ;;  %v11773_v23 = vld [vmem:[#allocation4_spill] sm:$0xff] }
 0x30d   : > { %v11774_v33 = vld [vmem:[#allocation8_spill] sm:$0xff] }
 0x30e   : > { %7369 = vmatmul.msk.bf16.vlgmr.msra.gmra.mxu2 %vm4423_vm4, %v10281_v27  ;;  %v3811_v44 = vadd.f32 %v11768_v5, %v3722_v35  ;;  %v3818_v9 = vmul.f32 %v10049_v7, %v3741_v25  ;;  %v3803_v35 = vadd.f32 %v11773_v23, %v3714_v18  ;;  %v11775_v5 = vld [vmem:[#allocation3_spill] sm:$0xff]  ;;  %v3791_v23 = vadd.f32 %v10175_v11, %v10250_v60 }
 0x30f   : > { %v3801_v3 = vadd.f32 %v11775_v5, %v3712_v37  ;;  %v3796_v37 = vadd.f32 %v10202_v17, %v10260_v61  ;;  %v3841_v17 = vmul.f32 %v10049_v7, %v3798_v47  ;;  %v3788_v11 = vadd.f32 %v10159_v13, %v3699_v10  ;;  %v11777_v5 = vld [vmem:[#allocation16_spill] sm:$0xff] }
 0x310   : > { %v3846_v52 = vmul.f32 %v10049_v7, %v3811_v44  ;;  %v3851_v44 = vadd.f32 %v10066_v0, %v3818_v9  ;;  %v3843_v19 = vmul.f32 %v10049_v7, %v3803_v35  ;;  %v11776_v35 = vld [vmem:[#allocation15_spill] sm:$0xff] }
 0x311   : > { %v3842_v9 = vmul.f32 %v10049_v7, %v3801_v3  ;;  %v11778_v3 = vld [vmem:[#allocation17_spill] sm:$0xff] }
 0x312   : > { %v3883_v15 = vmax.f32 %v3851_v44, 0.0  ;;  %v3659_v44 = vadd.f32 %v11778_v3, %v11777_v5  ;;  %v4425_v5 = vsel %vm4423_vm4, %v10281_v27, 0 }
 0x313   : > { %v4334_v38 = vpop.xlane.xlu1 %4333  ;;  %v3634_v24 = vpop.f32.mrf.mxu0 }
 0x314   : > { %v4335_v49 = vsub.f32 %v10240_v45, %v4334_v38  ;;  %v4336_v1 = vsub.f32 %v10248_v14, %v4334_v38  ;;  %v3724_v36 = vadd.f32 %v3723_v6, %v3634_v24  ;;  %v3742_v4 = vpop.f32.mrf.mxu1  ;;  %v3844_v14 = vmul.f32 %v10049_v7, %v3806_v39 }
 0x315   : > { %v3743_v48 = vadd.f32 %v3742_v4, %v3654_v56  ;;  %v3879_v6 = vadd.f32 %v10066_v0, %v3846_v52  ;;  %v3878_v56 = vadd.f32 %v10066_v0, %v3845_v20  ;;  %v3793_v52 = vadd.f32 %v10187_v42, %v3704_v50 }
 0x316   : > { %v4337_v58 = vmul.f32 1.442695, %v4335_v49  ;;  %v4339_v29 = vmul.f32 1.442695, %v4336_v1  ;;  %v3813_v25 = vadd.f32 %v11774_v33, %v3724_v36  ;;  %v3877_v24 = vadd.f32 %v10066_v0, %v3844_v14 }
 0x317   : > { %v3819_v45 = vmul.f32 %v10049_v7, %v3743_v48  ;;  %v3911_v38 = vmax.f32 %v3879_v6, 0.0  ;;  %v3910_v36 = vmax.f32 %v3878_v56, 0.0  ;;  %v3876_v4 = vadd.f32 %v10066_v0, %v3843_v19 }
 0x318   : > { %7738 = vpow2.f32 %v4337_v58  ;;  %v3847_v16 = vmul.f32 %v10049_v7, %v3813_v25  ;;  %v3840_v42 = vmul.f32 %v10049_v7, %v3796_v37  ;;  %v3909_v48 = vmax.f32 %v3877_v24, 0.0 }
 0x319   : > { %7740 = vpow2.f32 %v4339_v29  ;;  %v3852_v18 = vadd.f32 %v10066_v0, %v3819_v45  ;;  %v3875_v20 = vadd.f32 %v10066_v0, %v3842_v9  ;;  %v3694_v58 = vadd.f32 %v10213_v22, %v10218_v43 }
 0x31a   : > { %v3880_v21 = vadd.f32 %v10066_v0, %v3847_v16  ;;  %v3839_v60 = vmul.f32 %v10049_v7, %v3793_v52  ;;  %v10342_v29 = vpack.c.bf16 %v3910_v36, %v3909_v48  ;;  %v3908_v33 = vmax.f32 %v3876_v4, 0.0 }
 0x31b   : > { %v3884_v39 = vmax.f32 %v3852_v18, 0.0  ;;  %v3874_v25 = vadd.f32 %v10066_v0, %v3841_v17  ;;  %v3838_v14 = vmul.f32 %v10049_v7, %v3791_v23  ;;  %v3907_v22 = vmax.f32 %v3875_v20, 0.0 }
 0x31c   : > { %v3912_v55 = vmax.f32 %v3880_v21, 0.0  ;;  %v3745_v32 = vpop.f32.mrf.mxu1  ;;  %v3873_v13 = vadd.f32 %v10066_v0, %v3840_v42  ;;  %v3689_v43 = vadd.f32 %v10170_v28, %v10177_v30  ;;  %v3783_v16 = vadd.f32 %v10136_v12, %v3694_v58 }
 0x31d   : > { %v10318_v49 = vpack.c.bf16 %v3884_v39, %v3883_v15  ;;  %v3746_v2 = vadd.f32 %v3745_v32, %v11776_v35  ;;  %v3837_v18 = vmul.f32 %v10049_v7, %v3788_v11  ;;  %v10355_v47 = vpack.c.bf16 %v3908_v33, %v3907_v22 }
 0x31e   : > { %v10320_v1 = vpop.eup %7738  ;;  %v10323_v61 = vpack.c.bf16 %v3912_v55, %v3911_v38  ;;  %v3906_v19 = vmax.f32 %v3874_v25, 0.0  ;;  %v3872_v21 = vadd.f32 %v10066_v0, %v3839_v60  ;;  %v3836_v15 = vmul.f32 %v10049_v7, %v10229_v46 }
 0x31f   : > { %v10326_v62 = vpop.eup %7740  ;;  %7370 = vmatmul.msk.bf16.gmra.mxu2 %vm4423_vm4, %v10318_v49  ;;  %v3820_v45 = vmul.f32 %v10049_v7, %v3746_v2  ;;  %v3905_v28 = vmax.f32 %v3873_v13, 0.0  ;;  %v3871_v12 = vadd.f32 %v10066_v0, %v3838_v14  ;;  %v3778_v30 = vadd.f32 %v10090_v26, %v3689_v43  ;;  %v10420_v14 = vld [vmem:[%s11592_s9] ss:$0 sm:$0xff] }
 0x320   : > { %v4341_v54 = vadd.f32 %v10326_v62, %v10320_v1  ;;  %4375 = vmatpush.bf16.msra.mxu1 %v10323_v61  ;;  %v3835_v9 = vmul.f32 %v10049_v7, %v3783_v16  ;;  %v3904_v55 = vmax.f32 %v3872_v21, 0.0  ;;  %v3870_v32 = vadd.f32 %v10066_v0, %v3837_v18 }
 0x321   : > { %v3853_v56 = vadd.f32 %v10066_v0, %v3820_v45  ;;  %v10367_v38 = vpack.c.bf16 %v3906_v19, %v3905_v28  ;;  %v3834_v46 = vmul.f32 %v10049_v7, %v10196_v41  ;;  %v3903_v52 = vmax.f32 %v3871_v12, 0.0 }
 0x322   : > { %4342 = vadd.xlane.f32.xlu2 %v4341_v54  ;;  %v3869_v17 = vadd.f32 %v10066_v0, %v3836_v15  ;;  %v3832_v26 = vmul.f32 %v10049_v7, %v10143_v31  ;;  %v3833_v4 = vmul.f32 %v10049_v7, %v3778_v30  ;;  %v3902_v35 = vmax.f32 %v3870_v32, 0.0 }
 0x323   : > { %v3885_v24 = vmax.f32 %v3853_v56, 0.0  ;;  %v10377_v23 = vpack.c.bf16 %v3904_v55, %v3903_v52  ;;  %v3868_v2 = vadd.f32 %v10066_v0, %v3835_v9  ;;  %v3867_v54 = vadd.f32 %v10066_v0, %v3834_v46 }
 0x324   : > { %v3747_v6 = vpop.f32.mrf.mxu1  ;;  %4376 = vmatpush.bf16.msra.mxu1 %v10342_v29  ;;  %v3901_v42 = vmax.f32 %v3869_v17, 0.0  ;;  %v3866_v20 = vadd.f32 %v10066_v0, %v3833_v4  ;;  %v4428_v25 = vsel %vm4423_vm4, %v10318_v49, 0 }
 0x325   : > { %v3748_v50 = vadd.f32 %v3747_v6, %v3659_v44  ;;  %v3900_v48 = vmax.f32 %v3868_v2, 0.0  ;;  %v3899_v58 = vmax.f32 %v3867_v54, 0.0 }
 0x326   : > { %v10384_v31 = vpack.c.bf16 %v3902_v35, %v3901_v42  ;;  %v3898_v33 = vmax.f32 %v3866_v20, 0.0 }
 0x327   : > { %v3821_v37 = vmul.f32 %v10049_v7, %v3748_v50  ;;  %v3865_v7 = vadd.f32 %v10066_v0, %v3832_v26  ;;  %v10390_v11 = vpack.c.bf16 %v3900_v48, %v3899_v58  ;;  %v10428_v50 = vld [vmem:[%s11592_s9 + $0x1] ss:$0 sm:$0xff] }
 0x328   : > { %4377 = vmatpush.bf16.msra.mxu1 %v10355_v47 }
 0x329   : > { %v3854_v39 = vadd.f32 %v10066_v0, %v3821_v37  ;;  %v3897_v60 = vmax.f32 %v3865_v7, 0.0 }
 0x32b   : > { %v3886_v10 = vmax.f32 %v3854_v39, 0.0  ;;  %v10397_v0 = vpack.c.bf16 %v3898_v33, %v3897_v60 }
 0x32c   : > { %4378 = vmatpush.bf16.msra.mxu1 %v10367_v38 }
 0x32d   : > { %v3915_v36 = vpack.c.bf16 %v3886_v10, %v3885_v24 }
 0x32f   : > { %4367 = vmatpush.bf16.msrb.mxu0 %v3915_v36  ;;  %7371 = vmatmul.msk.bf16.gmra.mxu2 %vm4423_vm4, %v3915_v36  ;;  %v4431_v41 = vsel %vm4423_vm4, %v3915_v36, 0 }
 0x330   : > { %6533 = vmatpush.bf16.xpose.msra.mxu3 %v4431_v41  ;;  %4379 = vmatpush.bf16.msra.mxu1 %v10377_v23 }
 0x333   : > { %4368 = vmatpush.bf16.msrb.mxu0 %v10318_v49 }
 0x334   : > { %4380 = vmatpush.bf16.msra.mxu1 %v10384_v31 }
 0x337   : > { %4369 = vmatpush.bf16.msrb.mxu0 %v10281_v27 }
 0x338   : > { %6534 = vmatpush.bf16.xpose.msra.mxu3 %v4428_v25  ;;  %4381 = vmatpush.bf16.msra.mxu1 %v10390_v11 }
 0x33b   : > { %4747 = vmatpush.bf16.msra.mxu0 %v10004_v63 }
 0x33c   : > { %4382 = vmatpush.bf16.msra.mxu1 %v10397_v0 }
 0x33f   : > { %4748 = vmatpush.bf16.msra.mxu0 %v10020_v57  ;;  %7372 = vmatmul.msk.bf16.gmra.mxu2 %vm4423_vm4, %v10140_v59 }
 0x340   : > { %6535 = vmatpush.bf16.xpose.msra.mxu3 %v4425_v5 }
 0x34f   : > { %7373 = vmatmul.msk.bf16.gmra.mxu2 %vm4423_vm4, %v10132_v53 }
 0x35f   : > { %7374 = vmatmul.msk.bf16.gmra.mxu2 %vm4423_vm4, %v10126_v8 }
 0x36f   : > { %7375 = vmatmul.msk.bf16.gmra.mxu2 %vm4423_vm4, %v10109_v51 }
 0x37f   : > { %7376 = vmatmul.msk.bf16.gmra.mxu2 %vm4423_vm4, %v10102_v40 }
 0x38f   : > { %7377 = vmatmul.msk.bf16.gmra.mxu2 %vm4423_vm4, %v10397_v0 }
 0x391   : > { %v4481_v63 = vpop.f32.mrf.mxu2 }
 0x395   : > { %v4343_v57 = vpop.xlane.xlu2 %4342 }
 0x396   : > { %7742 = vrcp.f32 %v4343_v57  ;;  %v4355_v8 = vand.u32 2147483648, %v4343_v57  ;;  %v4353_v51 = vand.u32 2147483647, %v4343_v57  ;;  %vm4349_vm12 = vweird.f32 %v4343_v57 }
 0x398   : > { %v4356_v40 = vor.u32 1.1754944e-38, %v4355_v8  ;;  %vm4354_vm14 = vcmp.eq.f32.partialorder %v4353_v51, 8.507059e+37 }
 0x399   : > { %v4483_v59 = vpop.f32.mrf.mxu2 }
 0x39a   : > { %v4563_v15 = vmul.f32 %v10420_v14, %v4483_v59 }
 0x39c   : > { %v7743_v27 = vpop.eup %7742  ;;  %v4596_v30 = vadd.f32 %v10428_v50, %v4563_v15  ;;  %v7668_v15 = vld [vmem:[%s11589_s6 + $0x38] sm:$0xff] }
 0x39d   : > { %v4345_v49 = vmul.f32 %v7743_v27, %v4343_v57  ;;  %vm4350_vm7 = vweird.f32 %v7743_v27 }
 0x39e   : > { %vm4351_vm9 = vmor %vm4349_vm12, %vm4350_vm7  ;;  %v4628_v32 = vmax.f32 %v4596_v30, 0.0 }
 0x39f   : > { %v4346_v3 = vsub.f32 1.0, %v4345_v49  ;;  %7378 = vmatmul.msk.bf16.gmra.mxu2 %vm4423_vm4, %v10390_v11  ;;  %vm11790_vm7 = vmmov %vm11781_vm0 }
 0x3a0   : > { %vm11791_vm12 = vmmov %vm11781_vm0 }
 0x3a1   : > { %v4347_v53 = vmul.f32 %v7743_v27, %v4346_v3 }
 0x3a2   : > { %v4486_v44 = vpop.f32.mrf.mxu2 }
 0x3a3   : > { %v4348_v45 = vadd.f32 %v7743_v27, %v4347_v53  ;;  %v4564_v13 = vmul.f32 %v10420_v14, %v4486_v44 }
 0x3a5   : > { %v4352_v6 = vsel %vm4351_vm9, %v7743_v27, %v4348_v45  ;;  %v4597_v56 = vadd.f32 %v10428_v50, %v4564_v13  ;;  %vm11792_vm9 = vmmov %vm11781_vm0 }
 0x3a6   : > { %v4357_v22 = vsel %vm4354_vm14, %v4356_v40, %v4352_v6  ;;  %vm11793_vm14 = vmmov %vm11781_vm0 }
 0x3a7   : > { %v4358_v43 = vmul.f32 %v10320_v1, %v4357_v22  ;;  %v4359_v16 = vmul.f32 %v10326_v62, %v4357_v22  ;;  %v4562_v62 = vmul.f32 %v10420_v14, %v4481_v63  ;;  %v4629_v28 = vmax.f32 %v4597_v56, 0.0 }
 0x3a9   : > { %v4360_v18 = vpack.c.bf16 %v4358_v43, %v4358_v43  ;;  %v4361_v19 = vpack.c.bf16 %v4359_v16, %v4359_v16  ;;  %v4595_v55 = vadd.f32 %v10428_v50, %v4562_v62 }
 0x3aa   : > { %v4488_v21 = vpop.f32.mrf.mxu2 }
 0x3ab   : > { %4370 = vmatmul.bf16.vlgmr.msrb.gmra.mxu0 %v4360_v18  ;;  %4383 = vmatmul.bf16.vlgmr.msra.gmra.mxu1 %v4361_v19  ;;  %v4565_v37 = vmul.f32 %v10420_v14, %v4488_v21  ;;  %v4627_v24 = vmax.f32 %v4595_v55, 0.0  ;;  %v7665_v55 = vld [vmem:[%s11589_s6 + $0x20] sm:$0xff] }
 0x3ac   : > { %4986 = vmatpush.bf16.msrb.mxu0 %v7668_v15 }
 0x3ad   : > { %v4598_v1 = vadd.f32 %v10428_v50, %v4565_v37  ;;  %v4659_v46 = vpack.c.bf16 %v4628_v32, %v4627_v24 }
 0x3af   : > { %v4630_v12 = vmax.f32 %v4598_v1, 0.0  ;;  %7379 = vmatmul.msk.bf16.gmra.mxu2 %vm4423_vm4, %v10384_v31 }
 0x3b1   : > { %v4660_v39 = vpack.c.bf16 %v4630_v12, %v4629_v28  ;;  %v7667_v12 = vld [vmem:[%s11589_s6 + $0x30] sm:$0xff] }
 0x3b2   : > { %v4491_v9 = vpop.f32.mrf.mxu2  ;;  %4987 = vmatpush.bf16.msrb.mxu0 %v7667_v12 }
 0x3b3   : > { %7394 = vmatmul.msk.bf16.vlgmr.msrb.gmra.mxu3 %vm11779_vm13, %v4660_v39  ;;  %v4566_v10 = vmul.f32 %v10420_v14, %v4491_v9  ;;  %v7666_v39 = vld [vmem:[%s11589_s6 + $0x28] sm:$0xff]  ;;  %vm11794_vm13 = vmmov %vm11781_vm0 }
 0x3b5   : > { %v4599_v17 = vadd.f32 %v10428_v50, %v4566_v10 }
 0x3b6   : > { %4988 = vmatpush.bf16.msrb.mxu0 %v7666_v39 }
 0x3b7   : > { %v4631_v4 = vmax.f32 %v4599_v17, 0.0 }
 0x3ba   : > { %v4493_v52 = vpop.f32.mrf.mxu2  ;;  %4989 = vmatpush.bf16.msrb.mxu0 %v7665_v55 }
 0x3bb   : > { %7393 = vmatmul.msk.bf16.vlgmr.msra.gmra.mxu0 %vm11780_vm3, %v4659_v46  ;;  %v4567_v26 = vmul.f32 %v10420_v14, %v4493_v52  ;;  %v7674_v52 = vld [vmem:[%s11589_s6 + $0x58] sm:$0xff]  ;;  %vm11795_vm3 = vmmov %vm11781_vm0 }
 0x3bd   : > { %v4600_v36 = vadd.f32 %v10428_v50, %v4567_v26 }
 0x3be   : > { %5081 = vmatpush.bf16.msra.mxu0 %v7674_v52 }
 0x3bf   : > { %v4632_v35 = vmax.f32 %v4600_v36, 0.0  ;;  %7380 = vmatmul.msk.bf16.gmra.mxu2 %vm4423_vm4, %v10377_v23 }
 0x3c1   : > { %v4661_v2 = vpack.c.bf16 %v4632_v35, %v4631_v4  ;;  %v7673_v4 = vld [vmem:[%s11589_s6 + $0x50] sm:$0xff] }
 0x3c2   : > { %v4496_v41 = vpop.f32.mrf.mxu2  ;;  %5082 = vmatpush.bf16.msra.mxu0 %v7673_v4 }
 0x3c3   : > { %7395 = vmatmul.msk.bf16.gmra.mxu3 %vm11781_vm0, %v4661_v2  ;;  %v4568_v42 = vmul.f32 %v10420_v14, %v4496_v41  ;;  %v7672_v2 = vld [vmem:[%s11589_s6 + $0x48] sm:$0xff]  ;;  %vm6101_vm0 = vcmask 1043456  }
 0x3c5   : > { %v4601_v48 = vadd.f32 %v10428_v50, %v4568_v42  ;;  %v7671_v42 = vld [vmem:[%s11589_s6 + $0x40] sm:$0xff] }
 0x3c6   : > { %5083 = vmatpush.bf16.msra.mxu0 %v7672_v2 }
 0x3c7   : > { %v4633_v58 = vmax.f32 %v4601_v48, 0.0 }
 0x3ca   : > { %v4498_v54 = vpop.f32.mrf.mxu2  ;;  %5084 = vmatpush.bf16.msra.mxu0 %v7671_v42 }
 0x3cb   : > { %v4569_v7 = vmul.f32 %v10420_v14, %v4498_v54 }
 0x3cd   : > { %v4602_v20 = vadd.f32 %v10428_v50, %v4569_v7 }
 0x3cf   : > { %v4634_v60 = vmax.f32 %v4602_v20, 0.0  ;;  %7381 = vmatmul.msk.bf16.gmra.mxu2 %vm4423_vm4, %v10367_v38 }
 0x3d1   : > { %v4662_v33 = vpack.c.bf16 %v4634_v60, %v4633_v58 }
 0x3d2   : > { %v4501_v25 = vpop.f32.mrf.mxu2 }
 0x3d3   : > { %7396 = vmatmul.msk.bf16.gmra.mxu3 %vm11782_vm2, %v4662_v33  ;;  %v4570_v5 = vmul.f32 %v10420_v14, %v4501_v25  ;;  %vm11796_vm2 = vmmov %vm11787_vm1 }
 0x3d5   : > { %v4603_v57 = vadd.f32 %v10428_v50, %v4570_v5 }
 0x3d7   : > { %v4635_v49 = vmax.f32 %v4603_v57, 0.0 }
 0x3da   : > { %v4503_v63 = vpop.f32.mrf.mxu2 }
 0x3db   : > { %v4571_v59 = vmul.f32 %v10420_v14, %v4503_v63 }
 0x3dd   : > { %v4604_v27 = vadd.f32 %v10428_v50, %v4571_v59 }
 0x3df   : > { %v4636_v3 = vmax.f32 %v4604_v27, 0.0  ;;  %7382 = vmatmul.msk.bf16.gmra.mxu2 %vm4423_vm4, %v10355_v47 }
 0x3e1   : > { %v4663_v8 = vpack.c.bf16 %v4636_v3, %v4635_v49 }
 0x3e2   : > { %v4506_v53 = vpop.f32.mrf.mxu2 }
 0x3e3   : > { %7397 = vmatmul.msk.bf16.gmra.mxu3 %vm11783_vm8, %v4663_v8  ;;  %v4572_v51 = vmul.f32 %v10420_v14, %v4506_v53  ;;  %vm11797_vm8 = vmmov %vm11787_vm1 }
 0x3e5   : > { %v4605_v45 = vadd.f32 %v10428_v50, %v4572_v51 }
 0x3e7   : > { %v4637_v22 = vmax.f32 %v4605_v45, 0.0 }
 0x3ea   : > { %v4508_v44 = vpop.f32.mrf.mxu2 }
 0x3eb   : > { %v4573_v40 = vmul.f32 %v10420_v14, %v4508_v44 }
 0x3ed   : > { %v4606_v6 = vadd.f32 %v10428_v50, %v4573_v40 }
 0x3ef   : > { %v4638_v13 = vmax.f32 %v4606_v6, 0.0  ;;  %7383 = vmatmul.msk.bf16.gmra.mxu2 %vm4423_vm4, %v10342_v29 }
 0x3f1   : > { %v4664_v43 = vpack.c.bf16 %v4638_v13, %v4637_v22 }
 0x3f2   : > { %v4511_v16 = vpop.f32.mrf.mxu2 }
 0x3f3   : > { %7398 = vmatmul.msk.bf16.gmra.mxu3 %vm11784_vm11, %v4664_v43  ;;  %v4574_v18 = vmul.f32 %v10420_v14, %v4511_v16  ;;  %v10520_v16 = vld [vmem:[%s11592_s9 + $0x2] ss:$0 sm:$0xff]  ;;  %vm11798_vm11 = vmmov %vm11787_vm1 }
 0x3f5   : > { %v4607_v21 = vadd.f32 %v10428_v50, %v4574_v18 }
 0x3f7   : > { %v4639_v1 = vmax.f32 %v4607_v21, 0.0  ;;  %v10526_v21 = vld [vmem:[%s11592_s9 + $0x3] ss:$0 sm:$0xff] }
 0x3fa   : > { %v4513_v19 = vpop.f32.mrf.mxu2 }
 0x3fb   : > { %v4575_v56 = vmul.f32 %v10420_v14, %v4513_v19 }
 0x3fd   : > { %v4608_v37 = vadd.f32 %v10428_v50, %v4575_v56 }
 0x3ff   : > { %v4640_v62 = vmax.f32 %v4608_v37, 0.0  ;;  %7384 = vmatmul.msk.bf16.gmra.mxu2 %vm4423_vm4, %v10323_v61 }
 0x401   : > { %v4665_v28 = vpack.c.bf16 %v4640_v62, %v4639_v1 }
 0x402   : > { %v4516_v30 = vpop.f32.mrf.mxu2 }
 0x403   : > { %7399 = vmatmul.msk.bf16.gmra.mxu3 %vm11785_vm5, %v4665_v28  ;;  %v4576_v9 = vmul.f32 %v10420_v14, %v4516_v30  ;;  %vm11799_vm5 = vmmov %vm11787_vm1 }
 0x405   : > { %v4609_v24 = vadd.f32 %v10428_v50, %v4576_v9 }
 0x407   : > { %v4641_v17 = vmax.f32 %v4609_v24, 0.0 }
 0x40a   : > { %v4518_v32 = vpop.f32.mrf.mxu2 }
 0x40b   : > { %v4577_v10 = vmul.f32 %v10420_v14, %v4518_v32 }
 0x40d   : > { %v4610_v46 = vadd.f32 %v10428_v50, %v4577_v10 }
 0x40f   : > { %v4642_v26 = vmax.f32 %v4610_v46, 0.0 }
 0x411   : > { %v4666_v36 = vpack.c.bf16 %v4642_v26, %v4641_v17 }
 0x412   : > { %v4521_v35 = vpop.f32.mrf.mxu2 }
 0x413   : > { %7400 = vmatmul.msk.bf16.gmra.mxu3 %vm11786_vm10, %v4666_v36  ;;  %v4578_v41 = vmul.f32 %v10420_v14, %v4521_v35  ;;  %vm11800_vm10 = vmmov %vm11787_vm1 }
 0x415   : > { %v4611_v48 = vadd.f32 %v10428_v50, %v4578_v41 }
 0x417   : > { %v4643_v58 = vmax.f32 %v4611_v48, 0.0 }
 0x41a   : > { %v4523_v54 = vpop.f32.mrf.mxu2 }
 0x41b   : > { %v4579_v7 = vmul.f32 %v10420_v14, %v4523_v54 }
 0x41d   : > { %v4612_v20 = vadd.f32 %v10428_v50, %v4579_v7 }
 0x41f   : > { %v4644_v60 = vmax.f32 %v4612_v20, 0.0 }
 0x421   : > { %v4667_v33 = vpack.c.bf16 %v4644_v60, %v4643_v58 }
 0x422   : > { %v4526_v25 = vpop.f32.mrf.mxu2 }
 0x423   : > { %7401 = vmatmul.msk.bf16.gmra.mxu3 %vm11787_vm1, %v4667_v33  ;;  %v4580_v5 = vmul.f32 %v10420_v14, %v4526_v25 }
 0x425   : > { %v4613_v49 = vadd.f32 %v10428_v50, %v4580_v5 }
 0x427   : > { %v4645_v51 = vmax.f32 %v4613_v49, 0.0 }
 0x428   : > { %v4371_v63 = vpop.f32.mrf.mxu0  ;;  %v4384_v57 = vpop.f32.mrf.mxu1 }
 0x429   : > { %v4385_v59 = vadd.f32 %v4384_v57, %v4371_v63 }
 0x42a   : > { %v4528_v27 = vpop.f32.mrf.mxu2 }
 0x42b   : > { %v4388_v3 = vpack.c.bf16 %v4385_v59, %v4385_v59  ;;  %v4581_v8 = vmul.f32 %v10420_v14, %v4528_v27 }
 0x42d   : > { %v4614_v53 = vadd.f32 %v10428_v50, %v4581_v8  ;;  %7433 = vmatmul.msk.bf16.vlgmr.msrb.gmra.mxu0 %vm4423_vm4, %v4388_v3 }
 0x42f   : > { %v4646_v44 = vmax.f32 %v4614_v53, 0.0 }
 0x430   : > { %v4373_v45 = vpop.f32.mrf.mxu0  ;;  %v4386_v40 = vpop.f32.mrf.mxu1 }
 0x431   : > { %v4668_v6 = vpack.c.bf16 %v4646_v44, %v4645_v51 }
 0x432   : > { %v4531_v22 = vpop.f32.mrf.mxu2 }
 0x433   : > { %7402 = vmatmul.msk.bf16.gmra.mxu3 %vm11788_vm6, %v4668_v6  ;;  %v4582_v43 = vmul.f32 %v10420_v14, %v4531_v22  ;;  %vm11801_vm6 = vmmov %vm11787_vm1 }
 0x435   : > { %v4615_v19 = vadd.f32 %v10428_v50, %v4582_v43 }
 0x436   : > { %v4755_v13 = vpop.f32.mrf.mxu3 }
 0x437   : > { %v4833_v56 = vmul.f32 %v10520_v16, %v4755_v13  ;;  %v4647_v62 = vmax.f32 %v4615_v19, 0.0 }
 0x439   : > { %v4866_v28 = vadd.f32 %v10526_v21, %v4833_v56 }
 0x43a   : > { %v4533_v18 = vpop.f32.mrf.mxu2 }
 0x43b   : > { %v4583_v37 = vmul.f32 %v10420_v14, %v4533_v18  ;;  %v4898_v32 = vmax.f32 %v4866_v28, 0.0 }
 0x43d   : > { %v4616_v15 = vadd.f32 %v10428_v50, %v4583_v37  ;;  %7471 = vmatmul.msk.bf16.vlgmr.msra.gmra.mxu0 %vm4423_vm4, %v4388_v3 }
 0x43e   : > { %v4757_v1 = vpop.f32.mrf.mxu3 }
 0x43f   : > { %v4648_v12 = vmax.f32 %v4616_v15, 0.0  ;;  %v4834_v30 = vmul.f32 %v10520_v16, %v4757_v1 }
 0x441   : > { %v4669_v39 = vpack.c.bf16 %v4648_v12, %v4647_v62  ;;  %v4867_v9 = vadd.f32 %v10526_v21, %v4834_v30 }
 0x442   : > { %v4536_v55 = vpop.f32.mrf.mxu2 }
 0x443   : > { %v4899_v24 = vmax.f32 %v4867_v9, 0.0  ;;  %7403 = vmatmul.msk.bf16.gmra.mxu3 %vm11789_vm15, %v4669_v39  ;;  %v4584_v52 = vmul.f32 %v10420_v14, %v4536_v55  ;;  %vm11802_vm15 = vmmov %vm11787_vm1 }
 0x445   : > { %v10536_v10 = vpack.c.bf16 %v4899_v24, %v4898_v32  ;;  %v4617_v26 = vadd.f32 %v10428_v50, %v4584_v52 }
 0x446   : > { %v4760_v46 = vpop.f32.mrf.mxu3 }
 0x447   : > { %v4835_v36 = vmul.f32 %v10520_v16, %v4760_v46  ;;  %v4649_v41 = vmax.f32 %v4617_v26, 0.0 }
 0x449   : > { %v4868_v42 = vadd.f32 %v10526_v21, %v4835_v36 }
 0x44a   : > { %v4538_v17 = vpop.f32.mrf.mxu2 }
 0x44b   : > { %v4585_v4 = vmul.f32 %v10420_v14, %v4538_v17  ;;  %v4900_v60 = vmax.f32 %v4868_v42, 0.0 }
 0x44d   : > { %v4618_v35 = vadd.f32 %v10428_v50, %v4585_v4 }
 0x44e   : > { %v4762_v2 = vpop.f32.mrf.mxu3 }
 0x44f   : > { %v4650_v54 = vmax.f32 %v4618_v35, 0.0  ;;  %v4836_v48 = vmul.f32 %v10520_v16, %v4762_v2 }
 0x451   : > { %v4670_v7 = vpack.c.bf16 %v4650_v54, %v4649_v41  ;;  %v4869_v20 = vadd.f32 %v10526_v21, %v4836_v48  ;;  %v7670_v41 = vld [vmem:[%s11590_s7 + $0x18] sm:$0xff] }
 0x452   : > { %v4541_v58 = vpop.f32.mrf.mxu2  ;;  %5029 = vmatpush.bf16.msrb.mxu1 %v7670_v41 }
 0x453   : > { %v4901_v33 = vmax.f32 %v4869_v20, 0.0  ;;  %7404 = vmatmul.msk.bf16.gmra.mxu3 %vm11790_vm7, %v4670_v7  ;;  %v4586_v63 = vmul.f32 %v10420_v14, %v4541_v58  ;;  %v7669_v7 = vld [vmem:[%s11590_s7 + $0x10] sm:$0xff]  ;;  %v4750_v58 = vpop.f32.mrf.mxu0  ;;  %vm11803_vm7 = vmmov %vm11787_vm1 }
 0x455   : > { %v10547_v25 = vpack.c.bf16 %v4901_v33, %v4900_v60  ;;  %v4619_v59 = vadd.f32 %v10428_v50, %v4586_v63 }
 0x456   : > { %v4765_v5 = vpop.f32.mrf.mxu3  ;;  %5030 = vmatpush.bf16.msrb.mxu1 %v7669_v7 }
 0x457   : > { %v4837_v27 = vmul.f32 %v10520_v16, %v4765_v5  ;;  %v4651_v53 = vmax.f32 %v4619_v59, 0.0 }
 0x459   : > { %v4870_v51 = vadd.f32 %v10526_v21, %v4837_v27 }
 0x45a   : > { %v4543_v57 = vpop.f32.mrf.mxu2 }
 0x45b   : > { %v4587_v49 = vmul.f32 %v10420_v14, %v4543_v57  ;;  %v4902_v13 = vmax.f32 %v4870_v51, 0.0  ;;  %v4752_v60 = vpop.f32.mrf.mxu0 }
 0x45d   : > { %v4620_v3 = vadd.f32 %v10428_v50, %v4587_v49  ;;  %v7732_v49 = vld [vmem:[%s11592_s9 + $0x8] ss:$0 sm:$0xff] }
 0x45e   : > { %v4767_v8 = vpop.f32.mrf.mxu3 }
 0x45f   : > { %v4652_v44 = vmax.f32 %v4620_v3, 0.0  ;;  %v4838_v45 = vmul.f32 %v10520_v16, %v4767_v8  ;;  %v7733_v3 = vld [vmem:[%s11592_s9 + $0x9] ss:$0 sm:$0xff] }
 0x461   : > { %v4671_v40 = vpack.c.bf16 %v4652_v44, %v4651_v53  ;;  %v4871_v6 = vadd.f32 %v10526_v21, %v4838_v45 }
 0x462   : > { %v4546_v22 = vpop.f32.mrf.mxu2 }
 0x463   : > { %v4903_v43 = vmax.f32 %v4871_v6, 0.0  ;;  %7405 = vmatmul.msk.bf16.gmra.mxu3 %vm11791_vm12, %v4671_v40  ;;  %v4588_v19 = vmul.f32 %v10420_v14, %v4546_v22  ;;  %v7734_v22 = vld [vmem:[%s11592_s9 + $0x6] ss:$0 sm:$0xff]  ;;  %vm5268_vm12 = vcmask 64512  }
 0x465   : > { %v10558_v18 = vpack.c.bf16 %v4903_v43, %v4902_v13  ;;  %v4621_v37 = vadd.f32 %v10428_v50, %v4588_v19  ;;  %v7735_v13 = vld [vmem:[%s11592_s9 + $0x7] ss:$0 sm:$0xff] }
 0x467   : > { %v4653_v62 = vmax.f32 %v4621_v37, 0.0 }
 0x46a   : > { %v4548_v56 = vpop.f32.mrf.mxu2 }
 0x46b   : > { %v4589_v15 = vmul.f32 %v10420_v14, %v4548_v56  ;;  %v4832_v56 = vmul.f32 %v10520_v16, %v4752_v60 }
 0x46d   : > { %v4622_v1 = vadd.f32 %v10428_v50, %v4589_v15  ;;  %v4831_v15 = vmul.f32 %v10520_v16, %v4750_v58 }
 0x46f   : > { %v4654_v28 = vmax.f32 %v4622_v1, 0.0 }
 0x471   : > { %v4672_v12 = vpack.c.bf16 %v4654_v28, %v4653_v62  ;;  %v4865_v62 = vadd.f32 %v10526_v21, %v4832_v56 }
 0x472   : > { %v4551_v30 = vpop.f32.mrf.mxu2 }
 0x473   : > { %7406 = vmatmul.msk.bf16.gmra.mxu3 %vm11792_vm9, %v4672_v12  ;;  %v4590_v39 = vmul.f32 %v10420_v14, %v4551_v30  ;;  %v4864_v30 = vadd.f32 %v10526_v21, %v4831_v15  ;;  %vm11804_vm9 = vmmov %vm11787_vm1 }
 0x475   : > { %v4623_v55 = vadd.f32 %v10428_v50, %v4590_v39 }
 0x477   : > { %v4655_v46 = vmax.f32 %v4623_v55, 0.0  ;;  %v4470_v55 = vsel %vm4423_vm4, %v10323_v61, 0  ;;  %v4461_v61 = vsel %vm4423_vm4, %v10367_v38, 0  ;;  %v4449_v38 = vsel %vm4423_vm4, %v10397_v0, 0 }
 0x47a   : > { %v4553_v9 = vpop.f32.mrf.mxu2 }
 0x47b   : > { %v4591_v32 = vmul.f32 %v10420_v14, %v4553_v9  ;;  %v4770_v9 = vpop.f32.mrf.mxu3 }
 0x47d   : > { %v4624_v24 = vadd.f32 %v10428_v50, %v4591_v32  ;;  %v4897_v32 = vmax.f32 %v4865_v62, 0.0 }
 0x47f   : > { %v4656_v52 = vmax.f32 %v4624_v24, 0.0  ;;  %v4896_v24 = vmax.f32 %v4864_v30, 0.0 }
 0x481   : > { %v4673_v17 = vpack.c.bf16 %v4656_v52, %v4655_v46  ;;  %v4928_v46 = vpack.c.bf16 %v4897_v32, %v4896_v24  ;;  %v4467_v52 = vsel %vm4423_vm4, %v10342_v29, 0 }
 0x482   : > { %v4556_v26 = vpop.f32.mrf.mxu2 }
 0x483   : > { %7407 = vmatmul.msk.bf16.gmra.mxu3 %vm11793_vm14, %v4673_v17  ;;  %v4592_v36 = vmul.f32 %v10420_v14, %v4556_v26  ;;  %v4772_v17 = vpop.f32.mrf.mxu3  ;;  %v4464_v26 = vsel %vm4423_vm4, %v10355_v47, 0  ;;  %v4455_v47 = vsel %vm4423_vm4, %v10384_v31, 0  ;;  %vm11805_vm14 = vmmov %vm11787_vm1 }
 0x485   : > { %v4625_v35 = vadd.f32 %v10428_v50, %v4592_v36 }
 0x487   : > { %v4657_v54 = vmax.f32 %v4625_v35, 0.0  ;;  %v4458_v35 = vsel %vm4423_vm4, %v10377_v23, 0  ;;  %v4840_v23 = vmul.f32 %v10520_v16, %v4772_v17 }
 0x489   : > { %v4873_v31 = vadd.f32 %v10526_v21, %v4840_v23 }
 0x48a   : > { %v4558_v4 = vpop.f32.mrf.mxu2 }
 0x48b   : > { %v4593_v2 = vmul.f32 %v10420_v14, %v4558_v4  ;;  %v7730_v14 = vld [vmem:[%s11592_s9 + $0x4] ss:$0 sm:$0xff]  ;;  %v4775_v36 = vpop.f32.mrf.mxu3 }
 0x48c   : > { %v4841_v0 = vmul.f32 %v10520_v16, %v4775_v36 }
 0x48d   : > { %v4626_v42 = vadd.f32 %v10428_v50, %v4593_v2  ;;  %v7731_v50 = vld [vmem:[%s11592_s9 + $0x5] ss:$0 sm:$0xff] }
 0x48e   : > { %v4874_v58 = vadd.f32 %v10526_v21, %v4841_v0 }
 0x48f   : > { %v4658_v48 = vmax.f32 %v4626_v42, 0.0 }
 0x491   : > { %v4674_v20 = vpack.c.bf16 %v4658_v48, %v4657_v54  ;;  %v4905_v54 = vmax.f32 %v4873_v31, 0.0 }
 0x493   : > { %7408 = vmatmul.msk.bf16.gmra.mxu3 %vm11794_vm13, %v4674_v20  ;;  %v4777_v4 = vpop.f32.mrf.mxu3  ;;  %vm11806_vm13 = vmmov %vm11787_vm1 }
 0x49b   : > { %v4780_v29 = vpop.f32.mrf.mxu3 }
 0x4a3   : > { %v4782_v2 = vpop.f32.mrf.mxu3 }
 0x4aa   : > { %v4991_v33 = vpop.f32.mrf.mxu0 }
 0x4ab   : > { %v4996_v5 = vmul.f32 %v7730_v14, %v4991_v33  ;;  %v4785_v41 = vpop.f32.mrf.mxu3 }
 0x4ad   : > { %v4998_v63 = vadd.f32 %v7731_v50, %v4996_v5  ;;  %v4906_v50 = vmax.f32 %v4874_v58, 0.0  ;;  %v4844_v5 = vmul.f32 %v10520_v16, %v4782_v2 }
 0x4af   : > { %v4999_v57 = vmax.f32 %v4998_v63, 0.0 }
 0x4b1   : > { %v5000_v59 = vpack.c.bf16 %v4999_v57, %v4999_v57  ;;  %v4843_v57 = vmul.f32 %v10520_v16, %v4780_v29 }
 0x4b2   : > { %v4993_v27 = vpop.f32.mrf.mxu0 }
 0x4b3   : > { %7446 = vmatmul.msk.bf16.vlgmr.msrb.gmra.mxu1 %vm11795_vm3, %v5000_v59  ;;  %v4787_v7 = vpop.f32.mrf.mxu3  ;;  %v4877_v59 = vadd.f32 %v10526_v21, %v4844_v5  ;;  %v4876_v27 = vadd.f32 %v10526_v21, %v4843_v57  ;;  %vm11807_vm3 = vmmov %vm11787_vm1 }
 0x4ba   : > { %v5086_v8 = vpop.f32.mrf.mxu0 }
 0x4bb   : > { %v5091_v53 = vmul.f32 %v7732_v49, %v5086_v8  ;;  %v4790_v60 = vpop.f32.mrf.mxu3  ;;  %v4909_v49 = vmax.f32 %v4877_v59, 0.0 }
 0x4bd   : > { %v5093_v51 = vadd.f32 %v7733_v3, %v5091_v53  ;;  %v4908_v3 = vmax.f32 %v4876_v27, 0.0 }
 0x4bf   : > { %v5094_v44 = vmax.f32 %v5093_v51, 0.0  ;;  %v4934_v53 = vpack.c.bf16 %v4909_v49, %v4908_v3  ;;  %v4846_v51 = vmul.f32 %v10520_v16, %v4787_v7 }
 0x4c1   : > { %v5095_v45 = vpack.c.bf16 %v5094_v44, %v5094_v44  ;;  %v4845_v44 = vmul.f32 %v10520_v16, %v4785_v41 }
 0x4c2   : > { %v5088_v40 = vpop.f32.mrf.mxu0 }
 0x4c3   : > { %v6103_v6 = vsel %vm6101_vm0, %v5095_v45, 0  ;;  %v4792_v63 = vpop.f32.mrf.mxu3  ;;  %v4879_v45 = vadd.f32 %v10526_v21, %v4846_v51  ;;  %vm11808_vm0 = vmmov %vm11787_vm1 }
 0x4c4   : > { %6112 = vmatpush.bf16.msrb.mxu0 %v6103_v6  ;;  %v4878_v6 = vadd.f32 %v10526_v21, %v4845_v44  ;;  %v4848_v56 = vmul.f32 %v10520_v16, %v4792_v63 }
 0x4c6   : > { %v4881_v15 = vadd.f32 %v10526_v21, %v4848_v56 }
 0x4c8   : > { %v4913_v62 = vmax.f32 %v4881_v15, 0.0 }
 0x4cb   : > { %v4795_v8 = vpop.f32.mrf.mxu3 }
 0x4cc   : > { %v4849_v24 = vmul.f32 %v10520_v16, %v4795_v8 }
 0x4ce   : > { %v4882_v36 = vadd.f32 %v10526_v21, %v4849_v24 }
 0x4d3   : > { %v4797_v40 = vpop.f32.mrf.mxu3 }
 0x4d4   : > { %v4850_v32 = vmul.f32 %v10520_v16, %v4797_v40 }
 0x4d6   : > { %v4883_v17 = vadd.f32 %v10526_v21, %v4850_v32 }
 0x530   : > { %v5032_v43 = vpop.f32.mrf.mxu1 }
 0x531   : > { %v5037_v19 = vmul.f32 %v7734_v22, %v5032_v43  ;;  %v4911_v22 = vmax.f32 %v4879_v45, 0.0 }
 0x533   : > { %v5039_v37 = vadd.f32 %v7735_v13, %v5037_v19  ;;  %v4910_v13 = vmax.f32 %v4878_v6, 0.0  ;;  %v4800_v19 = vpop.f32.mrf.mxu3 }
 0x535   : > { %v5040_v1 = vmax.f32 %v5039_v37, 0.0  ;;  %v4935_v43 = vpack.c.bf16 %v4911_v22, %v4910_v13  ;;  %v4847_v37 = vmul.f32 %v10520_v16, %v4790_v60 }
 0x537   : > { %v5041_v28 = vpack.c.bf16 %v5040_v1, %v5040_v1  ;;  %v4880_v1 = vadd.f32 %v10526_v21, %v4847_v37 }
 0x538   : > { %v5034_v12 = vpop.f32.mrf.mxu1 }
 0x539   : > { %v5145_v39 = vsel %vm11796_vm2, %v5041_v28, 0  ;;  %v4912_v12 = vmax.f32 %v4880_v1, 0.0  ;;  %vm11809_vm2 = vmmov %vm11808_vm0 }
 0x53a   : > { %5154 = vmatpush.bf16.xpose.msra.mxu1 %v5145_v39 }
 0x53b   : > { %v4802_v28 = vpop.f32.mrf.mxu3  ;;  %v4936_v39 = vpack.c.bf16 %v4913_v62, %v4912_v12 }
 0x53c   : > { %v4852_v23 = vmul.f32 %v10520_v16, %v4802_v28 }
 0x53e   : > { %v4885_v31 = vadd.f32 %v10526_v21, %v4852_v23 }
 0x540   : > { %v4917_v7 = vmax.f32 %v4885_v31, 0.0 }
 0x541   : > { %7472 = vmatmul.msk.bf16.vlgmr.msra.gmra.mxu1 %vm11797_vm8, %v4928_v46  ;;  %vm11810_vm8 = vmmov %vm11808_vm0 }
 0x542   : > { %6557 = vmatpush.bf16.xpose.msrb.mxu1 %v4470_v55 }
 0x543   : > { %v4805_v46 = vpop.f32.mrf.mxu3 }
 0x54a   : > { %6558 = vmatpush.bf16.xpose.msrb.mxu1 %v4467_v52 }
 0x54b   : > { %v4807_v2 = vpop.f32.mrf.mxu3 }
 0x551   : > { %7473 = vmatmul.msk.bf16.gmra.mxu1 %vm11798_vm11, %v10536_v10  ;;  %v4452_v10 = vsel %vm4423_vm4, %v10390_v11, 0  ;;  %vm11811_vm11 = vmmov %vm11808_vm0 }
 0x552   : > { %6559 = vmatpush.bf16.xpose.msrb.mxu1 %v4464_v26 }
 0x55a   : > { %6560 = vmatpush.bf16.xpose.msrb.mxu1 %v4461_v61 }
 0x561   : > { %7474 = vmatmul.msk.bf16.gmra.mxu1 %vm11799_vm5, %v10547_v25  ;;  %v4839_v25 = vmul.f32 %v10520_v16, %v4770_v9 }
 0x562   : > { %6561 = vmatpush.bf16.xpose.msrb.mxu1 %v4458_v35  ;;  %v4914_v35 = vmax.f32 %v4882_v36, 0.0 }
 0x563   : > { %v4872_v42 = vadd.f32 %v10526_v21, %v4839_v25  ;;  %v4851_v25 = vmul.f32 %v10520_v16, %v4800_v19 }
 0x565   : > { %v4904_v11 = vmax.f32 %v4872_v42, 0.0 }
 0x567   : > { %v4932_v48 = vpack.c.bf16 %v4905_v54, %v4904_v11  ;;  %v4884_v54 = vadd.f32 %v10526_v21, %v4851_v25 }
 0x56a   : > { %6562 = vmatpush.bf16.xpose.msrb.mxu1 %v4455_v47 }
 0x571   : > { %7475 = vmatmul.msk.bf16.gmra.mxu1 %vm11800_vm10, %v10558_v18  ;;  %v4842_v18 = vmul.f32 %v10520_v16, %v4777_v4  ;;  %v4915_v4 = vmax.f32 %v4883_v17, 0.0 }
 0x572   : > { %6563 = vmatpush.bf16.xpose.msrb.mxu1 %v4452_v10 }
 0x573   : > { %v4875_v20 = vadd.f32 %v10526_v21, %v4842_v18  ;;  %v4937_v47 = vpack.c.bf16 %v4915_v4, %v4914_v35  ;;  %v4916_v18 = vmax.f32 %v4884_v54, 0.0 }
 0x575   : > { %v4907_v14 = vmax.f32 %v4875_v20, 0.0  ;;  %v4938_v20 = vpack.c.bf16 %v4917_v7, %v4916_v18 }
 0x577   : > { %v4933_v33 = vpack.c.bf16 %v4907_v14, %v4906_v50  ;;  %v4854_v14 = vmul.f32 %v10520_v16, %v4807_v2 }
 0x579   : > { %v4887_v63 = vadd.f32 %v10526_v21, %v4854_v14 }
 0x57a   : > { %6564 = vmatpush.bf16.xpose.msrb.mxu1 %v4449_v38 }
 0x57b   : > { %v4919_v49 = vmax.f32 %v4887_v63, 0.0 }
 0x581   : > { %7476 = vmatmul.msk.bf16.gmra.mxu1 %vm11787_vm1, %v4932_v48  ;;  %v4810_v48 = vpop.f32.mrf.mxu3 }
 0x582   : > { %v4855_v6 = vmul.f32 %v10520_v16, %v4810_v48 }
 0x584   : > { %v4888_v56 = vadd.f32 %v10526_v21, %v4855_v6 }
 0x586   : > { %v4920_v1 = vmax.f32 %v4888_v56, 0.0 }
 0x589   : > { %v4812_v50 = vpop.f32.mrf.mxu3 }
 0x58a   : > { %v4856_v40 = vmul.f32 %v10520_v16, %v4812_v50 }
 0x58c   : > { %v4889_v13 = vadd.f32 %v10526_v21, %v4856_v40 }
 0x58e   : > { %v4921_v15 = vmax.f32 %v4889_v13, 0.0 }
 0x590   : > { %v4940_v28 = vpack.c.bf16 %v4921_v15, %v4920_v1 }
 0x591   : > { %7477 = vmatmul.msk.bf16.gmra.mxu1 %vm11801_vm6, %v4933_v33  ;;  %v4853_v33 = vmul.f32 %v10520_v16, %v4805_v46  ;;  %v4815_v8 = vpop.f32.mrf.mxu3 }
 0x592   : > { %v4857_v32 = vmul.f32 %v10520_v16, %v4815_v8 }
 0x593   : > { %v4886_v59 = vadd.f32 %v10526_v21, %v4853_v33 }
 0x594   : > { %v4890_v46 = vadd.f32 %v10526_v21, %v4857_v32 }
 0x595   : > { %v4918_v3 = vmax.f32 %v4886_v59, 0.0 }
 0x596   : > { %v4922_v36 = vmax.f32 %v4890_v46, 0.0 }
 0x597   : > { %v4939_v51 = vpack.c.bf16 %v4919_v49, %v4918_v3 }
 0x599   : > { %v4817_v19 = vpop.f32.mrf.mxu3 }
 0x5a1   : > { %7478 = vmatmul.msk.bf16.gmra.mxu1 %vm11802_vm15, %v4934_v53 }
 0x5b1   : > { %7479 = vmatmul.msk.bf16.gmra.mxu1 %vm11803_vm7, %v4935_v43 }
 0x5be   : > { %v5156_v30 = vpop.f32.mrf.mxu1 }
 0x5bf   : > { %v10652_v9 = vmul.f32 0.17677669, %v5156_v30 }
 0x5c1   : > { %7480 = vmatmul.msk.bf16.gmra.mxu1 %vm11804_vm9, %v4936_v39  ;;  %v5269_v55 = vsel %vm5268_vm12, %v10652_v9, -inf  ;;  %v4820_v39 = vpop.f32.mrf.mxu3 }
 0x5c2   : > { %5270 = vmax.xlane.f32.xlu0 %v5269_v55  ;;  %v4858_v55 = vmul.f32 %v10520_v16, %v4817_v19  ;;  %v4859_v35 = vmul.f32 %v10520_v16, %v4820_v39 }
 0x5c4   : > { %v4891_v24 = vadd.f32 %v10526_v21, %v4858_v55  ;;  %v4892_v2 = vadd.f32 %v10526_v21, %v4859_v35 }
 0x5c6   : > { %v5158_v52 = vpop.f32.mrf.mxu1  ;;  %v4924_v23 = vmax.f32 %v4892_v2, 0.0 }
 0x5c7   : > { %v10660_v26 = vmul.f32 0.17677669, %v5158_v52  ;;  %v4923_v52 = vmax.f32 %v4891_v24, 0.0 }
 0x5c9   : > { %v5272_v61 = vsel %vm5268_vm12, %v10660_v26, -inf  ;;  %v4822_v17 = vpop.f32.mrf.mxu3 }
 0x5ca   : > { %5273 = vmax.xlane.f32.xlu2 %v5272_v61  ;;  %v4941_v61 = vpack.c.bf16 %v4923_v52, %v4922_v36  ;;  %v4860_v4 = vmul.f32 %v10520_v16, %v4822_v17 }
 0x5ce   : > { %v5161_v29 = vpop.f32.mrf.mxu1 }
 0x5cf   : > { %v10665_v10 = vmul.f32 0.17677669, %v5161_v29 }
 0x5d1   : > { %7481 = vmatmul.msk.bf16.gmra.mxu1 %vm11805_vm14, %v4937_v47  ;;  %v5275_v38 = vsel %vm5268_vm12, %v10665_v10, -inf  ;;  %v4825_v29 = vpop.f32.mrf.mxu3  ;;  %v4893_v47 = vadd.f32 %v10526_v21, %v4860_v4 }
 0x5d2   : > { %5276 = vmax.xlane.f32.xlu1 %v5275_v38  ;;  %v4861_v54 = vmul.f32 %v10520_v16, %v4825_v29 }
 0x5d3   : > { %v4925_v38 = vmax.f32 %v4893_v47, 0.0 }
 0x5d4   : > { %v4894_v48 = vadd.f32 %v10526_v21, %v4861_v54 }
 0x5d5   : > { %v4942_v25 = vpack.c.bf16 %v4925_v38, %v4924_v23 }
 0x5d6   : > { %v5163_v41 = vpop.f32.mrf.mxu1  ;;  %v4926_v18 = vmax.f32 %v4894_v48, 0.0 }
 0x5d7   : > { %v10673_v42 = vmul.f32 0.17677669, %v5163_v41 }
 0x5d9   : > { %v5278_v11 = vsel %vm5268_vm12, %v10673_v42, -inf  ;;  %v4827_v41 = vpop.f32.mrf.mxu3 }
 0x5da   : > { %5279 = vmax.xlane.f32.xlu2 %v5278_v11  ;;  %v4862_v31 = vmul.f32 %v10520_v16, %v4827_v41 }
 0x5dc   : > { %v4895_v11 = vadd.f32 %v10526_v21, %v4862_v31 }
 0x5de   : > { %v5166_v0 = vpop.f32.mrf.mxu1  ;;  %v4927_v7 = vmax.f32 %v4895_v11, 0.0 }
 0x5df   : > { %v10678_v58 = vmul.f32 0.17677669, %v5166_v0 }
 0x5e0   : > { %v4943_v0 = vpack.c.bf16 %v4927_v7, %v4926_v18 }
 0x5e1   : > { %7482 = vmatmul.msk.bf16.gmra.mxu1 %vm11806_vm13, %v4938_v20  ;;  %v5281_v60 = vsel %vm5268_vm12, %v10678_v58, -inf }
 0x5e2   : > { %5282 = vmax.xlane.f32.xlu1 %v5281_v60 }
 0x5e6   : > { %v5168_v5 = vpop.f32.mrf.mxu1 }
 0x5e7   : > { %v10686_v57 = vmul.f32 0.17677669, %v5168_v5 }
 0x5e9   : > { %v5284_v27 = vsel %vm5268_vm12, %v10686_v57, -inf }
 0x5ea   : > { %5285 = vmax.xlane.f32.xlu2 %v5284_v27 }
 0x5ee   : > { %v5171_v53 = vpop.f32.mrf.mxu1 }
 0x5ef   : > { %v10691_v44 = vmul.f32 0.17677669, %v5171_v53 }
 0x5f1   : > { %7483 = vmatmul.msk.bf16.gmra.mxu1 %vm11807_vm3, %v4939_v51  ;;  %v5287_v45 = vsel %vm5268_vm12, %v10691_v44, -inf }
 0x5f2   : > { %5288 = vmax.xlane.f32.xlu0 %v5287_v45 }
 0x5f6   : > { %v5173_v22 = vpop.f32.mrf.mxu1 }
 0x5f7   : > { %v10699_v43 = vmul.f32 0.17677669, %v5173_v22 }
 0x5f9   : > { %v5290_v37 = vsel %vm5268_vm12, %v10699_v43, -inf }
 0x5fa   : > { %5291 = vmax.xlane.f32.xlu1 %v5290_v37 }
 0x5fe   : > { %v5176_v62 = vpop.f32.mrf.mxu1 }
 0x5ff   : > { %v10704_v12 = vmul.f32 0.17677669, %v5176_v62 }
 0x601   : > { %7484 = vmatmul.msk.bf16.gmra.mxu1 %vm11808_vm0, %v4940_v28  ;;  %v5293_v30 = vsel %vm5268_vm12, %v10704_v12, -inf }
 0x602   : > { %5294 = vmax.xlane.f32.xlu1 %v5293_v30 }
 0x606   : > { %v5178_v20 = vpop.f32.mrf.mxu1 }
 0x607   : > { %v10730_v49 = vmul.f32 0.17677669, %v5178_v20 }
 0x609   : > { %v5296_v51 = vsel %vm5268_vm12, %v10730_v49, -inf }
 0x60e   : > { %v5181_v33 = vpop.f32.mrf.mxu1 }
 0x60f   : > { %v10739_v45 = vmul.f32 0.17677669, %v5181_v33 }
 0x611   : > { %7485 = vmatmul.msk.bf16.gmra.mxu1 %vm11809_vm2, %v4941_v61  ;;  %v5299_v56 = vsel %vm5268_vm12, %v10739_v45, -inf }
 0x616   : > { %v5183_v27 = vpop.f32.mrf.mxu1 }
 0x617   : > { %v10748_v37 = vmul.f32 0.17677669, %v5183_v27 }
 0x619   : > { %v5302_v39 = vsel %vm5268_vm12, %v10748_v37, -inf }
 0x61e   : > { %v5186_v6 = vpop.f32.mrf.mxu1 }
 0x61f   : > { %v10757_v55 = vmul.f32 0.17677669, %v5186_v6 }
 0x621   : > { %7486 = vmatmul.msk.bf16.gmra.mxu1 %vm11810_vm8, %v4942_v25  ;;  %v5305_v17 = vsel %vm5268_vm12, %v10757_v55, -inf }
 0x631   : > { %7487 = vmatmul.msk.bf16.gmra.mxu1 %vm11811_vm11, %v4943_v0 }
 0x635   : > { %v5271_v60 = vpop.xlane.xlu0 %5270 }
 0x636   : > { %v5365_v14 = vsub.f32 %v10652_v9, %v5271_v60 }
 0x638   : > { %v5397_v50 = vmul.f32 1.442695, %v5365_v14 }
 0x63a   : > { %7744 = vpow2.f32 %v5397_v50 }
 0x63d   : > { %v5274_v5 = vpop.xlane.xlu2 %5273 }
 0x63e   : > { %v5366_v63 = vsub.f32 %v10660_v26, %v5274_v5 }
 0x640   : > { %v10726_v16 = vpop.eup %7744  ;;  %v5399_v59 = vmul.f32 1.442695, %v5366_v63 }
 0x641   : > { %v5461_v21 = vsel %vm5268_vm12, %v10726_v16, 0.0 }
 0x642   : > { %7746 = vpow2.f32 %v5399_v59  ;;  %5462 = vadd.xlane.f32.xlu2 %v5461_v21 }
 0x645   : > { %v5277_v3 = vpop.xlane.xlu1 %5276 }
 0x646   : > { %v5367_v9 = vsub.f32 %v10665_v10, %v5277_v3 }
 0x648   : > { %v10733_v8 = vpop.eup %7746  ;;  %v5401_v53 = vmul.f32 1.442695, %v5367_v9 }
 0x649   : > { %v5464_v26 = vsel %vm5268_vm12, %v10733_v8, 0.0 }
 0x64a   : > { %7748 = vpow2.f32 %v5401_v53  ;;  %5465 = vadd.xlane.f32.xlu0 %v5464_v26  ;;  %5297 = vmax.xlane.f32.xlu2 %v5296_v51 }
 0x64d   : > { %v5280_v40 = vpop.xlane.xlu2 %5279 }
 0x64e   : > { %v5368_v22 = vsub.f32 %v10673_v42, %v5280_v40  ;;  %v5188_v42 = vpop.f32.mrf.mxu1 }
 0x64f   : > { %v10766_v61 = vmul.f32 0.17677669, %v5188_v42 }
 0x650   : > { %v10742_v13 = vpop.eup %7748  ;;  %v5403_v10 = vmul.f32 1.442695, %v5368_v22 }
 0x651   : > { %v5467_v19 = vsel %vm5268_vm12, %v10742_v13, 0.0  ;;  %v5308_v2 = vsel %vm5268_vm12, %v10766_v61, -inf }
 0x652   : > { %7750 = vpow2.f32 %v5403_v10  ;;  %5468 = vadd.xlane.f32.xlu0 %v5467_v19  ;;  %5300 = vmax.xlane.f32.xlu2 %v5299_v56 }
 0x655   : > { %v5283_v15 = vpop.xlane.xlu1 %5282 }
 0x656   : > { %v5369_v1 = vsub.f32 %v10678_v58, %v5283_v15  ;;  %v5191_v36 = vpop.f32.mrf.mxu1 }
 0x657   : > { %v10775_v23 = vmul.f32 0.17677669, %v5191_v36 }
 0x658   : > { %v10751_v62 = vpop.eup %7750  ;;  %v5405_v28 = vmul.f32 1.442695, %v5369_v1 }
 0x659   : > { %v5470_v30 = vsel %vm5268_vm12, %v10751_v62, 0.0  ;;  %v5311_v11 = vsel %vm5268_vm12, %v10775_v23, -inf }
 0x65a   : > { %7752 = vpow2.f32 %v5405_v28  ;;  %5471 = vadd.xlane.f32.xlu1 %v5470_v30  ;;  %5303 = vmax.xlane.f32.xlu0 %v5302_v39 }
 0x65d   : > { %v5286_v32 = vpop.xlane.xlu2 %5285 }
 0x65e   : > { %v5370_v24 = vsub.f32 %v10686_v57, %v5286_v32  ;;  %v5193_v38 = vpop.f32.mrf.mxu1 }
 0x65f   : > { %v10784_v48 = vmul.f32 0.17677669, %v5193_v38 }
 0x660   : > { %v10760_v46 = vpop.eup %7752  ;;  %v5407_v58 = vmul.f32 1.442695, %v5370_v24 }
 0x661   : > { %v5473_v52 = vsel %vm5268_vm12, %v10760_v46, 0.0  ;;  %v5314_v14 = vsel %vm5268_vm12, %v10784_v48, -inf }
 0x662   : > { %7754 = vpow2.f32 %v5407_v58  ;;  %5474 = vadd.xlane.f32.xlu1 %v5473_v52  ;;  %5306 = vmax.xlane.f32.xlu0 %v5305_v17 }
 0x665   : > { %v5289_v4 = vpop.xlane.xlu0 %5288 }
 0x666   : > { %v5371_v35 = vsub.f32 %v10691_v44, %v5289_v4  ;;  %v5196_v18 = vpop.f32.mrf.mxu1 }
 0x667   : > { %v10793_v50 = vmul.f32 0.17677669, %v5196_v18 }
 0x668   : > { %v10769_v29 = vpop.eup %7754  ;;  %v5409_v57 = vmul.f32 1.442695, %v5371_v35 }
 0x669   : > { %v5476_v47 = vsel %vm5268_vm12, %v10769_v29, 0.0  ;;  %v5317_v63 = vsel %vm5268_vm12, %v10793_v50, -inf }
 0x66a   : > { %7756 = vpow2.f32 %v5409_v57  ;;  %5477 = vadd.xlane.f32.xlu2 %v5476_v47  ;;  %5309 = vmax.xlane.f32.xlu1 %v5308_v2 }
 0x66d   : > { %v5292_v25 = vpop.xlane.xlu1 %5291 }
 0x66e   : > { %v5372_v41 = vsub.f32 %v10699_v43, %v5292_v25  ;;  %v5198_v5 = vpop.f32.mrf.mxu1 }
 0x66f   : > { %v10801_v59 = vmul.f32 0.17677669, %v5198_v5 }
 0x670   : > { %v10778_v31 = vpop.eup %7756  ;;  %v5411_v44 = vmul.f32 1.442695, %v5372_v41 }
 0x671   : > { %v5479_v54 = vsel %vm5268_vm12, %v10778_v31, 0.0  ;;  %v5320_v21 = vsel %vm5268_vm12, %v10801_v59, -inf }
 0x672   : > { %7758 = vpow2.f32 %v5411_v44  ;;  %5480 = vadd.xlane.f32.xlu2 %v5479_v54  ;;  %5312 = vmax.xlane.f32.xlu1 %v5311_v11 }
 0x675   : > { %v5295_v7 = vpop.xlane.xlu1 %5294 }
 0x676   : > { %v5373_v0 = vsub.f32 %v10704_v12, %v5295_v7  ;;  %v5201_v27 = vpop.f32.mrf.mxu1 }
 0x677   : > { %v10805_v3 = vmul.f32 0.17677669, %v5201_v27 }
 0x678   : > { %v10787_v20 = vpop.eup %7758  ;;  %v5413_v43 = vmul.f32 1.442695, %v5373_v0 }
 0x679   : > { %v5482_v60 = vsel %vm5268_vm12, %v10787_v20, 0.0  ;;  %v5323_v9 = vsel %vm5268_vm12, %v10805_v3, -inf }
 0x67a   : > { %7760 = vpow2.f32 %v5413_v43  ;;  %5483 = vadd.xlane.f32.xlu0 %v5482_v60  ;;  %5315 = vmax.xlane.f32.xlu2 %v5314_v14 }
 0x67e   : > { %v5203_v19 = vpop.f32.mrf.mxu1 }
 0x680   : > { %v10795_v33 = vpop.eup %7760 }
 0x681   : > { %v5485_v12 = vsel %vm5268_vm12, %v10795_v33, 0.0 }
 0x682   : > { %5486 = vadd.xlane.f32.xlu0 %v5485_v12  ;;  %5318 = vmax.xlane.f32.xlu2 %v5317_v63 }
 0x686   : > { %v10822_v2 = vpop.f32.mrf.mxu1 }
 0x68a   : > { %5321 = vmax.xlane.f32.xlu0 %v5320_v21 }
 0x692   : > { %5324 = vmax.xlane.f32.xlu0 %v5323_v9 }
 0x6b5   : > { %v5463_v53 = vpop.xlane.xlu2 %5462 }
 0x6b6   : > { %7762 = vrcp.f32 %v5463_v53  ;;  %v5568_v32 = vand.u32 2147483648, %v5463_v53  ;;  %vm5562_vm10 = vweird.f32 %v5463_v53  ;;  %v5566_v24 = vand.u32 2147483647, %v5463_v53 }
 0x6b8   : > { %v5569_v38 = vor.u32 1.1754944e-38, %v5568_v32  ;;  %vm5567_vm15 = vcmp.eq.f32.partialorder %v5566_v24, 8.507059e+37 }
 0x6bc   : > { %v7763_v26 = vpop.eup %7762 }
 0x6bd   : > { %v5558_v51 = vmul.f32 %v7763_v26, %v5463_v53  ;;  %v5466_v40 = vpop.xlane.xlu0 %5465  ;;  %v5298_v6 = vpop.xlane.xlu2 %5297  ;;  %vm5563_vm5 = vweird.f32 %v7763_v26 }
 0x6be   : > { %7764 = vrcp.f32 %v5466_v40  ;;  %v5374_v10 = vsub.f32 %v10730_v49, %v5298_v6  ;;  %vm10814_vm1 = vmor %vm5562_vm10, %vm5563_vm5  ;;  %v5581_v17 = vand.u32 2147483647, %v5466_v40  ;;  %v5583_v36 = vand.u32 2147483648, %v5466_v40 }
 0x6bf   : > { %v5559_v22 = vsub.f32 1.0, %v5558_v51  ;;  %vm5577_vm7 = vweird.f32 %v5466_v40 }
 0x6c0   : > { %v5415_v15 = vmul.f32 1.442695, %v5374_v10  ;;  %v5584_v54 = vor.u32 1.1754944e-38, %v5583_v36  ;;  %vm5582_vm14 = vcmp.eq.f32.partialorder %v5581_v17, 8.507059e+37 }
 0x6c1   : > { %v5560_v56 = vmul.f32 %v7763_v26, %v5559_v22 }
 0x6c2   : > { %7766 = vpow2.f32 %v5415_v15 }
 0x6c3   : > { %v5561_v42 = vadd.f32 %v7763_v26, %v5560_v56 }
 0x6c4   : > { %v7765_v1 = vpop.eup %7764 }
 0x6c5   : > { %v5573_v28 = vmul.f32 %v7765_v1, %v5466_v40  ;;  %v10810_v30 = vpop.xlane.xlu0 %5468  ;;  %v5301_v39 = vpop.xlane.xlu2 %5300  ;;  %v5565_v35 = vsel %vm10814_vm1, %v7763_v26, %v5561_v42  ;;  %vm5578_vm6 = vweird.f32 %v7765_v1 }
 0x6c6   : > { %7768 = vrcp.f32 %v10810_v30  ;;  %v5375_v52 = vsub.f32 %v10739_v45, %v5301_v39  ;;  %v5570_v44 = vsel %vm5567_vm15, %v5569_v38, %v5565_v35  ;;  %vm5579_vm9 = vmor %vm5577_vm7, %vm5578_vm6  ;;  %v5598_v22 = vand.u32 2147483648, %v10810_v30 }
 0x6c7   : > { %v5574_v58 = vsub.f32 1.0, %v5573_v28  ;;  %v5571_v60 = vmul.f32 %v10726_v16, %v5570_v44  ;;  %v5208_v16 = vpop.f32.mrf.mxu1  ;;  %vm5592_vm3 = vweird.f32 %v10810_v30  ;;  %v5596_v15 = vand.u32 2147483647, %v10810_v30 }
 0x6c8   : > { %v10818_v4 = vpop.eup %7766  ;;  %v5417_v47 = vmul.f32 1.442695, %v5375_v52 }
 0x6c9   : > { %v5575_v57 = vmul.f32 %v7765_v1, %v5574_v58  ;;  %v5488_v45 = vsel %vm5268_vm12, %v10818_v4, 0.0  ;;  %v5599_v58 = vor.u32 1.1754944e-38, %v5598_v22  ;;  %vm5597_vm11 = vcmp.eq.f32.partialorder %v5596_v15, 8.507059e+37 }
 0x6ca   : > { %7770 = vpow2.f32 %v5417_v47  ;;  %5489 = vadd.xlane.f32.xlu1 %v5488_v45  ;;  %v10869_v45 = vmul.f32 0.17677669, %v10822_v2 }
 0x6cb   : > { %v5576_v25 = vadd.f32 %v7765_v1, %v5575_v57 }
 0x6cc   : > { %v10826_v41 = vpop.eup %7768 }
 0x6cd   : > { %v5580_v11 = vsel %vm5579_vm9, %v7765_v1, %v5576_v25  ;;  %v5588_v7 = vmul.f32 %v10826_v41, %v10810_v30  ;;  %v5472_v18 = vpop.xlane.xlu1 %5471  ;;  %v5304_v0 = vpop.xlane.xlu0 %5303  ;;  %vm5593_vm13 = vweird.f32 %v10826_v41 }
 0x6ce   : > { %v5585_v43 = vsel %vm5582_vm14, %v5584_v54, %v5580_v11  ;;  %7772 = vrcp.f32 %v5472_v18  ;;  %v5376_v12 = vsub.f32 %v10748_v37, %v5304_v0  ;;  %v10841_v37 = vmul.f32 0.17677669, %v5203_v19  ;;  %vm10852_vm0 = vmor %vm5592_vm3, %vm5593_vm13 }
 0x6cf   : > { %v5586_v14 = vmul.f32 %v10733_v8, %v5585_v43  ;;  %v5589_v5 = vsub.f32 1.0, %v5588_v7  ;;  %v5613_v28 = vand.u32 2147483648, %v5472_v18  ;;  %v5611_v24 = vand.u32 2147483647, %v5472_v18  ;;  %v5211_v25 = vpop.f32.mrf.mxu1 }
 0x6d0   : > { %v10833_v63 = vpop.eup %7770  ;;  %v5419_v27 = vmul.f32 1.442695, %v5376_v12  ;;  %v5326_v30 = vsel %vm5268_vm12, %v10841_v37, -inf  ;;  %vm5607_vm8 = vweird.f32 %v5472_v18  ;;  %v10884_v12 = vmul.f32 0.17677669, %v5208_v16 }
 0x6d1   : > { %v6037_v21 = vpack.c.bf16 %v5586_v14, %v5571_v60  ;;  %v5590_v9 = vmul.f32 %v10826_v41, %v5589_v5  ;;  %v5491_v53 = vsel %vm5268_vm12, %v10833_v63, 0.0  ;;  %v5614_v36 = vor.u32 1.1754944e-38, %v5613_v28 }
 0x6d2   : > { %7774 = vpow2.f32 %v5419_v27  ;;  %5492 = vadd.xlane.f32.xlu1 %v5491_v53  ;;  %vm5612_vm10 = vcmp.eq.f32.partialorder %v5611_v24, 8.507059e+37  ;;  %v5329_v60 = vsel %vm5268_vm12, %v10869_v45, -inf }
 0x6d3   : > { %7488 = vmatmul.msk.bf16.vlgmr.msrb.gmra.mxu0 %vm5268_vm12, %v6037_v21  ;;  %v5591_v6 = vadd.f32 %v10826_v41, %v5590_v9 }
 0x6d4   : > { %v7773_v26 = vpop.eup %7772 }
 0x6d5   : > { %v5603_v51 = vmul.f32 %v7773_v26, %v5472_v18  ;;  %v10839_v8 = vpop.xlane.xlu1 %5474  ;;  %v5307_v40 = vpop.xlane.xlu0 %5306  ;;  %vm5608_vm2 = vweird.f32 %v7773_v26  ;;  %v5595_v32 = vsel %vm10852_vm0, %v10826_v41, %v5591_v6 }
 0x6d6   : > { %7776 = vrcp.f32 %v10839_v8  ;;  %v5377_v56 = vsub.f32 %v10757_v55, %v5307_v40  ;;  %vm5609_vm5 = vmor %vm5607_vm8, %vm5608_vm2  ;;  %v5600_v38 = vsel %vm5597_vm11, %v5599_v58, %v5595_v32  ;;  %v5628_v27 = vand.u32 2147483648, %v10839_v8 }
 0x6d7   : > { %v5604_v10 = vsub.f32 1.0, %v5603_v51  ;;  %v5601_v11 = vmul.f32 %v10742_v13, %v5600_v38  ;;  %vm5622_vm6 = vweird.f32 %v10839_v8  ;;  %v5626_v51 = vand.u32 2147483647, %v10839_v8 }
 0x6d8   : > { %v10850_v1 = vpop.eup %7774  ;;  %v5421_v39 = vmul.f32 1.442695, %v5377_v56  ;;  %v5629_v19 = vor.u32 1.1754944e-38, %v5628_v27 }
 0x6d9   : > { %v5605_v42 = vmul.f32 %v7773_v26, %v5604_v10  ;;  %v5494_v55 = vsel %vm5268_vm12, %v10850_v1, 0.0  ;;  %vm5627_vm14 = vcmp.eq.f32.partialorder %v5626_v51, 8.507059e+37 }
 0x6da   : > { %7778 = vpow2.f32 %v5421_v39  ;;  %5495 = vadd.xlane.f32.xlu2 %v5494_v55  ;;  %5327 = vmax.xlane.f32.xlu1 %v5326_v30 }
 0x6db   : > { %v5606_v52 = vadd.f32 %v7773_v26, %v5605_v42 }
 0x6dc   : > { %v10863_v49 = vpop.eup %7776 }
 0x6dd   : > { %v5610_v17 = vsel %vm5609_vm5, %v7773_v26, %v5606_v52  ;;  %v5618_v35 = vmul.f32 %v10863_v49, %v10839_v8  ;;  %v5478_v57 = vpop.xlane.xlu2 %5477  ;;  %v5310_v47 = vpop.xlane.xlu1 %5309  ;;  %vm5623_vm1 = vweird.f32 %v10863_v49  ;;  %v5332_v8 = vsel %vm5268_vm12, %v10884_v12, -inf }
 0x6de   : > { %7780 = vrcp.f32 %v5478_v57  ;;  %v5378_v44 = vsub.f32 %v10766_v61, %v5310_v47  ;;  %v5615_v54 = vsel %vm5612_vm10, %v5614_v36, %v5610_v17  ;;  %v5213_v26 = vpop.f32.mrf.mxu1  ;;  %vm10895_vm15 = vmor %vm5622_vm6, %vm5623_vm1  ;;  %v5643_v22 = vand.u32 2147483648, %v5478_v57 }
 0x6df   : > { %v5619_v41 = vsub.f32 1.0, %v5618_v35  ;;  %v5616_v7 = vmul.f32 %v10751_v62, %v5615_v54  ;;  %vm5637_vm9 = vweird.f32 %v5478_v57  ;;  %v10908_v52 = vmul.f32 0.17677669, %v5211_v25 }
 0x6e0   : > { %v10874_v18 = vpop.eup %7778  ;;  %v5423_v0 = vmul.f32 1.442695, %v5378_v44  ;;  %v5644_v32 = vor.u32 1.1754944e-38, %v5643_v22 }
 0x6e1   : > { %v5620_v43 = vmul.f32 %v10863_v49, %v5619_v41  ;;  %v5497_v2 = vsel %vm5268_vm12, %v10874_v18, 0.0  ;;  %v6038_v14 = vpack.c.bf16 %v5616_v7, %v5601_v11  ;;  %v5335_v25 = vsel %vm5268_vm12, %v10908_v52, -inf }
 0x6e2   : > { %7782 = vpow2.f32 %v5423_v0  ;;  %5498 = vadd.xlane.f32.xlu2 %v5497_v2  ;;  %5330 = vmax.xlane.f32.xlu1 %v5329_v60 }
 0x6e3   : > { %7489 = vmatmul.msk.bf16.gmra.mxu0 %vm5268_vm12, %v6038_v14  ;;  %v5621_v21 = vadd.f32 %v10863_v49, %v5620_v43  ;;  %v10922_v43 = vmul.f32 0.17677669, %v5213_v26 }
 0x6e4   : > { %v7781_v61 = vpop.eup %7780 }
 0x6e5   : > { %v5633_v13 = vmul.f32 %v7781_v61, %v5478_v57  ;;  %v10882_v62 = vpop.xlane.xlu2 %5480  ;;  %v5313_v5 = vpop.xlane.xlu1 %5312  ;;  %vm5638_vm7 = vweird.f32 %v7781_v61  ;;  %v5625_v56 = vsel %vm10895_vm15, %v10863_v49, %v5621_v21 }
 0x6e6   : > { %7784 = vrcp.f32 %v10882_v62  ;;  %v5379_v53 = vsub.f32 %v10775_v23, %v5313_v5  ;;  %v5641_v23 = vand.u32 2147483647, %v5478_v57  ;;  %vm5639_vm13 = vmor %vm5637_vm9, %vm5638_vm7  ;;  %v5630_v58 = vsel %vm5627_vm14, %v5629_v19, %v5625_v56  ;;  %v5216_v44 = vpop.f32.mrf.mxu1 }
 0x6e7   : > { %v5634_v9 = vsub.f32 1.0, %v5633_v13  ;;  %v5631_v35 = vmul.f32 %v10760_v46, %v5630_v58  ;;  %v5658_v2 = vand.u32 2147483648, %v10882_v62  ;;  %vm5652_vm2 = vweird.f32 %v10882_v62 }
 0x6e8   : > { %v10893_v40 = vpop.eup %7782  ;;  %v5425_v10 = vmul.f32 1.442695, %v5379_v53  ;;  %vm5642_vm3 = vcmp.eq.f32.partialorder %v5641_v23, 8.507059e+37  ;;  %v5656_v60 = vand.u32 2147483647, %v10882_v62 }
 0x6e9   : > { %v5635_v6 = vmul.f32 %v7781_v61, %v5634_v9  ;;  %v5500_v15 = vsel %vm5268_vm12, %v10893_v40, 0.0  ;;  %v5659_v51 = vor.u32 1.1754944e-38, %v5658_v2  ;;  %v7675_v2 = vld [vmem:[%s11587_s4] sm:$0xff] }
 0x6ea   : > { %7786 = vpow2.f32 %v5425_v10  ;;  %5501 = vadd.xlane.f32.xlu0 %v5500_v15  ;;  %5333 = vmax.xlane.f32.xlu2 %v5332_v8  ;;  %vm5657_vm5 = vcmp.eq.f32.partialorder %v5656_v60, 8.507059e+37  ;;  %v10940_v15 = vmul.f32 0.17677669, %v5216_v44 }
 0x6eb   : > { %v5636_v42 = vadd.f32 %v7781_v61, %v5635_v6 }
 0x6ec   : > { %v7785_v28 = vpop.eup %7784 }
 0x6ed   : > { %v5640_v39 = vsel %vm5639_vm13, %v7781_v61, %v5636_v42  ;;  %v5648_v24 = vmul.f32 %v7785_v28, %v10882_v62  ;;  %v5484_v55 = vpop.xlane.xlu0 %5483  ;;  %v5316_v30 = vpop.xlane.xlu2 %5315  ;;  %vm5653_vm0 = vweird.f32 %v7785_v28 }
 0x6ee   : > { %7788 = vrcp.f32 %v5484_v55  ;;  %v5380_v17 = vsub.f32 %v10784_v48, %v5316_v30  ;;  %v5645_v36 = vsel %vm5642_vm3, %v5644_v32, %v5640_v39  ;;  %vm10928_vm8 = vmor %vm5652_vm2, %vm5653_vm0  ;;  %v5671_v5 = vand.u32 2147483647, %v5484_v55  ;;  %v5218_v6 = vpop.f32.mrf.mxu1 }
 0x6ef   : > { %v5649_v49 = vsub.f32 1.0, %v5648_v24  ;;  %v5646_v57 = vmul.f32 %v10769_v29, %v5645_v36  ;;  %v5673_v21 = vand.u32 2147483648, %v5484_v55  ;;  %vm5667_vm10 = vweird.f32 %v5484_v55 }
 0x6f0   : > { %v10913_v47 = vpop.eup %7786  ;;  %v5427_v41 = vmul.f32 1.442695, %v5380_v17  ;;  %vm5672_vm6 = vcmp.eq.f32.partialorder %v5671_v5, 8.507059e+37  ;;  %v5341_v30 = vsel %vm5268_vm12, %v10940_v15, -inf  ;;  %v10952_v58 = vmul.f32 0.17677669, %v5218_v6 }
 0x6f1   : > { %v5650_v38 = vmul.f32 %v7785_v28, %v5649_v49  ;;  %v5503_v54 = vsel %vm5268_vm12, %v10913_v47, 0.0  ;;  %v6039_v11 = vpack.c.bf16 %v5646_v57, %v5631_v35  ;;  %v5674_v22 = vor.u32 1.1754944e-38, %v5673_v21 }
 0x6f2   : > { %7790 = vpow2.f32 %v5427_v41  ;;  %5504 = vadd.xlane.f32.xlu0 %v5503_v54  ;;  %5336 = vmax.xlane.f32.xlu2 %v5335_v25  ;;  %v5344_v35 = vsel %vm5268_vm12, %v10952_v58, -inf }
 0x6f3   : > { %7490 = vmatmul.msk.bf16.gmra.mxu0 %vm5268_vm12, %v6039_v11  ;;  %v5651_v46 = vadd.f32 %v7785_v28, %v5650_v38 }
 0x6f4   : > { %v7789_v48 = vpop.eup %7788 }
 0x6f5   : > { %v5663_v29 = vmul.f32 %v7789_v48, %v5484_v55  ;;  %v10920_v7 = vpop.xlane.xlu0 %5486  ;;  %v5319_v0 = vpop.xlane.xlu2 %5318  ;;  %v5655_v9 = vsel %vm10928_vm8, %v7785_v28, %v5651_v46  ;;  %vm5668_vm11 = vweird.f32 %v7789_v48 }
 0x6f6   : > { %v5381_v61 = vsub.f32 %v10793_v50, %v5319_v0  ;;  %v5338_v50 = vsel %vm5268_vm12, %v10922_v43, -inf  ;;  %vm5669_vm1 = vmor %vm5667_vm10, %vm5668_vm11  ;;  %v5660_v10 = vsel %vm5657_vm5, %v5659_v51, %v5655_v9  ;;  %vm5682_vm7 = vweird.f32 %v10920_v7 }
 0x6f7   : > { %v5664_v14 = vsub.f32 1.0, %v5663_v29  ;;  %v5661_v42 = vmul.f32 %v10778_v31, %v5660_v10  ;;  %v5221_v31 = vpop.f32.mrf.mxu1  ;;  %v7676_v29 = vld [vmem:[%s11587_s4 + $0x8] sm:$0xff] }
 0x6f8   : > { %v10932_v27 = vpop.eup %7790  ;;  %v5429_v26 = vmul.f32 1.442695, %v5381_v61  ;;  %v10961_v57 = vmul.f32 0.17677669, %v5221_v31  ;;  %6282 = vmatpush.bf16.msrb.mxu2 %v7676_v29 }
 0x6f9   : > { %v5665_v53 = vmul.f32 %v7789_v48, %v5664_v14  ;;  %v5506_v62 = vsel %vm5268_vm12, %v10932_v27, 0.0 }
 0x6fa   : > { %7792 = vpow2.f32 %v5429_v26  ;;  %5507 = vadd.xlane.f32.xlu1 %v5506_v62  ;;  %5339 = vmax.xlane.f32.xlu0 %v5338_v50  ;;  %v5347_v44 = vsel %vm5268_vm12, %v10961_v57, -inf  ;;  %v5688_v26 = vand.u32 2147483648, %v10920_v7  ;;  %v5686_v62 = vand.u32 2147483647, %v10920_v7 }
 0x6fb   : > { %v5666_v16 = vadd.f32 %v7789_v48, %v5665_v53 }
 0x6fc   : > { %6283 = vmatpush.bf16.msrb.mxu2 %v7675_v2  ;;  %vm5687_vm3 = vcmp.eq.f32.partialorder %v5686_v62, 8.507059e+37 }
 0x6fd   : > { %v5670_v56 = vsel %vm5669_vm1, %v7789_v48, %v5666_v16  ;;  %v5322_v23 = vpop.xlane.xlu0 %5321  ;;  %vm11824_vm1 = vcmask 261120  }
 0x6fe   : > { %v5382_v8 = vsub.f32 %v10801_v59, %v5322_v23  ;;  %v5675_v19 = vsel %vm5672_vm6, %v5674_v22, %v5670_v56  ;;  %v5689_v56 = vor.u32 1.1754944e-38, %v5688_v26 }
 0x6ff   : > { %v5676_v28 = vmul.f32 %v10787_v20, %v5675_v19  ;;  %v5223_v41 = vpop.f32.mrf.mxu1 }
 0x700   : > { %v5431_v39 = vmul.f32 1.442695, %v5382_v8  ;;  %v10945_v32 = vpop.eup %7792  ;;  %v10969_v54 = vmul.f32 0.17677669, %v5223_v41 }
 0x701   : > { %v6040_v24 = vpack.c.bf16 %v5676_v28, %v5661_v42  ;;  %v5509_v55 = vsel %vm5268_vm12, %v10945_v32, 0.0 }
 0x702   : > { %7794 = vpow2.f32 %v5431_v39  ;;  %5510 = vadd.xlane.f32.xlu1 %v5509_v55  ;;  %5342 = vmax.xlane.f32.xlu0 %v5341_v30  ;;  %v5350_v25 = vsel %vm5268_vm12, %v10969_v54, -inf }
 0x703   : > { %7491 = vmatmul.msk.bf16.gmra.mxu0 %vm5268_vm12, %v6040_v24 }
 0x705   : > { %v5325_v59 = vpop.xlane.xlu0 %5324 }
 0x706   : > { %v5383_v20 = vsub.f32 %v10805_v3, %v5325_v59 }
 0x707   : > { %v5226_v11 = vpop.f32.mrf.mxu1 }
 0x708   : > { %v10955_v49 = vpop.eup %7794  ;;  %v5433_v17 = vmul.f32 1.442695, %v5383_v20  ;;  %v10973_v48 = vmul.f32 0.17677669, %v5226_v11 }
 0x709   : > { %v5512_v36 = vsel %vm5268_vm12, %v10955_v49, 0.0 }
 0x70a   : > { %7796 = vpow2.f32 %v5433_v17  ;;  %5513 = vadd.xlane.f32.xlu2 %v5512_v36  ;;  %5345 = vmax.xlane.f32.xlu1 %v5344_v35  ;;  %v5353_v46 = vsel %vm5268_vm12, %v10973_v48, -inf }
 0x70b   : > { %7798 = vrcp.f32 %v10920_v7 }
 0x710   : > { %v10963_v38 = vpop.eup %7796 }
 0x711   : > { %v5515_v3 = vsel %vm5268_vm12, %v10963_v38, 0.0  ;;  %v7799_v0 = vpop.eup %7798 }
 0x712   : > { %5516 = vadd.xlane.f32.xlu2 %v5515_v3  ;;  %5348 = vmax.xlane.f32.xlu1 %v5347_v44  ;;  %v5678_v60 = vmul.f32 %v7799_v0, %v10920_v7  ;;  %vm5683_vm15 = vweird.f32 %v7799_v0 }
 0x713   : > { %vm10991_vm9 = vmor %vm5682_vm7, %vm5683_vm15 }
 0x714   : > { %v5679_v61 = vsub.f32 1.0, %v5678_v60 }
 0x716   : > { %v5680_v13 = vmul.f32 %v7799_v0, %v5679_v61 }
 0x718   : > { %v5681_v53 = vadd.f32 %v7799_v0, %v5680_v13 }
 0x71a   : > { %5351 = vmax.xlane.f32.xlu2 %v5350_v25  ;;  %v5685_v22 = vsel %vm10991_vm9, %v7799_v0, %v5681_v53 }
 0x71b   : > { %v5690_v24 = vsel %vm5687_vm3, %v5689_v56, %v5685_v22  ;;  %v5228_v56 = vpop.f32.mrf.mxu1 }
 0x71c   : > { %v5691_v20 = vmul.f32 %v10795_v33, %v5690_v24 }
 0x722   : > { %5354 = vmax.xlane.f32.xlu2 %v5353_v46 }
 0x73d   : > { %v5490_v14 = vpop.xlane.xlu1 %5489 }
 0x73e   : > { %7800 = vrcp.f32 %v5490_v14  ;;  %v5703_v6 = vand.u32 2147483648, %v5490_v14  ;;  %v5701_v10 = vand.u32 2147483647, %v5490_v14  ;;  %vm5697_vm13 = vweird.f32 %v5490_v14 }
 0x740   : > { %v5704_v42 = vor.u32 1.1754944e-38, %v5703_v6  ;;  %vm5702_vm2 = vcmp.eq.f32.partialorder %v5701_v10, 8.507059e+37 }
 0x744   : > { %v7801_v5 = vpop.eup %7800 }
 0x745   : > { %v5693_v21 = vmul.f32 %v7801_v5, %v5490_v14  ;;  %v10985_v9 = vpop.xlane.xlu1 %5492  ;;  %vm5698_vm14 = vweird.f32 %v7801_v5 }
 0x746   : > { %7802 = vrcp.f32 %v10985_v9  ;;  %vm5699_vm0 = vmor %vm5697_vm13, %vm5698_vm14  ;;  %vm5712_vm11 = vweird.f32 %v10985_v9  ;;  %v5716_v0 = vand.u32 2147483647, %v10985_v9 }
 0x747   : > { %v5694_v51 = vsub.f32 1.0, %v5693_v21 }
 0x748   : > { %vm5717_vm15 = vcmp.eq.f32.partialorder %v5716_v0, 8.507059e+37 }
 0x749   : > { %v5695_v16 = vmul.f32 %v7801_v5, %v5694_v51 }
 0x74b   : > { %v5696_v23 = vadd.f32 %v7801_v5, %v5695_v16 }
 0x74c   : > { %v7803_v8 = vpop.eup %7802 }
 0x74d   : > { %v5700_v19 = vsel %vm5699_vm0, %v7801_v5, %v5696_v23  ;;  %v5708_v7 = vmul.f32 %v7803_v8, %v10985_v9  ;;  %v5496_v28 = vpop.xlane.xlu2 %5495  ;;  %v5328_v39 = vpop.xlane.xlu1 %5327  ;;  %vm5713_vm8 = vweird.f32 %v7803_v8 }
 0x74e   : > { %7804 = vrcp.f32 %v5496_v28  ;;  %v5384_v30 = vsub.f32 %v10841_v37, %v5328_v39  ;;  %v5705_v31 = vsel %vm5702_vm2, %v5704_v42, %v5700_v19  ;;  %v5718_v37 = vand.u32 2147483648, %v10985_v9  ;;  %vm11011_vm5 = vmor %vm5712_vm11, %vm5713_vm8 }
 0x74f   : > { %v5709_v55 = vsub.f32 1.0, %v5708_v7  ;;  %v5706_v17 = vmul.f32 %v10818_v4, %v5705_v31  ;;  %v5733_v13 = vand.u32 2147483648, %v5496_v28  ;;  %vm5727_vm6 = vweird.f32 %v5496_v28 }
 0x750   : > { %v6114_v59 = vpop.f32.mrf.mxu0  ;;  %v5435_v36 = vmul.f32 1.442695, %v5384_v30  ;;  %v5719_v9 = vor.u32 1.1754944e-38, %v5718_v37  ;;  %v5231_v37 = vpop.f32.mrf.mxu1 }
 0x751   : > { %v5710_v35 = vmul.f32 %v7803_v8, %v5709_v55  ;;  %v6041_v41 = vpack.c.bf16 %v5706_v17, %v5691_v20  ;;  %v5734_v50 = vor.u32 1.1754944e-38, %v5733_v13 }
 0x752   : > { %7806 = vpow2.f32 %v5435_v36 }
 0x753   : > { %7492 = vmatmul.msk.bf16.gmra.mxu0 %vm5268_vm12, %v6041_v41  ;;  %v5711_v46 = vadd.f32 %v7803_v8, %v5710_v35 }
 0x754   : > { %v7805_v3 = vpop.eup %7804 }
 0x755   : > { %v5723_v44 = vmul.f32 %v7805_v3, %v5496_v28  ;;  %v11002_v25 = vpop.xlane.xlu2 %5498  ;;  %v5331_v11 = vpop.xlane.xlu1 %5330  ;;  %vm5728_vm10 = vweird.f32 %v7805_v3  ;;  %v5715_v21 = vsel %vm11011_vm5, %v7803_v8, %v5711_v46  ;;  %vm11827_vm5 = vmmov %vm11824_vm1 }
 0x756   : > { %7808 = vrcp.f32 %v11002_v25  ;;  %v5385_v4 = vsub.f32 %v10869_v45, %v5331_v11  ;;  %v5731_v45 = vand.u32 2147483647, %v5496_v28  ;;  %vm5729_vm7 = vmor %vm5727_vm6, %vm5728_vm10  ;;  %v5720_v10 = vsel %vm5717_vm15, %v5719_v9, %v5715_v21 }
 0x757   : > { %v5724_v33 = vsub.f32 1.0, %v5723_v44  ;;  %v5721_v7 = vmul.f32 %v10833_v63, %v5720_v10  ;;  %v5748_v36 = vand.u32 2147483648, %v11002_v25  ;;  %vm5742_vm13 = vweird.f32 %v11002_v25 }
 0x758   : > { %v6116_v29 = vpop.f32.mrf.mxu0  ;;  %v11009_v60 = vpop.eup %7806  ;;  %v5437_v5 = vmul.f32 1.442695, %v5385_v4  ;;  %vm5732_vm9 = vcmp.eq.f32.partialorder %v5731_v45, 8.507059e+37 }
 0x759   : > { %v6194_v2 = vpack.c.bf16 %v6116_v29, %v6114_v59  ;;  %v5725_v61 = vmul.f32 %v7805_v3, %v5724_v33  ;;  %v5518_v53 = vsel %vm5268_vm12, %v11009_v60, 0.0 }
 0x75a   : > { %7810 = vpow2.f32 %v5437_v5  ;;  %5519 = vadd.xlane.f32.xlu0 %v5518_v53 }
 0x75b   : > { %7512 = vmatmul.msk.bf16.vlgmr.msrb.gmra.mxu2 %vm11824_vm1, %v6194_v2  ;;  %v5726_v26 = vadd.f32 %v7805_v3, %v5725_v61  ;;  %v5749_v61 = vor.u32 1.1754944e-38, %v5748_v36 }
 0x75c   : > { %v11020_v51 = vpop.eup %7808 }
 0x75d   : > { %v5730_v62 = vsel %vm5729_vm7, %v7805_v3, %v5726_v26  ;;  %v5738_v16 = vmul.f32 %v11020_v51, %v11002_v25  ;;  %v11024_v6 = vpop.xlane.xlu0 %5501  ;;  %v5334_v22 = vpop.xlane.xlu2 %5333  ;;  %vm5743_vm14 = vweird.f32 %v11020_v51  ;;  %v5746_v3 = vand.u32 2147483647, %v11002_v25 }
 0x75e   : > { %7812 = vrcp.f32 %v11024_v6  ;;  %v5386_v8 = vsub.f32 %v10884_v12, %v5334_v22  ;;  %v5735_v19 = vsel %vm5732_vm9, %v5734_v50, %v5730_v62  ;;  %v5763_v44 = vand.u32 2147483648, %v11024_v6  ;;  %vm11051_vm3 = vmor %vm5742_vm13, %vm5743_vm14 }
 0x75f   : > { %v5739_v23 = vsub.f32 1.0, %v5738_v16  ;;  %v5736_v28 = vmul.f32 %v10850_v1, %v5735_v19  ;;  %v11039_v1 = vmul.f32 0.17677669, %v5228_v56  ;;  %v5761_v25 = vand.u32 2147483647, %v11024_v6 }
 0x760   : > { %v6119_v42 = vpop.f32.mrf.mxu0  ;;  %v11030_v39 = vpop.eup %7810  ;;  %v5439_v24 = vmul.f32 1.442695, %v5386_v8  ;;  %vm5757_vm2 = vweird.f32 %v11024_v6  ;;  %vm5747_vm8 = vcmp.eq.f32.partialorder %v5746_v3, 8.507059e+37  ;;  %v5764_v45 = vor.u32 1.1754944e-38, %v5763_v44 }
 0x761   : > { %v5740_v55 = vmul.f32 %v11020_v51, %v5739_v23  ;;  %v5521_v30 = vsel %vm5268_vm12, %v11030_v39, 0.0  ;;  %v6042_v59 = vpack.c.bf16 %v5736_v28, %v5721_v7  ;;  %v5356_v14 = vsel %vm5268_vm12, %v11039_v1, -inf }
 0x762   : > { %7814 = vpow2.f32 %v5439_v24  ;;  %5522 = vadd.xlane.f32.xlu0 %v5521_v30  ;;  %v11072_v62 = vmul.f32 0.17677669, %v5231_v37  ;;  %vm5762_vm10 = vcmp.eq.f32.partialorder %v5761_v25, 8.507059e+37  ;;  %v5233_v24 = vpop.f32.mrf.mxu1 }
 0x763   : > { %7493 = vmatmul.msk.bf16.gmra.mxu0 %vm5268_vm12, %v6042_v59  ;;  %v5741_v17 = vadd.f32 %v11020_v51, %v5740_v55  ;;  %v11089_v30 = vmul.f32 0.17677669, %v5233_v24 }
 0x764   : > { %v7813_v31 = vpop.eup %7812  ;;  %v5359_v7 = vsel %vm5268_vm12, %v11072_v62, -inf }
 0x765   : > { %v5753_v12 = vmul.f32 %v7813_v31, %v11024_v6  ;;  %v11037_v20 = vpop.xlane.xlu0 %5504  ;;  %v5337_v63 = vpop.xlane.xlu2 %5336  ;;  %vm5758_vm0 = vweird.f32 %v7813_v31 }
 0x766   : > { %7816 = vrcp.f32 %v11037_v20  ;;  %v5387_v41 = vsub.f32 %v10908_v52, %v5337_v63  ;;  %v5745_v52 = vsel %vm11051_vm3, %v11020_v51, %v5741_v17  ;;  %vm5759_vm11 = vmor %vm5757_vm2, %vm5758_vm0  ;;  %vm5772_vm6 = vweird.f32 %v11037_v20 }
 0x767   : > { %v5754_v35 = vsub.f32 1.0, %v5753_v12  ;;  %v5750_v51 = vsel %vm5747_vm8, %v5749_v61, %v5745_v52  ;;  %v5776_v17 = vand.u32 2147483647, %v11037_v20  ;;  %vm11830_vm3 = vmmov %vm11827_vm5 }
 0x768   : > { %v6121_v11 = vpop.f32.mrf.mxu0  ;;  %v11049_v46 = vpop.eup %7814  ;;  %v5441_v29 = vmul.f32 1.442695, %v5387_v41  ;;  %v5751_v10 = vmul.f32 %v10874_v18, %v5750_v51 }
 0x769   : > { %v5755_v4 = vmul.f32 %v7813_v31, %v5754_v35  ;;  %v6195_v0 = vpack.c.bf16 %v6121_v11, %v6119_v42  ;;  %v5524_v2 = vsel %vm5268_vm12, %v11049_v46, 0.0  ;;  %vm5777_vm14 = vcmp.eq.f32.partialorder %v5776_v17, 8.507059e+37 }
 0x76a   : > { %7818 = vpow2.f32 %v5441_v29  ;;  %5525 = vadd.xlane.f32.xlu1 %v5524_v2  ;;  %5357 = vmax.xlane.f32.xlu0 %v5356_v14 }
 0x76b   : > { %v5756_v13 = vadd.f32 %v7813_v31, %v5755_v4  ;;  %7513 = vmatmul.msk.bf16.gmra.mxu2 %vm11827_vm5, %v6195_v0  ;;  %v5362_v4 = vsel %vm5268_vm12, %v11089_v30, -inf }
 0x76c   : > { %v11064_v5 = vpop.eup %7816 }
 0x76d   : > { %v5760_v21 = vsel %vm5759_vm11, %v7813_v31, %v5756_v13  ;;  %v5768_v53 = vmul.f32 %v11064_v5, %v11037_v20  ;;  %v11070_v9 = vpop.xlane.xlu1 %5507  ;;  %v5340_v26 = vpop.xlane.xlu0 %5339  ;;  %vm5773_vm1 = vweird.f32 %v11064_v5  ;;  %v5778_v31 = vand.u32 2147483648, %v11037_v20 }
 0x76e   : > { %7820 = vrcp.f32 %v11070_v9  ;;  %v5388_v16 = vsub.f32 %v10922_v43, %v5340_v26  ;;  %v5765_v6 = vsel %vm5762_vm10, %v5764_v45, %v5760_v21  ;;  %v5793_v36 = vand.u32 2147483648, %v11070_v9  ;;  %vm11101_vm15 = vmor %vm5772_vm6, %vm5773_vm1 }
 0x76f   : > { %v5769_v50 = vsub.f32 1.0, %v5768_v53  ;;  %v5766_v56 = vmul.f32 %v10893_v40, %v5765_v6  ;;  %v5791_v33 = vand.u32 2147483647, %v11070_v9  ;;  %v5779_v29 = vor.u32 1.1754944e-38, %v5778_v31 }
 0x770   : > { %v6124_v22 = vpop.f32.mrf.mxu0  ;;  %v11078_v23 = vpop.eup %7818  ;;  %v5443_v8 = vmul.f32 1.442695, %v5388_v16  ;;  %vm5787_vm9 = vweird.f32 %v11070_v9  ;;  %v5794_v25 = vor.u32 1.1754944e-38, %v5793_v36 }
 0x771   : > { %v5770_v19 = vmul.f32 %v11064_v5, %v5769_v50  ;;  %v5527_v42 = vsel %vm5268_vm12, %v11078_v23, 0.0  ;;  %v6043_v28 = vpack.c.bf16 %v5766_v56, %v5751_v10  ;;  %vm5792_vm0 = vcmp.eq.f32.partialorder %v5791_v33, 8.507059e+37 }
 0x772   : > { %7822 = vpow2.f32 %v5443_v8  ;;  %5528 = vadd.xlane.f32.xlu1 %v5527_v42  ;;  %5360 = vmax.xlane.f32.xlu0 %v5359_v7 }
 0x773   : > { %7494 = vmatmul.msk.bf16.gmra.mxu0 %vm5268_vm12, %v6043_v28  ;;  %v5771_v59 = vadd.f32 %v11064_v5, %v5770_v19 }
 0x774   : > { %v7821_v43 = vpop.eup %7820 }
 0x775   : > { %v5783_v18 = vmul.f32 %v7821_v43, %v11070_v9  ;;  %v11087_v40 = vpop.xlane.xlu1 %5510  ;;  %v5343_v55 = vpop.xlane.xlu0 %5342  ;;  %vm5788_vm7 = vweird.f32 %v7821_v43 }
 0x776   : > { %7824 = vrcp.f32 %v11087_v40  ;;  %v5389_v63 = vsub.f32 %v10940_v15, %v5343_v55  ;;  %v5775_v15 = vsel %vm11101_vm15, %v11064_v5, %v5771_v59  ;;  %vm5789_vm13 = vmor %vm5787_vm9, %vm5788_vm7  ;;  %vm5802_vm8 = vweird.f32 %v11087_v40 }
 0x777   : > { %v5784_v12 = vsub.f32 1.0, %v5783_v18  ;;  %v5780_v5 = vsel %vm5777_vm14, %v5779_v29, %v5775_v15  ;;  %v5806_v42 = vand.u32 2147483647, %v11087_v40  ;;  %vm11833_vm7 = vmmov %vm11830_vm3 }
 0x778   : > { %v6126_v35 = vpop.f32.mrf.mxu0  ;;  %v11099_v41 = vpop.eup %7822  ;;  %v5445_v11 = vmul.f32 1.442695, %v5389_v63  ;;  %v5781_v51 = vmul.f32 %v10913_v47, %v5780_v5  ;;  %v5808_v47 = vand.u32 2147483648, %v11087_v40 }
 0x779   : > { %v5785_v44 = vmul.f32 %v7821_v43, %v5784_v12  ;;  %v6196_v37 = vpack.c.bf16 %v6126_v35, %v6124_v22  ;;  %v5530_v20 = vsel %vm5268_vm12, %v11099_v41, 0.0  ;;  %vm5807_vm10 = vcmp.eq.f32.partialorder %v5806_v42, 8.507059e+37 }
 0x77a   : > { %7826 = vpow2.f32 %v5445_v11  ;;  %5531 = vadd.xlane.f32.xlu2 %v5530_v20  ;;  %5363 = vmax.xlane.f32.xlu1 %v5362_v4  ;;  %v5809_v17 = vor.u32 1.1754944e-38, %v5808_v47 }
 0x77b   : > { %v5786_v0 = vadd.f32 %v7821_v43, %v5785_v44  ;;  %7514 = vmatmul.msk.bf16.gmra.mxu2 %vm11830_vm3, %v6196_v37 }
 0x77c   : > { %v7825_v52 = vpop.eup %7824 }
 0x77d   : > { %v5514_v2 = vpop.xlane.xlu2 %5513  ;;  %v5790_v14 = vsel %vm5789_vm13, %v7821_v43, %v5786_v0  ;;  %v5798_v61 = vmul.f32 %v7825_v52, %v11087_v40  ;;  %v5346_v13 = vpop.xlane.xlu1 %5345  ;;  %vm5803_vm2 = vweird.f32 %v7825_v52 }
 0x77e   : > { %7828 = vrcp.f32 %v5514_v2  ;;  %v5390_v21 = vsub.f32 %v10952_v58, %v5346_v13  ;;  %v5795_v53 = vsel %vm5792_vm0, %v5794_v25, %v5790_v14  ;;  %vm11131_vm11 = vmor %vm5802_vm8, %vm5803_vm2  ;;  %v5821_v43 = vand.u32 2147483647, %v5514_v2 }
 0x77f   : > { %v5799_v45 = vsub.f32 1.0, %v5798_v61  ;;  %v5796_v50 = vmul.f32 %v10932_v27, %v5795_v53  ;;  %v5823_v18 = vand.u32 2147483648, %v5514_v2  ;;  %vm5817_vm1 = vweird.f32 %v5514_v2  ;;  %vm11836_vm2 = vmmov %vm11833_vm7 }
 0x780   : > { %v5447_v9 = vmul.f32 1.442695, %v5390_v21  ;;  %v6129_v26 = vpop.f32.mrf.mxu0  ;;  %v11120_v16 = vpop.eup %7826  ;;  %vm5822_vm15 = vcmp.eq.f32.partialorder %v5821_v43, 8.507059e+37 }
 0x781   : > { %v5800_v6 = vmul.f32 %v7825_v52, %v5799_v45  ;;  %v5533_v22 = vsel %vm5268_vm12, %v11120_v16, 0.0  ;;  %v6044_v10 = vpack.c.bf16 %v5796_v50, %v5781_v51  ;;  %v5824_v35 = vor.u32 1.1754944e-38, %v5823_v18 }
 0x782   : > { %7830 = vpow2.f32 %v5447_v9  ;;  %5534 = vadd.xlane.f32.xlu2 %v5533_v22 }
 0x783   : > { %v5801_v8 = vadd.f32 %v7825_v52, %v5800_v6  ;;  %7495 = vmatmul.msk.bf16.gmra.mxu0 %vm5268_vm12, %v6044_v10 }
 0x784   : > { %v7829_v56 = vpop.eup %7828 }
 0x785   : > { %v5813_v58 = vmul.f32 %v7829_v56, %v5514_v2  ;;  %v11125_v19 = vpop.xlane.xlu2 %5516  ;;  %v5349_v27 = vpop.xlane.xlu1 %5348  ;;  %v5805_v59 = vsel %vm11131_vm11, %v7825_v52, %v5801_v8  ;;  %vm5818_vm5 = vweird.f32 %v7829_v56 }
 0x786   : > { %v5391_v28 = vsub.f32 %v10961_v57, %v5349_v27  ;;  %vm5819_vm6 = vmor %vm5817_vm1, %vm5818_vm5  ;;  %v5810_v3 = vsel %vm5807_vm10, %v5809_v17, %v5805_v59  ;;  %v5838_v6 = vand.u32 2147483648, %v11125_v19  ;;  %vm5832_vm14 = vweird.f32 %v11125_v19 }
 0x787   : > { %v5814_v7 = vsub.f32 1.0, %v5813_v58  ;;  %v5811_v33 = vmul.f32 %v10945_v32, %v5810_v3  ;;  %v5836_v10 = vand.u32 2147483647, %v11125_v19 }
 0x788   : > { %v11135_v55 = vpop.eup %7830  ;;  %v5449_v12 = vmul.f32 1.442695, %v5391_v28  ;;  %v6131_v63 = vpop.f32.mrf.mxu0  ;;  %v5839_v28 = vor.u32 1.1754944e-38, %v5838_v6 }
 0x789   : > { %v5815_v31 = vmul.f32 %v7829_v56, %v5814_v7  ;;  %v6197_v40 = vpack.c.bf16 %v6131_v63, %v6129_v26  ;;  %v5536_v57 = vsel %vm5268_vm12, %v11135_v55, 0.0  ;;  %vm5837_vm8 = vcmp.eq.f32.partialorder %v5836_v10, 8.507059e+37 }
 0x78a   : > { %7832 = vpow2.f32 %v5449_v12  ;;  %5537 = vadd.xlane.f32.xlu0 %v5536_v57 }
 0x78b   : > { %v5816_v36 = vadd.f32 %v7829_v56, %v5815_v31  ;;  %7515 = vmatmul.msk.bf16.gmra.mxu2 %vm11833_vm7, %v6197_v40 }
 0x78d   : > { %v5820_v44 = vsel %vm5819_vm6, %v7829_v56, %v5816_v36  ;;  %v5352_v11 = vpop.xlane.xlu2 %5351 }
 0x78e   : > { %v5392_v37 = vsub.f32 %v10969_v54, %v5352_v11  ;;  %v5825_v15 = vsel %vm5822_vm15, %v5824_v35, %v5820_v44 }
 0x78f   : > { %v5826_v20 = vmul.f32 %v10955_v49, %v5825_v15 }
 0x790   : > { %v5451_v4 = vmul.f32 1.442695, %v5392_v37  ;;  %v11145_v29 = vpop.eup %7832 }
 0x791   : > { %v6045_v0 = vpack.c.bf16 %v5826_v20, %v5811_v33  ;;  %v5539_v52 = vsel %vm5268_vm12, %v11145_v29, 0.0 }
 0x792   : > { %7834 = vpow2.f32 %v5451_v4  ;;  %5540 = vadd.xlane.f32.xlu1 %v5539_v52 }
 0x793   : > { %7496 = vmatmul.msk.bf16.gmra.mxu0 %vm5268_vm12, %v6045_v0 }
 0x795   : > { %v5355_v25 = vpop.xlane.xlu2 %5354 }
 0x796   : > { %v5393_v2 = vsub.f32 %v10973_v48, %v5355_v25 }
 0x798   : > { %v11151_v54 = vpop.eup %7834  ;;  %v5453_v14 = vmul.f32 1.442695, %v5393_v2 }
 0x799   : > { %v5542_v32 = vsel %vm5268_vm12, %v11151_v54, 0.0 }
 0x79a   : > { %7836 = vpow2.f32 %v5453_v14  ;;  %5543 = vadd.xlane.f32.xlu2 %v5542_v32 }
 0x79b   : > { %7838 = vrcp.f32 %v11125_v19 }
 0x7a0   : > { %v11155_v49 = vpop.eup %7836 }
 0x7a1   : > { %v5545_v61 = vsel %vm5268_vm12, %v11155_v49, 0.0  ;;  %v7839_v13 = vpop.eup %7838 }
 0x7a2   : > { %5546 = vadd.xlane.f32.xlu0 %v5545_v61  ;;  %v5828_v5 = vmul.f32 %v7839_v13, %v11125_v19  ;;  %vm5833_vm9 = vweird.f32 %v7839_v13 }
 0x7a3   : > { %vm11167_vm13 = vmor %vm5832_vm14, %vm5833_vm9 }
 0x7a4   : > { %v5829_v21 = vsub.f32 1.0, %v5828_v5  ;;  %vm11839_vm9 = vmmov %vm11836_vm2 }
 0x7a6   : > { %v5830_v53 = vmul.f32 %v7839_v13, %v5829_v21 }
 0x7a8   : > { %v5831_v50 = vadd.f32 %v7839_v13, %v5830_v53 }
 0x7aa   : > { %v5835_v42 = vsel %vm11167_vm13, %v7839_v13, %v5831_v50 }
 0x7ab   : > { %v5840_v63 = vsel %vm5837_vm8, %v5839_v28, %v5835_v42 }
 0x7ac   : > { %v5841_v35 = vmul.f32 %v10963_v38, %v5840_v63 }
 0x7cd   : > { %v5520_v48 = vpop.xlane.xlu0 %5519 }
 0x7ce   : > { %7840 = vrcp.f32 %v5520_v48  ;;  %v5853_v47 = vand.u32 2147483648, %v5520_v48  ;;  %v5851_v7 = vand.u32 2147483647, %v5520_v48  ;;  %vm5847_vm0 = vweird.f32 %v5520_v48 }
 0x7d0   : > { %v6134_v45 = vpop.f32.mrf.mxu0  ;;  %v5854_v18 = vor.u32 1.1754944e-38, %v5853_v47  ;;  %vm5852_vm5 = vcmp.eq.f32.partialorder %v5851_v7, 8.507059e+37 }
 0x7d4   : > { %v7841_v9 = vpop.eup %7840 }
 0x7d5   : > { %v5843_v26 = vmul.f32 %v7841_v9, %v5520_v48  ;;  %v11161_v51 = vpop.xlane.xlu0 %5522  ;;  %vm5848_vm3 = vweird.f32 %v7841_v9 }
 0x7d6   : > { %7842 = vrcp.f32 %v11161_v51  ;;  %vm5849_vm11 = vmor %vm5847_vm0, %vm5848_vm3  ;;  %vm5862_vm1 = vweird.f32 %v11161_v51  ;;  %v5866_v52 = vand.u32 2147483647, %v11161_v51 }
 0x7d7   : > { %v5844_v22 = vsub.f32 1.0, %v5843_v26 }
 0x7d8   : > { %v6136_v56 = vpop.f32.mrf.mxu0  ;;  %vm5867_vm14 = vcmp.eq.f32.partialorder %v5866_v52, 8.507059e+37 }
 0x7d9   : > { %v5845_v58 = vmul.f32 %v7841_v9, %v5844_v22  ;;  %v6198_v27 = vpack.c.bf16 %v6136_v56, %v6134_v45 }
 0x7db   : > { %v5846_v24 = vadd.f32 %v7841_v9, %v5845_v58  ;;  %7516 = vmatmul.msk.bf16.gmra.mxu2 %vm11836_vm2, %v6198_v27 }
 0x7dc   : > { %v7843_v43 = vpop.eup %7842 }
 0x7dd   : > { %v5850_v19 = vsel %vm5849_vm11, %v7841_v9, %v5846_v24  ;;  %v5858_v59 = vmul.f32 %v7843_v43, %v11161_v51  ;;  %v5526_v31 = vpop.xlane.xlu1 %5525  ;;  %v5358_v12 = vpop.xlane.xlu0 %5357  ;;  %vm5863_vm10 = vweird.f32 %v7843_v43 }
 0x7de   : > { %7844 = vrcp.f32 %v5526_v31  ;;  %v5394_v40 = vsub.f32 %v11039_v1, %v5358_v12  ;;  %v5855_v57 = vsel %vm5852_vm5, %v5854_v18, %v5850_v19  ;;  %v5868_v1 = vand.u32 2147483648, %v11161_v51  ;;  %vm11188_vm6 = vmor %vm5862_vm1, %vm5863_vm10 }
 0x7df   : > { %v5859_v17 = vsub.f32 1.0, %v5858_v59  ;;  %v5856_v3 = vmul.f32 %v11009_v60, %v5855_v57  ;;  %v5883_v25 = vand.u32 2147483648, %v5526_v31  ;;  %vm5877_vm7 = vweird.f32 %v5526_v31  ;;  %vm11842_vm1 = vmmov %vm11839_vm9 }
 0x7e0   : > { %v6139_v36 = vpop.f32.mrf.mxu0  ;;  %v5455_v44 = vmul.f32 1.442695, %v5394_v40  ;;  %v5869_v45 = vor.u32 1.1754944e-38, %v5868_v1 }
 0x7e1   : > { %v5860_v11 = vmul.f32 %v7843_v43, %v5859_v17  ;;  %v6046_v37 = vpack.c.bf16 %v5856_v3, %v5841_v35  ;;  %v5884_v51 = vor.u32 1.1754944e-38, %v5883_v25 }
 0x7e2   : > { %7846 = vpow2.f32 %v5455_v44 }
 0x7e3   : > { %7497 = vmatmul.msk.bf16.gmra.mxu0 %vm5268_vm12, %v6046_v37  ;;  %v5861_v0 = vadd.f32 %v7843_v43, %v5860_v11 }
 0x7e4   : > { %v7845_v15 = vpop.eup %7844 }
 0x7e5   : > { %v5873_v33 = vmul.f32 %v7845_v15, %v5526_v31  ;;  %v11179_v20 = vpop.xlane.xlu1 %5528  ;;  %v5361_v4 = vpop.xlane.xlu0 %5360  ;;  %vm5878_vm15 = vweird.f32 %v7845_v15  ;;  %v5865_v48 = vsel %vm11188_vm6, %v7843_v43, %v5861_v0 }
 0x7e6   : > { %7848 = vrcp.f32 %v11179_v20  ;;  %v5395_v60 = vsub.f32 %v11072_v62, %v5361_v4  ;;  %v5881_v62 = vand.u32 2147483647, %v5526_v31  ;;  %vm5879_vm13 = vmor %vm5877_vm7, %vm5878_vm15  ;;  %v5870_v10 = vsel %vm5867_vm14, %v5869_v45, %v5865_v48 }
 0x7e7   : > { %v5874_v38 = vsub.f32 1.0, %v5873_v33  ;;  %v5871_v27 = vmul.f32 %v11030_v39, %v5870_v10  ;;  %v5898_v39 = vand.u32 2147483648, %v11179_v20  ;;  %vm5892_vm2 = vweird.f32 %v11179_v20 }
 0x7e8   : > { %v6141_v2 = vpop.f32.mrf.mxu0  ;;  %v11186_v14 = vpop.eup %7846  ;;  %v5457_v13 = vmul.f32 1.442695, %v5395_v60  ;;  %vm5882_vm3 = vcmp.eq.f32.partialorder %v5881_v62, 8.507059e+37 }
 0x7e9   : > { %v5875_v61 = vmul.f32 %v7845_v15, %v5874_v38  ;;  %v6199_v5 = vpack.c.bf16 %v6141_v2, %v6139_v36  ;;  %v5548_v21 = vsel %vm5268_vm12, %v11186_v14, 0.0  ;;  %v5899_v11 = vor.u32 1.1754944e-38, %v5898_v39 }
 0x7ea   : > { %7850 = vpow2.f32 %v5457_v13  ;;  %5549 = vadd.xlane.f32.xlu1 %v5548_v21 }
 0x7eb   : > { %v5876_v53 = vadd.f32 %v7845_v15, %v5875_v61  ;;  %7517 = vmatmul.msk.bf16.gmra.mxu2 %vm11839_vm9, %v6199_v5 }
 0x7ec   : > { %v7849_v9 = vpop.eup %7848 }
 0x7ed   : > { %v5880_v26 = vsel %vm5879_vm13, %v7845_v15, %v5876_v53  ;;  %v5888_v50 = vmul.f32 %v7849_v9, %v11179_v20  ;;  %v5532_v6 = vpop.xlane.xlu2 %5531  ;;  %v5364_v22 = vpop.xlane.xlu1 %5363  ;;  %vm5893_vm0 = vweird.f32 %v7849_v9 }
 0x7ee   : > { %7852 = vrcp.f32 %v5532_v6  ;;  %v5396_v8 = vsub.f32 %v11089_v30, %v5364_v22  ;;  %v5885_v58 = vsel %vm5882_vm3, %v5884_v51, %v5880_v26  ;;  %vm11209_vm8 = vmor %vm5892_vm2, %vm5893_vm0  ;;  %v5911_v17 = vand.u32 2147483647, %v5532_v6 }
 0x7ef   : > { %v5889_v56 = vsub.f32 1.0, %v5888_v50  ;;  %v5886_v42 = vmul.f32 %v11049_v46, %v5885_v58  ;;  %v5896_v46 = vand.u32 2147483647, %v11179_v20  ;;  %v5913_v40 = vand.u32 2147483648, %v5532_v6 }
 0x7f0   : > { %v6144_v47 = vpop.f32.mrf.mxu0  ;;  %v11201_v7 = vpop.eup %7850  ;;  %v5459_v24 = vmul.f32 1.442695, %v5396_v8  ;;  %vm5907_vm10 = vweird.f32 %v5532_v6  ;;  %vm5912_vm15 = vcmp.eq.f32.partialorder %v5911_v17, 8.507059e+37 }
 0x7f1   : > { %v5890_v28 = vmul.f32 %v7849_v9, %v5889_v56  ;;  %v5551_v43 = vsel %vm5268_vm12, %v11201_v7, 0.0  ;;  %v6047_v19 = vpack.c.bf16 %v5886_v42, %v5871_v27  ;;  %vm5897_vm5 = vcmp.eq.f32.partialorder %v5896_v46, 8.507059e+37 }
 0x7f2   : > { %7854 = vpow2.f32 %v5459_v24  ;;  %5552 = vadd.xlane.f32.xlu2 %v5551_v43  ;;  %v5914_v20 = vor.u32 1.1754944e-38, %v5913_v40 }
 0x7f3   : > { %7498 = vmatmul.msk.bf16.gmra.mxu0 %vm5268_vm12, %v6047_v19  ;;  %v5891_v30 = vadd.f32 %v7849_v9, %v5890_v28 }
 0x7f4   : > { %v7853_v18 = vpop.eup %7852 }
 0x7f5   : > { %v5903_v59 = vmul.f32 %v7853_v18, %v5532_v6  ;;  %v5535_v31 = vpop.xlane.xlu2 %5534  ;;  %v5895_v35 = vsel %vm11209_vm8, %v7849_v9, %v5891_v30  ;;  %vm5908_vm11 = vweird.f32 %v7853_v18  ;;  %vm11845_vm8 = vmmov %vm11842_vm1  ;;  %v11232_v30 = vpop.f32.mrf.mxu2 }
 0x7f6   : > { %7856 = vrcp.f32 %v5535_v31  ;;  %vm5909_vm6 = vmor %vm5907_vm10, %vm5908_vm11  ;;  %v5900_v0 = vsel %vm5897_vm5, %v5899_v11, %v5895_v35  ;;  %v5928_v45 = vand.u32 2147483648, %v5535_v31  ;;  %vm5922_vm9 = vweird.f32 %v5535_v31 }
 0x7f7   : > { %v5904_v12 = vsub.f32 1.0, %v5903_v59  ;;  %v5901_v25 = vmul.f32 %v11078_v23, %v5900_v0  ;;  %v5926_v53 = vand.u32 2147483647, %v5535_v31 }
 0x7f8   : > { %v6146_v57 = vpop.f32.mrf.mxu0  ;;  %v11213_v36 = vpop.eup %7854  ;;  %v5929_v22 = vor.u32 1.1754944e-38, %v5928_v45 }
 0x7f9   : > { %v5905_v3 = vmul.f32 %v7853_v18, %v5904_v12  ;;  %v6200_v44 = vpack.c.bf16 %v6146_v57, %v6144_v47  ;;  %v5554_v37 = vsel %vm5268_vm12, %v11213_v36, 0.0  ;;  %vm5927_vm3 = vcmp.eq.f32.partialorder %v5926_v53, 8.507059e+37 }
 0x7fa   : > { %5555 = vadd.xlane.f32.xlu0 %v5554_v37 }
 0x7fb   : > { %v5906_v15 = vadd.f32 %v7853_v18, %v5905_v3  ;;  %7518 = vmatmul.msk.bf16.gmra.mxu2 %vm11842_vm1, %v6200_v44 }
 0x7fc   : > { %v7857_v33 = vpop.eup %7856 }
 0x7fd   : > { %v5538_v4 = vpop.xlane.xlu0 %5537  ;;  %v5910_v1 = vsel %vm5909_vm6, %v7853_v18, %v5906_v15  ;;  %v5918_v38 = vmul.f32 %v7857_v33, %v5535_v31  ;;  %vm5923_vm7 = vweird.f32 %v7857_v33 }
 0x7fe   : > { %7858 = vrcp.f32 %v5538_v4  ;;  %v5915_v60 = vsel %vm5912_vm15, %v5914_v20, %v5910_v1  ;;  %vm11223_vm14 = vmor %vm5922_vm9, %vm5923_vm7  ;;  %v5943_v23 = vand.u32 2147483648, %v5538_v4  ;;  %v5941_v50 = vand.u32 2147483647, %v5538_v4  ;;  %v11241_v20 = vpop.f32.mrf.mxu2 }
 0x7ff   : > { %v5919_v52 = vsub.f32 1.0, %v5918_v38  ;;  %v5916_v2 = vmul.f32 %v11099_v41, %v5915_v60  ;;  %vm5937_vm0 = vweird.f32 %v5538_v4 }
 0x800   : > { %v6149_v32 = vpop.f32.mrf.mxu0  ;;  %v5944_v58 = vor.u32 1.1754944e-38, %v5943_v23  ;;  %vm5942_vm11 = vcmp.eq.f32.partialorder %v5941_v50, 8.507059e+37  ;;  %v11262_v23 = vld [vmem:[%s11593_s10 + $0x2] ss:$0 sm:$0xff] }
 0x801   : > { %v5920_v61 = vmul.f32 %v7857_v33, %v5919_v52  ;;  %v6048_v13 = vpack.c.bf16 %v5916_v2, %v5901_v25 }
 0x803   : > { %v5921_v48 = vadd.f32 %v7857_v33, %v5920_v61  ;;  %7499 = vmatmul.msk.bf16.gmra.mxu0 %vm5268_vm12, %v6048_v13 }
 0x804   : > { %v7859_v5 = vpop.eup %7858 }
 0x805   : > { %v5933_v62 = vmul.f32 %v7859_v5, %v5538_v4  ;;  %v5541_v21 = vpop.xlane.xlu1 %5540  ;;  %v5925_v41 = vsel %vm11223_vm14, %v7857_v33, %v5921_v48  ;;  %vm5938_vm13 = vweird.f32 %v7859_v5 }
 0x806   : > { %7860 = vrcp.f32 %v5541_v21  ;;  %vm5939_vm2 = vmor %vm5937_vm0, %vm5938_vm13  ;;  %v5930_v27 = vsel %vm5927_vm3, %v5929_v22, %v5925_v41  ;;  %v5958_v17 = vand.u32 2147483648, %v5541_v21  ;;  %vm5952_vm10 = vweird.f32 %v5541_v21  ;;  %v11246_v2 = vpop.f32.mrf.mxu2 }
 0x807   : > { %v5934_v9 = vsub.f32 1.0, %v5933_v62  ;;  %v5931_v19 = vmul.f32 %v11120_v16, %v5930_v27  ;;  %v5956_v57 = vand.u32 2147483647, %v5541_v21  ;;  %vm11848_vm13 = vmmov %vm11845_vm8 }
 0x808   : > { %v6151_v6 = vpop.f32.mrf.mxu0  ;;  %v5959_v37 = vor.u32 1.1754944e-38, %v5958_v17 }
 0x809   : > { %v5935_v51 = vmul.f32 %v7859_v5, %v5934_v9  ;;  %v6201_v10 = vpack.c.bf16 %v6151_v6, %v6149_v32  ;;  %vm5957_vm7 = vcmp.eq.f32.partialorder %v5956_v57, 8.507059e+37  ;;  %v11268_v6 = vld [vmem:[%s11593_s10 + $0x3] ss:$0 sm:$0xff] }
 0x80b   : > { %v5936_v56 = vadd.f32 %v7859_v5, %v5935_v51  ;;  %7519 = vmatmul.msk.bf16.gmra.mxu2 %vm11845_vm8, %v6201_v10 }
 0x80c   : > { %v7861_v8 = vpop.eup %7860 }
 0x80d   : > { %v5544_v47 = vpop.xlane.xlu2 %5543  ;;  %v5940_v42 = vsel %vm5939_vm2, %v7859_v5, %v5936_v56  ;;  %v5948_v28 = vmul.f32 %v7861_v8, %v5541_v21  ;;  %vm5953_vm5 = vweird.f32 %v7861_v8 }
 0x80e   : > { %7862 = vrcp.f32 %v5544_v47  ;;  %v5945_v24 = vsel %vm5942_vm11, %v5944_v58, %v5940_v42  ;;  %v5973_v35 = vand.u32 2147483648, %v5544_v47  ;;  %vm11235_vm1 = vmor %vm5952_vm10, %vm5953_vm5  ;;  %v5971_v3 = vand.u32 2147483647, %v5544_v47  ;;  %v11249_v32 = vpop.f32.mrf.mxu2 }
 0x80f   : > { %v5949_v43 = vsub.f32 1.0, %v5948_v28  ;;  %v5946_v18 = vmul.f32 %v11135_v55, %v5945_v24  ;;  %vm5967_vm15 = vweird.f32 %v5544_v47  ;;  %vm11851_vm10 = vmmov %vm11848_vm13 }
 0x810   : > { %v6154_v31 = vpop.f32.mrf.mxu0  ;;  %v5974_v4 = vor.u32 1.1754944e-38, %v5973_v35  ;;  %vm5972_vm14 = vcmp.eq.f32.partialorder %v5971_v3, 8.507059e+37 }
 0x811   : > { %v5950_v59 = vmul.f32 %v7861_v8, %v5949_v43  ;;  %v6049_v39 = vpack.c.bf16 %v5946_v18, %v5931_v19 }
 0x813   : > { %v5951_v63 = vadd.f32 %v7861_v8, %v5950_v59  ;;  %7500 = vmatmul.msk.bf16.gmra.mxu0 %vm5268_vm12, %v6049_v39 }
 0x814   : > { %v7863_v46 = vpop.eup %7862 }
 0x815   : > { %v5963_v12 = vmul.f32 %v7863_v46, %v5544_v47  ;;  %vm5968_vm6 = vweird.f32 %v7863_v46  ;;  %v5955_v44 = vsel %vm11235_vm1, %v7861_v8, %v5951_v63  ;;  %v5547_v48 = vpop.xlane.xlu0 %5546 }
 0x816   : > { %vm5969_vm9 = vmor %vm5967_vm15, %vm5968_vm6  ;;  %v5960_v1 = vsel %vm5957_vm7, %v5959_v37, %v5955_v44  ;;  %v11251_v61 = vpop.f32.mrf.mxu2  ;;  %7864 = vrcp.f32 %v5547_v48  ;;  %vm5982_vm0 = vweird.f32 %v5547_v48  ;;  %v5986_v8 = vand.u32 2147483647, %v5547_v48 }
 0x817   : > { %v5964_v40 = vsub.f32 1.0, %v5963_v12  ;;  %v5961_v52 = vmul.f32 %v11145_v29, %v5960_v1  ;;  %v5988_v58 = vand.u32 2147483648, %v5547_v48 }
 0x818   : > { %v6156_v11 = vpop.f32.mrf.mxu0  ;;  %vm5987_vm11 = vcmp.eq.f32.partialorder %v5986_v8, 8.507059e+37 }
 0x819   : > { %v5965_v55 = vmul.f32 %v7863_v46, %v5964_v40  ;;  %v6202_v33 = vpack.c.bf16 %v6156_v11, %v6154_v31  ;;  %v5989_v39 = vor.u32 1.1754944e-38, %v5988_v58 }
 0x81b   : > { %v5966_v15 = vadd.f32 %v7863_v46, %v5965_v55  ;;  %7520 = vmatmul.msk.bf16.gmra.mxu2 %vm11848_vm13, %v6202_v33 }
 0x81c   : > { %v7865_v62 = vpop.eup %7864 }
 0x81d   : > { %v5970_v0 = vsel %vm5969_vm9, %v7863_v46, %v5966_v15  ;;  %vm5983_vm3 = vweird.f32 %v7865_v62 }
 0x81e   : > { %v5975_v38 = vsel %vm5972_vm14, %v5974_v4, %v5970_v0  ;;  %v11253_v13 = vpop.f32.mrf.mxu2  ;;  %vm11270_vm2 = vmor %vm5982_vm0, %vm5983_vm3 }
 0x81f   : > { %v5976_v60 = vmul.f32 %v11151_v54, %v5975_v38  ;;  %v5978_v54 = vmul.f32 %v7865_v62, %v5547_v48  ;;  %vm11854_vm0 = vmmov %vm11851_vm10 }
 0x821   : > { %v6050_v25 = vpack.c.bf16 %v5976_v60, %v5961_v52  ;;  %v5979_v29 = vsub.f32 1.0, %v5978_v54 }
 0x823   : > { %7501 = vmatmul.msk.bf16.gmra.mxu0 %vm5268_vm12, %v6050_v25  ;;  %v5980_v9 = vmul.f32 %v7865_v62, %v5979_v29 }
 0x825   : > { %v5981_v50 = vadd.f32 %v7865_v62, %v5980_v9 }
 0x826   : > { %v11255_v5 = vpop.f32.mrf.mxu2 }
 0x827   : > { %v5985_v24 = vsel %vm11270_vm2, %v7865_v62, %v5981_v50 }
 0x828   : > { %v5990_v57 = vsel %vm5987_vm11, %v5989_v39, %v5985_v24  ;;  %vm11855_vm11 = vmmov %vm11854_vm0 }
 0x829   : > { %v5991_v4 = vmul.f32 %v11155_v49, %v5990_v57 }
 0x82e   : > { %v11257_v21 = vpop.f32.mrf.mxu2 }
 0x85d   : > { %v5550_v45 = vpop.xlane.xlu1 %5549 }
 0x85e   : > { %v6305_v53 = vpop.f32.mrf.mxu2  ;;  %7866 = vrcp.f32 %v5550_v45  ;;  %v6003_v43 = vand.u32 2147483648, %v5550_v45  ;;  %v6001_v46 = vand.u32 2147483647, %v5550_v45  ;;  %vm5997_vm5 = vweird.f32 %v5550_v45 }
 0x85f   : > { %v6374_v41 = vmul.f32 %v11262_v23, %v6305_v53 }
 0x860   : > { %v6159_v26 = vpop.f32.mrf.mxu0  ;;  %v6004_v16 = vor.u32 1.1754944e-38, %v6003_v43  ;;  %vm6002_vm6 = vcmp.eq.f32.partialorder %v6001_v46, 8.507059e+37 }
 0x861   : > { %v6407_v42 = vadd.f32 %v11268_v6, %v6374_v41 }
 0x863   : > { %v6439_v63 = vmax.f32 %v6407_v42, 0.0 }
 0x864   : > { %v7867_v51 = vpop.eup %7866 }
 0x865   : > { %v5993_v22 = vmul.f32 %v7867_v51, %v5550_v45  ;;  %v5553_v10 = vpop.xlane.xlu2 %5552  ;;  %vm5998_vm8 = vweird.f32 %v7867_v51 }
 0x866   : > { %v6307_v56 = vpop.f32.mrf.mxu2  ;;  %7868 = vrcp.f32 %v5553_v10  ;;  %vm5999_vm1 = vmor %vm5997_vm5, %vm5998_vm8  ;;  %v6018_v62 = vand.u32 2147483648, %v5553_v10  ;;  %vm6012_vm7 = vweird.f32 %v5553_v10  ;;  %v6016_v54 = vand.u32 2147483647, %v5553_v10 }
 0x867   : > { %v5994_v27 = vsub.f32 1.0, %v5993_v22  ;;  %v6375_v28 = vmul.f32 %v11262_v23, %v6307_v56  ;;  %vm11857_vm5 = vmmov %vm11854_vm0 }
 0x868   : > { %v6161_v19 = vpop.f32.mrf.mxu0  ;;  %vm6017_vm13 = vcmp.eq.f32.partialorder %v6016_v54, 8.507059e+37 }
 0x869   : > { %v5995_v18 = vmul.f32 %v7867_v51, %v5994_v27  ;;  %v6408_v59 = vadd.f32 %v11268_v6, %v6375_v28  ;;  %v6203_v31 = vpack.c.bf16 %v6161_v19, %v6159_v26 }
 0x86b   : > { %v5996_v12 = vadd.f32 %v7867_v51, %v5995_v18  ;;  %v6440_v17 = vmax.f32 %v6408_v59, 0.0  ;;  %7521 = vmatmul.msk.bf16.gmra.mxu2 %vm11851_vm10, %v6203_v31  ;;  %vm11858_vm10 = vmmov %vm11854_vm0 }
 0x86c   : > { %v7869_v40 = vpop.eup %7868 }
 0x86d   : > { %v6000_v35 = vsel %vm5999_vm1, %v7867_v51, %v5996_v12  ;;  %v6008_v55 = vmul.f32 %v7869_v40, %v5553_v10  ;;  %v5556_v3 = vpop.xlane.xlu0 %5555  ;;  %v11282_v11 = vpack.c.bf16 %v6440_v17, %v6439_v63  ;;  %vm6013_vm15 = vweird.f32 %v7869_v40  ;;  %vm11859_vm1 = vmmov %vm11854_vm0 }
 0x86e   : > { %v11280_v44 = vpop.f32.mrf.mxu2  ;;  %7870 = vrcp.f32 %v5556_v3  ;;  %v6005_v15 = vsel %vm6002_vm6, %v6004_v16, %v6000_v35  ;;  %vm11287_vm9 = vmor %vm6012_vm7, %vm6013_vm15  ;;  %v6031_v49 = vand.u32 2147483647, %v5556_v3  ;;  %v6033_v53 = vand.u32 2147483648, %v5556_v3 }
 0x86f   : > { %v6009_v37 = vsub.f32 1.0, %v6008_v55  ;;  %v6006_v0 = vmul.f32 %v11186_v14, %v6005_v15  ;;  %v6019_v51 = vor.u32 1.1754944e-38, %v6018_v62  ;;  %vm6027_vm3 = vweird.f32 %v5556_v3 }
 0x870   : > { %v6164_v33 = vpop.f32.mrf.mxu0  ;;  %v6034_v22 = vor.u32 1.1754944e-38, %v6033_v53  ;;  %vm6032_vm8 = vcmp.eq.f32.partialorder %v6031_v49, 8.507059e+37  ;;  %v6372_v53 = vmul.f32 %v11262_v23, %v11255_v5 }
 0x871   : > { %v6010_v1 = vmul.f32 %v7869_v40, %v6009_v37  ;;  %v6051_v38 = vpack.c.bf16 %v6006_v0, %v5991_v4  ;;  %v6376_v4 = vmul.f32 %v11262_v23, %v11280_v44  ;;  %v6373_v44 = vmul.f32 %v11262_v23, %v11257_v21 }
 0x872   : > { %v6370_v21 = vmul.f32 %v11262_v23, %v11251_v61 }
 0x873   : > { %7502 = vmatmul.msk.bf16.gmra.mxu0 %vm5268_vm12, %v6051_v38  ;;  %v6011_v52 = vadd.f32 %v7869_v40, %v6010_v1 }
 0x874   : > { %v7871_v60 = vpop.eup %7870  ;;  %v6403_v5 = vadd.f32 %v11268_v6, %v6370_v21 }
 0x875   : > { %v6023_v25 = vmul.f32 %v7871_v60, %v5556_v3  ;;  %v6015_v9 = vsel %vm11287_vm9, %v7869_v40, %v6011_v52  ;;  %vm6028_vm14 = vweird.f32 %v7871_v60  ;;  %v6409_v52 = vadd.f32 %v11268_v6, %v6376_v4 }
 0x876   : > { %v6312_v48 = vpop.f32.mrf.mxu2  ;;  %vm6029_vm2 = vmor %vm6027_vm3, %vm6028_vm14  ;;  %v6020_v10 = vsel %vm6017_vm13, %v6019_v51, %v6015_v9  ;;  %v6405_v9 = vadd.f32 %v11268_v6, %v6372_v53  ;;  %v6631_v51 = vsel %vm4423_vm4, %v11282_v11, 0  ;;  %v6368_v11 = vmul.f32 %v11262_v23, %v11246_v2 }
 0x877   : > { %v6024_v29 = vsub.f32 1.0, %v6023_v25  ;;  %v6021_v47 = vmul.f32 %v11201_v7, %v6020_v10  ;;  %v6377_v37 = vmul.f32 %v11262_v23, %v6312_v48  ;;  %v6441_v54 = vmax.f32 %v6409_v52, 0.0 }
 0x878   : > { %v6166_v14 = vpop.f32.mrf.mxu0 }
 0x879   : > { %v6025_v26 = vmul.f32 %v7871_v60, %v6024_v29  ;;  %v6204_v41 = vpack.c.bf16 %v6166_v14, %v6164_v33  ;;  %v6410_v38 = vadd.f32 %v11268_v6, %v6377_v37  ;;  %v6406_v14 = vadd.f32 %v11268_v6, %v6373_v44 }
 0x87b   : > { %v6026_v50 = vadd.f32 %v7871_v60, %v6025_v26  ;;  %7522 = vmatmul.msk.bf16.gmra.mxu2 %vm11854_vm0, %v6204_v41  ;;  %v6442_v25 = vmax.f32 %v6410_v38, 0.0  ;;  %v6371_v26 = vmul.f32 %v11262_v23, %v11253_v13  ;;  %v6438_v41 = vmax.f32 %v6406_v14, 0.0 }
 0x87d   : > { %v6030_v56 = vsel %vm6029_vm2, %v7871_v60, %v6026_v50  ;;  %v6468_v45 = vpack.c.bf16 %v6442_v25, %v6441_v54  ;;  %v6437_v50 = vmax.f32 %v6405_v9, 0.0 }
 0x87e   : > { %v6315_v8 = vpop.f32.mrf.mxu2  ;;  %v6035_v58 = vsel %vm6032_vm8, %v6034_v22, %v6030_v56  ;;  %v6404_v22 = vadd.f32 %v11268_v6, %v6371_v26  ;;  %v6369_v56 = vmul.f32 %v11262_v23, %v11249_v32  ;;  %v6366_v32 = vmul.f32 %v11262_v23, %v11232_v30 }
 0x87f   : > { %v6036_v27 = vmul.f32 %v11213_v36, %v6035_v58  ;;  %v6378_v12 = vmul.f32 %v11262_v23, %v6315_v8  ;;  %v6634_v49 = vsel %vm4423_vm4, %v6468_v45, 0  ;;  %v6466_v10 = vpack.c.bf16 %v6438_v41, %v6437_v50 }
 0x880   : > { %v6169_v42 = vpop.f32.mrf.mxu0  ;;  %v6436_v8 = vmax.f32 %v6404_v22, 0.0  ;;  %v6435_v58 = vmax.f32 %v6403_v5, 0.0 }
 0x881   : > { %v6052_v28 = vpack.c.bf16 %v6036_v27, %v6021_v47  ;;  %v6411_v55 = vadd.f32 %v11268_v6, %v6378_v12  ;;  %v6628_v13 = vsel %vm4423_vm4, %v6466_v10, 0  ;;  %v6402_v47 = vadd.f32 %v11268_v6, %v6369_v56 }
 0x882   : > { %v6465_v61 = vpack.c.bf16 %v6436_v8, %v6435_v58  ;;  %v6401_v27 = vadd.f32 %v11268_v6, %v6368_v11  ;;  %v7681_v58 = vld [vmem:[%s11591_s8 + $0x20] sm:$0xff] }
 0x883   : > { %7503 = vmatmul.msk.bf16.gmra.mxu0 %vm5268_vm12, %v6052_v28  ;;  %vm11856_vm12 = vmmov %vm11854_vm0  ;;  %v6443_v0 = vmax.f32 %v6411_v55, 0.0  ;;  %v6434_v28 = vmax.f32 %v6402_v47, 0.0  ;;  %7552 = vmatmul.msk.bf16.vlgmr.msra.gmra.mxu3 %vm4423_vm4, %v7681_v58  ;;  %v11384_v47 = vld [vmem:[%s11591_s8] sm:$0xff] }
 0x884   : > { %7556 = vmatmul.msk.bf16.vlgmr.msrb.gmra.mxu1 %vm4423_vm4, %v7681_v58 }
 0x886   : > { %v6317_v24 = vpop.f32.mrf.mxu2 }
 0x887   : > { %v6379_v46 = vmul.f32 %v11262_v23, %v6317_v24  ;;  %v6625_v24 = vsel %vm4423_vm4, %v6465_v61, 0  ;;  %v7682_v61 = vld [vmem:[%s11591_s8 + $0x28] sm:$0xff] }
 0x888   : > { %v6171_v43 = vpop.f32.mrf.mxu0 }
 0x889   : > { %v6205_v19 = vpack.c.bf16 %v6171_v43, %v6169_v42  ;;  %v6412_v57 = vadd.f32 %v11268_v6, %v6379_v46  ;;  %v6367_v42 = vmul.f32 %v11262_v23, %v11241_v20  ;;  %v6433_v43 = vmax.f32 %v6401_v27, 0.0  ;;  %v11396_v27 = vld [vmem:[%s11591_s8 + $0x8] sm:$0xff] }
 0x88b   : > { %7523 = vmatmul.msk.bf16.gmra.mxu2 %vm11855_vm11, %v6205_v19  ;;  %v6444_v15 = vmax.f32 %v6412_v57, 0.0  ;;  %v6400_v19 = vadd.f32 %v11268_v6, %v6367_v42  ;;  %v6464_v2 = vpack.c.bf16 %v6434_v28, %v6433_v43  ;;  %v7683_v42 = vld [vmem:[%s11591_s8 + $0x30] sm:$0xff]  ;;  %v6731_v43 = vld [vmem:[%s11595_s12 + $0x38] sm:$0xff] }
 0x88c   : > { %v6730_v28 = vld [vmem:[%s11595_s12 + $0x30] sm:$0xff]  ;;  %6769 = vperm.xlu2 %7708, %v6731_v43  }
 0x88d   : > { %v6469_v60 = vpack.c.bf16 %v6444_v15, %v6443_v0  ;;  %6764 = vperm.xlu1 %7707, %v6730_v28  }
 0x88e   : > { %v6320_v18 = vpop.f32.mrf.mxu2 }
 0x88f   : > { %v6380_v31 = vmul.f32 %v11262_v23, %v6320_v18  ;;  %v6637_v62 = vsel %vm4423_vm4, %v6469_v60, 0  ;;  %v6399_v18 = vadd.f32 %v11268_v6, %v6366_v32  ;;  %v7890_v32 = vmov 1  }
 0x890   : > { %v6174_v59 = vpop.f32.mrf.mxu0  ;;  %7709 = vset.pattern.permute.xlu0 %v7890_v32 }
 0x891   : > { %v6413_v7 = vadd.f32 %v11268_v6, %v6380_v31  ;;  %v6622_v31 = vsel %vm4423_vm4, %v6464_v2, 0  ;;  %6813 = vperm.xlu0 %7709, %v6730_v28  }
 0x893   : > { %v6445_v35 = vmax.f32 %v6413_v7, 0.0  ;;  %7553 = vmatmul.msk.bf16.gmra.mxu3 %vm4423_vm4, %v7682_v61 }
 0x894   : > { %7557 = vmatmul.msk.bf16.gmra.mxu1 %vm4423_vm4, %v7682_v61 }
 0x895   : > { %7710 = vset.pattern.permute.xlu1 %v7890_v32 }
 0x896   : > { %v6322_v39 = vpop.f32.mrf.mxu2  ;;  %6817 = vperm.xlu1 %7710, %v6731_v43  }
 0x897   : > { %v6381_v36 = vmul.f32 %v11262_v23, %v6322_v39  ;;  %v6431_v39 = vmax.f32 %v6399_v18, 0.0  ;;  %v11428_v18 = vld [vmem:[%s11591_s8 + $0x18] sm:$0xff] }
 0x898   : > { %v6176_v17 = vpop.f32.mrf.mxu0 }
 0x899   : > { %v6414_v63 = vadd.f32 %v11268_v6, %v6381_v36  ;;  %v6206_v40 = vpack.c.bf16 %v6176_v17, %v6174_v59  ;;  %v6432_v59 = vmax.f32 %v6400_v19, 0.0  ;;  %v7684_v19 = vld [vmem:[%s11591_s8 + $0x38] sm:$0xff]  ;;  %7715 = vset.pattern.permute.xlu0 %v7889_v34 }
 0x89b   : > { %v6446_v16 = vmax.f32 %v6414_v63, 0.0  ;;  %7524 = vmatmul.msk.bf16.gmra.mxu2 %vm11856_vm12, %v6206_v40  ;;  %v6463_v46 = vpack.c.bf16 %v6432_v59, %v6431_v39  ;;  %v6729_v59 = vld [vmem:[%s11595_s12 + $0x28] sm:$0xff] }
 0x89d   : > { %v6470_v3 = vpack.c.bf16 %v6446_v16, %v6445_v35  ;;  %v6619_v20 = vsel %vm4423_vm4, %v6463_v46, 0  ;;  %v6726_v46 = vld [vmem:[%s11595_s12 + $0x10] sm:$0xff] }
 0x89e   : > { %v11346_v7 = vpop.f32.mrf.mxu2  ;;  %7711 = vset.pattern.permute.xlu1 %v7889_v34 }
 0x89f   : > { %v6640_v33 = vsel %vm4423_vm4, %v6470_v3, 0  ;;  %6759 = vperm.xlu1 %7711, %v6729_v59  }
 0x8a0   : > { %6666 = vmatpush.bf16.xpose.msra.mxu0 %v6640_v33  ;;  %v6179_v1 = vpop.f32.mrf.mxu0 }
 0x8a3   : > { %7554 = vmatmul.msk.bf16.gmra.mxu3 %vm4423_vm4, %v7683_v42 }
 0x8a4   : > { %7558 = vmatmul.msk.bf16.gmra.mxu1 %vm4423_vm4, %v7683_v42 }
 0x8a6   : > { %v11348_v36 = vpop.f32.mrf.mxu2 }
 0x8a7   : > { %7713 = vset.pattern.permute.xlu1 %v7890_v32 }
 0x8a8   : > { %6667 = vmatpush.bf16.xpose.msra.mxu0 %v6637_v62  ;;  %v6181_v48 = vpop.f32.mrf.mxu0  ;;  %6809 = vperm.xlu1 %7713, %v6729_v59  }
 0x8a9   : > { %v6207_v29 = vpack.c.bf16 %v6181_v48, %v6179_v1 }
 0x8ab   : > { %7525 = vmatmul.msk.bf16.gmra.mxu2 %vm11857_vm5, %v6207_v29 }
 0x8b0   : > { %6668 = vmatpush.bf16.xpose.msra.mxu0 %v6634_v49  ;;  %6797 = vperm.xlu1 %7713, %v6726_v46  }
 0x8b3   : > { %7555 = vmatmul.msk.bf16.gmra.mxu3 %vm4423_vm4, %v7684_v19 }
 0x8b4   : > { %7559 = vmatmul.msk.bf16.gmra.mxu1 %vm4423_vm4, %v7684_v19 }
 0x8b8   : > { %6669 = vmatpush.bf16.xpose.msra.mxu0 %v6631_v51  ;;  %7717 = vset.pattern.permute.xlu1 %v7889_v34 }
 0x8c0   : > { %6670 = vmatpush.bf16.xpose.msra.mxu0 %v6628_v13 }
 0x8c8   : > { %6671 = vmatpush.bf16.xpose.msra.mxu0 %v6625_v24  ;;  %v11411_v24 = vld [vmem:[%s11591_s8 + $0x10] sm:$0xff] }
 0x8d0   : > { %6672 = vmatpush.bf16.xpose.msra.mxu0 %v6622_v31 }
 0x8d8   : > { %6673 = vmatpush.bf16.xpose.msra.mxu0 %v6619_v20  ;;  %v6728_v20 = vld [vmem:[%s11595_s12 + $0x20] sm:$0xff] }
 0x8d9   : > { %6754 = vperm.xlu2 %7708, %v6728_v20  }
 0x8df   : > { %7576 = vmatmul.msk.bf16.vlgmr.msra.gmra.mxu0 %vm4423_vm4, %v11384_v47 }
 0x8e1   : > { %7712 = vset.pattern.permute.xlu2 %v7890_v32 }
 0x8e2   : > { %6805 = vperm.xlu2 %7712, %v6728_v20  }
 0x8ea   : > { %7714 = vset.pattern.permute.xlu2 %v7889_v34 }
 0x8eb   : > { %6744 = vperm.xlu2 %7714, %v6726_v46  }
 0x8ee   : > { %v6330_v30 = vpop.f32.mrf.mxu2 }
 0x8ef   : > { %v6384_v63 = vmul.f32 %v11262_v23, %v6330_v30  ;;  %7577 = vmatmul.msk.bf16.gmra.mxu0 %vm4423_vm4, %v11396_v27 }
 0x8f0   : > { %v6184_v12 = vpop.f32.mrf.mxu0 }
 0x8f1   : > { %v6417_v40 = vadd.f32 %v11268_v6, %v6384_v63  ;;  %v6727_v63 = vld [vmem:[%s11595_s12 + $0x18] sm:$0xff] }
 0x8f2   : > { %6749 = vperm.xlu0 %7715, %v6727_v63  }
 0x8f3   : > { %v6449_v3 = vmax.f32 %v6417_v40, 0.0  ;;  %7716 = vset.pattern.permute.xlu2 %v7890_v32 }
 0x8f4   : > { %6801 = vperm.xlu2 %7716, %v6727_v63  }
 0x8f6   : > { %v6332_v17 = vpop.f32.mrf.mxu2 }
 0x8f7   : > { %v6385_v57 = vmul.f32 %v11262_v23, %v6332_v17 }
 0x8f8   : > { %v6186_v16 = vpop.f32.mrf.mxu0 }
 0x8f9   : > { %v6418_v35 = vadd.f32 %v11268_v6, %v6385_v57  ;;  %v6208_v55 = vpack.c.bf16 %v6186_v16, %v6184_v12  ;;  %v6724_v12 = vld [vmem:[%s11595_s12] sm:$0xff]  ;;  %v6725_v57 = vld [vmem:[%s11595_s12 + $0x8] sm:$0xff] }
 0x8fa   : > { %6734 = vperm.xlu1 %7717, %v6724_v12   ;;  %7719 = vset.pattern.permute.xlu0 %v7890_v32 }
 0x8fb   : > { %v6450_v37 = vmax.f32 %v6418_v35, 0.0  ;;  %7526 = vmatmul.msk.bf16.gmra.mxu2 %vm11858_vm10, %v6208_v55  ;;  %6789 = vperm.xlu0 %7719, %v6724_v12  }
 0x8fc   : > { %7718 = vset.pattern.permute.xlu2 %v7889_v34 }
 0x8fd   : > { %v11355_v15 = vpack.c.bf16 %v6450_v37, %v6449_v3  ;;  %6739 = vperm.xlu2 %7718, %v6725_v57  }
 0x8fe   : > { %v6335_v33 = vpop.f32.mrf.mxu2 }
 0x8ff   : > { %v6386_v0 = vmul.f32 %v11262_v23, %v6335_v33  ;;  %7578 = vmatmul.msk.bf16.gmra.mxu0 %vm4423_vm4, %v11411_v24  ;;  %v6646_v28 = vsel %vm4423_vm4, %v11355_v15, 0  ;;  %v11494_v19 = vpop.permute.xlu1 %6764 }
 0x900   : > { %v6189_v4 = vpop.f32.mrf.mxu0 }
 0x901   : > { %v6419_v38 = vadd.f32 %v11268_v6, %v6386_v0 }
 0x902   : > { %7720 = vset.pattern.permute.xlu1 %v7890_v32 }
 0x903   : > { %v6451_v54 = vmax.f32 %v6419_v38, 0.0  ;;  %6793 = vperm.xlu1 %7720, %v6725_v57  }
 0x905   : > { %7721 = vset.pattern.permute.xlu2 %v7890_v32 }
 0x906   : > { %v6337_v1 = vpop.f32.mrf.mxu2 }
 0x907   : > { %v6387_v60 = vmul.f32 %v11262_v23, %v6337_v1 }
 0x908   : > { %v6191_v25 = vpop.f32.mrf.mxu0 }
 0x909   : > { %v6420_v52 = vadd.f32 %v11268_v6, %v6387_v60  ;;  %v6209_v62 = vpack.c.bf16 %v6191_v25, %v6189_v4 }
 0x90b   : > { %v6452_v48 = vmax.f32 %v6420_v52, 0.0  ;;  %7527 = vmatmul.msk.bf16.gmra.mxu2 %vm11859_vm1, %v6209_v62 }
 0x90d   : > { %v11362_v29 = vpack.c.bf16 %v6452_v48, %v6451_v54 }
 0x90e   : > { %v6340_v45 = vpop.f32.mrf.mxu2 }
 0x90f   : > { %v6388_v44 = vmul.f32 %v11262_v23, %v6340_v45  ;;  %7579 = vmatmul.msk.bf16.gmra.mxu0 %vm4423_vm4, %v11428_v18 }
 0x911   : > { %v6421_v53 = vadd.f32 %v11268_v6, %v6388_v44 }
 0x913   : > { %v6453_v26 = vmax.f32 %v6421_v53, 0.0 }
 0x916   : > { %v6342_v49 = vpop.f32.mrf.mxu2 }
 0x917   : > { %v6389_v14 = vmul.f32 %v11262_v23, %v6342_v49 }
 0x919   : > { %v6422_v9 = vadd.f32 %v11268_v6, %v6389_v14 }
 0x91b   : > { %v6454_v41 = vmax.f32 %v6422_v9, 0.0 }
 0x91d   : > { %v11368_v51 = vpack.c.bf16 %v6454_v41, %v6453_v26 }
 0x91e   : > { %v6345_v21 = vpop.f32.mrf.mxu2 }
 0x91f   : > { %v6390_v50 = vmul.f32 %v11262_v23, %v6345_v21 }
 0x921   : > { %v6423_v10 = vadd.f32 %v11268_v6, %v6390_v50  ;;  %v6537_v50 = vpop.f32.mrf.mxu3 }
 0x923   : > { %v6455_v8 = vmax.f32 %v6423_v10, 0.0  ;;  %v6652_v10 = vsel %vm4423_vm4, %v11368_v51, 0 }
 0x926   : > { %v6347_v22 = vpop.f32.mrf.mxu2 }
 0x927   : > { %v6391_v5 = vmul.f32 %v11262_v23, %v6347_v22 }
 0x929   : > { %v6424_v56 = vadd.f32 %v11268_v6, %v6391_v5  ;;  %v11480_v5 = vpop.f32.mrf.mxu3 }
 0x92b   : > { %v6456_v13 = vmax.f32 %v6424_v56, 0.0  ;;  %v6383_v56 = vmul.f32 %v11262_v23, %v11348_v36 }
 0x92d   : > { %v11374_v11 = vpack.c.bf16 %v6456_v13, %v6455_v8  ;;  %v6649_v8 = vsel %vm4423_vm4, %v11362_v29, 0  ;;  %v6382_v13 = vmul.f32 %v11262_v23, %v11346_v7 }
 0x92e   : > { %v6350_v2 = vpop.f32.mrf.mxu2 }
 0x92f   : > { %v6392_v54 = vmul.f32 %v11262_v23, %v6350_v2  ;;  %v6655_v21 = vsel %vm4423_vm4, %v11374_v11, 0  ;;  %v6416_v11 = vadd.f32 %v11268_v6, %v6383_v56  ;;  %v6415_v58 = vadd.f32 %v11268_v6, %v6382_v13 }
 0x931   : > { %v6425_v49 = vadd.f32 %v11268_v6, %v6392_v54  ;;  %v6542_v51 = vpop.f32.mrf.mxu3  ;;  %v6448_v42 = vmax.f32 %v6416_v11, 0.0  ;;  %v6447_v32 = vmax.f32 %v6415_v58, 0.0 }
 0x933   : > { %v6457_v9 = vmax.f32 %v6425_v49, 0.0  ;;  %v6471_v36 = vpack.c.bf16 %v6448_v42, %v6447_v32 }
 0x935   : > { %v6643_v29 = vsel %vm4423_vm4, %v6471_v36, 0 }
 0x936   : > { %v6352_v31 = vpop.f32.mrf.mxu2 }
 0x937   : > { %v6393_v52 = vmul.f32 %v11262_v23, %v6352_v31 }
 0x939   : > { %v6426_v45 = vadd.f32 %v11268_v6, %v6393_v52  ;;  %v6544_v43 = vpop.f32.mrf.mxu3 }
 0x93b   : > { %v6458_v53 = vmax.f32 %v6426_v45, 0.0 }
 0x93d   : > { %v6476_v26 = vpack.c.bf16 %v6458_v53, %v6457_v9 }
 0x93f   : > { %v6658_v41 = vsel %vm4423_vm4, %v6476_v26, 0 }
 0x941   : > { %v6547_v7 = vpop.f32.mrf.mxu3 }
 0x949   : > { %v6549_v31 = vpop.f32.mrf.mxu3 }
 0x95c   : > { %v6675_v22 = vpop.f32.mrf.mxu0 }
 0x95d   : > { %v6676_v63 = vadd.f32 %v6675_v22, %v6537_v50 }
 0x964   : > { %v11482_v34 = vpop.f32.mrf.mxu0 }
 0x965   : > { %v6678_v56 = vadd.f32 %v11482_v34, %v11480_v5  ;;  %v6566_v34 = vpop.f32.mrf.mxu1 }
 0x96c   : > { %v6680_v61 = vpop.f32.mrf.mxu0 }
 0x974   : > { %v6682_v2 = vpop.f32.mrf.mxu0 }
 0x975   : > { %v6683_v49 = vadd.f32 %v6682_v2, %v6544_v43 }
 0x97c   : > { %v6685_v59 = vpop.f32.mrf.mxu0 }
 0x97e   : > { %v6355_v39 = vpop.f32.mrf.mxu2 }
 0x97f   : > { %v6394_v37 = vmul.f32 %v11262_v23, %v6355_v39 }
 0x981   : > { %v6427_v38 = vadd.f32 %v11268_v6, %v6394_v37  ;;  %v11516_v37 = vpop.permute.xlu0 %6813 }
 0x983   : > { %v6459_v48 = vmax.f32 %v6427_v38, 0.0 }
 0x984   : > { %v6687_v46 = vpop.f32.mrf.mxu0 }
 0x986   : > { %v6357_v30 = vpop.f32.mrf.mxu2 }
 0x987   : > { %v6395_v16 = vmul.f32 %v11262_v23, %v6357_v30  ;;  %v6552_v30 = vpop.f32.mrf.mxu3 }
 0x989   : > { %v6428_v4 = vadd.f32 %v11268_v6, %v6395_v16  ;;  %v6750_v26 = vpop.permute.xlu0 %6749 }
 0x98b   : > { %v6460_v25 = vmax.f32 %v6428_v4, 0.0 }
 0x98d   : > { %v6477_v44 = vpack.c.bf16 %v6460_v25, %v6459_v48 }
 0x98e   : > { %v6360_v17 = vpop.f32.mrf.mxu2 }
 0x98f   : > { %v6396_v40 = vmul.f32 %v11262_v23, %v6360_v17  ;;  %v6661_v14 = vsel %vm4423_vm4, %v6477_v44, 0  ;;  %v6690_v17 = vpop.f32.mrf.mxu0 }
 0x990   : > { %v6691_v57 = vadd.f32 %v6690_v17, %v6552_v30 }
 0x991   : > { %v6429_v55 = vadd.f32 %v11268_v6, %v6396_v40  ;;  %v6686_v40 = vadd.f32 %v6685_v59, %v6547_v7 }
 0x993   : > { %v6461_v0 = vmax.f32 %v6429_v55, 0.0 }
 0x996   : > { %v6362_v35 = vpop.f32.mrf.mxu2 }
 0x997   : > { %v6397_v3 = vmul.f32 %v11262_v23, %v6362_v35  ;;  %v11497_v23 = vpop.permute.xlu2 %6769  ;;  %v6681_v35 = vadd.f32 %v6680_v61, %v6542_v51  ;;  %v6692_v54 = vpop.f32.mrf.mxu0 }
 0x998   : > { %v6790_v61 = vpop.permute.xlu0 %6789 }
 0x999   : > { %v6430_v33 = vadd.f32 %v11268_v6, %v6397_v3  ;;  %v11499_v6 = vpop.permute.xlu1 %6817  ;;  %v6784_v3 = vmul.f32 %v11494_v19, %v6691_v57 }
 0x99b   : > { %v6462_v1 = vmax.f32 %v6430_v33, 0.0 }
 0x99d   : > { %v6478_v60 = vpack.c.bf16 %v6462_v1, %v6461_v0  ;;  %v6832_v0 = vadd.f32 %v11516_v37, %v6784_v3 }
 0x99f   : > { %v6664_v62 = vsel %vm4423_vm4, %v6478_v60, 0  ;;  %v11503_v15 = vpop.permute.xlu2 %6754  ;;  %v6554_v60 = vpop.f32.mrf.mxu3  ;;  %v6848_v48 = vmax.f32 %v6832_v0, 0.0 }
 0x9a0   : > { %6695 = vmatpush.bf16.xpose.msrb.mxu3 %v6664_v62  ;;  %v6780_v16 = vmul.f32 %v11503_v15, %v6686_v40  ;;  %v6693_v45 = vadd.f32 %v6692_v54, %v6554_v60 }
 0x9a1   : > { %v11505_v39 = vpop.permute.xlu1 %6759  ;;  %6864 = vst [vmem:[%s11530_s25 + $0x60] sm:$0xff] %v6848_v48 }
 0x9a2   : > { %v6786_v53 = vmul.f32 %v11497_v23, %v6693_v45 }
 0x9a7   : > { %v11507_v20 = vpop.permute.xlu2 %6805 }
 0x9a8   : > { %6696 = vmatpush.bf16.xpose.msrb.mxu3 %v6661_v14  ;;  %v6828_v33 = vadd.f32 %v11507_v20, %v6780_v16  ;;  %v6834_v14 = vadd.f32 %v11499_v6, %v6786_v53  ;;  %v6868_v53 = vld [vmem:[%s11588_s5] sm:$0xf] }
 0x9a9   : > { %v11509_v12 = vpop.permute.xlu1 %6809 }
 0x9aa   : > { %v6844_v38 = vmax.f32 %v6828_v33, 0.0 }
 0x9ac   : > { %6860 = vst [vmem:[%s11530_s25 + $0x40] sm:$0xff] %v6844_v38 }
 0x9b0   : > { %6697 = vmatpush.bf16.xpose.msrb.mxu3 %v6658_v41  ;;  %v6850_v41 = vmax.f32 %v6834_v14, 0.0 }
 0x9b1   : > { %v11525_v52 = vpop.permute.xlu1 %6797 }
 0x9b2   : > { %6866 = vst [vmem:[%s11530_s25 + $0x70] sm:$0xff] %v6850_v41  ;;  %v6875_v22 = vpack.c.bf16 %v6850_v41, %v6848_v48 }
 0x9b4   : > { %6890 = vmatpush.bf16.msra.mxu1 %v6875_v22 }
 0x9b8   : > { %6698 = vmatpush.bf16.xpose.msrb.mxu3 %v6655_v21  ;;  %v6778_v21 = vmul.f32 %v6750_v26, %v6683_v49 }
 0x9b9   : > { %v6735_v50 = vpop.permute.xlu1 %6734 }
 0x9ba   : > { %v6772_v13 = vmul.f32 %v6735_v50, %v6676_v63 }
 0x9c0   : > { %6699 = vmatpush.bf16.xpose.msrb.mxu3 %v6652_v10 }
 0x9c1   : > { %v6794_v42 = vpop.permute.xlu1 %6793 }
 0x9c8   : > { %6700 = vmatpush.bf16.xpose.msrb.mxu3 %v6649_v8 }
 0x9d0   : > { %6701 = vmatpush.bf16.xpose.msrb.mxu3 %v6646_v28  ;;  %v6820_v28 = vadd.f32 %v6790_v61, %v6772_v13 }
 0x9d2   : > { %v6836_v36 = vmax.f32 %v6820_v28, 0.0 }
 0x9d4   : > { %6852 = vst [vmem:[%s11530_s25] sm:$0xff] %v6836_v36 }
 0x9d8   : > { %6702 = vmatpush.bf16.xpose.msrb.mxu3 %v6643_v29  ;;  %v6568_v29 = vpop.f32.mrf.mxu1 }
 0x9df   : > { %7580 = vmatmul.msk.bf16.vlgmr.msrb.gmra.mxu3 %vm4423_vm4, %v11384_v47  ;;  %v6688_v47 = vadd.f32 %v6687_v46, %v6549_v31 }
 0x9e0   : > { %v6571_v46 = vpop.f32.mrf.mxu1 }
 0x9e1   : > { %v6782_v55 = vmul.f32 %v11505_v39, %v6688_v47 }
 0x9e3   : > { %v6830_v4 = vadd.f32 %v11509_v12, %v6782_v55 }
 0x9e5   : > { %v6846_v25 = vmax.f32 %v6830_v4, 0.0 }
 0x9e7   : > { %6862 = vst [vmem:[%s11530_s25 + $0x50] sm:$0xff] %v6846_v25  ;;  %v6873_v11 = vpack.c.bf16 %v6846_v25, %v6844_v38 }
 0x9e8   : > { %v6573_v16 = vpop.f32.mrf.mxu1 }
 0x9e9   : > { %6891 = vmatpush.bf16.msra.mxu1 %v6873_v11 }
 0x9ef   : > { %7581 = vmatmul.msk.bf16.gmra.mxu3 %vm4423_vm4, %v11396_v27  ;;  %v11521_v27 = vpop.permute.xlu2 %6744 }
 0x9f0   : > { %v6776_v1 = vmul.f32 %v11521_v27, %v6681_v35 }
 0x9f2   : > { %v6824_v62 = vadd.f32 %v11525_v52, %v6776_v1  ;;  %v6576_v1 = vpop.f32.mrf.mxu1 }
 0x9f4   : > { %v6840_v44 = vmax.f32 %v6824_v62, 0.0 }
 0x9f6   : > { %6856 = vst [vmem:[%s11530_s25 + $0x20] sm:$0xff] %v6840_v44 }
 0x9f7   : > { %v6802_v9 = vpop.permute.xlu2 %6801 }
 0x9f8   : > { %v6826_v10 = vadd.f32 %v6802_v9, %v6778_v21  ;;  %v6877_v21 = vld [vmem:[%s11596_s13] sm:$0xff] }
 0x9f9   : > { %6880 = vperm.xlu2 %7721, %v6877_v21  }
 0x9fa   : > { %v6842_v8 = vmax.f32 %v6826_v10, 0.0  ;;  %v6578_v45 = vpop.f32.mrf.mxu1 }
 0x9fc   : > { %6858 = vst [vmem:[%s11530_s25 + $0x30] sm:$0xff] %v6842_v8  ;;  %v6871_v32 = vpack.c.bf16 %v6842_v8, %v6840_v44 }
 0x9fe   : > { %6892 = vmatpush.bf16.msra.mxu1 %v6871_v32 }
 0x9ff   : > { %7582 = vmatmul.msk.bf16.gmra.mxu3 %vm4423_vm4, %v11411_v24  ;;  %v6740_v58 = vpop.permute.xlu2 %6739 }
 0xa00   : > { %v6774_v51 = vmul.f32 %v6740_v58, %v6678_v56 }
 0xa02   : > { %v6822_v24 = vadd.f32 %v6794_v42, %v6774_v51 }
 0xa04   : > { %v6838_v43 = vmax.f32 %v6822_v24, 0.0 }
 0xa06   : > { %v6869_v5 = vpack.c.bf16 %v6838_v43, %v6836_v36  ;;  %6854 = vst [vmem:[%s11530_s25 + $0x10] sm:$0xff] %v6838_v43 }
 0xa08   : > { %6893 = vmatpush.bf16.msra.mxu1 %v6869_v5 }
 0xa0b   : > { %7584 = vmatmul.msk.bf16.vlgmr.msra.gmra.mxu1 %vm4423_vm4, %v6868_v53 }
 0xa0f   : > { %7583 = vmatmul.msk.bf16.gmra.mxu3 %vm4423_vm4, %v11428_v18 }
 0xa62   : > { %v6704_v2 = vpop.f32.mrf.mxu3 }
 0xa63   : > { %v6705_v7 = vadd.f32 %v6704_v2, %v6566_v34 }
 0xa65   : > { %v6773_v59 = vmul.f32 %v6735_v50, %v6705_v7 }
 0xa67   : > { %v6821_v31 = vadd.f32 %v6790_v61, %v6773_v59 }
 0xa69   : > { %v6837_v30 = vmax.f32 %v6821_v31, 0.0 }
 0xa6a   : > { %v6706_v63 = vpop.f32.mrf.mxu3 }
 0xa6b   : > { %6853 = vst [vmem:[%s11530_s25 + $0x8] sm:$0xff] %v6837_v30  ;;  %v6707_v17 = vadd.f32 %v6706_v63, %v6568_v29 }
 0xa6d   : > { %v6775_v40 = vmul.f32 %v6740_v58, %v6707_v17 }
 0xa6f   : > { %v6823_v47 = vadd.f32 %v6794_v42, %v6775_v40 }
 0xa71   : > { %v6839_v57 = vmax.f32 %v6823_v47, 0.0 }
 0xa72   : > { %v6709_v35 = vpop.f32.mrf.mxu3 }
 0xa73   : > { %6855 = vst [vmem:[%s11530_s25 + $0x18] sm:$0xff] %v6839_v57  ;;  %v6710_v18 = vadd.f32 %v6709_v35, %v6571_v46  ;;  %v6870_v61 = vpack.c.bf16 %v6839_v57, %v6837_v30 }
 0xa75   : > { %v6777_v55 = vmul.f32 %v11521_v27, %v6710_v18 }
 0xa77   : > { %v6825_v3 = vadd.f32 %v11525_v52, %v6777_v55 }
 0xa79   : > { %v6841_v33 = vmax.f32 %v6825_v3, 0.0 }
 0xa7a   : > { %v6711_v4 = vpop.f32.mrf.mxu3 }
 0xa7b   : > { %6857 = vst [vmem:[%s11530_s25 + $0x28] sm:$0xff] %v6841_v33  ;;  %v6712_v0 = vadd.f32 %v6711_v4, %v6573_v16 }
 0xa7d   : > { %v6779_v38 = vmul.f32 %v6750_v26, %v6712_v0  ;;  %v6581_v26 = vpop.f32.mrf.mxu1 }
 0xa7f   : > { %v6827_v60 = vadd.f32 %v6802_v9, %v6779_v38 }
 0xa81   : > { %v6843_v25 = vmax.f32 %v6827_v60, 0.0 }
 0xa82   : > { %v6714_v62 = vpop.f32.mrf.mxu3 }
 0xa83   : > { %6859 = vst [vmem:[%s11530_s25 + $0x38] sm:$0xff] %v6843_v25  ;;  %v6715_v54 = vadd.f32 %v6714_v62, %v6576_v1 }
 0xa85   : > { %v6781_v48 = vmul.f32 %v11503_v15, %v6715_v54  ;;  %v6583_v56 = vpop.f32.mrf.mxu1 }
 0xa87   : > { %v6829_v27 = vadd.f32 %v11507_v20, %v6781_v48 }
 0xa89   : > { %v6845_v44 = vmax.f32 %v6829_v27, 0.0 }
 0xa8a   : > { %v6716_v52 = vpop.f32.mrf.mxu3 }
 0xa8b   : > { %6861 = vst [vmem:[%s11530_s25 + $0x48] sm:$0xff] %v6845_v44  ;;  %v6717_v49 = vadd.f32 %v6716_v52, %v6578_v45 }
 0xa8d   : > { %v6783_v14 = vmul.f32 %v11505_v39, %v6717_v49 }
 0xa8f   : > { %v6831_v9 = vadd.f32 %v11509_v12, %v6783_v14 }
 0xa91   : > { %v6847_v15 = vmax.f32 %v6831_v9, 0.0 }
 0xa92   : > { %v6719_v41 = vpop.f32.mrf.mxu3 }
 0xa93   : > { %6863 = vst [vmem:[%s11530_s25 + $0x58] sm:$0xff] %v6847_v15  ;;  %v6720_v20 = vadd.f32 %v6719_v41, %v6581_v26  ;;  %v6874_v51 = vpack.c.bf16 %v6847_v15, %v6845_v44 }
 0xa95   : > { %v6785_v50 = vmul.f32 %v11494_v19, %v6720_v20  ;;  %v6872_v19 = vpack.c.bf16 %v6843_v25, %v6841_v33 }
 0xa97   : > { %v6833_v22 = vadd.f32 %v11516_v37, %v6785_v50  ;;  %v6895_v37 = vpop.f32.mrf.mxu1 }
 0xa99   : > { %v6849_v10 = vmax.f32 %v6833_v22, 0.0 }
 0xa9a   : > { %v6721_v39 = vpop.f32.mrf.mxu3 }
 0xa9b   : > { %6865 = vst [vmem:[%s11530_s25 + $0x68] sm:$0xff] %v6849_v10  ;;  %v6722_v12 = vadd.f32 %v6721_v39, %v6583_v56 }
 0xa9d   : > { %v6787_v8 = vmul.f32 %v11497_v23, %v6722_v12  ;;  %v6881_v23 = vpop.permute.xlu2 %6880 }
 0xa9e   : > { %v6896_v42 = vadd.f32 %v6895_v37, %v6881_v23 }
 0xa9f   : > { %v6835_v13 = vadd.f32 %v11499_v6, %v6787_v8  ;;  %v6897_v6 = vpop.f32.mrf.mxu1 }
 0xaa0   : > { %6912 = vst [vmem:[%s541_s30] sm:$0xff] %v6896_v42 }
 0xaa1   : > { %v6851_v11 = vmax.f32 %v6835_v13, 0.0 }
 0xaa3   : > { %6867 = vst [vmem:[%s11530_s25 + $0x78] sm:$0xff] %v6851_v11  ;;  %v6876_v58 = vpack.c.bf16 %v6851_v11, %v6849_v10 }
 0xaa5   : > { %6903 = vmatpush.bf16.msrb.mxu0 %v6876_v58 }
 0xaa9   : > { %6904 = vmatpush.bf16.msrb.mxu0 %v6874_v51 }
 0xaad   : > { %6905 = vmatpush.bf16.msrb.mxu0 %v6872_v19 }
 0xab1   : > { %6906 = vmatpush.bf16.msrb.mxu0 %v6870_v61 }
 0xab4   : > { %7585 = vmatmul.msk.bf16.vlgmr.msrb.gmra.mxu0 %vm4423_vm4, %v6868_v53 }
 0xb31   : > { %v6908_v28 = vpop.f32.mrf.mxu0 }
 0xb32   : > { %v6909_v24 = vadd.f32 %v6908_v28, %v6881_v23 }
 0xb34   : > { %6913 = vst [vmem:[%s541_s30 + $0x8] sm:$0xff] %v6909_v24 }
 0xb39   : > { %v6910_v32 = vpop.f32.mrf.mxu0 }
 0xb3a PF: > { %s27_s21 = sadd.s32 1, %s7883_s21  }
 0xb3b   : > { %p24_p4 = scmp.ge.s32.totalorder %s27_s21, 4  }
 0xb3d   :  { %26 = sbr.rel (!%p24_p4) target bundleno = 2 (0x2), region = 134 }

</bundles_post_ra>
